<compile_context>
chip_gen: v5e
topology: v5e:2x2
jax: 0.10.0
libtpu: 0.0.40
codegen_flags: <defaults>
</compile_context>

<pallas_src>
import math
import functools

import jax
import jax.numpy as jnp
from jax.experimental import pallas as pl
from jax.experimental.pallas import tpu as pltpu


NP = 128      # padded node count (graphs here are tiny: N <= 128)
LANE = 128    # padded channel count (lane dim)
BSUB = 8      # bias stored as a full (8, LANE) sublane tile

_CP = pltpu.CompilerParams(
    dimension_semantics=("arbitrary",),
    vmem_limit_bytes=32 * 1024 * 1024,
)


# ----------------------------------------------------------------------------
# In-kernel helpers (operate on VALUES already loaded from refs)
# ----------------------------------------------------------------------------

def _diag_mask(n):
    row = jax.lax.broadcasted_iota(jnp.int32, (n, n), 0)
    col = jax.lax.broadcasted_iota(jnp.int32, (n, n), 1)
    return row == col


def _gcn_normalize_and_aggregate(a, x, w, b_row, relu):
    """act( D^-1/2 (A + 2I) D^-1/2 @ (X @ W) + b )   (GCNConv, improved=True).

    The normalization is applied implicitly as row scalings around the
    aggregation matmul, so A_norm is never materialized.  Feature matmuls run
    bf16 -> f32 accumulate; elementwise math stays f32.
    """
    dm = _diag_mask(a.shape[0])
    # add_remaining_self_loops(fill_value=2.0): keep an existing self-loop
    # weight, otherwise insert 2.0 on the diagonal.
    a_hat = jnp.where(jnp.logical_and(dm, a == 0.0), 2.0, a)
    deg = jnp.sum(a_hat, axis=1, keepdims=True)                  # (NP, 1)
    dinv = jnp.where(deg > 0.0, jax.lax.rsqrt(deg), 0.0)         # (NP, 1)

    xw = jnp.dot(x.astype(jnp.bfloat16), w.astype(jnp.bfloat16),
                 preferred_element_type=jnp.float32)             # (NP, LANE)
    agg = jnp.dot(a_hat.astype(jnp.bfloat16),
                  (xw * dinv).astype(jnp.bfloat16),
                  preferred_element_type=jnp.float32)            # (NP, LANE)
    out = agg * dinv + b_row
    if relu:
        out = jnp.maximum(out, 0.0)
    return out


# ----------------------------------------------------------------------------
# Fused kernels
# ----------------------------------------------------------------------------

def _gcn_kernel(relu, a_ref, x_ref, w_ref, b_ref, o_ref):
    o_ref[...] = _gcn_normalize_and_aggregate(
        a_ref[...], x_ref[...], w_ref[...], b_ref[...][0:1, :], relu)


def gcn_conv(a, x, w, b, *, relu):
    """Fused GCNConv(improved=True): norm + X@W + A_norm@XW + bias (+relu)."""
    return pl.pallas_call(
        functools.partial(_gcn_kernel, relu),
        out_shape=jax.ShapeDtypeStruct((NP, LANE), jnp.float32),
        grid=(1,),
        in_specs=[
            pl.BlockSpec((NP, NP), lambda i: (0, 0)),       # raw adjacency
            pl.BlockSpec((NP, LANE), lambda i: (0, 0)),     # X
            pl.BlockSpec((LANE, LANE), lambda i: (0, 0)),   # W
            pl.BlockSpec((BSUB, LANE), lambda i: (0, 0)),   # bias
        ],
        out_specs=pl.BlockSpec((NP, LANE), lambda i: (0, 0)),
        compiler_params=_CP,
    )(a, x, w, b)


def _pool_conv_kernel(a_ref, x_ref, s_ref, st_ref, sc_ref, w_ref, b_ref,
                      a_out_ref, x_out_ref):
    dm = _diag_mask(NP)
    a = a_ref[...]
    # augment_adj: remove self loops -> add self loops (w=1) -> A@A -> remove.
    a1 = jnp.where(dm, 1.0, a)
    a2 = jnp.dot(a1, a1, preferred_element_type=jnp.float32)
    a2 = jnp.where(dm, 0.0, a2)
    # TopKPooling gather as MXU matmuls with the one-hot selection matrix S
    # (rows >= k are zero):  A_new = S A2 S^T ;  x_new = (S x) * score.
    s = s_ref[...]
    a_new = jnp.dot(jnp.dot(s, a2, preferred_element_type=jnp.float32),
                    st_ref[...], preferred_element_type=jnp.float32)
    x_sel = jnp.dot(s.astype(jnp.bfloat16), x_ref[...].astype(jnp.bfloat16),
                    preferred_element_type=jnp.float32) * sc_ref[...]
    # Fused GCNConv + relu on the pooled graph.
    a_out_ref[...] = a_new
    x_out_ref[...] = _gcn_normalize_and_aggregate(
        a_new, x_sel, w_ref[...], b_ref[...][0:1, :], True)


def pool_and_conv(a, x, s, st, score, w, b):
    return pl.pallas_call(
        _pool_conv_kernel,
        out_shape=(jax.ShapeDtypeStruct((NP, NP), jnp.float32),
                   jax.ShapeDtypeStruct((NP, LANE), jnp.float32)),
        grid=(1,),
        in_specs=[
            pl.BlockSpec((NP, NP), lambda i: (0, 0)),       # A (previous level)
            pl.BlockSpec((NP, LANE), lambda i: (0, 0)),     # X (previous level)
            pl.BlockSpec((NP, NP), lambda i: (0, 0)),       # S (one-hot perm)
            pl.BlockSpec((NP, NP), lambda i: (0, 0)),       # S^T
            pl.BlockSpec((NP, 1), lambda i: (0, 0)),        # selected tanh scores
            pl.BlockSpec((LANE, LANE), lambda i: (0, 0)),   # W
            pl.BlockSpec((BSUB, LANE), lambda i: (0, 0)),   # bias
        ],
        out_specs=(pl.BlockSpec((NP, NP), lambda i: (0, 0)),
                   pl.BlockSpec((NP, LANE), lambda i: (0, 0))),
        compiler_params=_CP,
    )(a, x, s, st, score, w, b)


def _up_conv_kernel(relu, a_ref, res_ref, st_ref, xd_ref, w_ref, b_ref, o_ref):
    # up-scatter (up[perm] = x_deep) as an MXU matmul with S^T, + skip add.
    up = jnp.dot(st_ref[...].astype(jnp.bfloat16),
                 xd_ref[...].astype(jnp.bfloat16),
                 preferred_element_type=jnp.float32)
    x_in = res_ref[...] + up
    o_ref[...] = _gcn_normalize_and_aggregate(
        a_ref[...], x_in, w_ref[...], b_ref[...][0:1, :], relu)


def up_scatter_and_conv(a, res, st, x_deep, w, b, *, relu):
    return pl.pallas_call(
        functools.partial(_up_conv_kernel, relu),
        out_shape=jax.ShapeDtypeStruct((NP, LANE), jnp.float32),
        grid=(1,),
        in_specs=[
            pl.BlockSpec((NP, NP), lambda i: (0, 0)),       # A at this level
            pl.BlockSpec((NP, LANE), lambda i: (0, 0)),     # residual features
            pl.BlockSpec((NP, NP), lambda i: (0, 0)),       # S^T (scatter)
            pl.BlockSpec((NP, LANE), lambda i: (0, 0)),     # deeper features
            pl.BlockSpec((LANE, LANE), lambda i: (0, 0)),   # W
            pl.BlockSpec((BSUB, LANE), lambda i: (0, 0)),   # bias
        ],
        out_specs=pl.BlockSpec((NP, LANE), lambda i: (0, 0)),
        compiler_params=_CP,
    )(a, res, st, x_deep, w, b)


# ----------------------------------------------------------------------------
# GraphUNet forward (dense padded adjacency formulation)
# ----------------------------------------------------------------------------

def graph_unet_forward(params, x, edge_index, *, num_nodes, in_channels,
                       out_channels, depth, ratio=0.5):
    n = num_nodes
    assert n <= NP, "toy kernels assume the padded graph fits in one VMEM tile"

    # Dense padded adjacency A[dst, src] (edge_weight = 1) and padded features.
    # Padding happens once here; everything stays padded until the final slice.
    a = jnp.zeros((NP, NP), jnp.float32).at[edge_index[1], edge_index[0]].add(1.0)
    xp = jnp.zeros((NP, LANE), jnp.float32).at[:n, :in_channels].set(x)

    xp = gcn_conv(a, xp, params["down_w"][0], params["down_b"][0], relu=True)

    xs, adjs, sts = [xp], [a], []
    n_act = n
    for lvl in range(1, depth + 1):
        k = int(math.ceil(ratio * n_act))
        # TopK scoring + selection (top_k stays in XLA); the permutation enters
        # the fused kernel as a one-hot matrix so gather/scatter run on the MXU.
        score = jnp.tanh((xp @ params["pool_p"][lvl - 1])
                         / params["pool_pnorm"][lvl - 1])             # (NP,)
        score = jnp.where(jnp.arange(NP) < n_act, score, -jnp.inf)    # mask pad
        vals, perm = jax.lax.top_k(score, k)
        s = jnp.zeros((NP, NP), jnp.float32).at[jnp.arange(k), perm].set(1.0)
        st = s.T
        sc = jnp.zeros((NP, 1), jnp.float32).at[:k, 0].set(vals)

        a, xp = pool_and_conv(a, xp, s, st, sc,
                              params["down_w"][lvl], params["down_b"][lvl])
        if lvl < depth:
            xs.append(xp)
            adjs.append(a)
        sts.append(st)
        n_act = k

    for i in range(depth):
        j = depth - 1 - i
        xp = up_scatter_and_conv(adjs[j], xs[j], sts[j], xp,
                                 params["up_w"][i], params["up_b"][i],
                                 relu=(i < depth - 1))

    return xp[:n, :out_channels]


# ----------------------------------------------------------------------------
# Parameter init (GCNConv: glorot weight, zero bias; TopKPooling: score vector)
# Parameters are padded ONCE here so the hot path never pads.
# ----------------------------------------------------------------------------

def init_params(key, in_channels, hidden, out_channels, depth):
    def glorot(k, shape):
        limit = (6.0 / (shape[0] + shape[1])) ** 0.5
        return jax.random.uniform(k, shape, jnp.float32, -limit, limit)

    def pad_w(w):
        out = jnp.zeros((LANE, LANE), jnp.float32)
        return out.at[: w.shape[0], : w.shape[1]].set(w)

    def pad_b(b):
        out = jnp.zeros((BSUB, LANE), jnp.float32)
        return out.at[:, : b.shape[0]].set(b)     # broadcast across sublanes

    def pad_p(p):
        out = jnp.zeros((LANE,), jnp.float32)
        return out.at[: p.shape[0]].set(p)

    params = {"down_w": [], "down_b": [], "pool_p": [], "pool_pnorm": [],
              "up_w": [], "up_b": []}
    k = key
    for d in [(in_channels, hidden)] + [(hidden, hidden)] * depth:
        k, k1 = jax.random.split(k)
        params["down_w"].append(pad_w(glorot(k1, d)))
        params["down_b"].append(pad_b(jnp.zeros((d[1],), jnp.float32)))
    for _ in range(depth):
        k, k1 = jax.random.split(k)
        p = jax.random.uniform(k1, (hidden,), jnp.float32, -1.0, 1.0)
        params["pool_p"].append(pad_p(p))
        params["pool_pnorm"].append(jnp.linalg.norm(p))
    for d in [(hidden, hidden)] * (depth - 1) + [(hidden, out_channels)]:
        k, k1 = jax.random.split(k)
        params["up_w"].append(pad_w(glorot(k1, d)))
        params["up_b"].append(pad_b(jnp.zeros((d[1],), jnp.float32)))
    return params


# ----------------------------------------------------------------------------
# Main
# ----------------------------------------------------------------------------

if __name__ == "__main__":
    IN_CH, HIDDEN, OUT_CH, DEPTH = 4, 16, 8, 2
    N = 16

    key = jax.random.PRNGKey(0)
    kx, kp = jax.random.split(key)

    # node features
    x = jax.random.normal(kx, (N, IN_CH), jnp.float32)

    # undirected ring + chords, no self loops
    src, dst = [], []
    for i in range(N):
        src += [i, (i + 1) % N]
        dst += [(i + 1) % N, i]
    for i in range(N // 2):
        src += [i, i + N // 2]
        dst += [i + N // 2, i]
    edge_index = jnp.array([src, dst], dtype=jnp.int32)   # (2, 48)

    params = init_params(kp, IN_CH, HIDDEN, OUT_CH, DEPTH)

    fwd = jax.jit(functools.partial(
        graph_unet_forward, num_nodes=N, in_channels=IN_CH,
        out_channels=OUT_CH, depth=DEPTH, ratio=0.5))
    out = fwd(params, x, edge_index)
    jax.block_until_ready(out)

    assert out.shape == (N, OUT_CH)
    assert bool(jnp.all(jnp.isfinite(out)))
    print("KERNEL_OK")
</pallas_src>

<mosaic_0001>
module attributes {stable_mosaic.version = 11 : i64} {
  func.func @_gcn_kernel(%arg0: i32, %arg1: memref<128x128xf32, #tpu.memory_space<vmem>>, %arg2: memref<128x128xf32, #tpu.memory_space<vmem>>, %arg3: memref<128x128xf32, #tpu.memory_space<vmem>>, %arg4: memref<8x128xf32, #tpu.memory_space<vmem>>, %arg5: memref<128x128xf32, #tpu.memory_space<vmem>>) attributes {dimension_semantics = [#tpu.dimension_semantics<arbitrary>], iteration_bounds = array<i64: 1>, scalar_prefetch = 0 : i64, scratch_operands = 0 : i64, tpu.core_type = #tpu.core_type<tc>, window_params = [{pipeline_mode = #tpu.pipeline_mode<synchronous>, transform_indices = @transform_0, window_bounds = array<i64: 128, 128>}, {pipeline_mode = #tpu.pipeline_mode<synchronous>, transform_indices = @transform_1, window_bounds = array<i64: 128, 128>}, {pipeline_mode = #tpu.pipeline_mode<synchronous>, transform_indices = @transform_2, window_bounds = array<i64: 128, 128>}, {pipeline_mode = #tpu.pipeline_mode<synchronous>, transform_indices = @transform_3, window_bounds = array<i64: 8, 128>}, {pipeline_mode = #tpu.pipeline_mode<synchronous>, transform_indices = @transform_4, window_bounds = array<i64: 128, 128>}]} {
    %c0 = arith.constant 0 : index
    %c0_0 = arith.constant 0 : index
    %0 = vector.load %arg1[%c0, %c0_0] : memref<128x128xf32, #tpu.memory_space<vmem>>, vector<128x128xf32>
    %c0_1 = arith.constant 0 : index
    %c0_2 = arith.constant 0 : index
    %1 = vector.load %arg2[%c0_1, %c0_2] : memref<128x128xf32, #tpu.memory_space<vmem>>, vector<128x128xf32>
    %c0_3 = arith.constant 0 : index
    %c0_4 = arith.constant 0 : index
    %2 = vector.load %arg3[%c0_3, %c0_4] : memref<128x128xf32, #tpu.memory_space<vmem>>, vector<128x128xf32>
    %c0_5 = arith.constant 0 : index
    %c0_6 = arith.constant 0 : index
    %3 = vector.load %arg4[%c0_5, %c0_6] : memref<8x128xf32, #tpu.memory_space<vmem>>, vector<8x128xf32>
    %4 = vector.extract_strided_slice %3 {offsets = [0, 0], sizes = [1, 128], strides = [1, 1]} : vector<8x128xf32> to vector<1x128xf32>
    %5 = tpu.iota {dimensions = array<i32: 0>} : vector<128x128xi32>
    %6 = tpu.iota {dimensions = array<i32: 1>} : vector<128x128xi32>
    %7 = arith.cmpi eq, %5, %6 : vector<128x128xi32>
    %cst = arith.constant 0.000000e+00 : f32
    %8 = vector.broadcast %cst : f32 to vector<128x128xf32>
    %9 = arith.cmpf oeq, %0, %8 : vector<128x128xf32>
    %10 = arith.andi %7, %9 : vector<128x128xi1>
    %cst_7 = arith.constant 2.000000e+00 : f32
    %11 = vector.broadcast %cst_7 : f32 to vector<128x128xf32>
    %12 = arith.select %10, %11, %0 : vector<128x128xi1>, vector<128x128xf32>
    %cst_8 = arith.constant dense<0.000000e+00> : vector<128xf32>
    %13 = vector.multi_reduction <add>, %12, %cst_8 [1] : vector<128x128xf32> to vector<128xf32>
    %14 = vector.shape_cast %13 : vector<128xf32> to vector<128x1xf32>
    %cst_9 = arith.constant 0.000000e+00 : f32
    %15 = vector.broadcast %cst_9 : f32 to vector<128x1xf32>
    %16 = arith.cmpf ogt, %14, %15 : vector<128x1xf32>
    %17 = math.rsqrt %14 : vector<128x1xf32>
    %cst_10 = arith.constant 0.000000e+00 : f32
    %18 = vector.broadcast %cst_10 : f32 to vector<128x1xf32>
    %19 = arith.select %16, %17, %18 : vector<128x1xi1>, vector<128x1xf32>
    %20 = arith.truncf %1 : vector<128x128xf32> to vector<128x128xbf16>
    %21 = arith.truncf %2 : vector<128x128xf32> to vector<128x128xbf16>
    %cst_11 = arith.constant dense<0.000000e+00> : vector<128x128xf32>
    %22 = tpu.matmul %20, %21, %cst_11 {dimension_numbers = #tpu.dot_dimension_numbers<[1], [0], [0], [1], [0, 0, 1, 1], [], []>} : vector<128x128xbf16>, vector<128x128xbf16>, vector<128x128xf32> -> vector<128x128xf32>
    %23 = arith.truncf %12 : vector<128x128xf32> to vector<128x128xbf16>
    %24 = vector.broadcast %19 : vector<128x1xf32> to vector<128x128xf32>
    %25 = arith.mulf %22, %24 : vector<128x128xf32>
    %26 = arith.truncf %25 : vector<128x128xf32> to vector<128x128xbf16>
    %cst_12 = arith.constant dense<0.000000e+00> : vector<128x128xf32>
    %27 = tpu.matmul %23, %26, %cst_12 {dimension_numbers = #tpu.dot_dimension_numbers<[1], [0], [0], [1], [0, 0, 1, 1], [], []>} : vector<128x128xbf16>, vector<128x128xbf16>, vector<128x128xf32> -> vector<128x128xf32>
    %28 = vector.broadcast %19 : vector<128x1xf32> to vector<128x128xf32>
    %29 = arith.mulf %27, %28 : vector<128x128xf32>
    %30 = vector.broadcast %4 : vector<1x128xf32> to vector<128x128xf32>
    %31 = arith.addf %29, %30 : vector<128x128xf32>
    %cst_13 = arith.constant 0.000000e+00 : f32
    %32 = vector.broadcast %cst_13 : f32 to vector<128x128xf32>
    %33 = arith.maximumf %31, %32 : vector<128x128xf32>
    %c0_14 = arith.constant 0 : index
    %c0_15 = arith.constant 0 : index
    %34 = vector.load %arg5[%c0_14, %c0_15] : memref<128x128xf32, #tpu.memory_space<vmem>>, vector<128x128xf32>
    tpu.vector_store %arg5[%c0_14, %c0_15], %33 {strides = array<i32>} : memref<128x128xf32, #tpu.memory_space<vmem>>, vector<128x128xf32>,
    return
  }
  func.func @transform_0(%arg0: i32) -> (i32, i32) {
    %c0_i32 = arith.constant 0 : i32
    %c0_i32_0 = arith.constant 0 : i32
    %c0_i32_1 = arith.constant 0 : i32
    return %c0_i32, %c0_i32_0 : i32, i32
  }
  func.func @transform_1(%arg0: i32) -> (i32, i32) {
    %c0_i32 = arith.constant 0 : i32
    %c0_i32_0 = arith.constant 0 : i32
    %c0_i32_1 = arith.constant 0 : i32
    return %c0_i32, %c0_i32_0 : i32, i32
  }
  func.func @transform_2(%arg0: i32) -> (i32, i32) {
    %c0_i32 = arith.constant 0 : i32
    %c0_i32_0 = arith.constant 0 : i32
    %c0_i32_1 = arith.constant 0 : i32
    return %c0_i32, %c0_i32_0 : i32, i32
  }
  func.func @transform_3(%arg0: i32) -> (i32, i32) {
    %c0_i32 = arith.constant 0 : i32
    %c0_i32_0 = arith.constant 0 : i32
    %c0_i32_1 = arith.constant 0 : i32
    return %c0_i32, %c0_i32_0 : i32, i32
  }
  func.func @transform_4(%arg0: i32) -> (i32, i32) {
    %c0_i32 = arith.constant 0 : i32
    %c0_i32_0 = arith.constant 0 : i32
    %c0_i32_1 = arith.constant 0 : i32
    return %c0_i32, %c0_i32_0 : i32, i32
  }
}

module attributes {stable_mosaic.version = 11 : i64} {
  func.func @_pool_conv_kernel(%arg0: i32, %arg1: memref<128x128xf32, #tpu.memory_space<vmem>>, %arg2: memref<128x128xf32, #tpu.memory_space<vmem>>, %arg3: memref<128x128xf32, #tpu.memory_space<vmem>>, %arg4: memref<128x128xf32, #tpu.memory_space<vmem>>, %arg5: memref<128x1xf32, #tpu.memory_space<vmem>>, %arg6: memref<128x128xf32, #tpu.memory_space<vmem>>, %arg7: memref<8x128xf32, #tpu.memory_space<vmem>>, %arg8: memref<128x128xf32, #tpu.memory_space<vmem>>, %arg9: memref<128x128xf32, #tpu.memory_space<vmem>>) attributes {dimension_semantics = [#tpu.dimension_semantics<arbitrary>], iteration_bounds = array<i64: 1>, scalar_prefetch = 0 : i64, scratch_operands = 0 : i64, tpu.core_type = #tpu.core_type<tc>, window_params = [{pipeline_mode = #tpu.pipeline_mode<synchronous>, transform_indices = @transform_0, window_bounds = array<i64: 128, 128>}, {pipeline_mode = #tpu.pipeline_mode<synchronous>, transform_indices = @transform_1, window_bounds = array<i64: 128, 128>}, {pipeline_mode = #tpu.pipeline_mode<synchronous>, transform_indices = @transform_2, window_bounds = array<i64: 128, 128>}, {pipeline_mode = #tpu.pipeline_mode<synchronous>, transform_indices = @transform_3, window_bounds = array<i64: 128, 128>}, {pipeline_mode = #tpu.pipeline_mode<synchronous>, transform_indices = @transform_4, window_bounds = array<i64: 128, 1>}, {pipeline_mode = #tpu.pipeline_mode<synchronous>, transform_indices = @transform_5, window_bounds = array<i64: 128, 128>}, {pipeline_mode = #tpu.pipeline_mode<synchronous>, transform_indices = @transform_6, window_bounds = array<i64: 8, 128>}, {pipeline_mode = #tpu.pipeline_mode<synchronous>, transform_indices = @transform_7, window_bounds = array<i64: 128, 128>}, {pipeline_mode = #tpu.pipeline_mode<synchronous>, transform_indices = @transform_8, window_bounds = array<i64: 128, 128>}]} {
    %0 = tpu.iota {dimensions = array<i32: 0>} : vector<128x128xi32>
    %1 = tpu.iota {dimensions = array<i32: 1>} : vector<128x128xi32>
    %2 = arith.cmpi eq, %0, %1 : vector<128x128xi32>
    %c0 = arith.constant 0 : index
    %c0_0 = arith.constant 0 : index
    %3 = vector.load %arg1[%c0, %c0_0] : memref<128x128xf32, #tpu.memory_space<vmem>>, vector<128x128xf32>
    %cst = arith.constant 1.000000e+00 : f32
    %4 = vector.broadcast %cst : f32 to vector<128x128xf32>
    %5 = arith.select %2, %4, %3 : vector<128x128xi1>, vector<128x128xf32>
    %cst_1 = arith.constant dense<0.000000e+00> : vector<128x128xf32>
    %6 = tpu.matmul %5, %5, %cst_1 {dimension_numbers = #tpu.dot_dimension_numbers<[1], [0], [0], [1], [0, 0, 1, 1], [], []>} : vector<128x128xf32>, vector<128x128xf32>, vector<128x128xf32> -> vector<128x128xf32>
    %cst_2 = arith.constant 0.000000e+00 : f32
    %7 = vector.broadcast %cst_2 : f32 to vector<128x128xf32>
    %8 = arith.select %2, %7, %6 : vector<128x128xi1>, vector<128x128xf32>
    %c0_3 = arith.constant 0 : index
    %c0_4 = arith.constant 0 : index
    %9 = vector.load %arg3[%c0_3, %c0_4] : memref<128x128xf32, #tpu.memory_space<vmem>>, vector<128x128xf32>
    %cst_5 = arith.constant dense<0.000000e+00> : vector<128x128xf32>
    %10 = tpu.matmul %9, %8, %cst_5 {dimension_numbers = #tpu.dot_dimension_numbers<[1], [0], [0], [1], [0, 0, 1, 1], [], []>} : vector<128x128xf32>, vector<128x128xf32>, vector<128x128xf32> -> vector<128x128xf32>
    %c0_6 = arith.constant 0 : index
    %c0_7 = arith.constant 0 : index
    %11 = vector.load %arg4[%c0_6, %c0_7] : memref<128x128xf32, #tpu.memory_space<vmem>>, vector<128x128xf32>
    %cst_8 = arith.constant dense<0.000000e+00> : vector<128x128xf32>
    %12 = tpu.matmul %10, %11, %cst_8 {dimension_numbers = #tpu.dot_dimension_numbers<[1], [0], [0], [1], [0, 0, 1, 1], [], []>} : vector<128x128xf32>, vector<128x128xf32>, vector<128x128xf32> -> vector<128x128xf32>
    %13 = arith.truncf %9 : vector<128x128xf32> to vector<128x128xbf16>
    %c0_9 = arith.constant 0 : index
    %c0_10 = arith.constant 0 : index
    %14 = vector.load %arg2[%c0_9, %c0_10] : memref<128x128xf32, #tpu.memory_space<vmem>>, vector<128x128xf32>
    %15 = arith.truncf %14 : vector<128x128xf32> to vector<128x128xbf16>
    %cst_11 = arith.constant dense<0.000000e+00> : vector<128x128xf32>
    %16 = tpu.matmul %13, %15, %cst_11 {dimension_numbers = #tpu.dot_dimension_numbers<[1], [0], [0], [1], [0, 0, 1, 1], [], []>} : vector<128x128xbf16>, vector<128x128xbf16>, vector<128x128xf32> -> vector<128x128xf32>
    %c0_12 = arith.constant 0 : index
    %c0_13 = arith.constant 0 : index
    %17 = vector.load %arg5[%c0_12, %c0_13] : memref<128x1xf32, #tpu.memory_space<vmem>>, vector<128x1xf32>
    %18 = vector.broadcast %17 : vector<128x1xf32> to vector<128x128xf32>
    %19 = arith.mulf %16, %18 : vector<128x128xf32>
    %c0_14 = arith.constant 0 : index
    %c0_15 = arith.constant 0 : index
    %20 = vector.load %arg8[%c0_14, %c0_15] : memref<128x128xf32, #tpu.memory_space<vmem>>, vector<128x128xf32>
    tpu.vector_store %arg8[%c0_14, %c0_15], %12 {strides = array<i32>} : memref<128x128xf32, #tpu.memory_space<vmem>>, vector<128x128xf32>,
    %c0_16 = arith.constant 0 : index
    %c0_17 = arith.constant 0 : index
    %21 = vector.load %arg6[%c0_16, %c0_17] : memref<128x128xf32, #tpu.memory_space<vmem>>, vector<128x128xf32>
    %c0_18 = arith.constant 0 : index
    %c0_19 = arith.constant 0 : index
    %22 = vector.load %arg7[%c0_18, %c0_19] : memref<8x128xf32, #tpu.memory_space<vmem>>, vector<8x128xf32>
    %23 = vector.extract_strided_slice %22 {offsets = [0, 0], sizes = [1, 128], strides = [1, 1]} : vector<8x128xf32> to vector<1x128xf32>
    %24 = tpu.iota {dimensions = array<i32: 0>} : vector<128x128xi32>
    %25 = tpu.iota {dimensions = array<i32: 1>} : vector<128x128xi32>
    %26 = arith.cmpi eq, %24, %25 : vector<128x128xi32>
    %cst_20 = arith.constant 0.000000e+00 : f32
    %27 = vector.broadcast %cst_20 : f32 to vector<128x128xf32>
    %28 = arith.cmpf oeq, %12, %27 : vector<128x128xf32>
    %29 = arith.andi %26, %28 : vector<128x128xi1>
    %cst_21 = arith.constant 2.000000e+00 : f32
    %30 = vector.broadcast %cst_21 : f32 to vector<128x128xf32>
    %31 = arith.select %29, %30, %12 : vector<128x128xi1>, vector<128x128xf32>
    %cst_22 = arith.constant dense<0.000000e+00> : vector<128xf32>
    %32 = vector.multi_reduction <add>, %31, %cst_22 [1] : vector<128x128xf32> to vector<128xf32>
    %33 = vector.shape_cast %32 : vector<128xf32> to vector<128x1xf32>
    %cst_23 = arith.constant 0.000000e+00 : f32
    %34 = vector.broadcast %cst_23 : f32 to vector<128x1xf32>
    %35 = arith.cmpf ogt, %33, %34 : vector<128x1xf32>
    %36 = math.rsqrt %33 : vector<128x1xf32>
    %cst_24 = arith.constant 0.000000e+00 : f32
    %37 = vector.broadcast %cst_24 : f32 to vector<128x1xf32>
    %38 = arith.select %35, %36, %37 : vector<128x1xi1>, vector<128x1xf32>
    %39 = arith.truncf %19 : vector<128x128xf32> to vector<128x128xbf16>
    %40 = arith.truncf %21 : vector<128x128xf32> to vector<128x128xbf16>
    %cst_25 = arith.constant dense<0.000000e+00> : vector<128x128xf32>
    %41 = tpu.matmul %39, %40, %cst_25 {dimension_numbers = #tpu.dot_dimension_numbers<[1], [0], [0], [1], [0, 0, 1, 1], [], []>} : vector<128x128xbf16>, vector<128x128xbf16>, vector<128x128xf32> -> vector<128x128xf32>
    %42 = arith.truncf %31 : vector<128x128xf32> to vector<128x128xbf16>
    %43 = vector.broadcast %38 : vector<128x1xf32> to vector<128x128xf32>
    %44 = arith.mulf %41, %43 : vector<128x128xf32>
    %45 = arith.truncf %44 : vector<128x128xf32> to vector<128x128xbf16>
    %cst_26 = arith.constant dense<0.000000e+00> : vector<128x128xf32>
    %46 = tpu.matmul %42, %45, %cst_26 {dimension_numbers = #tpu.dot_dimension_numbers<[1], [0], [0], [1], [0, 0, 1, 1], [], []>} : vector<128x128xbf16>, vector<128x128xbf16>, vector<128x128xf32> -> vector<128x128xf32>
    %47 = vector.broadcast %38 : vector<128x1xf32> to vector<128x128xf32>
    %48 = arith.mulf %46, %47 : vector<128x128xf32>
    %49 = vector.broadcast %23 : vector<1x128xf32> to vector<128x128xf32>
    %50 = arith.addf %48, %49 : vector<128x128xf32>
    %cst_27 = arith.constant 0.000000e+00 : f32
    %51 = vector.broadcast %cst_27 : f32 to vector<128x128xf32>
    %52 = arith.maximumf %50, %51 : vector<128x128xf32>
    %c0_28 = arith.constant 0 : index
    %c0_29 = arith.constant 0 : index
    %53 = vector.load %arg9[%c0_28, %c0_29] : memref<128x128xf32, #tpu.memory_space<vmem>>, vector<128x128xf32>
    tpu.vector_store %arg9[%c0_28, %c0_29], %52 {strides = array<i32>} : memref<128x128xf32, #tpu.memory_space<vmem>>, vector<128x128xf32>,
    return
  }
  func.func @transform_0(%arg0: i32) -> (i32, i32) {
    %c0_i32 = arith.constant 0 : i32
    %c0_i32_0 = arith.constant 0 : i32
    %c0_i32_1 = arith.constant 0 : i32
    return %c0_i32, %c0_i32_0 : i32, i32
  }
  func.func @transform_1(%arg0: i32) -> (i32, i32) {
    %c0_i32 = arith.constant 0 : i32
    %c0_i32_0 = arith.constant 0 : i32
    %c0_i32_1 = arith.constant 0 : i32
    return %c0_i32, %c0_i32_0 : i32, i32
  }
  func.func @transform_2(%arg0: i32) -> (i32, i32) {
    %c0_i32 = arith.constant 0 : i32
    %c0_i32_0 = arith.constant 0 : i32
    %c0_i32_1 = arith.constant 0 : i32
    return %c0_i32, %c0_i32_0 : i32, i32
  }
  func.func @transform_3(%arg0: i32) -> (i32, i32) {
    %c0_i32 = arith.constant 0 : i32
    %c0_i32_0 = arith.constant 0 : i32
    %c0_i32_1 = arith.constant 0 : i32
    return %c0_i32, %c0_i32_0 : i32, i32
  }
  func.func @transform_4(%arg0: i32) -> (i32, i32) {
    %c0_i32 = arith.constant 0 : i32
    %c0_i32_0 = arith.constant 0 : i32
    %c0_i32_1 = arith.constant 0 : i32
    return %c0_i32, %c0_i32_0 : i32, i32
  }
  func.func @transform_5(%arg0: i32) -> (i32, i32) {
    %c0_i32 = arith.constant 0 : i32
    %c0_i32_0 = arith.constant 0 : i32
    %c0_i32_1 = arith.constant 0 : i32
    return %c0_i32, %c0_i32_0 : i32, i32
  }
  func.func @transform_6(%arg0: i32) -> (i32, i32) {
    %c0_i32 = arith.constant 0 : i32
    %c0_i32_0 = arith.constant 0 : i32
    %c0_i32_1 = arith.constant 0 : i32
    return %c0_i32, %c0_i32_0 : i32, i32
  }
  func.func @transform_7(%arg0: i32) -> (i32, i32) {
    %c0_i32 = arith.constant 0 : i32
    %c0_i32_0 = arith.constant 0 : i32
    %c0_i32_1 = arith.constant 0 : i32
    return %c0_i32, %c0_i32_0 : i32, i32
  }
  func.func @transform_8(%arg0: i32) -> (i32, i32) {
    %c0_i32 = arith.constant 0 : i32
    %c0_i32_0 = arith.constant 0 : i32
    %c0_i32_1 = arith.constant 0 : i32
    return %c0_i32, %c0_i32_0 : i32, i32
  }
}

module attributes {stable_mosaic.version = 11 : i64} {
  func.func @_pool_conv_kernel(%arg0: i32, %arg1: memref<128x128xf32, #tpu.memory_space<vmem>>, %arg2: memref<128x128xf32, #tpu.memory_space<vmem>>, %arg3: memref<128x128xf32, #tpu.memory_space<vmem>>, %arg4: memref<128x128xf32, #tpu.memory_space<vmem>>, %arg5: memref<128x1xf32, #tpu.memory_space<vmem>>, %arg6: memref<128x128xf32, #tpu.memory_space<vmem>>, %arg7: memref<8x128xf32, #tpu.memory_space<vmem>>, %arg8: memref<128x128xf32, #tpu.memory_space<vmem>>, %arg9: memref<128x128xf32, #tpu.memory_space<vmem>>) attributes {dimension_semantics = [#tpu.dimension_semantics<arbitrary>], iteration_bounds = array<i64: 1>, scalar_prefetch = 0 : i64, scratch_operands = 0 : i64, tpu.core_type = #tpu.core_type<tc>, window_params = [{pipeline_mode = #tpu.pipeline_mode<synchronous>, transform_indices = @transform_0, window_bounds = array<i64: 128, 128>}, {pipeline_mode = #tpu.pipeline_mode<synchronous>, transform_indices = @transform_1, window_bounds = array<i64: 128, 128>}, {pipeline_mode = #tpu.pipeline_mode<synchronous>, transform_indices = @transform_2, window_bounds = array<i64: 128, 128>}, {pipeline_mode = #tpu.pipeline_mode<synchronous>, transform_indices = @transform_3, window_bounds = array<i64: 128, 128>}, {pipeline_mode = #tpu.pipeline_mode<synchronous>, transform_indices = @transform_4, window_bounds = array<i64: 128, 1>}, {pipeline_mode = #tpu.pipeline_mode<synchronous>, transform_indices = @transform_5, window_bounds = array<i64: 128, 128>}, {pipeline_mode = #tpu.pipeline_mode<synchronous>, transform_indices = @transform_6, window_bounds = array<i64: 8, 128>}, {pipeline_mode = #tpu.pipeline_mode<synchronous>, transform_indices = @transform_7, window_bounds = array<i64: 128, 128>}, {pipeline_mode = #tpu.pipeline_mode<synchronous>, transform_indices = @transform_8, window_bounds = array<i64: 128, 128>}]} {
    %0 = tpu.iota {dimensions = array<i32: 0>} : vector<128x128xi32>
    %1 = tpu.iota {dimensions = array<i32: 1>} : vector<128x128xi32>
    %2 = arith.cmpi eq, %0, %1 : vector<128x128xi32>
    %c0 = arith.constant 0 : index
    %c0_0 = arith.constant 0 : index
    %3 = vector.load %arg1[%c0, %c0_0] : memref<128x128xf32, #tpu.memory_space<vmem>>, vector<128x128xf32>
    %cst = arith.constant 1.000000e+00 : f32
    %4 = vector.broadcast %cst : f32 to vector<128x128xf32>
    %5 = arith.select %2, %4, %3 : vector<128x128xi1>, vector<128x128xf32>
    %cst_1 = arith.constant dense<0.000000e+00> : vector<128x128xf32>
    %6 = tpu.matmul %5, %5, %cst_1 {dimension_numbers = #tpu.dot_dimension_numbers<[1], [0], [0], [1], [0, 0, 1, 1], [], []>} : vector<128x128xf32>, vector<128x128xf32>, vector<128x128xf32> -> vector<128x128xf32>
    %cst_2 = arith.constant 0.000000e+00 : f32
    %7 = vector.broadcast %cst_2 : f32 to vector<128x128xf32>
    %8 = arith.select %2, %7, %6 : vector<128x128xi1>, vector<128x128xf32>
    %c0_3 = arith.constant 0 : index
    %c0_4 = arith.constant 0 : index
    %9 = vector.load %arg3[%c0_3, %c0_4] : memref<128x128xf32, #tpu.memory_space<vmem>>, vector<128x128xf32>
    %cst_5 = arith.constant dense<0.000000e+00> : vector<128x128xf32>
    %10 = tpu.matmul %9, %8, %cst_5 {dimension_numbers = #tpu.dot_dimension_numbers<[1], [0], [0], [1], [0, 0, 1, 1], [], []>} : vector<128x128xf32>, vector<128x128xf32>, vector<128x128xf32> -> vector<128x128xf32>
    %c0_6 = arith.constant 0 : index
    %c0_7 = arith.constant 0 : index
    %11 = vector.load %arg4[%c0_6, %c0_7] : memref<128x128xf32, #tpu.memory_space<vmem>>, vector<128x128xf32>
    %cst_8 = arith.constant dense<0.000000e+00> : vector<128x128xf32>
    %12 = tpu.matmul %10, %11, %cst_8 {dimension_numbers = #tpu.dot_dimension_numbers<[1], [0], [0], [1], [0, 0, 1, 1], [], []>} : vector<128x128xf32>, vector<128x128xf32>, vector<128x128xf32> -> vector<128x128xf32>
    %13 = arith.truncf %9 : vector<128x128xf32> to vector<128x128xbf16>
    %c0_9 = arith.constant 0 : index
    %c0_10 = arith.constant 0 : index
    %14 = vector.load %arg2[%c0_9, %c0_10] : memref<128x128xf32, #tpu.memory_space<vmem>>, vector<128x128xf32>
    %15 = arith.truncf %14 : vector<128x128xf32> to vector<128x128xbf16>
    %cst_11 = arith.constant dense<0.000000e+00> : vector<128x128xf32>
    %16 = tpu.matmul %13, %15, %cst_11 {dimension_numbers = #tpu.dot_dimension_numbers<[1], [0], [0], [1], [0, 0, 1, 1], [], []>} : vector<128x128xbf16>, vector<128x128xbf16>, vector<128x128xf32> -> vector<128x128xf32>
    %c0_12 = arith.constant 0 : index
    %c0_13 = arith.constant 0 : index
    %17 = vector.load %arg5[%c0_12, %c0_13] : memref<128x1xf32, #tpu.memory_space<vmem>>, vector<128x1xf32>
    %18 = vector.broadcast %17 : vector<128x1xf32> to vector<128x128xf32>
    %19 = arith.mulf %16, %18 : vector<128x128xf32>
    %c0_14 = arith.constant 0 : index
    %c0_15 = arith.constant 0 : index
    %20 = vector.load %arg8[%c0_14, %c0_15] : memref<128x128xf32, #tpu.memory_space<vmem>>, vector<128x128xf32>
    tpu.vector_store %arg8[%c0_14, %c0_15], %12 {strides = array<i32>} : memref<128x128xf32, #tpu.memory_space<vmem>>, vector<128x128xf32>,
    %c0_16 = arith.constant 0 : index
    %c0_17 = arith.constant 0 : index
    %21 = vector.load %arg6[%c0_16, %c0_17] : memref<128x128xf32, #tpu.memory_space<vmem>>, vector<128x128xf32>
    %c0_18 = arith.constant 0 : index
    %c0_19 = arith.constant 0 : index
    %22 = vector.load %arg7[%c0_18, %c0_19] : memref<8x128xf32, #tpu.memory_space<vmem>>, vector<8x128xf32>
    %23 = vector.extract_strided_slice %22 {offsets = [0, 0], sizes = [1, 128], strides = [1, 1]} : vector<8x128xf32> to vector<1x128xf32>
    %24 = tpu.iota {dimensions = array<i32: 0>} : vector<128x128xi32>
    %25 = tpu.iota {dimensions = array<i32: 1>} : vector<128x128xi32>
    %26 = arith.cmpi eq, %24, %25 : vector<128x128xi32>
    %cst_20 = arith.constant 0.000000e+00 : f32
    %27 = vector.broadcast %cst_20 : f32 to vector<128x128xf32>
    %28 = arith.cmpf oeq, %12, %27 : vector<128x128xf32>
    %29 = arith.andi %26, %28 : vector<128x128xi1>
    %cst_21 = arith.constant 2.000000e+00 : f32
    %30 = vector.broadcast %cst_21 : f32 to vector<128x128xf32>
    %31 = arith.select %29, %30, %12 : vector<128x128xi1>, vector<128x128xf32>
    %cst_22 = arith.constant dense<0.000000e+00> : vector<128xf32>
    %32 = vector.multi_reduction <add>, %31, %cst_22 [1] : vector<128x128xf32> to vector<128xf32>
    %33 = vector.shape_cast %32 : vector<128xf32> to vector<128x1xf32>
    %cst_23 = arith.constant 0.000000e+00 : f32
    %34 = vector.broadcast %cst_23 : f32 to vector<128x1xf32>
    %35 = arith.cmpf ogt, %33, %34 : vector<128x1xf32>
    %36 = math.rsqrt %33 : vector<128x1xf32>
    %cst_24 = arith.constant 0.000000e+00 : f32
    %37 = vector.broadcast %cst_24 : f32 to vector<128x1xf32>
    %38 = arith.select %35, %36, %37 : vector<128x1xi1>, vector<128x1xf32>
    %39 = arith.truncf %19 : vector<128x128xf32> to vector<128x128xbf16>
    %40 = arith.truncf %21 : vector<128x128xf32> to vector<128x128xbf16>
    %cst_25 = arith.constant dense<0.000000e+00> : vector<128x128xf32>
    %41 = tpu.matmul %39, %40, %cst_25 {dimension_numbers = #tpu.dot_dimension_numbers<[1], [0], [0], [1], [0, 0, 1, 1], [], []>} : vector<128x128xbf16>, vector<128x128xbf16>, vector<128x128xf32> -> vector<128x128xf32>
    %42 = arith.truncf %31 : vector<128x128xf32> to vector<128x128xbf16>
    %43 = vector.broadcast %38 : vector<128x1xf32> to vector<128x128xf32>
    %44 = arith.mulf %41, %43 : vector<128x128xf32>
    %45 = arith.truncf %44 : vector<128x128xf32> to vector<128x128xbf16>
    %cst_26 = arith.constant dense<0.000000e+00> : vector<128x128xf32>
    %46 = tpu.matmul %42, %45, %cst_26 {dimension_numbers = #tpu.dot_dimension_numbers<[1], [0], [0], [1], [0, 0, 1, 1], [], []>} : vector<128x128xbf16>, vector<128x128xbf16>, vector<128x128xf32> -> vector<128x128xf32>
    %47 = vector.broadcast %38 : vector<128x1xf32> to vector<128x128xf32>
    %48 = arith.mulf %46, %47 : vector<128x128xf32>
    %49 = vector.broadcast %23 : vector<1x128xf32> to vector<128x128xf32>
    %50 = arith.addf %48, %49 : vector<128x128xf32>
    %cst_27 = arith.constant 0.000000e+00 : f32
    %51 = vector.broadcast %cst_27 : f32 to vector<128x128xf32>
    %52 = arith.maximumf %50, %51 : vector<128x128xf32>
    %c0_28 = arith.constant 0 : index
    %c0_29 = arith.constant 0 : index
    %53 = vector.load %arg9[%c0_28, %c0_29] : memref<128x128xf32, #tpu.memory_space<vmem>>, vector<128x128xf32>
    tpu.vector_store %arg9[%c0_28, %c0_29], %52 {strides = array<i32>} : memref<128x128xf32, #tpu.memory_space<vmem>>, vector<128x128xf32>,
    return
  }
  func.func @transform_0(%arg0: i32) -> (i32, i32) {
    %c0_i32 = arith.constant 0 : i32
    %c0_i32_0 = arith.constant 0 : i32
    %c0_i32_1 = arith.constant 0 : i32
    return %c0_i32, %c0_i32_0 : i32, i32
  }
  func.func @transform_1(%arg0: i32) -> (i32, i32) {
    %c0_i32 = arith.constant 0 : i32
    %c0_i32_0 = arith.constant 0 : i32
    %c0_i32_1 = arith.constant 0 : i32
    return %c0_i32, %c0_i32_0 : i32, i32
  }
  func.func @transform_2(%arg0: i32) -> (i32, i32) {
    %c0_i32 = arith.constant 0 : i32
    %c0_i32_0 = arith.constant 0 : i32
    %c0_i32_1 = arith.constant 0 : i32
    return %c0_i32, %c0_i32_0 : i32, i32
  }
  func.func @transform_3(%arg0: i32) -> (i32, i32) {
    %c0_i32 = arith.constant 0 : i32
    %c0_i32_0 = arith.constant 0 : i32
    %c0_i32_1 = arith.constant 0 : i32
    return %c0_i32, %c0_i32_0 : i32, i32
  }
  func.func @transform_4(%arg0: i32) -> (i32, i32) {
    %c0_i32 = arith.constant 0 : i32
    %c0_i32_0 = arith.constant 0 : i32
    %c0_i32_1 = arith.constant 0 : i32
    return %c0_i32, %c0_i32_0 : i32, i32
  }
  func.func @transform_5(%arg0: i32) -> (i32, i32) {
    %c0_i32 = arith.constant 0 : i32
    %c0_i32_0 = arith.constant 0 : i32
    %c0_i32_1 = arith.constant 0 : i32
    return %c0_i32, %c0_i32_0 : i32, i32
  }
  func.func @transform_6(%arg0: i32) -> (i32, i32) {
    %c0_i32 = arith.constant 0 : i32
    %c0_i32_0 = arith.constant 0 : i32
    %c0_i32_1 = arith.constant 0 : i32
    return %c0_i32, %c0_i32_0 : i32, i32
  }
  func.func @transform_7(%arg0: i32) -> (i32, i32) {
    %c0_i32 = arith.constant 0 : i32
    %c0_i32_0 = arith.constant 0 : i32
    %c0_i32_1 = arith.constant 0 : i32
    return %c0_i32, %c0_i32_0 : i32, i32
  }
  func.func @transform_8(%arg0: i32) -> (i32, i32) {
    %c0_i32 = arith.constant 0 : i32
    %c0_i32_0 = arith.constant 0 : i32
    %c0_i32_1 = arith.constant 0 : i32
    return %c0_i32, %c0_i32_0 : i32, i32
  }
}

module attributes {stable_mosaic.version = 11 : i64} {
  func.func @_up_conv_kernel(%arg0: i32, %arg1: memref<128x128xf32, #tpu.memory_space<vmem>>, %arg2: memref<128x128xf32, #tpu.memory_space<vmem>>, %arg3: memref<128x128xf32, #tpu.memory_space<vmem>>, %arg4: memref<128x128xf32, #tpu.memory_space<vmem>>, %arg5: memref<128x128xf32, #tpu.memory_space<vmem>>, %arg6: memref<8x128xf32, #tpu.memory_space<vmem>>, %arg7: memref<128x128xf32, #tpu.memory_space<vmem>>) attributes {dimension_semantics = [#tpu.dimension_semantics<arbitrary>], iteration_bounds = array<i64: 1>, scalar_prefetch = 0 : i64, scratch_operands = 0 : i64, tpu.core_type = #tpu.core_type<tc>, window_params = [{pipeline_mode = #tpu.pipeline_mode<synchronous>, transform_indices = @transform_0, window_bounds = array<i64: 128, 128>}, {pipeline_mode = #tpu.pipeline_mode<synchronous>, transform_indices = @transform_1, window_bounds = array<i64: 128, 128>}, {pipeline_mode = #tpu.pipeline_mode<synchronous>, transform_indices = @transform_2, window_bounds = array<i64: 128, 128>}, {pipeline_mode = #tpu.pipeline_mode<synchronous>, transform_indices = @transform_3, window_bounds = array<i64: 128, 128>}, {pipeline_mode = #tpu.pipeline_mode<synchronous>, transform_indices = @transform_4, window_bounds = array<i64: 128, 128>}, {pipeline_mode = #tpu.pipeline_mode<synchronous>, transform_indices = @transform_5, window_bounds = array<i64: 8, 128>}, {pipeline_mode = #tpu.pipeline_mode<synchronous>, transform_indices = @transform_6, window_bounds = array<i64: 128, 128>}]} {
    %c0 = arith.constant 0 : index
    %c0_0 = arith.constant 0 : index
    %0 = vector.load %arg3[%c0, %c0_0] : memref<128x128xf32, #tpu.memory_space<vmem>>, vector<128x128xf32>
    %1 = arith.truncf %0 : vector<128x128xf32> to vector<128x128xbf16>
    %c0_1 = arith.constant 0 : index
    %c0_2 = arith.constant 0 : index
    %2 = vector.load %arg4[%c0_1, %c0_2] : memref<128x128xf32, #tpu.memory_space<vmem>>, vector<128x128xf32>
    %3 = arith.truncf %2 : vector<128x128xf32> to vector<128x128xbf16>
    %cst = arith.constant dense<0.000000e+00> : vector<128x128xf32>
    %4 = tpu.matmul %1, %3, %cst {dimension_numbers = #tpu.dot_dimension_numbers<[1], [0], [0], [1], [0, 0, 1, 1], [], []>} : vector<128x128xbf16>, vector<128x128xbf16>, vector<128x128xf32> -> vector<128x128xf32>
    %c0_3 = arith.constant 0 : index
    %c0_4 = arith.constant 0 : index
    %5 = vector.load %arg2[%c0_3, %c0_4] : memref<128x128xf32, #tpu.memory_space<vmem>>, vector<128x128xf32>
    %6 = arith.addf %5, %4 : vector<128x128xf32>
    %c0_5 = arith.constant 0 : index
    %c0_6 = arith.constant 0 : index
    %7 = vector.load %arg1[%c0_5, %c0_6] : memref<128x128xf32, #tpu.memory_space<vmem>>, vector<128x128xf32>
    %c0_7 = arith.constant 0 : index
    %c0_8 = arith.constant 0 : index
    %8 = vector.load %arg5[%c0_7, %c0_8] : memref<128x128xf32, #tpu.memory_space<vmem>>, vector<128x128xf32>
    %c0_9 = arith.constant 0 : index
    %c0_10 = arith.constant 0 : index
    %9 = vector.load %arg6[%c0_9, %c0_10] : memref<8x128xf32, #tpu.memory_space<vmem>>, vector<8x128xf32>
    %10 = vector.extract_strided_slice %9 {offsets = [0, 0], sizes = [1, 128], strides = [1, 1]} : vector<8x128xf32> to vector<1x128xf32>
    %11 = tpu.iota {dimensions = array<i32: 0>} : vector<128x128xi32>
    %12 = tpu.iota {dimensions = array<i32: 1>} : vector<128x128xi32>
    %13 = arith.cmpi eq, %11, %12 : vector<128x128xi32>
    %cst_11 = arith.constant 0.000000e+00 : f32
    %14 = vector.broadcast %cst_11 : f32 to vector<128x128xf32>
    %15 = arith.cmpf oeq, %7, %14 : vector<128x128xf32>
    %16 = arith.andi %13, %15 : vector<128x128xi1>
    %cst_12 = arith.constant 2.000000e+00 : f32
    %17 = vector.broadcast %cst_12 : f32 to vector<128x128xf32>
    %18 = arith.select %16, %17, %7 : vector<128x128xi1>, vector<128x128xf32>
    %cst_13 = arith.constant dense<0.000000e+00> : vector<128xf32>
    %19 = vector.multi_reduction <add>, %18, %cst_13 [1] : vector<128x128xf32> to vector<128xf32>
    %20 = vector.shape_cast %19 : vector<128xf32> to vector<128x1xf32>
    %cst_14 = arith.constant 0.000000e+00 : f32
    %21 = vector.broadcast %cst_14 : f32 to vector<128x1xf32>
    %22 = arith.cmpf ogt, %20, %21 : vector<128x1xf32>
    %23 = math.rsqrt %20 : vector<128x1xf32>
    %cst_15 = arith.constant 0.000000e+00 : f32
    %24 = vector.broadcast %cst_15 : f32 to vector<128x1xf32>
    %25 = arith.select %22, %23, %24 : vector<128x1xi1>, vector<128x1xf32>
    %26 = arith.truncf %6 : vector<128x128xf32> to vector<128x128xbf16>
    %27 = arith.truncf %8 : vector<128x128xf32> to vector<128x128xbf16>
    %cst_16 = arith.constant dense<0.000000e+00> : vector<128x128xf32>
    %28 = tpu.matmul %26, %27, %cst_16 {dimension_numbers = #tpu.dot_dimension_numbers<[1], [0], [0], [1], [0, 0, 1, 1], [], []>} : vector<128x128xbf16>, vector<128x128xbf16>, vector<128x128xf32> -> vector<128x128xf32>
    %29 = arith.truncf %18 : vector<128x128xf32> to vector<128x128xbf16>
    %30 = vector.broadcast %25 : vector<128x1xf32> to vector<128x128xf32>
    %31 = arith.mulf %28, %30 : vector<128x128xf32>
    %32 = arith.truncf %31 : vector<128x128xf32> to vector<128x128xbf16>
    %cst_17 = arith.constant dense<0.000000e+00> : vector<128x128xf32>
    %33 = tpu.matmul %29, %32, %cst_17 {dimension_numbers = #tpu.dot_dimension_numbers<[1], [0], [0], [1], [0, 0, 1, 1], [], []>} : vector<128x128xbf16>, vector<128x128xbf16>, vector<128x128xf32> -> vector<128x128xf32>
    %34 = vector.broadcast %25 : vector<128x1xf32> to vector<128x128xf32>
    %35 = arith.mulf %33, %34 : vector<128x128xf32>
    %36 = vector.broadcast %10 : vector<1x128xf32> to vector<128x128xf32>
    %37 = arith.addf %35, %36 : vector<128x128xf32>
    %cst_18 = arith.constant 0.000000e+00 : f32
    %38 = vector.broadcast %cst_18 : f32 to vector<128x128xf32>
    %39 = arith.maximumf %37, %38 : vector<128x128xf32>
    %c0_19 = arith.constant 0 : index
    %c0_20 = arith.constant 0 : index
    %40 = vector.load %arg7[%c0_19, %c0_20] : memref<128x128xf32, #tpu.memory_space<vmem>>, vector<128x128xf32>
    tpu.vector_store %arg7[%c0_19, %c0_20], %39 {strides = array<i32>} : memref<128x128xf32, #tpu.memory_space<vmem>>, vector<128x128xf32>,
    return
  }
  func.func @transform_0(%arg0: i32) -> (i32, i32) {
    %c0_i32 = arith.constant 0 : i32
    %c0_i32_0 = arith.constant 0 : i32
    %c0_i32_1 = arith.constant 0 : i32
    return %c0_i32, %c0_i32_0 : i32, i32
  }
  func.func @transform_1(%arg0: i32) -> (i32, i32) {
    %c0_i32 = arith.constant 0 : i32
    %c0_i32_0 = arith.constant 0 : i32
    %c0_i32_1 = arith.constant 0 : i32
    return %c0_i32, %c0_i32_0 : i32, i32
  }
  func.func @transform_2(%arg0: i32) -> (i32, i32) {
    %c0_i32 = arith.constant 0 : i32
    %c0_i32_0 = arith.constant 0 : i32
    %c0_i32_1 = arith.constant 0 : i32
    return %c0_i32, %c0_i32_0 : i32, i32
  }
  func.func @transform_3(%arg0: i32) -> (i32, i32) {
    %c0_i32 = arith.constant 0 : i32
    %c0_i32_0 = arith.constant 0 : i32
    %c0_i32_1 = arith.constant 0 : i32
    return %c0_i32, %c0_i32_0 : i32, i32
  }
  func.func @transform_4(%arg0: i32) -> (i32, i32) {
    %c0_i32 = arith.constant 0 : i32
    %c0_i32_0 = arith.constant 0 : i32
    %c0_i32_1 = arith.constant 0 : i32
    return %c0_i32, %c0_i32_0 : i32, i32
  }
  func.func @transform_5(%arg0: i32) -> (i32, i32) {
    %c0_i32 = arith.constant 0 : i32
    %c0_i32_0 = arith.constant 0 : i32
    %c0_i32_1 = arith.constant 0 : i32
    return %c0_i32, %c0_i32_0 : i32, i32
  }
  func.func @transform_6(%arg0: i32) -> (i32, i32) {
    %c0_i32 = arith.constant 0 : i32
    %c0_i32_0 = arith.constant 0 : i32
    %c0_i32_1 = arith.constant 0 : i32
    return %c0_i32, %c0_i32_0 : i32, i32
  }
}

module attributes {stable_mosaic.version = 11 : i64} {
  func.func @_up_conv_kernel(%arg0: i32, %arg1: memref<128x128xf32, #tpu.memory_space<vmem>>, %arg2: memref<128x128xf32, #tpu.memory_space<vmem>>, %arg3: memref<128x128xf32, #tpu.memory_space<vmem>>, %arg4: memref<128x128xf32, #tpu.memory_space<vmem>>, %arg5: memref<128x128xf32, #tpu.memory_space<vmem>>, %arg6: memref<8x128xf32, #tpu.memory_space<vmem>>, %arg7: memref<128x128xf32, #tpu.memory_space<vmem>>) attributes {dimension_semantics = [#tpu.dimension_semantics<arbitrary>], iteration_bounds = array<i64: 1>, scalar_prefetch = 0 : i64, scratch_operands = 0 : i64, tpu.core_type = #tpu.core_type<tc>, window_params = [{pipeline_mode = #tpu.pipeline_mode<synchronous>, transform_indices = @transform_0, window_bounds = array<i64: 128, 128>}, {pipeline_mode = #tpu.pipeline_mode<synchronous>, transform_indices = @transform_1, window_bounds = array<i64: 128, 128>}, {pipeline_mode = #tpu.pipeline_mode<synchronous>, transform_indices = @transform_2, window_bounds = array<i64: 128, 128>}, {pipeline_mode = #tpu.pipeline_mode<synchronous>, transform_indices = @transform_3, window_bounds = array<i64: 128, 128>}, {pipeline_mode = #tpu.pipeline_mode<synchronous>, transform_indices = @transform_4, window_bounds = array<i64: 128, 128>}, {pipeline_mode = #tpu.pipeline_mode<synchronous>, transform_indices = @transform_5, window_bounds = array<i64: 8, 128>}, {pipeline_mode = #tpu.pipeline_mode<synchronous>, transform_indices = @transform_6, window_bounds = array<i64: 128, 128>}]} {
    %c0 = arith.constant 0 : index
    %c0_0 = arith.constant 0 : index
    %0 = vector.load %arg3[%c0, %c0_0] : memref<128x128xf32, #tpu.memory_space<vmem>>, vector<128x128xf32>
    %1 = arith.truncf %0 : vector<128x128xf32> to vector<128x128xbf16>
    %c0_1 = arith.constant 0 : index
    %c0_2 = arith.constant 0 : index
    %2 = vector.load %arg4[%c0_1, %c0_2] : memref<128x128xf32, #tpu.memory_space<vmem>>, vector<128x128xf32>
    %3 = arith.truncf %2 : vector<128x128xf32> to vector<128x128xbf16>
    %cst = arith.constant dense<0.000000e+00> : vector<128x128xf32>
    %4 = tpu.matmul %1, %3, %cst {dimension_numbers = #tpu.dot_dimension_numbers<[1], [0], [0], [1], [0, 0, 1, 1], [], []>} : vector<128x128xbf16>, vector<128x128xbf16>, vector<128x128xf32> -> vector<128x128xf32>
    %c0_3 = arith.constant 0 : index
    %c0_4 = arith.constant 0 : index
    %5 = vector.load %arg2[%c0_3, %c0_4] : memref<128x128xf32, #tpu.memory_space<vmem>>, vector<128x128xf32>
    %6 = arith.addf %5, %4 : vector<128x128xf32>
    %c0_5 = arith.constant 0 : index
    %c0_6 = arith.constant 0 : index
    %7 = vector.load %arg1[%c0_5, %c0_6] : memref<128x128xf32, #tpu.memory_space<vmem>>, vector<128x128xf32>
    %c0_7 = arith.constant 0 : index
    %c0_8 = arith.constant 0 : index
    %8 = vector.load %arg5[%c0_7, %c0_8] : memref<128x128xf32, #tpu.memory_space<vmem>>, vector<128x128xf32>
    %c0_9 = arith.constant 0 : index
    %c0_10 = arith.constant 0 : index
    %9 = vector.load %arg6[%c0_9, %c0_10] : memref<8x128xf32, #tpu.memory_space<vmem>>, vector<8x128xf32>
    %10 = vector.extract_strided_slice %9 {offsets = [0, 0], sizes = [1, 128], strides = [1, 1]} : vector<8x128xf32> to vector<1x128xf32>
    %11 = tpu.iota {dimensions = array<i32: 0>} : vector<128x128xi32>
    %12 = tpu.iota {dimensions = array<i32: 1>} : vector<128x128xi32>
    %13 = arith.cmpi eq, %11, %12 : vector<128x128xi32>
    %cst_11 = arith.constant 0.000000e+00 : f32
    %14 = vector.broadcast %cst_11 : f32 to vector<128x128xf32>
    %15 = arith.cmpf oeq, %7, %14 : vector<128x128xf32>
    %16 = arith.andi %13, %15 : vector<128x128xi1>
    %cst_12 = arith.constant 2.000000e+00 : f32
    %17 = vector.broadcast %cst_12 : f32 to vector<128x128xf32>
    %18 = arith.select %16, %17, %7 : vector<128x128xi1>, vector<128x128xf32>
    %cst_13 = arith.constant dense<0.000000e+00> : vector<128xf32>
    %19 = vector.multi_reduction <add>, %18, %cst_13 [1] : vector<128x128xf32> to vector<128xf32>
    %20 = vector.shape_cast %19 : vector<128xf32> to vector<128x1xf32>
    %cst_14 = arith.constant 0.000000e+00 : f32
    %21 = vector.broadcast %cst_14 : f32 to vector<128x1xf32>
    %22 = arith.cmpf ogt, %20, %21 : vector<128x1xf32>
    %23 = math.rsqrt %20 : vector<128x1xf32>
    %cst_15 = arith.constant 0.000000e+00 : f32
    %24 = vector.broadcast %cst_15 : f32 to vector<128x1xf32>
    %25 = arith.select %22, %23, %24 : vector<128x1xi1>, vector<128x1xf32>
    %26 = arith.truncf %6 : vector<128x128xf32> to vector<128x128xbf16>
    %27 = arith.truncf %8 : vector<128x128xf32> to vector<128x128xbf16>
    %cst_16 = arith.constant dense<0.000000e+00> : vector<128x128xf32>
    %28 = tpu.matmul %26, %27, %cst_16 {dimension_numbers = #tpu.dot_dimension_numbers<[1], [0], [0], [1], [0, 0, 1, 1], [], []>} : vector<128x128xbf16>, vector<128x128xbf16>, vector<128x128xf32> -> vector<128x128xf32>
    %29 = arith.truncf %18 : vector<128x128xf32> to vector<128x128xbf16>
    %30 = vector.broadcast %25 : vector<128x1xf32> to vector<128x128xf32>
    %31 = arith.mulf %28, %30 : vector<128x128xf32>
    %32 = arith.truncf %31 : vector<128x128xf32> to vector<128x128xbf16>
    %cst_17 = arith.constant dense<0.000000e+00> : vector<128x128xf32>
    %33 = tpu.matmul %29, %32, %cst_17 {dimension_numbers = #tpu.dot_dimension_numbers<[1], [0], [0], [1], [0, 0, 1, 1], [], []>} : vector<128x128xbf16>, vector<128x128xbf16>, vector<128x128xf32> -> vector<128x128xf32>
    %34 = vector.broadcast %25 : vector<128x1xf32> to vector<128x128xf32>
    %35 = arith.mulf %33, %34 : vector<128x128xf32>
    %36 = vector.broadcast %10 : vector<1x128xf32> to vector<128x128xf32>
    %37 = arith.addf %35, %36 : vector<128x128xf32>
    %c0_18 = arith.constant 0 : index
    %c0_19 = arith.constant 0 : index
    %38 = vector.load %arg7[%c0_18, %c0_19] : memref<128x128xf32, #tpu.memory_space<vmem>>, vector<128x128xf32>
    tpu.vector_store %arg7[%c0_18, %c0_19], %37 {strides = array<i32>} : memref<128x128xf32, #tpu.memory_space<vmem>>, vector<128x128xf32>,
    return
  }
  func.func @transform_0(%arg0: i32) -> (i32, i32) {
    %c0_i32 = arith.constant 0 : i32
    %c0_i32_0 = arith.constant 0 : i32
    %c0_i32_1 = arith.constant 0 : i32
    return %c0_i32, %c0_i32_0 : i32, i32
  }
  func.func @transform_1(%arg0: i32) -> (i32, i32) {
    %c0_i32 = arith.constant 0 : i32
    %c0_i32_0 = arith.constant 0 : i32
    %c0_i32_1 = arith.constant 0 : i32
    return %c0_i32, %c0_i32_0 : i32, i32
  }
  func.func @transform_2(%arg0: i32) -> (i32, i32) {
    %c0_i32 = arith.constant 0 : i32
    %c0_i32_0 = arith.constant 0 : i32
    %c0_i32_1 = arith.constant 0 : i32
    return %c0_i32, %c0_i32_0 : i32, i32
  }
  func.func @transform_3(%arg0: i32) -> (i32, i32) {
    %c0_i32 = arith.constant 0 : i32
    %c0_i32_0 = arith.constant 0 : i32
    %c0_i32_1 = arith.constant 0 : i32
    return %c0_i32, %c0_i32_0 : i32, i32
  }
  func.func @transform_4(%arg0: i32) -> (i32, i32) {
    %c0_i32 = arith.constant 0 : i32
    %c0_i32_0 = arith.constant 0 : i32
    %c0_i32_1 = arith.constant 0 : i32
    return %c0_i32, %c0_i32_0 : i32, i32
  }
  func.func @transform_5(%arg0: i32) -> (i32, i32) {
    %c0_i32 = arith.constant 0 : i32
    %c0_i32_0 = arith.constant 0 : i32
    %c0_i32_1 = arith.constant 0 : i32
    return %c0_i32, %c0_i32_0 : i32, i32
  }
  func.func @transform_6(%arg0: i32) -> (i32, i32) {
    %c0_i32 = arith.constant 0 : i32
    %c0_i32_0 = arith.constant 0 : i32
    %c0_i32_1 = arith.constant 0 : i32
    return %c0_i32, %c0_i32_0 : i32, i32
  }
}

</mosaic_0001>

<bundles_post_ra>
// kernel: graph_unet_forward.5
= control target key start
LH: loop header
LB: loop body
LE: loop exit
PB: predicated region body
PF: predicated region fallthrough
CT: control target
= control target key end

     0   :  { %v66_v0 = vlaneseq  ;;  %s1448_s2 = inlined_call_operand.vmem [shape: f32[128,128], index: 2, kind: input, shape index: {}]   ;;  %s1449_s0 = inlined_call_operand.vmem [shape: f32[128,128], index: 0, kind: input, shape index: {}]   ;;  %s1450_s1 = inlined_call_operand.vmem [shape: f32[128,128], index: 1, kind: input, shape index: {}]   ;;  %s1451_s3 = inlined_call_operand.vmem [shape: f32[8,128], index: 3, kind: input, shape index: {}]   ;;  %s1452_s4 = inlined_call_operand.vmem [shape: f32[128,128], index: 4, kind: output, shape index: {}]  }
   0x1   :  { %v63_v1 = vld [vmem:[%s1448_s2 + $0x70] sm:$0xff]  ;;  %v64_v2 = vld [vmem:[%s1448_s2 + $0x78] sm:$0xff]  ;;  %v61_v3 = vld [vmem:[%s1448_s2 + $0x60] sm:$0xff] }
   0x2   :  { %v388_v4 = vpack.c.bf16 %v64_v2, %v63_v1  ;;  %v62_v5 = vld [vmem:[%s1448_s2 + $0x68] sm:$0xff]  ;;  %v31_v6 = vld [vmem:[%s1449_s0 + $0x70] sm:$0xff]  ;;  %v676_v7 = vshrl.u32 %v66_v0, 7  ;;  %v678_v8 = vand.u32 127, %v66_v0  ;;  %v60_v14 = vld [vmem:[%s1448_s2 + $0x58] sm:$0xff] }
   0x3   :  { %v387_v9 = vpack.c.bf16 %v62_v5, %v61_v3  ;;  %vm115_vm0 = vcmp.eq.f32.partialorder %v31_v6, 0.0  ;;  %v27_v11 = vld [vmem:[%s1449_s0 + $0x50] sm:$0xff]  ;;  %v32_v15 = vld [vmem:[%s1449_s0 + $0x78] sm:$0xff]  ;;  %v29_v17 = vld [vmem:[%s1449_s0 + $0x60] sm:$0xff] }
   0x4   :  { %588 = vmatpush.bf16.msra.mxu2 %v388_v4  ;;  %389 = vmatpush.bf16.msra.mxu0 %v388_v4  ;;  %v81_v10 = vadd.s32 112, %v676_v7  ;;  %v77_v12 = vadd.s32 80, %v676_v7  ;;  %v59_v13 = vld [vmem:[%s1448_s2 + $0x50] sm:$0xff]  ;;  %vm111_vm1 = vcmp.eq.f32.partialorder %v27_v11, 0.0  ;;  %v82_v16 = vadd.s32 120, %v676_v7  ;;  %v28_v18 = vld [vmem:[%s1449_s0 + $0x58] sm:$0xff] }
   0x5   :  { %v79_v19 = vadd.s32 96, %v676_v7  ;;  %vm113_vm5 = vcmp.eq.f32.partialorder %v29_v17, 0.0  ;;  %v78_v20 = vadd.s32 88, %v676_v7  ;;  %v386_v22 = vpack.c.bf16 %v60_v14, %v59_v13  ;;  %v57_v23 = vld [vmem:[%s1448_s2 + $0x40] sm:$0xff]  ;;  %v58_v24 = vld [vmem:[%s1448_s2 + $0x48] sm:$0xff]  ;;  %v55_v31 = vld [vmem:[%s1448_s2 + $0x30] sm:$0xff] }
   0x6   :  { %vm99_vm2 = vcmp.eq.s32.totalorder %v81_v10, %v678_v8  ;;  %vm95_vm3 = vcmp.eq.s32.totalorder %v77_v12, %v678_v8  ;;  %vm100_vm7 = vcmp.eq.s32.totalorder %v82_v16, %v678_v8  ;;  %vm116_vm8 = vcmp.eq.f32.partialorder %v32_v15, 0.0  ;;  %v30_v26 = vld [vmem:[%s1449_s0 + $0x68] sm:$0xff]  ;;  %v56_v32 = vld [vmem:[%s1448_s2 + $0x38] sm:$0xff]  ;;  %v25_v33 = vld [vmem:[%s1449_s0 + $0x40] sm:$0xff] }
   0x7   :  { %vm131_vm4 = vmand %vm99_vm2, %vm115_vm0  ;;  %vm97_vm9 = vcmp.eq.s32.totalorder %v79_v19, %v678_v8  ;;  %vm96_vm10 = vcmp.eq.s32.totalorder %v78_v20, %v678_v8  ;;  %vm112_vm11 = vcmp.eq.f32.partialorder %v28_v18, 0.0  ;;  %v80_v27 = vadd.s32 104, %v676_v7  ;;  %v23_v36 = vld [vmem:[%s1449_s0 + $0x30] sm:$0xff]  ;;  %v53_v40 = vld [vmem:[%s1448_s2 + $0x20] sm:$0xff] }
   0x8   :  { %589 = vmatpush.bf16.msra.mxu2 %v387_v9  ;;  %390 = vmatpush.bf16.msra.mxu0 %v387_v9  ;;  %v705_v21 = vsel %vm131_vm4, 2.0, %v31_v6  ;;  %vm127_vm6 = vmand %vm95_vm3, %vm111_vm1  ;;  %v385_v29 = vpack.c.bf16 %v58_v24, %v57_v23  ;;  %v75_v30 = vadd.s32 64, %v676_v7  ;;  %vm114_vm0 = vcmp.eq.f32.partialorder %v30_v26, 0.0  ;;  %v54_v41 = vld [vmem:[%s1448_s2 + $0x28] sm:$0xff]  ;;  %v51_v46 = vld [vmem:[%s1448_s2 + $0x10] sm:$0xff] }
   0x9   :  { %1469 = vst [vmem:[#allocation2_spill] sm:$0xff] %v705_v21  ;;  %177 = vadd.xlane.f32.xlu0 %v705_v21  ;;  %v716_v25 = vsel %vm127_vm6, 2.0, %v27_v11  ;;  %vm129_vm12 = vmand %vm97_vm9, %vm113_vm5  ;;  %vm98_vm15 = vcmp.eq.s32.totalorder %v80_v27, %v678_v8  ;;  %v73_v34 = vadd.s32 48, %v676_v7  ;;  %v384_v38 = vpack.c.bf16 %v56_v32, %v55_v31  ;;  %v26_v42 = vld [vmem:[%s1449_s0 + $0x48] sm:$0xff]  ;;  %v52_v47 = vld [vmem:[%s1448_s2 + $0x18] sm:$0xff] }
   0xa   :  { %1470 = vst [vmem:[#allocation3_spill] sm:$0xff] %v716_v25  ;;  %169 = vadd.xlane.f32.xlu2 %v716_v25  ;;  %vm132_vm13 = vmand %vm100_vm7, %vm116_vm8  ;;  %v726_v28 = vsel %vm129_vm12, 2.0, %v29_v17  ;;  %vm93_vm2 = vcmp.eq.s32.totalorder %v75_v30, %v678_v8  ;;  %vm109_vm3 = vcmp.eq.f32.partialorder %v25_v33, 0.0  ;;  %v76_v39 = vadd.s32 72, %v676_v7  ;;  %v24_v48 = vld [vmem:[%s1449_s0 + $0x38] sm:$0xff]  ;;  %v22_v51 = vld [vmem:[%s1449_s0 + $0x28] sm:$0xff] }
   0xb   :  { %1471 = vst [vmem:[#allocation4_spill] sm:$0xff] %v726_v28  ;;  %vm128_vm14 = vmand %vm96_vm10, %vm112_vm11  ;;  %173 = vadd.xlane.f32.xlu1 %v726_v28  ;;  %v741_v35 = vsel %vm132_vm13, 2.0, %v32_v15  ;;  %vm91_vm4 = vcmp.eq.s32.totalorder %v73_v34, %v678_v8  ;;  %vm107_vm5 = vcmp.eq.f32.partialorder %v23_v36, 0.0  ;;  %v383_v44 = vpack.c.bf16 %v54_v41, %v53_v40  ;;  %v49_v55 = vld [vmem:[%s1448_s2] sm:$0xff]  ;;  %v50_v56 = vld [vmem:[%s1448_s2 + $0x8] sm:$0xff] }
   0xc   :  { %590 = vmatpush.bf16.msra.mxu2 %v386_v22  ;;  %391 = vmatpush.bf16.msra.mxu0 %v386_v22  ;;  %1472 = vst [vmem:[#allocation5_spill] sm:$0xff] %v741_v35  ;;  %v746_v37 = vsel %vm128_vm14, 2.0, %v28_v18  ;;  %vm130_vm1 = vmand %vm98_vm15, %vm114_vm0  ;;  %v74_v45 = vadd.s32 56, %v676_v7  ;;  %vm94_vm8 = vcmp.eq.s32.totalorder %v76_v39, %v678_v8  ;;  %vm110_vm9 = vcmp.eq.f32.partialorder %v26_v42, 0.0  ;;  %v21_v57 = vld [vmem:[%s1449_s0 + $0x20] sm:$0xff]  ;;  %v42_v60 = vld [vmem:[%s1450_s1 + $0x48] sm:$0xff] }
   0xd   :  { %1473 = vst [vmem:[#allocation6_spill] sm:$0xff] %v746_v37  ;;  %v762_v43 = vsel %vm130_vm1, 2.0, %v30_v26  ;;  %vm125_vm6 = vmand %vm93_vm2, %vm109_vm3  ;;  %v72_v49 = vadd.s32 40, %v676_v7  ;;  %v382_v53 = vpack.c.bf16 %v52_v47, %v51_v46  ;;  %vm108_vm12 = vcmp.eq.f32.partialorder %v24_v48, 0.0  ;;  %v41_v59 = vld [vmem:[%s1450_s1 + $0x40] sm:$0xff]  ;;  %v34_v63 = vld [vmem:[%s1450_s1 + $0x8] sm:$0xff] }
   0xe   :  { %1474 = vst [vmem:[#allocation7_spill] sm:$0xff] %v762_v43  ;;  %vm123_vm7 = vmand %vm91_vm4, %vm107_vm5  ;;  %v777_v50 = vsel %vm125_vm6, 2.0, %v25_v33  ;;  %vm92_vm11 = vcmp.eq.s32.totalorder %v74_v45, %v678_v8  ;;  %v71_v54 = vadd.s32 32, %v676_v7  ;;  %vm106_vm14 = vcmp.eq.f32.partialorder %v22_v51, 0.0  ;;  %v33_v62 = vld [vmem:[%s1450_s1] sm:$0xff]  ;;  %v19_v1 = vld [vmem:[%s1449_s0 + $0x10] sm:$0xff] }
   0xf   :  { %1475 = vst [vmem:[#allocation8_spill] sm:$0xff] %v777_v50  ;;  %v782_v52 = vsel %vm123_vm7, 2.0, %v23_v36  ;;  %vm126_vm10 = vmand %vm94_vm8, %vm110_vm9  ;;  %vm90_vm13 = vcmp.eq.s32.totalorder %v72_v49, %v678_v8  ;;  %v381_v61 = vpack.c.bf16 %v50_v56, %v49_v55  ;;  %v69_v0 = vadd.s32 16, %v676_v7  ;;  %v17_v3 = vld [vmem:[%s1449_s0] sm:$0xff]  ;;  %v20_v10 = vld [vmem:[%s1449_s0 + $0x18] sm:$0xff] }
  0x10   :  { %591 = vmatpush.bf16.msra.mxu2 %v385_v29  ;;  %392 = vmatpush.bf16.msra.mxu0 %v385_v29  ;;  %1476 = vst [vmem:[#allocation9_spill] sm:$0xff] %v782_v52  ;;  %v798_v58 = vsel %vm126_vm10, 2.0, %v26_v42  ;;  %vm124_vm15 = vmand %vm92_vm11, %vm108_vm12  ;;  %vm89_vm1 = vcmp.eq.s32.totalorder %v71_v54, %v678_v8  ;;  %vm105_vm2 = vcmp.eq.f32.partialorder %v21_v57, 0.0  ;;  %v377_v4 = vpack.c.bf16 %v42_v60, %v41_v59  ;;  %v18_v13 = vld [vmem:[%s1449_s0 + $0x8] sm:$0xff]  ;;  %v43_v16 = vld [vmem:[%s1450_s1 + $0x50] sm:$0xff] }
  0x11   :  { %179 = vadd.xlane.f32.xlu0 %v741_v35  ;;  %1477 = vst [vmem:[#allocation10_spill] sm:$0xff] %v798_v58  ;;  %vm122_vm0 = vmand %vm90_vm13, %vm106_vm14  ;;  %v818_v2 = vsel %vm124_vm15, 2.0, %v24_v48  ;;  %v373_v5 = vpack.c.bf16 %v34_v63, %v33_v62  ;;  %vm87_vm4 = vcmp.eq.s32.totalorder %v69_v0, %v678_v8  ;;  %vm103_vm5 = vcmp.eq.f32.partialorder %v19_v1, 0.0  ;;  %v44_v17 = vld [vmem:[%s1450_s1 + $0x58] sm:$0xff]  ;;  %v45_v23 = vld [vmem:[%s1450_s1 + $0x60] sm:$0xff] }
  0x12   :  { %171 = vadd.xlane.f32.xlu2 %v746_v37  ;;  %1478 = vst [vmem:[#allocation11_spill] sm:$0xff] %v818_v2  ;;  %v823_v6 = vsel %vm122_vm0, 2.0, %v22_v51  ;;  %vm121_vm3 = vmand %vm89_vm1, %vm105_vm2  ;;  %v70_v9 = vadd.s32 24, %v676_v7  ;;  %vm85_vm6 = vcmp.eq.s32.totalorder %v676_v7, %v678_v8  ;;  %vm101_vm7 = vcmp.eq.f32.partialorder %v17_v3, 0.0  ;;  %v36_v18 = vld [vmem:[%s1450_s1 + $0x18] sm:$0xff]  ;;  %v46_v24 = vld [vmem:[%s1450_s1 + $0x68] sm:$0xff] }
  0x13   :  { %175 = vadd.xlane.f32.xlu1 %v762_v43  ;;  %1479 = vst [vmem:[#allocation12_spill] sm:$0xff] %v823_v6  ;;  %v834_v11 = vsel %vm121_vm3, 2.0, %v21_v57  ;;  %vm119_vm8 = vmand %vm87_vm4, %vm103_vm5  ;;  %v68_v12 = vadd.s32 8, %v676_v7  ;;  %vm104_vm11 = vcmp.eq.f32.partialorder %v20_v10, 0.0  ;;  %vm102_vm14 = vcmp.eq.f32.partialorder %v18_v13, 0.0  ;;  %v37_v26 = vld [vmem:[%s1450_s1 + $0x20] sm:$0xff] }
  0x14   :  { %592 = vmatpush.bf16.msra.mxu2 %v384_v38  ;;  %393 = vmatpush.bf16.msra.mxu0 %v384_v38  ;;  %1480 = vst [vmem:[#allocation13_spill] sm:$0xff] %v834_v11  ;;  %vm117_vm9 = vmand %vm85_vm6, %vm101_vm7  ;;  %vm88_vm10 = vcmp.eq.s32.totalorder %v70_v9, %v678_v8  ;;  %v842_v14 = vsel %vm119_vm8, 2.0, %v19_v1  ;;  %v378_v20 = vpack.c.bf16 %v44_v17, %v43_v16  ;;  %v38_v27 = vld [vmem:[%s1450_s1 + $0x28] sm:$0xff]  ;;  %v47_v31 = vld [vmem:[%s1450_s1 + $0x70] sm:$0xff] }
  0x15   :  { %1481 = vst [vmem:[#allocation14_spill] sm:$0xff] %v842_v14  ;;  %v844_v15 = vsel %vm117_vm9, 2.0, %v17_v3  ;;  %vm120_vm12 = vmand %vm88_vm10, %vm104_vm11  ;;  %vm86_vm13 = vcmp.eq.s32.totalorder %v68_v12, %v678_v8  ;;  %v35_v8 = vld [vmem:[%s1450_s1 + $0x10] sm:$0xff]  ;;  %v379_v29 = vpack.c.bf16 %v46_v24, %v45_v23  ;;  %v375_v30 = vpack.c.bf16 %v38_v27, %v37_v26  ;;  %v48_v32 = vld [vmem:[%s1450_s1 + $0x78] sm:$0xff] }
  0x16   :  { %1482 = vst [vmem:[#allocation15_spill] sm:$0xff] %v844_v15  ;;  %v849_v7 = vsel %vm120_vm12, 2.0, %v20_v10  ;;  %vm118_vm15 = vmand %vm86_vm13, %vm102_vm14  ;;  %v374_v22 = vpack.c.bf16 %v36_v18, %v35_v8  ;;  %v39_v33 = vld [vmem:[%s1450_s1 + $0x30] sm:$0xff]  ;;  %v40_v34 = vld [vmem:[%s1450_s1 + $0x38] sm:$0xff]  ;;  %v380_v36 = vpack.c.bf16 %v48_v32, %v47_v31 }
  0x17   :  { %1483 = vst [vmem:[#allocation16_spill] sm:$0xff] %v849_v7  ;;  %v864_v19 = vsel %vm118_vm15, 2.0, %v18_v13  ;;  %v376_v38 = vpack.c.bf16 %v40_v34, %v39_v33 }
  0x18   :  { %593 = vmatpush.bf16.msra.mxu2 %v383_v44  ;;  %394 = vmatpush.bf16.msra.mxu0 %v383_v44  ;;  %1484 = vst [vmem:[#allocation17_spill] sm:$0xff] %v864_v19 }
  0x19   :  { %165 = vadd.xlane.f32.xlu0 %v777_v50 }
  0x1a   :  { %161 = vadd.xlane.f32.xlu2 %v782_v52 }
  0x1b   :  { %167 = vadd.xlane.f32.xlu1 %v798_v58 }
  0x1c   :  { %594 = vmatpush.bf16.msra.mxu2 %v382_v53  ;;  %395 = vmatpush.bf16.msra.mxu0 %v382_v53 }
  0x20   :  { %595 = vmatpush.bf16.msra.mxu2 %v381_v61  ;;  %396 = vmatpush.bf16.msra.mxu0 %v381_v61 }
  0x21   :  { %163 = vadd.xlane.f32.xlu0 %v818_v2 }
  0x22   :  { %159 = vadd.xlane.f32.xlu2 %v823_v6 }
  0x23   :  { %417 = vmatmul.bf16.vlgmr.msra.gmra.mxu2 %v377_v4  ;;  %397 = vmatmul.bf16.vlgmr.msra.gmra.mxu0 %v373_v5 }
  0x24   :  { %157 = vadd.xlane.f32.xlu1 %v834_v11 }
  0x29   :  { %153 = vadd.xlane.f32.xlu0 %v842_v14 }
  0x2a   :  { %149 = vadd.xlane.f32.xlu2 %v844_v15 }
  0x2c   :  { %155 = vadd.xlane.f32.xlu1 %v849_v7 }
  0x31   :  { %151 = vadd.xlane.f32.xlu0 %v864_v19 }
  0x33   :  { %422 = vmatmul.bf16.gmra.mxu2 %v378_v20  ;;  %402 = vmatmul.bf16.gmra.mxu0 %v374_v22 }
  0x43   :  { %427 = vmatmul.bf16.gmra.mxu2 %v379_v29  ;;  %407 = vmatmul.bf16.gmra.mxu0 %v375_v30 }
  0x53   :  { %432 = vmatmul.bf16.gmra.mxu2 %v380_v36  ;;  %412 = vmatmul.bf16.gmra.mxu0 %v376_v38 }
  0x7c   :  { %v891_v39 = vpop.xlane.xlu0 %177 }
  0x7d   :  { %v899_v44 = vpop.xlane.xlu2 %169  ;;  %vm343_vm14 = vweird.f32 %v891_v39 }
  0x7e   :  { %v897_v42 = vpop.xlane.xlu1 %173  ;;  %604 = vrsqrt.f32 %v899_v44  ;;  %vm303_vm0 = vweird.f32 %v899_v44  ;;  %vm191_vm5 = vcmp.gt.f32.partialorder %v899_v44, 0.0 }
  0x7f   :  { %606 = vrsqrt.f32 %v891_v39 }
  0x80   :  { %608 = vrsqrt.f32 %v897_v42 }
  0x84   :  { %v901_v45 = vpop.xlane.xlu0 %179  ;;  %v917_v54 = vpop.eup %604 }
  0x85   :  { %v910_v49 = vpop.xlane.xlu2 %171  ;;  %610 = vrsqrt.f32 %v901_v45  ;;  %v298_v56 = vmul.f32 %v917_v54, %v899_v44  ;;  %v929_v59 = vpop.eup %606  ;;  %vm304_vm1 = vweird.f32 %v917_v54 }
  0x86   :  { %v908_v48 = vpop.xlane.xlu1 %175  ;;  %612 = vrsqrt.f32 %v910_v49  ;;  %v934_v61 = vpop.eup %608  ;;  %v338_v5 = vmul.f32 %v929_v59, %v891_v39  ;;  %vm999_vm2 = vmor %vm303_vm0, %vm304_vm1  ;;  %vm313_vm6 = vweird.f32 %v910_v49  ;;  %vm344_vm15 = vweird.f32 %v929_v59 }
  0x87   :  { %v299_v63 = vmul.f32 %v917_v54, %v298_v56  ;;  %v318_v9 = vmul.f32 %v934_v61, %v897_v42  ;;  %vm333_vm12 = vweird.f32 %v908_v48  ;;  %vm192_vm1 = vcmp.gt.f32.partialorder %v910_v49, 0.0 }
  0x88   :  { %v339_v22 = vmul.f32 %v929_v59, %v338_v5 }
  0x89   :  { %v300_v12 = vmul.f32 0.5, %v299_v63  ;;  %v319_v23 = vmul.f32 %v934_v61, %v318_v9 }
  0x8a   :  { %v988_v38 = vmul.f32 0.5, %v339_v22 }
  0x8b   :  { %v936_v62 = vpop.eup %610  ;;  %v301_v26 = vsub.f32 1.5, %v300_v12  ;;  %v990_v56 = vmul.f32 0.5, %v319_v23 }
  0x8c   :  { %v912_v51 = vpop.xlane.xlu0 %165  ;;  %v943_v3 = vpop.eup %612  ;;  %v348_v17 = vmul.f32 %v936_v62, %v901_v45 }
  0x8d   :  { %614 = vrsqrt.f32 %v912_v51  ;;  %v932_v60 = vpop.xlane.xlu2 %161  ;;  %v308_v13 = vmul.f32 %v943_v3, %v910_v49  ;;  %v302_v12 = vmul.f32 %v917_v54, %v301_v26  ;;  %vm283_vm3 = vweird.f32 %v912_v51 }
  0x8e   :  { %v927_v57 = vpop.xlane.xlu1 %167  ;;  %616 = vrsqrt.f32 %v908_v48  ;;  %v349_v32 = vmul.f32 %v936_v62, %v348_v17  ;;  %vm314_vm7 = vweird.f32 %v943_v3  ;;  %vm189_vm8 = vcmp.gt.f32.partialorder %v912_v51, 0.0 }
  0x8f   :  { %618 = vrsqrt.f32 %v927_v57  ;;  %v309_v27 = vmul.f32 %v943_v3, %v308_v13  ;;  %vm293_vm4 = vweird.f32 %v927_v57  ;;  %vm1054_vm11 = vmor %vm313_vm6, %vm314_vm7  ;;  %vm190_vm6 = vcmp.gt.f32.partialorder %v927_v57, 0.0 }
  0x90   :  { %620 = vrsqrt.f32 %v932_v60  ;;  %v997_v13 = vmul.f32 0.5, %v349_v32  ;;  %vm323_vm7 = vweird.f32 %v897_v42 }
  0x91   :  { %v310_v5 = vmul.f32 0.5, %v309_v27  ;;  %v341_v27 = vsub.f32 1.5, %v988_v38 }
  0x92   :  { %v351_v35 = vsub.f32 1.5, %v997_v13 }
  0x93   :  { %v946_v4 = vpop.eup %614 }
  0x94   :  { %v939_v0 = vpop.xlane.xlu0 %163  ;;  %v953_v10 = vpop.eup %616  ;;  %v278_v8 = vmul.f32 %v946_v4, %v912_v51  ;;  %vm284_vm9 = vweird.f32 %v946_v4 }
  0x95   :  { %v965_v20 = vpop.eup %618  ;;  %v328_v24 = vmul.f32 %v953_v10, %v908_v48  ;;  %v972_v29 = vpop.xlane.xlu2 %159  ;;  %622 = vrsqrt.f32 %v939_v0  ;;  %vm334_vm13 = vweird.f32 %v953_v10  ;;  %vm1070_vm0 = vmor %vm283_vm3, %vm284_vm9  ;;  %vm324_vm9 = vweird.f32 %v934_v61 }
  0x96   :  { %v976_v31 = vpop.eup %620  ;;  %v279_v33 = vmul.f32 %v946_v4, %v278_v8  ;;  %v288_v34 = vmul.f32 %v965_v20, %v927_v57  ;;  %624 = vrsqrt.f32 %v972_v29  ;;  %vm294_vm10 = vweird.f32 %v965_v20  ;;  %vm1091_vm3 = vmor %vm333_vm12, %vm334_vm13 }
  0x97   :  { %v963_v18 = vpop.xlane.xlu1 %157  ;;  %v329_v63 = vmul.f32 %v953_v10, %v328_v24  ;;  %v258_v9 = vmul.f32 %v976_v31, %v932_v60  ;;  %vm1129_vm13 = vmor %vm293_vm4, %vm294_vm10  ;;  %vm194_vm10 = vcmp.gt.f32.partialorder %v908_v48, 0.0 }
  0x98   :  { %626 = vrsqrt.f32 %v963_v18  ;;  %v280_v17 = vmul.f32 0.5, %v279_v33  ;;  %v289_v22 = vmul.f32 %v965_v20, %v288_v34  ;;  %v311_v33 = vsub.f32 1.5, %v310_v5  ;;  %vm1146_vm4 = vmor %vm323_vm7, %vm324_vm9 }
  0x99   :  { %v330_v21 = vmul.f32 0.5, %v329_v63  ;;  %v259_v2 = vmul.f32 %v976_v31, %v258_v9  ;;  %v306_v34 = vsel %vm999_vm2, %v917_v54, %v302_v12  ;;  %vm353_vm2 = vweird.f32 %v901_v45 }
  0x9a   :  { %v281_v52 = vsub.f32 1.5, %v280_v17  ;;  %v290_v9 = vmul.f32 0.5, %v289_v22  ;;  %v1039_v12 = vsel %vm191_vm5, %v306_v34, 0.0  ;;  %v312_v22 = vmul.f32 %v943_v3, %v311_v33 }
  0x9b   :  { %v1006_v24 = vpop.eup %622  ;;  %v331_v54 = vsub.f32 1.5, %v330_v21  ;;  %v1041_v13 = vmul.f32 0.5, %v259_v2  ;;  %vm354_vm5 = vweird.f32 %v936_v62  ;;  %vm243_vm7 = vweird.f32 %v963_v18 }
  0x9c   :  { %v984_v36 = vpop.xlane.xlu0 %153  ;;  %v1013_v32 = vpop.eup %624  ;;  %v268_v5 = vmul.f32 %v1006_v24, %v939_v0  ;;  %v282_v28 = vmul.f32 %v946_v4, %v281_v52  ;;  %v291_v34 = vsub.f32 1.5, %v290_v9  ;;  %v316_v11 = vsel %vm1054_vm11, %v943_v3, %v312_v22  ;;  %vm1103_vm11 = vmor %vm343_vm14, %vm344_vm15 }
  0x9d   :  { %628 = vrsqrt.f32 %v984_v36  ;;  %v1030_v43 = vpop.xlane.xlu2 %149  ;;  %v248_v17 = vmul.f32 %v1013_v32, %v972_v29  ;;  %v332_v25 = vmul.f32 %v953_v10, %v331_v54  ;;  %v342_v3 = vmul.f32 %v929_v59, %v341_v27  ;;  %vm1117_vm12 = vmor %vm353_vm2, %vm354_vm5 }
  0x9e   :  { %v1023_v63 = vpop.eup %626  ;;  %v269_v2 = vmul.f32 %v1006_v24, %v268_v5  ;;  %v286_v44 = vsel %vm1070_vm0, %v946_v4, %v282_v28  ;;  %v292_v58 = vmul.f32 %v965_v20, %v291_v34  ;;  %vm195_vm14 = vcmp.gt.f32.partialorder %v891_v39, 0.0 }
  0x9f   :  { %v1011_v26 = vpop.xlane.xlu1 %155  ;;  %v238_v21 = vmul.f32 %v1023_v63, %v963_v18  ;;  %v249_v9 = vmul.f32 %v1013_v32, %v248_v17  ;;  %v352_v17 = vmul.f32 %v936_v62, %v351_v35  ;;  %vm196_vm15 = vcmp.gt.f32.partialorder %v901_v45, 0.0 }
  0xa0   :  { %v893_v40 = vpop.f32.mrf.mxu0  ;;  %630 = vrsqrt.f32 %v1011_v26  ;;  %v270_v22 = vmul.f32 0.5, %v269_v2  ;;  %v1499_v2 = vsub.f32 1.5, %v990_v56  ;;  %v296_v7 = vsel %vm1129_vm13, %v965_v20, %v292_v58 }
  0xa1   :  { %632 = vrsqrt.f32 %v1030_v43  ;;  %v239_v6 = vmul.f32 %v1023_v63, %v238_v21  ;;  %v261_v21 = vsub.f32 1.5, %v1041_v13  ;;  %v1137_v13 = vsel %vm192_vm1, %v316_v11, 0.0 }
  0xa2   :  { %v322_v34 = vmul.f32 %v934_v61, %v1499_v2  ;;  %v250_v52 = vmul.f32 0.5, %v249_v9  ;;  %v336_v11 = vsel %vm1091_vm3, %v953_v10, %v332_v25  ;;  %v356_v56 = vsel %vm1117_vm12, %v936_v62, %v352_v17 }
  0xa3   :  { %v1063_v33 = vpop.eup %628  ;;  %v240_v19 = vmul.f32 0.5, %v239_v6  ;;  %v346_v6 = vsel %vm1103_vm11, %v929_v59, %v342_v3  ;;  %v271_v9 = vsub.f32 1.5, %v270_v22  ;;  %v1168_v25 = vsel %vm189_vm8, %v286_v44, 0.0 }
  0xa4   :  { %v1045_v8 = vpop.xlane.xlu0 %151  ;;  %v218_v35 = vmul.f32 %v1063_v33, %v984_v36  ;;  %vm193_vm0 = vcmp.gt.f32.partialorder %v897_v42, 0.0  ;;  %v326_v59 = vsel %vm1146_vm4, %v934_v61, %v322_v34  ;;  %v1183_v51 = vsel %vm194_vm10, %v336_v11, 0.0 }
  0xa5   :  { %634 = vrsqrt.f32 %v1045_v8  ;;  %v1185_v10 = vsel %vm195_vm14, %v346_v6, 0.0  ;;  %v1187_v58 = vsel %vm196_vm15, %v356_v56, 0.0  ;;  %v251_v3 = vsub.f32 1.5, %v250_v52 }
  0xa6   :  { %v895_v41 = vpop.f32.mrf.mxu2  ;;  %v1077_v5 = vpop.eup %630  ;;  %v219_v39 = vmul.f32 %v1063_v33, %v218_v35  ;;  %v241_v54 = vsub.f32 1.5, %v240_v19  ;;  %vm223_vm8 = vweird.f32 %v984_v36  ;;  %v1193_v61 = vsel %vm193_vm0, %v326_v59, 0.0 }
  0xa7   :  { %v1121_v50 = vpop.eup %632  ;;  %v228_v4 = vmul.f32 %v1077_v5, %v1011_v26  ;;  %vm263_vm1 = vweird.f32 %v932_v60  ;;  %vm264_vm2 = vweird.f32 %v976_v31  ;;  %vm273_vm5 = vweird.f32 %v939_v0 }
  0xa8   :  { %v903_v46 = vpop.f32.mrf.mxu0  ;;  %v198_v2 = vmul.f32 %v1121_v50, %v1030_v43  ;;  %vm274_vm3 = vweird.f32 %v1006_v24  ;;  %v220_v19 = vmul.f32 0.5, %v219_v39  ;;  %v1204_v27 = vsel %vm190_vm6, %v296_v7, 0.0  ;;  %vm1210_vm9 = vmor %vm263_vm1, %vm264_vm2  ;;  %v1525_v39 = vld [vmem:[#allocation6_spill] sm:$0xff] }
  0xa9   :  { %v229_v45 = vmul.f32 %v1077_v5, %v228_v4  ;;  %v272_v34 = vmul.f32 %v1006_v24, %v271_v9  ;;  %v242_v57 = vmul.f32 %v1023_v63, %v241_v54  ;;  %vm244_vm6 = vweird.f32 %v1023_v63  ;;  %vm1222_vm11 = vmor %vm273_vm5, %vm274_vm3 }
  0xaa   :  { %v199_v15 = vmul.f32 %v1121_v50, %v198_v2  ;;  %v252_v11 = vmul.f32 %v1013_v32, %v251_v3  ;;  %vm253_vm12 = vweird.f32 %v972_v29  ;;  %vm254_vm13 = vweird.f32 %v1013_v32  ;;  %vm1235_vm10 = vmor %vm243_vm7, %vm244_vm6 }
  0xab   :  { %v1154_v49 = vpop.eup %634  ;;  %v230_v35 = vmul.f32 0.5, %v229_v45  ;;  %v221_v56 = vsub.f32 1.5, %v220_v19  ;;  %vm187_vm4 = vcmp.gt.f32.partialorder %v932_v60, 0.0  ;;  %vm188_vm14 = vcmp.gt.f32.partialorder %v939_v0, 0.0  ;;  %vm1255_vm2 = vmor %vm253_vm12, %vm254_vm13 }
  0xac   :  { %v208_v62 = vmul.f32 %v1154_v49, %v1045_v8  ;;  %v200_v52 = vmul.f32 0.5, %v199_v15  ;;  %v276_v45 = vsel %vm1222_vm11, %v1006_v24, %v272_v34  ;;  %vm224_vm15 = vweird.f32 %v1063_v33 }
  0xad   :  { %v231_v2 = vsub.f32 1.5, %v230_v35  ;;  %vm233_vm0 = vweird.f32 %v1011_v26  ;;  %vm185_vm1 = vcmp.gt.f32.partialorder %v963_v18, 0.0  ;;  %vm234_vm5 = vweird.f32 %v1077_v5  ;;  %vm1279_vm7 = vmor %vm223_vm8, %vm224_vm15 }
  0xae   :  { %v905_v47 = vpop.f32.mrf.mxu2  ;;  %v209_v44 = vmul.f32 %v1154_v49, %v208_v62  ;;  %vm186_vm3 = vcmp.gt.f32.partialorder %v972_v29, 0.0  ;;  %v201_v59 = vsub.f32 1.5, %v200_v52  ;;  %v246_v62 = vsel %vm1235_vm10, %v1023_v63, %v242_v57  ;;  %vm1294_vm8 = vmor %vm233_vm0, %vm234_vm5 }
  0xaf   :  { %v455_v24 = vmul.f32 %v905_v47, %v1204_v27  ;;  %v1272_v3 = vsel %vm188_vm14, %v276_v45, 0.0  ;;  %v232_v60 = vmul.f32 %v1077_v5, %v231_v2  ;;  %v256_v0 = vsel %vm1255_vm2, %v1013_v32, %v252_v11  ;;  %v1523_v2 = vld [vmem:[#allocation16_spill] sm:$0xff] }
  0xb0   :  { %v921_v55 = vpop.f32.mrf.mxu0  ;;  %v210_v9 = vmul.f32 0.5, %v209_v44  ;;  %vm204_vm6 = vweird.f32 %v1121_v50  ;;  %vm213_vm11 = vweird.f32 %v1045_v8  ;;  %vm214_vm12 = vweird.f32 %v1154_v49  ;;  %v1527_v45 = vld [vmem:[#allocation12_spill] sm:$0xff] }
  0xb1   :  { %vm183_vm13 = vcmp.gt.f32.partialorder %v984_v36, 0.0  ;;  %v1305_v19 = vsel %vm185_vm1, %v246_v62, 0.0  ;;  %v1309_v44 = vsel %vm186_vm3, %v256_v0, 0.0  ;;  %vm184_vm10 = vcmp.gt.f32.partialorder %v1011_v26, 0.0  ;;  %vm1327_vm14 = vmor %vm213_vm11, %vm214_vm12  ;;  %v1531_v62 = vld [vmem:[#allocation11_spill] sm:$0xff] }
  0xb2   :  { %v211_v47 = vsub.f32 1.5, %v210_v9  ;;  %v236_v18 = vsel %vm1294_vm8, %v1077_v5, %v232_v60  ;;  %vm181_vm15 = vcmp.gt.f32.partialorder %v1030_v43, 0.0  ;;  %vm182_vm0 = vcmp.gt.f32.partialorder %v1045_v8, 0.0  ;;  %v65_v60 = vld [vmem:[%s1451_s3] sm:$0xff] }
  0xb3   :  { %v1335_v4 = vsel %vm184_vm10, %v236_v18, 0.0  ;;  %v1369_v0 = vperm.slane %v65_v60, 0 }
  0xb6   :  { %v915_v53 = vpop.f32.mrf.mxu2 }
  0xb7   :  { %v456_v7 = vmul.f32 %v915_v53, %v1039_v12  ;;  %v454_v53 = vmul.f32 %v895_v41, %v1168_v25 }
  0xb8   :  { %v957_v16 = vpop.f32.mrf.mxu0 }
  0xb9   :  { %v449_v34 = vmul.f32 %v957_v16, %v1335_v4  ;;  %v1522_v16 = vld [vmem:[#allocation14_spill] sm:$0xff] }
  0xbe   :  { %v941_v1 = vpop.f32.mrf.mxu2 }
  0xc0   :  { %v1004_v23 = vpop.f32.mrf.mxu0 }
  0xc1   :  { %v450_v36 = vmul.f32 %v1004_v23, %v1305_v19 }
  0xc6   :  { %v974_v30 = vpop.f32.mrf.mxu2 }
  0xc7   :  { %v458_v28 = vmul.f32 %v974_v30, %v1193_v61 }
  0xc8   :  { %v1084_v37 = vpop.f32.mrf.mxu0 }
  0xc9   :  { %v451_v26 = vmul.f32 %v1084_v37, %v1309_v44 }
  0xcb   :  { %v464_v52 = vpack.c.bf16 %v451_v26, %v450_v36 }
  0xce   :  { %v1021_v38 = vpop.f32.mrf.mxu2 }
  0xcf   :  { %v459_v22 = vmul.f32 %v1021_v38, %v1183_v51  ;;  %v262_v38 = vmul.f32 %v976_v31, %v261_v21  ;;  %v457_v21 = vmul.f32 %v941_v1, %v1137_v13 }
  0xd0   :  { %v413_v48 = vpop.f32.mrf.mxu0 }
  0xd1   :  { %v468_v6 = vpack.c.bf16 %v459_v22, %v458_v28  ;;  %v266_v1 = vsel %vm1210_vm9, %v976_v31, %v262_v38  ;;  %v467_v41 = vpack.c.bf16 %v457_v21, %v456_v7  ;;  %vm203_vm9 = vweird.f32 %v1030_v43  ;;  %v1518_v21 = vld [vmem:[#allocation15_spill] sm:$0xff]  ;;  %v1528_v31 = vld [vmem:[#allocation4_spill] sm:$0xff] }
  0xd2   :  { %v466_v22 = vpack.c.bf16 %v455_v24, %v454_v53  ;;  %v439_v7 = vpack.c.bf16 %v1523_v2, %v1522_v16  ;;  %v1529_v24 = vld [vmem:[#allocation7_spill] sm:$0xff] }
  0xd6   :  { %v433_v14 = vpop.f32.mrf.mxu2 }
  0xd7   :  { %v460_v42 = vmul.f32 %v433_v14, %v1185_v10 }
  0xd8   :  { %v415_v54 = vpop.f32.mrf.mxu0 }
  0xd9   :  { %v453_v15 = vmul.f32 %v415_v54, %v1272_v3 }
  0xde   :  { %v435_v20 = vpop.f32.mrf.mxu2 }
  0xdf   :  { %v461_v17 = vmul.f32 %v435_v20, %v1187_v58  ;;  %v1268_v20 = vsel %vm187_vm4, %v266_v1, 0.0  ;;  %vm1311_vm4 = vmor %vm203_vm9, %vm204_vm6 }
  0xe0   :  { %v452_v32 = vmul.f32 %v413_v48, %v1268_v20  ;;  %v212_v48 = vmul.f32 %v1154_v49, %v211_v47  ;;  %v1532_v47 = vld [vmem:[#allocation2_spill] sm:$0xff] }
  0xe1   :  { %v469_v14 = vpack.c.bf16 %v461_v17, %v460_v42  ;;  %v222_v42 = vmul.f32 %v1063_v33, %v221_v56  ;;  %v1521_v56 = vld [vmem:[#allocation10_spill] sm:$0xff] }
  0xe2   :  { %v216_v5 = vsel %vm1327_vm14, %v1154_v49, %v212_v48 }
  0xe3   :  { %470 = vmatpush.bf16.msra.mxu1 %v469_v14  ;;  %596 = vmatpush.bf16.msra.mxu3 %v469_v14  ;;  %v202_v14 = vmul.f32 %v1121_v50, %v201_v59  ;;  %v226_v28 = vsel %vm1279_vm7, %v1063_v33, %v222_v42  ;;  %v465_v33 = vpack.c.bf16 %v453_v15, %v452_v32  ;;  %v358_v57 = vsel %vm182_vm0, %v216_v5, 0.0  ;;  %v1530_v59 = vld [vmem:[#allocation9_spill] sm:$0xff] }
  0xe4   :  { %v359_v38 = vsel %vm183_vm13, %v226_v28, 0.0  ;;  %v447_v8 = vmul.f32 %v903_v46, %v358_v57  ;;  %v1524_v46 = vld [vmem:[#allocation3_spill] sm:$0xff]  ;;  %v441_v54 = vpack.c.bf16 %v1531_v62, %v1530_v59  ;;  %v1533_v42 = vld [vmem:[#allocation5_spill] sm:$0xff] }
  0xe5   :  { %v206_v23 = vsel %vm1311_vm4, %v1121_v50, %v202_v14  ;;  %v448_v37 = vmul.f32 %v921_v55, %v359_v38  ;;  %v1519_v50 = vld [vmem:[#allocation17_spill] sm:$0xff]  ;;  %v1520_v55 = vld [vmem:[#allocation8_spill] sm:$0xff]  ;;  %v443_v1 = vpack.c.bf16 %v1525_v39, %v1524_v46  ;;  %v445_v17 = vpack.c.bf16 %v1533_v42, %v1532_v47 }
  0xe6   :  { %v357_v43 = vsel %vm181_vm15, %v206_v23, 0.0  ;;  %v442_v9 = vpack.c.bf16 %v1521_v56, %v1520_v55 }
  0xe7   :  { %471 = vmatpush.bf16.msra.mxu1 %v468_v6  ;;  %597 = vmatpush.bf16.msra.mxu3 %v468_v6  ;;  %v463_v11 = vpack.c.bf16 %v449_v34, %v448_v37  ;;  %v446_v49 = vmul.f32 %v893_v40, %v357_v43  ;;  %v438_v6 = vpack.c.bf16 %v1519_v50, %v1518_v21  ;;  %v1526_v40 = vld [vmem:[#allocation13_spill] sm:$0xff] }
  0xe8   :  { %v440_v53 = vpack.c.bf16 %v1527_v45, %v1526_v40 }
  0xe9   :  { %v462_v30 = vpack.c.bf16 %v447_v8, %v446_v49 }
  0xeb   :  { %472 = vmatpush.bf16.msra.mxu1 %v467_v41  ;;  %598 = vmatpush.bf16.msra.mxu3 %v467_v41  ;;  %v444_v41 = vpack.c.bf16 %v1529_v24, %v1528_v31 }
  0xef   :  { %473 = vmatpush.bf16.msra.mxu1 %v466_v22  ;;  %599 = vmatpush.bf16.msra.mxu3 %v466_v22 }
  0xf3   :  { %474 = vmatpush.bf16.msra.mxu1 %v465_v33  ;;  %600 = vmatpush.bf16.msra.mxu3 %v465_v33 }
  0xf7   :  { %475 = vmatpush.bf16.msra.mxu1 %v464_v52  ;;  %601 = vmatpush.bf16.msra.mxu3 %v464_v52 }
  0xfb   :  { %476 = vmatpush.bf16.msra.mxu1 %v463_v11  ;;  %602 = vmatpush.bf16.msra.mxu3 %v463_v11 }
  0xff   :  { %477 = vmatpush.bf16.msra.mxu1 %v462_v30  ;;  %603 = vmatpush.bf16.msra.mxu3 %v462_v30 }
 0x102   :  { %478 = vmatmul.bf16.vlgmr.msra.gmra.mxu1 %v438_v6  ;;  %498 = vmatmul.bf16.vlgmr.msra.gmra.mxu3 %v442_v9 }
 0x112   :  { %483 = vmatmul.bf16.gmra.mxu1 %v439_v7  ;;  %503 = vmatmul.bf16.gmra.mxu3 %v443_v1 }
 0x122   :  { %488 = vmatmul.bf16.gmra.mxu1 %v440_v53  ;;  %508 = vmatmul.bf16.gmra.mxu3 %v444_v41 }
 0x132   :  { %493 = vmatmul.bf16.gmra.mxu1 %v441_v54  ;;  %513 = vmatmul.bf16.gmra.mxu3 %v445_v17 }
 0x17f   :  { %v479_v63 = vpop.f32.mrf.mxu1 }
 0x180   :  { %v519_v32 = vmul.f32 %v479_v63, %v357_v43 }
 0x182   :  { %v536_v15 = vadd.f32 %v1369_v0, %v519_v32 }
 0x184   :  { %v552_v22 = vmax.f32 %v536_v15, 0.0 }
 0x185   :  { %v499_v14 = vpop.f32.mrf.mxu3 }
 0x186   :  { %568 = vst [vmem:[%s1452_s4] sm:$0xff] %v552_v22  ;;  %v527_v35 = vmul.f32 %v499_v14, %v1168_v25 }
 0x187   :  { %v481_v48 = vpop.f32.mrf.mxu1 }
 0x188   :  { %v544_v28 = vadd.f32 %v1369_v0, %v527_v35  ;;  %v520_v18 = vmul.f32 %v481_v48, %v358_v57 }
 0x18a   :  { %v560_v29 = vmax.f32 %v544_v28, 0.0  ;;  %v537_v36 = vadd.f32 %v1369_v0, %v520_v18 }
 0x18c   :  { %576 = vst [vmem:[%s1452_s4 + $0x40] sm:$0xff] %v560_v29  ;;  %v553_v26 = vmax.f32 %v537_v36, 0.0 }
 0x18d   :  { %v501_v33 = vpop.f32.mrf.mxu3 }
 0x18e   :  { %569 = vst [vmem:[%s1452_s4 + $0x8] sm:$0xff] %v553_v26  ;;  %v528_v5 = vmul.f32 %v501_v33, %v1204_v27 }
 0x18f   :  { %v484_v25 = vpop.f32.mrf.mxu1 }
 0x190   :  { %v545_v23 = vadd.f32 %v1369_v0, %v528_v5  ;;  %v521_v37 = vmul.f32 %v484_v25, %v359_v38 }
 0x192   :  { %v561_v34 = vmax.f32 %v545_v23, 0.0  ;;  %v538_v52 = vadd.f32 %v1369_v0, %v521_v37 }
 0x194   :  { %577 = vst [vmem:[%s1452_s4 + $0x48] sm:$0xff] %v561_v34  ;;  %v554_v57 = vmax.f32 %v538_v52, 0.0 }
 0x195   :  { %v504_v43 = vpop.f32.mrf.mxu3 }
 0x196   :  { %570 = vst [vmem:[%s1452_s4 + $0x10] sm:$0xff] %v554_v57  ;;  %v529_v8 = vmul.f32 %v504_v43, %v1039_v12 }
 0x197   :  { %v486_v27 = vpop.f32.mrf.mxu1 }
 0x198   :  { %v546_v11 = vadd.f32 %v1369_v0, %v529_v8  ;;  %v522_v38 = vmul.f32 %v486_v27, %v1335_v4 }
 0x19a   :  { %v562_v49 = vmax.f32 %v546_v11, 0.0  ;;  %v539_v30 = vadd.f32 %v1369_v0, %v522_v38 }
 0x19c   :  { %578 = vst [vmem:[%s1452_s4 + $0x50] sm:$0xff] %v562_v49  ;;  %v555_v21 = vmax.f32 %v539_v30, 0.0 }
 0x19d   :  { %v506_v50 = vpop.f32.mrf.mxu3 }
 0x19e   :  { %571 = vst [vmem:[%s1452_s4 + $0x18] sm:$0xff] %v555_v21  ;;  %v530_v12 = vmul.f32 %v506_v50, %v1137_v13 }
 0x19f   :  { %v489_v6 = vpop.f32.mrf.mxu1 }
 0x1a0   :  { %v547_v55 = vadd.f32 %v1369_v0, %v530_v12  ;;  %v523_v4 = vmul.f32 %v489_v6, %v1305_v19 }
 0x1a2   :  { %v563_v56 = vmax.f32 %v547_v55, 0.0  ;;  %v540_v9 = vadd.f32 %v1369_v0, %v523_v4 }
 0x1a4   :  { %579 = vst [vmem:[%s1452_s4 + $0x58] sm:$0xff] %v563_v56  ;;  %v556_v16 = vmax.f32 %v540_v9, 0.0 }
 0x1a5   :  { %v509_v2 = vpop.f32.mrf.mxu3 }
 0x1a6   :  { %572 = vst [vmem:[%s1452_s4 + $0x20] sm:$0xff] %v556_v16  ;;  %v531_v13 = vmul.f32 %v509_v2, %v1193_v61 }
 0x1a7   :  { %v491_v7 = vpop.f32.mrf.mxu1 }
 0x1a8   :  { %v548_v46 = vadd.f32 %v1369_v0, %v531_v13  ;;  %v524_v19 = vmul.f32 %v491_v7, %v1309_v44 }
 0x1aa   :  { %v564_v39 = vmax.f32 %v548_v46, 0.0  ;;  %v541_v1 = vadd.f32 %v1369_v0, %v524_v19 }
 0x1ac   :  { %580 = vst [vmem:[%s1452_s4 + $0x60] sm:$0xff] %v564_v39  ;;  %v557_v40 = vmax.f32 %v541_v1, 0.0 }
 0x1ad   :  { %v511_v45 = vpop.f32.mrf.mxu3 }
 0x1ae   :  { %573 = vst [vmem:[%s1452_s4 + $0x28] sm:$0xff] %v557_v40  ;;  %v532_v61 = vmul.f32 %v511_v45, %v1183_v51 }
 0x1af   :  { %v494_v53 = vpop.f32.mrf.mxu1 }
 0x1b0   :  { %v549_v31 = vadd.f32 %v1369_v0, %v532_v61  ;;  %v525_v44 = vmul.f32 %v494_v53, %v1268_v20 }
 0x1b2   :  { %v565_v24 = vmax.f32 %v549_v31, 0.0  ;;  %v542_v41 = vadd.f32 %v1369_v0, %v525_v44 }
 0x1b4   :  { %581 = vst [vmem:[%s1452_s4 + $0x68] sm:$0xff] %v565_v24  ;;  %v558_v59 = vmax.f32 %v542_v41, 0.0 }
 0x1b5   :  { %v514_v62 = vpop.f32.mrf.mxu3 }
 0x1b6   :  { %574 = vst [vmem:[%s1452_s4 + $0x30] sm:$0xff] %v558_v59  ;;  %v533_v51 = vmul.f32 %v514_v62, %v1185_v10 }
 0x1b7   :  { %v496_v54 = vpop.f32.mrf.mxu1 }
 0x1b8   :  { %v550_v47 = vadd.f32 %v1369_v0, %v533_v51  ;;  %v526_v20 = vmul.f32 %v496_v54, %v1272_v3 }
 0x1ba   :  { %v566_v42 = vmax.f32 %v550_v47, 0.0  ;;  %v543_v17 = vadd.f32 %v1369_v0, %v526_v20 }
 0x1bc   :  { %582 = vst [vmem:[%s1452_s4 + $0x70] sm:$0xff] %v566_v42  ;;  %v559_v60 = vmax.f32 %v543_v17, 0.0 }
 0x1bd   :  { %v516_v63 = vpop.f32.mrf.mxu3 }
 0x1be   :  { %575 = vst [vmem:[%s1452_s4 + $0x38] sm:$0xff] %v559_v60  ;;  %v534_v10 = vmul.f32 %v516_v63, %v1187_v58 }
 0x1c0   :  { %v551_v32 = vadd.f32 %v1369_v0, %v534_v10 }
 0x1c2   :  { %v567_v15 = vmax.f32 %v551_v32, 0.0 }
 0x1c4   :  { %583 = vst [vmem:[%s1452_s4 + $0x78] sm:$0xff] %v567_v15 }

// kernel: graph_unet_forward.6
= control target key start
LH: loop header
LB: loop body
LE: loop exit
PB: predicated region body
PF: predicated region fallthrough
CT: control target
= control target key end

     0   :  { %v28_v0 = vlaneseq  ;;  %s2413_s0 = inlined_call_operand.vmem [shape: f32[128,128], index: 0, kind: input, shape index: {}]   ;;  %s2414_s2 = inlined_call_operand.vmem [shape: f32[128,128], index: 2, kind: input, shape index: {}]   ;;  %s2415_s1 = inlined_call_operand.vmem [shape: f32[128,128], index: 1, kind: input, shape index: {}]   ;;  %s2416_s4 = inlined_call_operand.vmem [shape: f32[128,1], index: 4, kind: input, shape index: {}]   ;;  %s2417_s3 = inlined_call_operand.vmem [shape: f32[128,128], index: 3, kind: input, shape index: {}]   ;;  %s2418_s5 = inlined_call_operand.vmem [shape: f32[128,128], index: 5, kind: input, shape index: {}]   ;;  %s2419_s7 = inlined_call_operand.vmem [shape: f32[128,128], index: 7, kind: output, shape index: {0}]   ;;  %s2420_s6 = inlined_call_operand.vmem [shape: f32[8,128], index: 6, kind: input, shape index: {}]   ;;  %s2421_s8 = inlined_call_operand.vmem [shape: f32[128,128], index: 8, kind: output, shape index: {1}]  }
   0x1   :  { %v78_v4 = vld [vmem:[%s2413_s0 + $0x78] sm:$0xff]  ;;  %v77_v6 = vld [vmem:[%s2413_s0 + $0x70] sm:$0xff]  ;;  %v76_v9 = vld [vmem:[%s2413_s0 + $0x68] sm:$0xff] }
   0x2   :  { %v1201_v1 = vshrl.u32 %v28_v0, 7  ;;  %v1203_v2 = vand.u32 127, %v28_v0  ;;  %v75_v13 = vld [vmem:[%s2413_s0 + $0x60] sm:$0xff]  ;;  %v74_v16 = vld [vmem:[%s2413_s0 + $0x58] sm:$0xff]  ;;  %v73_v19 = vld [vmem:[%s2413_s0 + $0x50] sm:$0xff] }
   0x3   :  { %v72_v22 = vld [vmem:[%s2413_s0 + $0x48] sm:$0xff]  ;;  %v71_v25 = vld [vmem:[%s2413_s0 + $0x40] sm:$0xff]  ;;  %v70_v28 = vld [vmem:[%s2413_s0 + $0x38] sm:$0xff] }
   0x4   :  { %v1206_v3 = vadd.s32 120, %v1201_v1  ;;  %v1212_v5 = vadd.s32 112, %v1201_v1  ;;  %v1218_v7 = vadd.s32 104, %v1201_v1  ;;  %v1221_v8 = vadd.s32 96, %v1201_v1  ;;  %v69_v31 = vld [vmem:[%s2413_s0 + $0x30] sm:$0xff]  ;;  %v68_v34 = vld [vmem:[%s2413_s0 + $0x28] sm:$0xff] }
   0x5   :  { %v1233_v10 = vadd.s32 88, %v1201_v1  ;;  %v1252_v14 = vadd.s32 80, %v1201_v1  ;;  %v1267_v17 = vadd.s32 72, %v1201_v1  ;;  %v1282_v20 = vadd.s32 64, %v1201_v1  ;;  %v67_v37 = vld [vmem:[%s2413_s0 + $0x20] sm:$0xff]  ;;  %v66_v40 = vld [vmem:[%s2413_s0 + $0x18] sm:$0xff] }
   0x6   :  { %vm2426_vm0 = vcmp.eq.s32.totalorder %v1206_v3, %v1203_v2  ;;  %vm2427_vm1 = vcmp.eq.s32.totalorder %v1212_v5, %v1203_v2  ;;  %vm60_vm2 = vcmp.eq.s32.totalorder %v1218_v7, %v1203_v2  ;;  %vm59_vm3 = vcmp.eq.s32.totalorder %v1221_v8, %v1203_v2  ;;  %v65_v43 = vld [vmem:[%s2413_s0 + $0x10] sm:$0xff]  ;;  %v64_v45 = vld [vmem:[%s2413_s0 + $0x8] sm:$0xff]  ;;  %v63_v47 = vld [vmem:[%s2413_s0] sm:$0xff] }
   0x7   :  { %v1238_v11 = vsel %vm2426_vm0, 1.0, %v78_v4  ;;  %v1243_v12 = vsel %vm2427_vm1, 1.0, %v77_v6  ;;  %v1257_v15 = vsel %vm60_vm2, 1.0, %v76_v9  ;;  %vm58_vm4 = vcmp.eq.s32.totalorder %v1233_v10, %v1203_v2  ;;  %v1461_v6 = vld [vmem:[%s2414_s2] sm:$0xff] }
   0x8   :  { %1087 = vmatpush.msra.mxu2 %v1238_v11  ;;  %95 = vmatpush.msra.mxu0 %v1238_v11  ;;  %v1272_v18 = vsel %vm59_vm3, 1.0, %v75_v13  ;;  %vm57_vm5 = vcmp.eq.s32.totalorder %v1252_v14, %v1203_v2  ;;  %v1287_v21 = vsel %vm58_vm4, 1.0, %v74_v16  ;;  %vm56_vm6 = vcmp.eq.s32.totalorder %v1267_v17, %v1203_v2  ;;  %v1466_v9 = vld [vmem:[%s2414_s2 + $0x40] sm:$0xff]  ;;  %v359_v16 = vld [vmem:[%s2415_s1 + $0x68] sm:$0xff] }
   0x9   :  { %v1297_v23 = vadd.s32 56, %v1201_v1  ;;  %v1302_v24 = vsel %vm57_vm5, 1.0, %v73_v19  ;;  %vm55_vm7 = vcmp.eq.s32.totalorder %v1282_v20, %v1203_v2  ;;  %v1312_v26 = vadd.s32 48, %v1201_v1  ;;  %v1487_v19 = vld [vmem:[%s2414_s2 + $0x8] sm:$0xff] }
   0xa   :  { %1088 = vmatpush.msra.mxu2 %v1243_v12  ;;  %96 = vmatpush.msra.mxu0 %v1243_v12  ;;  %v88_v27 = vsel %vm56_vm6, 1.0, %v72_v22  ;;  %v1325_v29 = vadd.s32 40, %v1201_v1  ;;  %v87_v30 = vsel %vm55_vm7, 1.0, %v71_v25  ;;  %v1337_v32 = vadd.s32 32, %v1201_v1  ;;  %v356_v22 = vld [vmem:[%s2415_s1 + $0x50] sm:$0xff] }
   0xb   :  { %vm54_vm8 = vcmp.eq.s32.totalorder %v1297_v23, %v1203_v2  ;;  %vm2428_vm9 = vcmp.eq.s32.totalorder %v1312_v26, %v1203_v2  ;;  %v1348_v35 = vadd.s32 24, %v1201_v1  ;;  %v1359_v38 = vadd.s32 16, %v1201_v1 }
   0xc   :  { %1089 = vmatpush.msra.mxu2 %v1257_v15  ;;  %97 = vmatpush.msra.mxu0 %v1257_v15  ;;  %v86_v33 = vsel %vm54_vm8, 1.0, %v70_v28  ;;  %vm2429_vm10 = vcmp.eq.s32.totalorder %v1325_v29, %v1203_v2  ;;  %v85_v36 = vsel %vm2428_vm9, 1.0, %v69_v31  ;;  %vm2430_vm11 = vcmp.eq.s32.totalorder %v1337_v32, %v1203_v2  ;;  %v355_v28 = vld [vmem:[%s2415_s1 + $0x48] sm:$0xff]  ;;  %v1511_v31 = vld [vmem:[%s2414_s2 + $0x10] sm:$0xff] }
   0xd   :  { %v84_v39 = vsel %vm2429_vm10, 1.0, %v68_v34  ;;  %vm2425_vm12 = vcmp.eq.s32.totalorder %v1348_v35, %v1203_v2  ;;  %v1370_v41 = vadd.s32 8, %v1201_v1  ;;  %v83_v42 = vsel %vm2430_vm11, 1.0, %v67_v37  ;;  %v352_v34 = vld [vmem:[%s2415_s1 + $0x30] sm:$0xff] }
   0xe   :  { %1090 = vmatpush.msra.mxu2 %v1272_v18  ;;  %98 = vmatpush.msra.mxu0 %v1272_v18  ;;  %vm2424_vm13 = vcmp.eq.s32.totalorder %v1359_v38, %v1203_v2  ;;  %v82_v44 = vsel %vm2425_vm12, 1.0, %v66_v40  ;;  %vm2422_vm15 = vcmp.eq.s32.totalorder %v1201_v1, %v1203_v2  ;;  %vm1061_vm12 = vmneg %vm59_vm3  ;;  %v351_v40 = vld [vmem:[%s2415_s1 + $0x28] sm:$0xff] }
   0xf   :  { %vm2423_vm14 = vcmp.eq.s32.totalorder %v1370_v41, %v1203_v2  ;;  %v81_v46 = vsel %vm2424_vm13, 1.0, %v65_v43  ;;  %v79_v49 = vsel %vm2422_vm15, 1.0, %v63_v47  ;;  %vm1055_vm15 = vmneg %vm2426_vm0  ;;  %v1535_v43 = vld [vmem:[%s2414_s2 + $0x18] sm:$0xff] }
  0x10   :  { %1091 = vmatpush.msra.mxu2 %v1287_v21  ;;  %99 = vmatpush.msra.mxu0 %v1287_v21  ;;  %v80_v48 = vsel %vm2423_vm14, 1.0, %v64_v45  ;;  %vm1057_vm14 = vmneg %vm2427_vm1  ;;  %v348_v45 = vld [vmem:[%s2415_s1 + $0x10] sm:$0xff] }
  0x11   :  { %vm1059_vm13 = vmneg %vm60_vm2 }
  0x12   :  { %1092 = vmatpush.msra.mxu2 %v1302_v24  ;;  %100 = vmatpush.msra.mxu0 %v1302_v24  ;;  %vm1063_vm0 = vmneg %vm58_vm4 }
  0x14   :  { %1093 = vmatpush.msra.mxu2 %v88_v27  ;;  %101 = vmatpush.msra.mxu0 %v88_v27 }
  0x16   :  { %1094 = vmatpush.msra.mxu2 %v87_v30  ;;  %102 = vmatpush.msra.mxu0 %v87_v30 }
  0x18   :  { %1095 = vmatpush.msra.mxu2 %v86_v33  ;;  %103 = vmatpush.msra.mxu0 %v86_v33 }
  0x1a   :  { %1096 = vmatpush.msra.mxu2 %v85_v36  ;;  %104 = vmatpush.msra.mxu0 %v85_v36 }
  0x1c   :  { %1097 = vmatpush.msra.mxu2 %v84_v39  ;;  %105 = vmatpush.msra.mxu0 %v84_v39 }
  0x1e   :  { %1098 = vmatpush.msra.mxu2 %v83_v42  ;;  %106 = vmatpush.msra.mxu0 %v83_v42 }
  0x20   :  { %1099 = vmatpush.msra.mxu2 %v82_v44  ;;  %107 = vmatpush.msra.mxu0 %v82_v44 }
  0x22   :  { %1100 = vmatpush.msra.mxu2 %v81_v46  ;;  %108 = vmatpush.msra.mxu0 %v81_v46 }
  0x24   :  { %1101 = vmatpush.msra.mxu2 %v80_v48  ;;  %109 = vmatpush.msra.mxu0 %v80_v48 }
  0x26   :  { %1102 = vmatpush.msra.mxu2 %v79_v49  ;;  %110 = vmatpush.msra.mxu0 %v79_v49 }
  0x27   :  { %135 = vmatmul.f32.vlgmr.msra.gmra.mxu2 %v87_v30  ;;  %111 = vmatmul.f32.vlgmr.msra.gmra.mxu0 %v79_v49  ;;  %v347_v49 = vld [vmem:[%s2415_s1 + $0x8] sm:$0xff] }
  0x2f   :  { %138 = vmatmul.f32.gmra.mxu2 %v88_v27  ;;  %114 = vmatmul.f32.gmra.mxu0 %v80_v48  ;;  %v354_v27 = vld [vmem:[%s2415_s1 + $0x40] sm:$0xff] }
  0x30   :  { %v366_v30 = vpack.c.bf16 %v355_v28, %v354_v27  ;;  %v346_v48 = vld [vmem:[%s2415_s1] sm:$0xff]  ;;  %v425_v27 = vld [vmem:[%s2416_s4 + $0x30] sm:$0xff] }
  0x31   :  { %v261_v28 = vld [vmem:[%s2417_s3 + $0x20] sm:$0xff] }
  0x37   :  { %141 = vmatmul.f32.gmra.mxu2 %v1302_v24  ;;  %117 = vmatmul.f32.gmra.mxu0 %v81_v46  ;;  %v357_v24 = vld [vmem:[%s2415_s1 + $0x58] sm:$0xff] }
  0x38   :  { %v367_v25 = vpack.c.bf16 %v357_v24, %v356_v22  ;;  %v349_v46 = vld [vmem:[%s2415_s1 + $0x18] sm:$0xff]  ;;  %v339_v22 = vpack.c.bf16 %v1535_v43, %v1511_v31  ;;  %v263_v24 = vld [vmem:[%s2417_s3 + $0x30] sm:$0xff] }
  0x39   :  { %v363_v47 = vpack.c.bf16 %v349_v46, %v348_v45  ;;  %v434_v46 = vld [vmem:[%s2416_s4 + $0x78] sm:$0xff] }
  0x3f   :  { %144 = vmatmul.f32.gmra.mxu2 %v1287_v21  ;;  %120 = vmatmul.f32.gmra.mxu0 %v82_v44  ;;  %v1492_v21 = vld [vmem:[%s2414_s2 + $0x48] sm:$0xff]  ;;  %v1540_v44 = vld [vmem:[%s2414_s2 + $0x58] sm:$0xff] }
  0x47   :  { %147 = vmatmul.f32.gmra.mxu2 %v1272_v18  ;;  %123 = vmatmul.f32.gmra.mxu0 %v83_v42 }
  0x4f   :  { %150 = vmatmul.f32.gmra.mxu2 %v1257_v15  ;;  %126 = vmatmul.f32.gmra.mxu0 %v84_v39  ;;  %v358_v15 = vld [vmem:[%s2415_s1 + $0x60] sm:$0xff] }
  0x50   :  { %v368_v18 = vpack.c.bf16 %v359_v16, %v358_v15  ;;  %v350_v39 = vld [vmem:[%s2415_s1 + $0x20] sm:$0xff]  ;;  %v422_v15 = vld [vmem:[%s2416_s4 + $0x18] sm:$0xff]  ;;  %v266_v16 = vld [vmem:[%s2417_s3 + $0x48] sm:$0xff] }
  0x51   :  { %v364_v42 = vpack.c.bf16 %v351_v40, %v350_v39  ;;  %v428_v39 = vld [vmem:[%s2416_s4 + $0x48] sm:$0xff]  ;;  %v431_v40 = vld [vmem:[%s2416_s4 + $0x60] sm:$0xff] }
  0x57   :  { %153 = vmatmul.f32.gmra.mxu2 %v1243_v12  ;;  %129 = vmatmul.f32.gmra.mxu0 %v85_v36  ;;  %v361_v12 = vld [vmem:[%s2415_s1 + $0x78] sm:$0xff] }
  0x58   :  { %v353_v36 = vld [vmem:[%s2415_s1 + $0x38] sm:$0xff] }
  0x59   :  { %v365_v37 = vpack.c.bf16 %v353_v36, %v352_v34  ;;  %v258_v34 = vld [vmem:[%s2417_s3 + $0x8] sm:$0xff] }
  0x5f   :  { %156 = vmatmul.f32.gmra.mxu2 %v1238_v11  ;;  %132 = vmatmul.f32.gmra.mxu0 %v86_v33  ;;  %v360_v11 = vld [vmem:[%s2415_s1 + $0x70] sm:$0xff] }
  0x60   :  { %v369_v13 = vpack.c.bf16 %v361_v12, %v360_v11  ;;  %v1516_v33 = vld [vmem:[%s2414_s2 + $0x50] sm:$0xff]  ;;  %v270_v11 = vld [vmem:[%s2417_s3 + $0x68] sm:$0xff]  ;;  %v269_v12 = vld [vmem:[%s2417_s3 + $0x60] sm:$0xff] }
  0xa4   :  { %v1408_v51 = vpop.f32.mrf.mxu0 }
  0xaa   :  { %v136_v50 = vpop.f32.mrf.mxu2 }
  0xac   :  { %v115_v53 = vpop.f32.mrf.mxu0 }
  0xb2   :  { %v139_v52 = vpop.f32.mrf.mxu2 }
  0xb4   :  { %v118_v55 = vpop.f32.mrf.mxu0 }
  0xba   :  { %v142_v54 = vpop.f32.mrf.mxu2 }
  0xbc   :  { %v121_v57 = vpop.f32.mrf.mxu0 }
  0xc2   :  { %v145_v56 = vpop.f32.mrf.mxu2 }
  0xc4   :  { %v124_v60 = vpop.f32.mrf.mxu0 }
  0xca   :  { %v148_v58 = vpop.f32.mrf.mxu2 }
  0xcc   :  { %v127_v62 = vpop.f32.mrf.mxu0 }
  0xd2   :  { %v151_v59 = vpop.f32.mrf.mxu2 }
  0xd4   :  { %v130_v0 = vpop.f32.mrf.mxu0 }
  0xda   :  { %v154_v61 = vpop.f32.mrf.mxu2 }
  0xdc   :  { %v133_v4 = vpop.f32.mrf.mxu0 }
  0xe2   :  { %v157_v63 = vpop.f32.mrf.mxu2 }
  0xe3   :  { %1056 = vmatpush.msk.msra.mxu1 %vm1055_vm15, %v157_v63  ;;  %1103 = vmatpush.msk.msra.mxu3 %vm1055_vm15, %v157_v63  ;;  %vm1065_vm15 = vmneg %vm57_vm5  ;;  %v420_v63 = vld [vmem:[%s2416_s4 + $0x8] sm:$0xff] }
  0xe5   :  { %1058 = vmatpush.msk.msra.mxu1 %vm1057_vm14, %v154_v61  ;;  %1104 = vmatpush.msk.msra.mxu3 %vm1057_vm14, %v154_v61  ;;  %vm1067_vm14 = vmneg %vm56_vm6  ;;  %v183_v61 = vld [vmem:[%s2414_s2 + $0x38] sm:$0xff] }
  0xe7   :  { %1060 = vmatpush.msk.msra.mxu1 %vm1059_vm13, %v151_v59  ;;  %1105 = vmatpush.msk.msra.mxu3 %vm1059_vm13, %v151_v59  ;;  %vm1069_vm13 = vmneg %vm55_vm7  ;;  %v272_v59 = vld [vmem:[%s2417_s3 + $0x78] sm:$0xff] }
  0xe8   :  { %273 = vmatpush.msrb.mxu2 %v272_v59 }
  0xe9   :  { %1062 = vmatpush.msk.msra.mxu1 %vm1061_vm12, %v148_v58  ;;  %1106 = vmatpush.msk.msra.mxu3 %vm1061_vm12, %v148_v58  ;;  %vm1071_vm12 = vmneg %vm54_vm8  ;;  %v419_v58 = vld [vmem:[%s2416_s4] sm:$0xff] }
  0xeb   :  { %1064 = vmatpush.msk.msra.mxu1 %vm1063_vm0, %v145_v56  ;;  %1107 = vmatpush.msk.msra.mxu3 %vm1063_vm0, %v145_v56  ;;  %vm1073_vm0 = vmneg %vm2428_vm9  ;;  %v1583_v56 = vld [vmem:[%s2414_s2 + $0x30] sm:$0xff] }
  0xec   :  { %v341_v45 = vpack.c.bf16 %v183_v61, %v1583_v56 }
  0xed   :  { %1066 = vmatpush.msk.msra.mxu1 %vm1065_vm15, %v142_v54  ;;  %1108 = vmatpush.msk.msra.mxu3 %vm1065_vm15, %v142_v54  ;;  %vm1075_vm15 = vmneg %vm2429_vm10  ;;  %v1571_v54 = vld [vmem:[%s2414_s2 + $0x28] sm:$0xff] }
  0xef   :  { %1068 = vmatpush.msk.msra.mxu1 %vm1067_vm14, %v139_v52  ;;  %1109 = vmatpush.msk.msra.mxu3 %vm1067_vm14, %v139_v52  ;;  %vm1077_vm14 = vmneg %vm2430_vm11  ;;  %v1564_v52 = vld [vmem:[%s2414_s2 + $0x60] sm:$0xff] }
  0xf1   :  { %1070 = vmatpush.msk.msra.mxu1 %vm1069_vm13, %v136_v50  ;;  %1110 = vmatpush.msk.msra.mxu3 %vm1069_vm13, %v136_v50  ;;  %vm2437_vm13 = vcmp.eq.s32.totalorder %v1348_v35, %v1203_v2  ;;  %v362_v50 = vpack.c.bf16 %v347_v49, %v346_v48  ;;  %v429_v48 = vld [vmem:[%s2416_s4 + $0x50] sm:$0xff]  ;;  %v342_v49 = vpack.c.bf16 %v1492_v21, %v1466_v9 }
  0xf2   :  { %vm1079_vm1 = vmneg %vm2437_vm13 }
  0xf3   :  { %1072 = vmatpush.msk.msra.mxu1 %vm1071_vm12, %v133_v4  ;;  %1111 = vmatpush.msk.msra.mxu3 %vm1071_vm12, %v133_v4  ;;  %vm2438_vm12 = vcmp.eq.s32.totalorder %v1359_v38, %v1203_v2  ;;  %v421_v4 = vld [vmem:[%s2416_s4 + $0x10] sm:$0xff] }
  0xf4   :  { %vm1081_vm9 = vmneg %vm2438_vm12 }
  0xf5   :  { %1074 = vmatpush.msk.msra.mxu1 %vm1073_vm0, %v130_v0  ;;  %1112 = vmatpush.msk.msra.mxu3 %vm1073_vm0, %v130_v0  ;;  %vm2439_vm0 = vcmp.eq.s32.totalorder %v1370_v41, %v1203_v2  ;;  %v338_v0 = vpack.c.bf16 %v1487_v19, %v1461_v6 }
  0xf6   :  { %vm1083_vm10 = vmneg %vm2439_vm0 }
  0xf7   :  { %1076 = vmatpush.msk.msra.mxu1 %vm1075_vm15, %v127_v62  ;;  %1113 = vmatpush.msk.msra.mxu3 %vm1075_vm15, %v127_v62  ;;  %vm2440_vm15 = vcmp.eq.s32.totalorder %v1201_v1, %v1203_v2  ;;  %v1607_v62 = vld [vmem:[%s2414_s2 + $0x78] sm:$0xff] }
  0xf8   :  { %vm1085_vm11 = vmneg %vm2440_vm15 }
  0xf9   :  { %1078 = vmatpush.msk.msra.mxu1 %vm1077_vm14, %v124_v60  ;;  %1114 = vmatpush.msk.msra.mxu3 %vm1077_vm14, %v124_v60  ;;  %v271_v60 = vld [vmem:[%s2417_s3 + $0x70] sm:$0xff] }
  0xfa   :  { %274 = vmatpush.msrb.mxu2 %v271_v60 }
  0xfb   :  { %1080 = vmatpush.msk.msra.mxu1 %vm1079_vm1, %v121_v57  ;;  %1115 = vmatpush.msk.msra.mxu3 %vm1079_vm1, %v121_v57  ;;  %v1588_v57 = vld [vmem:[%s2414_s2 + $0x70] sm:$0xff] }
  0xfc   :  { %275 = vmatpush.msrb.mxu2 %v270_v11  ;;  %v557_v11 = vld [vmem:[%s2418_s5 + $0x50] sm:$0xff] }
  0xfd   :  { %1082 = vmatpush.msk.msra.mxu1 %vm1081_vm9, %v118_v55  ;;  %1116 = vmatpush.msk.msra.mxu3 %vm1081_vm9, %v118_v55  ;;  %v1576_v55 = vld [vmem:[%s2414_s2 + $0x68] sm:$0xff] }
  0xfe   :  { %276 = vmatpush.msrb.mxu2 %v269_v12  ;;  %v558_v12 = vld [vmem:[%s2418_s5 + $0x58] sm:$0xff] }
  0xff   :  { %1084 = vmatpush.msk.msra.mxu1 %vm1083_vm10, %v115_v53  ;;  %1117 = vmatpush.msk.msra.mxu3 %vm1083_vm10, %v115_v53  ;;  %v1155_v53 = vmov 0  }
 0x100   :  { %1120 = vset.pattern.permute.xlu0 %v1155_v53  ;;  %1121 = vset.pattern.permute.xlu1 %v1155_v53 }
 0x101   :  { %1086 = vmatpush.msk.msra.mxu1 %vm1085_vm11, %v1408_v51  ;;  %1118 = vmatpush.msk.msra.mxu3 %vm1085_vm11, %v1408_v51  ;;  %v1559_v51 = vld [vmem:[%s2414_s2 + $0x20] sm:$0xff] }
 0x102   :  { %208 = vmatmul.f32.vlgmr.msra.gmra.mxu1 %v1461_v6  ;;  %232 = vmatmul.f32.vlgmr.msra.gmra.mxu3 %v1466_v9  ;;  %v267_v6 = vld [vmem:[%s2417_s3 + $0x50] sm:$0xff]  ;;  %v340_v36 = vpack.c.bf16 %v1571_v54, %v1559_v51 }
 0x103   :  { %370 = vmatpush.bf16.msrb.mxu3 %v369_v13  ;;  %1122 = vset.pattern.permute.xlu2 %v1155_v53  ;;  %v268_v13 = vld [vmem:[%s2417_s3 + $0x58] sm:$0xff]  ;;  %v561_v9 = vld [vmem:[%s2418_s5 + $0x70] sm:$0xff] }
 0x104   :  { %437 = vperm.xlu0 %1120, %v419_v58   ;;  %447 = vperm.xlu1 %1121, %v421_v4   ;;  %v343_v58 = vpack.c.bf16 %v1540_v44, %v1516_v33 }
 0x105   :  { %277 = vmatpush.msrb.mxu2 %v268_v13  ;;  %v849_v13 = vpack.c.bf16 %v558_v12, %v557_v11 }
 0x107   :  { %371 = vmatpush.bf16.msrb.mxu3 %v368_v18  ;;  %278 = vmatpush.msrb.mxu2 %v267_v6  ;;  %v265_v18 = vld [vmem:[%s2417_s3 + $0x40] sm:$0xff] }
 0x108   :  { %v555_v6 = vld [vmem:[%s2418_s5 + $0x40] sm:$0xff] }
 0x109   :  { %279 = vmatpush.msrb.mxu2 %v266_v16 }
 0x10a   :  { %211 = vmatmul.f32.gmra.mxu1 %v1487_v19  ;;  %235 = vmatmul.f32.gmra.mxu3 %v1492_v21  ;;  %v264_v19 = vld [vmem:[%s2417_s3 + $0x38] sm:$0xff] }
 0x10b   :  { %372 = vmatpush.bf16.msrb.mxu3 %v367_v25  ;;  %280 = vmatpush.msrb.mxu2 %v265_v18  ;;  %v262_v25 = vld [vmem:[%s2417_s3 + $0x28] sm:$0xff]  ;;  %v562_v21 = vld [vmem:[%s2418_s5 + $0x78] sm:$0xff] }
 0x10c   :  { %442 = vperm.xlu0 %1120, %v420_v63   ;;  %452 = vperm.xlu1 %1121, %v422_v15   ;;  %v851_v60 = vpack.c.bf16 %v562_v21, %v561_v9  ;;  %v556_v15 = vld [vmem:[%s2418_s5 + $0x48] sm:$0xff] }
 0x10d   :  { %281 = vmatpush.msrb.mxu2 %v264_v19  ;;  %v848_v18 = vpack.c.bf16 %v556_v15, %v555_v6  ;;  %v344_v19 = vpack.c.bf16 %v1576_v55, %v1564_v52 }
 0x10e   :  { %852 = vmatpush.bf16.msrb.mxu0 %v851_v60 }
 0x10f   :  { %373 = vmatpush.bf16.msrb.mxu3 %v366_v30  ;;  %282 = vmatpush.msrb.mxu2 %v263_v24  ;;  %v260_v30 = vld [vmem:[%s2417_s3 + $0x18] sm:$0xff] }
 0x110   :  { %v430_v24 = vld [vmem:[%s2416_s4 + $0x58] sm:$0xff] }
 0x111   :  { %283 = vmatpush.msrb.mxu2 %v262_v25  ;;  %v553_v25 = vld [vmem:[%s2418_s5 + $0x30] sm:$0xff] }
 0x112   :  { %214 = vmatmul.f32.gmra.mxu1 %v1511_v31  ;;  %238 = vmatmul.f32.gmra.mxu3 %v1516_v33  ;;  %v259_v31 = vld [vmem:[%s2417_s3 + $0x10] sm:$0xff]  ;;  %v559_v33 = vld [vmem:[%s2418_s5 + $0x60] sm:$0xff] }
 0x113   :  { %374 = vmatpush.bf16.msrb.mxu3 %v365_v37  ;;  %284 = vmatpush.msrb.mxu2 %v261_v28  ;;  %v257_v37 = vld [vmem:[%s2417_s3] sm:$0xff] }
 0x114   :  { %467 = vperm.xlu0 %1120, %v425_v27   ;;  %v554_v27 = vld [vmem:[%s2418_s5 + $0x38] sm:$0xff] }
 0x115   :  { %285 = vmatpush.msrb.mxu2 %v260_v30  ;;  %v847_v28 = vpack.c.bf16 %v554_v27, %v553_v25 }
 0x117   :  { %375 = vmatpush.bf16.msrb.mxu3 %v364_v42  ;;  %286 = vmatpush.msrb.mxu2 %v259_v31  ;;  %v423_v42 = vld [vmem:[%s2416_s4 + $0x20] sm:$0xff] }
 0x118   :  { %457 = vperm.xlu2 %1122, %v423_v42   ;;  %v547_v42 = vld [vmem:[%s2418_s5] sm:$0xff] }
 0x119   :  { %287 = vmatpush.msrb.mxu2 %v258_v34 }
 0x11a   :  { %217 = vmatmul.f32.gmra.mxu1 %v1535_v43  ;;  %241 = vmatmul.f32.gmra.mxu3 %v1540_v44  ;;  %v426_v43 = vld [vmem:[%s2416_s4 + $0x38] sm:$0xff]  ;;  %v560_v44 = vld [vmem:[%s2418_s5 + $0x68] sm:$0xff] }
 0x11b   :  { %376 = vmatpush.bf16.msrb.mxu3 %v363_v47  ;;  %288 = vmatpush.msrb.mxu2 %v257_v37  ;;  %v424_v47 = vld [vmem:[%s2416_s4 + $0x28] sm:$0xff]  ;;  %v549_v37 = vld [vmem:[%s2418_s5 + $0x10] sm:$0xff] }
 0x11c   :  { %482 = vperm.xlu0 %1120, %v428_v39   ;;  %472 = vperm.xlu1 %1121, %v426_v43   ;;  %v550_v39 = vld [vmem:[%s2418_s5 + $0x18] sm:$0xff]  ;;  %v548_v43 = vld [vmem:[%s2418_s5 + $0x8] sm:$0xff] }
 0x11f   :  { %377 = vmatpush.bf16.msrb.mxu3 %v362_v50 }
 0x120   :  { %462 = vperm.xlu2 %1122, %v424_v47   ;;  %v345_v47 = vpack.c.bf16 %v1607_v62, %v1588_v57 }
 0x122   :  { %220 = vmatmul.f32.gmra.mxu1 %v1559_v51  ;;  %244 = vmatmul.f32.gmra.mxu3 %v1564_v52  ;;  %v432_v51 = vld [vmem:[%s2416_s4 + $0x68] sm:$0xff]  ;;  %v551_v52 = vld [vmem:[%s2418_s5 + $0x20] sm:$0xff] }
 0x124   :  { %497 = vperm.xlu0 %1120, %v431_v40   ;;  %487 = vperm.xlu1 %1121, %v429_v48   ;;  %v845_v40 = vpack.c.bf16 %v550_v39, %v549_v37 }
 0x12a   :  { %223 = vmatmul.f32.gmra.mxu1 %v1571_v54  ;;  %247 = vmatmul.f32.gmra.mxu3 %v1576_v55  ;;  %v552_v55 = vld [vmem:[%s2418_s5 + $0x28] sm:$0xff] }
 0x12b   :  { %v846_v31 = vpack.c.bf16 %v552_v55, %v551_v52 }
 0x12c   :  { %512 = vperm.xlu0 %1120, %v434_v46   ;;  %502 = vperm.xlu1 %1121, %v432_v51   ;;  %v844_v46 = vpack.c.bf16 %v548_v43, %v547_v42 }
 0x132   :  { %226 = vmatmul.f32.gmra.mxu1 %v1583_v56  ;;  %250 = vmatmul.f32.gmra.mxu3 %v1588_v57 }
 0x13a   :  { %229 = vmatmul.f32.gmra.mxu1 %v183_v61  ;;  %253 = vmatmul.f32.gmra.mxu3 %v1607_v62  ;;  %v427_v61 = vld [vmem:[%s2416_s4 + $0x40] sm:$0xff] }
 0x13b   :  { %477 = vperm.xlu2 %1122, %v427_v61  }
 0x142   :  { %378 = vmatmul.bf16.vlgmr.msrb.gmra.mxu3 %v338_v0  ;;  %v850_v0 = vpack.c.bf16 %v560_v44, %v559_v33 }
 0x143   :  { %492 = vperm.xlu2 %1122, %v430_v24  }
 0x144   :  { %853 = vmatpush.bf16.msrb.mxu0 %v850_v0 }
 0x148   :  { %854 = vmatpush.bf16.msrb.mxu0 %v849_v13 }
 0x14c   :  { %855 = vmatpush.bf16.msrb.mxu0 %v848_v18 }
 0x150   :  { %856 = vmatpush.bf16.msrb.mxu0 %v847_v28 }
 0x152   :  { %383 = vmatmul.bf16.gmra.mxu3 %v339_v22 }
 0x154   :  { %857 = vmatpush.bf16.msrb.mxu0 %v846_v31 }
 0x158   :  { %858 = vmatpush.bf16.msrb.mxu0 %v845_v40 }
 0x15c   :  { %859 = vmatpush.bf16.msrb.mxu0 %v844_v46 }
 0x162   :  { %388 = vmatmul.bf16.gmra.mxu3 %v340_v36  ;;  %v433_v36 = vld [vmem:[%s2416_s4 + $0x70] sm:$0xff] }
 0x163   :  { %507 = vperm.xlu2 %1122, %v433_v36  }
 0x172   :  { %393 = vmatmul.bf16.gmra.mxu3 %v341_v45  ;;  %v458_v11 = vpop.permute.xlu2 %457 }
 0x176   :  { %v448_v57 = vpop.permute.xlu1 %447 }
 0x17e   :  { %v453_v33 = vpop.permute.xlu1 %452 }
 0x17f   :  { %v209_v50 = vpop.f32.mrf.mxu1 }
 0x180   :  { %289 = vmatmul.f32.vlgmr.msrb.gmra.mxu2 %v209_v50 }
 0x182   :  { %398 = vmatmul.bf16.gmra.mxu3 %v342_v49 }
 0x185   :  { %v1697_v53 = vpop.f32.mrf.mxu3 }
 0x187   :  { %v212_v54 = vpop.f32.mrf.mxu1 }
 0x188   :  { %292 = vmatmul.f32.gmra.mxu2 %v212_v54  ;;  %v438_v54 = vpop.permute.xlu0 %437 }
 0x18d   :  { %v1699_v56 = vpop.f32.mrf.mxu3 }
 0x18f   :  { %v215_v59 = vpop.f32.mrf.mxu1 }
 0x190   :  { %295 = vmatmul.f32.gmra.mxu2 %v215_v59  ;;  %v443_v59 = vpop.permute.xlu0 %442 }
 0x192   :  { %403 = vmatmul.bf16.gmra.mxu3 %v343_v58 }
 0x195   :  { %v239_v63 = vpop.f32.mrf.mxu3 }
 0x197   :  { %v218_v4 = vpop.f32.mrf.mxu1 }
 0x198   :  { %298 = vmatmul.f32.gmra.mxu2 %v218_v4 }
 0x19d   :  { %v242_v16 = vpop.f32.mrf.mxu3 }
 0x19f   :  { %v221_v22 = vpop.f32.mrf.mxu1 }
 0x1a0   :  { %301 = vmatmul.f32.gmra.mxu2 %v221_v22 }
 0x1a2   :  { %408 = vmatmul.bf16.gmra.mxu3 %v344_v19  ;;  %v473_v19 = vpop.permute.xlu1 %472 }
 0x1a5   :  { %v245_v30 = vpop.f32.mrf.mxu3 }
 0x1a7   :  { %v224_v34 = vpop.f32.mrf.mxu1 }
 0x1a8   :  { %304 = vmatmul.f32.gmra.mxu2 %v224_v34 }
 0x1aa   :  { %v488_v46 = vpop.permute.xlu1 %487 }
 0x1ad   :  { %v248_v45 = vpop.f32.mrf.mxu3 }
 0x1af   :  { %v227_v48 = vpop.f32.mrf.mxu1 }
 0x1b0   :  { %307 = vmatmul.f32.gmra.mxu2 %v227_v48 }
 0x1b2   :  { %413 = vmatmul.bf16.gmra.mxu3 %v345_v47 }
 0x1b5   :  { %v251_v49 = vpop.f32.mrf.mxu3 }
 0x1b7   :  { %v230_v50 = vpop.f32.mrf.mxu1 }
 0x1b8   :  { %310 = vmatmul.f32.gmra.mxu2 %v230_v50 }
 0x1bd   :  { %v254_v51 = vpop.f32.mrf.mxu3 }
 0x1c0   :  { %313 = vmatmul.f32.gmra.mxu2 %v1697_v53 }
 0x1c5   :  { %v379_v58 = vpop.f32.mrf.mxu3 }
 0x1c6   :  { %v515_v9 = vmul.f32 %v438_v54, %v379_v58 }
 0x1c8   :  { %316 = vmatmul.f32.gmra.mxu2 %v1699_v56  ;;  %v463_v56 = vpop.permute.xlu2 %462 }
 0x1cd   :  { %v381_v21 = vpop.f32.mrf.mxu3 }
 0x1ce   :  { %v516_v60 = vmul.f32 %v443_v59, %v381_v21 }
 0x1d0   :  { %v836_v61 = vpack.c.bf16 %v516_v60, %v515_v9  ;;  %319 = vmatmul.f32.gmra.mxu2 %v239_v63  ;;  %v478_v55 = vpop.permute.xlu2 %477  ;;  %v503_v9 = vpop.permute.xlu1 %502 }
 0x1d2   :  { %860 = vmatmul.bf16.vlgmr.msrb.gmra.mxu0 %v836_v61 }
 0x1d5   :  { %v384_v62 = vpop.f32.mrf.mxu3 }
 0x1d6   :  { %v517_v44 = vmul.f32 %v448_v57, %v384_v62 }
 0x1d8   :  { %322 = vmatmul.f32.gmra.mxu2 %v242_v16  ;;  %v468_v16 = vpop.permute.xlu0 %467  ;;  %v493_v43 = vpop.permute.xlu2 %492 }
 0x1dd   :  { %v386_v0 = vpop.f32.mrf.mxu3 }
 0x1de   :  { %v518_v4 = vmul.f32 %v453_v33, %v386_v0 }
 0x1e0   :  { %325 = vmatmul.f32.gmra.mxu2 %v245_v30  ;;  %v837_v53 = vpack.c.bf16 %v518_v4, %v517_v44  ;;  %v483_v34 = vpop.permute.xlu0 %482  ;;  %v508_v4 = vpop.permute.xlu2 %507 }
 0x1e2   :  { %865 = vmatmul.bf16.gmra.mxu0 %v837_v53 }
 0x1e5   :  { %v389_v12 = vpop.f32.mrf.mxu3 }
 0x1e6   :  { %v519_v13 = vmul.f32 %v458_v11, %v389_v12 }
 0x1e8   :  { %328 = vmatmul.f32.gmra.mxu2 %v248_v45  ;;  %v498_v59 = vpop.permute.xlu0 %497 }
 0x1ed   :  { %v391_v6 = vpop.f32.mrf.mxu3 }
 0x1ee   :  { %v520_v15 = vmul.f32 %v463_v56, %v391_v6 }
 0x1f0   :  { %331 = vmatmul.f32.gmra.mxu2 %v251_v49  ;;  %v838_v63 = vpack.c.bf16 %v520_v15, %v519_v13  ;;  %v513_v0 = vpop.permute.xlu0 %512 }
 0x1f2   :  { %870 = vmatmul.bf16.gmra.mxu0 %v838_v63 }
 0x1f5   :  { %v394_v18 = vpop.f32.mrf.mxu3 }
 0x1f6   :  { %v521_v22 = vmul.f32 %v468_v16, %v394_v18 }
 0x1f8   :  { %334 = vmatmul.f32.gmra.mxu2 %v254_v51 }
 0x1fd   :  { %v396_v24 = vpop.f32.mrf.mxu3 }
 0x1fe   :  { %v522_v25 = vmul.f32 %v473_v19, %v396_v24 }
 0x200   :  { %v839_v27 = vpack.c.bf16 %v522_v25, %v521_v22 }
 0x202   :  { %875 = vmatmul.bf16.gmra.mxu0 %v839_v27 }
 0x203   :  { %v1766_v28 = vpop.f32.mrf.mxu2 }
 0x204   :  { %531 = vst [vmem:[%s2419_s7] sm:$0xff] %v1766_v28 }
 0x205   :  { %v399_v52 = vpop.f32.mrf.mxu3 }
 0x206   :  { %v523_v31 = vmul.f32 %v478_v55, %v399_v52 }
 0x20b   :  { %v1772_v30 = vpop.f32.mrf.mxu2 }
 0x20c   :  { %532 = vst [vmem:[%s2419_s7 + $0x8] sm:$0xff] %v1772_v30 }
 0x20d   :  { %v401_v36 = vpop.f32.mrf.mxu3 }
 0x20e   :  { %v524_v37 = vmul.f32 %v483_v34, %v401_v36 }
 0x210   :  { %v840_v39 = vpack.c.bf16 %v524_v37, %v523_v31 }
 0x212   :  { %880 = vmatmul.bf16.gmra.mxu0 %v840_v39 }
 0x213   :  { %v1778_v40 = vpop.f32.mrf.mxu2 }
 0x214   :  { %533 = vst [vmem:[%s2419_s7 + $0x10] sm:$0xff] %v1778_v40 }
 0x215   :  { %v404_v42 = vpop.f32.mrf.mxu3 }
 0x216   :  { %v525_v48 = vmul.f32 %v488_v46, %v404_v42 }
 0x21b   :  { %v1784_v45 = vpop.f32.mrf.mxu2 }
 0x21c   :  { %534 = vst [vmem:[%s2419_s7 + $0x18] sm:$0xff] %v1784_v45 }
 0x21d   :  { %v406_v47 = vpop.f32.mrf.mxu3 }
 0x21e   :  { %v526_v49 = vmul.f32 %v493_v43, %v406_v47 }
 0x220   :  { %v841_v50 = vpack.c.bf16 %v526_v49, %v525_v48 }
 0x222   :  { %885 = vmatmul.bf16.gmra.mxu0 %v841_v50 }
 0x223   :  { %v1790_v51 = vpop.f32.mrf.mxu2 }
 0x224   :  { %535 = vst [vmem:[%s2419_s7 + $0x20] sm:$0xff] %v1790_v51 }
 0x225   :  { %v409_v54 = vpop.f32.mrf.mxu3 }
 0x226   :  { %v527_v60 = vmul.f32 %v498_v59, %v409_v54 }
 0x22b   :  { %v1796_v58 = vpop.f32.mrf.mxu2 }
 0x22c   :  { %536 = vst [vmem:[%s2419_s7 + $0x28] sm:$0xff] %v1796_v58 }
 0x22d   :  { %v411_v21 = vpop.f32.mrf.mxu3 }
 0x22e   :  { %v528_v61 = vmul.f32 %v503_v9, %v411_v21 }
 0x230   :  { %v842_v57 = vpack.c.bf16 %v528_v61, %v527_v60 }
 0x232   :  { %890 = vmatmul.bf16.gmra.mxu0 %v842_v57 }
 0x233   :  { %v1802_v62 = vpop.f32.mrf.mxu2 }
 0x234   :  { %537 = vst [vmem:[%s2419_s7 + $0x30] sm:$0xff] %v1802_v62 }
 0x235   :  { %v414_v33 = vpop.f32.mrf.mxu3 }
 0x236   :  { %v529_v11 = vmul.f32 %v508_v4, %v414_v33 }
 0x23b   :  { %v311_v44 = vpop.f32.mrf.mxu2 }
 0x23c   :  { %538 = vst [vmem:[%s2419_s7 + $0x38] sm:$0xff] %v311_v44 }
 0x23d   :  { %v416_v53 = vpop.f32.mrf.mxu3 }
 0x23e   :  { %v530_v12 = vmul.f32 %v513_v0, %v416_v53 }
 0x240   :  { %v843_v56 = vpack.c.bf16 %v530_v12, %v529_v11 }
 0x242   :  { %895 = vmatmul.bf16.gmra.mxu0 %v843_v56 }
 0x243   :  { %v314_v13 = vpop.f32.mrf.mxu2 }
 0x244   :  { %539 = vst [vmem:[%s2419_s7 + $0x40] sm:$0xff] %v314_v13  ;;  %vm572_vm1 = vcmp.eq.f32.partialorder %v314_v13, 0.0 }
 0x245   :  { %vm588_vm9 = vmand %vm55_vm7, %vm572_vm1  ;;  %vm2443_vm1 = vcmp.eq.s32.totalorder %v1212_v5, %v1203_v2 }
 0x246   :  { %v1823_v15 = vsel %vm588_vm9, 2.0, %v314_v13 }
 0x24b   :  { %v317_v6 = vpop.f32.mrf.mxu2 }
 0x24c   :  { %540 = vst [vmem:[%s2419_s7 + $0x48] sm:$0xff] %v317_v6  ;;  %vm573_vm10 = vcmp.eq.f32.partialorder %v317_v6, 0.0 }
 0x24d   :  { %vm589_vm11 = vmand %vm56_vm6, %vm573_vm10  ;;  %vm566_vm10 = vcmp.eq.f32.partialorder %v1778_v40, 0.0 }
 0x24e   :  { %v1825_v63 = vsel %vm589_vm11, 2.0, %v317_v6 }
 0x24f   :  { %v1869_v27 = vpop.f32.mrf.mxu0 }
 0x253   :  { %v320_v16 = vpop.f32.mrf.mxu2 }
 0x254   :  { %541 = vst [vmem:[%s2419_s7 + $0x50] sm:$0xff] %v320_v16  ;;  %vm574_vm7 = vcmp.eq.f32.partialorder %v320_v16, 0.0 }
 0x255   :  { %vm590_vm14 = vmand %vm57_vm5, %vm574_vm7 }
 0x256   :  { %v1835_v20 = vsel %vm590_vm14, 2.0, %v320_v16  ;;  %vm2446_vm14 = vcmp.eq.s32.totalorder %v1206_v3, %v1203_v2 }
 0x257   :  { %632 = vadd.xlane.f32.xlu1 %v1835_v20  ;;  %v1890_v31 = vpop.f32.mrf.mxu0 }
 0x25b   :  { %v323_v17 = vpop.f32.mrf.mxu2 }
 0x25c   :  { %542 = vst [vmem:[%s2419_s7 + $0x58] sm:$0xff] %v323_v17  ;;  %vm575_vm6 = vcmp.eq.f32.partialorder %v323_v17, 0.0 }
 0x25d   :  { %vm591_vm13 = vmand %vm58_vm4, %vm575_vm6 }
 0x25e   :  { %v1844_v19 = vsel %vm591_vm13, 2.0, %v323_v17  ;;  %vm565_vm13 = vcmp.eq.f32.partialorder %v1772_v30, 0.0 }
 0x25f   :  { %v1916_v3 = vpop.f32.mrf.mxu0 }
 0x263   :  { %v326_v22 = vpop.f32.mrf.mxu2 }
 0x264   :  { %543 = vst [vmem:[%s2419_s7 + $0x60] sm:$0xff] %v326_v22  ;;  %vm576_vm5 = vcmp.eq.f32.partialorder %v326_v22, 0.0 }
 0x265   :  { %vm592_vm12 = vmand %vm59_vm3, %vm576_vm5  ;;  %vm571_vm3 = vcmp.eq.f32.partialorder %v311_v44, 0.0  ;;  %vm568_vm5 = vcmp.eq.f32.partialorder %v1790_v51, 0.0 }
 0x266   :  { %v1854_v24 = vsel %vm592_vm12, 2.0, %v326_v22  ;;  %vm587_vm15 = vmand %vm54_vm8, %vm571_vm3  ;;  %vm2445_vm8 = vcmp.eq.s32.totalorder %v1359_v38, %v1203_v2  ;;  %vm2448_vm12 = vcmp.eq.s32.totalorder %v1370_v41, %v1203_v2 }
 0x267   :  { %2441 = vst [vmem:[#allocation2_spill] sm:$0xff] %v1854_v24  ;;  %636 = vadd.xlane.f32.xlu0 %v1854_v24  ;;  %v1880_v7 = vsel %vm587_vm15, 2.0, %v311_v44  ;;  %vm582_vm11 = vmand %vm2445_vm8, %vm566_vm10  ;;  %vm567_vm15 = vcmp.eq.f32.partialorder %v1784_v45, 0.0  ;;  %vm2451_vm10 = vcmp.eq.s32.totalorder %v1312_v26, %v1203_v2 }
 0x268   :  { %v1899_v5 = vsel %vm582_vm11, 2.0, %v1778_v40  ;;  %vm569_vm11 = vcmp.eq.f32.partialorder %v1796_v58, 0.0 }
 0x26b   :  { %v329_v10 = vpop.f32.mrf.mxu2 }
 0x26c   :  { %544 = vst [vmem:[%s2419_s7 + $0x68] sm:$0xff] %v329_v10  ;;  %vm577_vm4 = vcmp.eq.f32.partialorder %v329_v10, 0.0 }
 0x26d   :  { %vm593_vm0 = vmand %vm60_vm2, %vm577_vm4 }
 0x26e   :  { %v1863_v25 = vsel %vm593_vm0, 2.0, %v329_v10  ;;  %vm581_vm4 = vmand %vm2448_vm12, %vm565_vm13  ;;  %vm2449_vm0 = vcmp.eq.s32.totalorder %v1337_v32, %v1203_v2  ;;  %vm2453_vm13 = vcmp.eq.s32.totalorder %v1201_v1, %v1203_v2 }
 0x26f   :  { %2442 = vst [vmem:[#allocation3_spill] sm:$0xff] %v1863_v25  ;;  %628 = vadd.xlane.f32.xlu0 %v1823_v15  ;;  %638 = vadd.xlane.f32.xlu2 %v1863_v25  ;;  %vm584_vm3 = vmand %vm2449_vm0, %vm568_vm5  ;;  %v1919_v36 = vsel %vm581_vm4, 2.0, %v1772_v30  ;;  %v1942_v30 = vpop.f32.mrf.mxu0 }
 0x270   :  { %v1922_v37 = vsel %vm584_vm3, 2.0, %v1790_v51 }
 0x273   :  { %v332_v52 = vpop.f32.mrf.mxu2 }
 0x274   :  { %545 = vst [vmem:[%s2419_s7 + $0x70] sm:$0xff] %v332_v52  ;;  %vm578_vm2 = vcmp.eq.f32.partialorder %v332_v52, 0.0 }
 0x275   :  { %vm594_vm9 = vmand %vm2443_vm1, %vm578_vm2  ;;  %vm570_vm2 = vcmp.eq.f32.partialorder %v1802_v62, 0.0  ;;  %vm2450_vm1 = vcmp.eq.s32.totalorder %v1348_v35, %v1203_v2 }
 0x276   :  { %v1882_v55 = vsel %vm594_vm9, 2.0, %v332_v52  ;;  %vm583_vm9 = vmand %vm2450_vm1, %vm567_vm15 }
 0x277   :  { %2444 = vst [vmem:[#allocation4_spill] sm:$0xff] %v1882_v55  ;;  %626 = vadd.xlane.f32.xlu0 %v1880_v7  ;;  %640 = vadd.xlane.f32.xlu1 %v1882_v55  ;;  %vm586_vm8 = vmand %vm2451_vm10, %vm570_vm2  ;;  %v1936_v32 = vsel %vm583_vm9, 2.0, %v1784_v45  ;;  %v1954_v35 = vpop.f32.mrf.mxu0 }
 0x278   :  { %v1940_v41 = vsel %vm586_vm8, 2.0, %v1802_v62 }
 0x27b   :  { %v335_v23 = vpop.f32.mrf.mxu2 }
 0x27c   :  { %546 = vst [vmem:[%s2419_s7 + $0x78] sm:$0xff] %v335_v23  ;;  %vm579_vm7 = vcmp.eq.f32.partialorder %v335_v23, 0.0 }
 0x27d   :  { %vm595_vm6 = vmand %vm2446_vm14, %vm579_vm7  ;;  %vm2452_vm7 = vcmp.eq.s32.totalorder %v1325_v29, %v1203_v2 }
 0x27e   :  { %v1901_v34 = vsel %vm595_vm6, 2.0, %v335_v23  ;;  %vm585_vm14 = vmand %vm2452_vm7, %vm569_vm11  ;;  %vm564_vm6 = vcmp.eq.f32.partialorder %v1766_v28, 0.0 }
 0x27f   :  { %2447 = vst [vmem:[#allocation5_spill] sm:$0xff] %v1901_v34  ;;  %616 = vadd.xlane.f32.xlu0 %v1899_v5  ;;  %630 = vadd.xlane.f32.xlu1 %v1825_v63  ;;  %v1950_v26 = vsel %vm585_vm14, 2.0, %v1796_v58  ;;  %vm580_vm5 = vmand %vm2453_vm13, %vm564_vm6  ;;  %v1963_v29 = vpop.f32.mrf.mxu0 }
 0x280   :  { %642 = vadd.xlane.f32.xlu2 %v1901_v34  ;;  %v1960_v39 = vsel %vm580_vm5, 2.0, %v1766_v28 }
 0x287   :  { %614 = vadd.xlane.f32.xlu0 %v1919_v36  ;;  %620 = vadd.xlane.f32.xlu1 %v1922_v37  ;;  %v1965_v40 = vpop.f32.mrf.mxu0 }
 0x288   :  { %634 = vadd.xlane.f32.xlu2 %v1844_v19 }
 0x28f   :  { %618 = vadd.xlane.f32.xlu1 %v1936_v32  ;;  %v1967_v42 = vpop.f32.mrf.mxu0 }
 0x290   :  { %624 = vadd.xlane.f32.xlu2 %v1940_v41 }
 0x297   :  { %v1969_v43 = vpop.f32.mrf.mxu0 }
 0x298   :  { %622 = vadd.xlane.f32.xlu2 %v1950_v26 }
 0x29f   :  { %v1971_v45 = vpop.f32.mrf.mxu0 }
 0x2a0   :  { %612 = vadd.xlane.f32.xlu2 %v1960_v39 }
 0x2a7   :  { %v1973_v46 = vpop.f32.mrf.mxu0 }
 0x2af   :  { %v1978_v28 = vpop.f32.mrf.mxu0 }
 0x2b7   :  { %v1989_v59 = vpop.f32.mrf.mxu0 }
 0x2bf   :  { %v2015_v16 = vpop.f32.mrf.mxu0 }
 0x2ca   :  { %v633_v47 = vpop.xlane.xlu1 %632 }
 0x2cb   :  { %1123 = vrsqrt.f32 %v633_v47  ;;  %vm766_vm4 = vweird.f32 %v633_v47  ;;  %vm654_vm2 = vcmp.gt.f32.partialorder %v633_v47, 0.0 }
 0x2d1   :  { %v1124_v2 = vpop.eup %1123 }
 0x2d2   :  { %v761_v48 = vmul.f32 %v1124_v2, %v633_v47  ;;  %vm767_vm12 = vweird.f32 %v1124_v2 }
 0x2d3   :  { %vm2019_vm0 = vmor %vm766_vm4, %vm767_vm12 }
 0x2d4   :  { %v762_v54 = vmul.f32 %v1124_v2, %v761_v48 }
 0x2d6   :  { %v763_v9 = vmul.f32 0.5, %v762_v54 }
 0x2d8   :  { %v764_v62 = vsub.f32 1.5, %v763_v9 }
 0x2da   :  { %v1975_v1 = vpop.xlane.xlu0 %636  ;;  %v765_v11 = vmul.f32 %v1124_v2, %v764_v62 }
 0x2db   :  { %1125 = vrsqrt.f32 %v1975_v1  ;;  %vm786_vm15 = vweird.f32 %v1975_v1  ;;  %vm656_vm9 = vcmp.gt.f32.partialorder %v1975_v1, 0.0 }
 0x2dc   :  { %v769_v23 = vsel %vm2019_vm0, %v1124_v2, %v765_v11 }
 0x2dd   :  { %v2045_v11 = vsel %vm654_vm2, %v769_v23, 0.0 }
 0x2de   :  { %2458 = vst [vmem:[#allocation6_spill] sm:$0xff] %v2045_v11 }
 0x2e1   :  { %v1982_v50 = vpop.eup %1125 }
 0x2e2   :  { %v1980_v49 = vpop.xlane.xlu0 %628  ;;  %v1984_v51 = vpop.xlane.xlu2 %638  ;;  %v781_v58 = vmul.f32 %v1982_v50, %v1975_v1  ;;  %vm787_vm3 = vweird.f32 %v1982_v50 }
 0x2e3   :  { %1127 = vrsqrt.f32 %v1984_v51  ;;  %vm2037_vm1 = vmor %vm786_vm15, %vm787_vm3  ;;  %vm796_vm10 = vweird.f32 %v1984_v51  ;;  %vm746_vm8 = vweird.f32 %v1980_v49  ;;  %vm657_vm7 = vcmp.gt.f32.partialorder %v1984_v51, 0.0 }
 0x2e4   :  { %1129 = vrsqrt.f32 %v1980_v49  ;;  %v782_v60 = vmul.f32 %v1982_v50, %v781_v58 }
 0x2e6   :  { %v783_v33 = vmul.f32 0.5, %v782_v60 }
 0x2e8   :  { %v784_v12 = vsub.f32 1.5, %v783_v33  ;;  %v2067_v33 = vpop.f32.mrf.mxu0 }
 0x2e9   :  { %v1998_v57 = vpop.eup %1127 }
 0x2ea   :  { %v1992_v21 = vpop.xlane.xlu1 %640  ;;  %v1995_v61 = vpop.xlane.xlu0 %626  ;;  %v791_v0 = vmul.f32 %v1998_v57, %v1984_v51  ;;  %v785_v9 = vmul.f32 %v1982_v50, %v784_v12  ;;  %vm797_vm14 = vweird.f32 %v1998_v57 }
 0x2eb   :  { %1131 = vrsqrt.f32 %v1992_v21  ;;  %v2000_v44 = vpop.eup %1129  ;;  %vm806_vm13 = vweird.f32 %v1992_v21  ;;  %vm658_vm5 = vcmp.gt.f32.partialorder %v1992_v21, 0.0  ;;  %vm2107_vm0 = vmor %vm796_vm10, %vm797_vm14  ;;  %vm736_vm15 = vweird.f32 %v1995_v61 }
 0x2ec   :  { %1133 = vrsqrt.f32 %v1995_v61  ;;  %v741_v56 = vmul.f32 %v2000_v44, %v1980_v49  ;;  %v792_v17 = vmul.f32 %v1998_v57, %v791_v0  ;;  %v789_v22 = vsel %vm2037_vm1, %v1982_v50, %v785_v9 }
 0x2ed   :  { %v2073_v1 = vsel %vm656_vm9, %v789_v22, 0.0  ;;  %vm747_vm6 = vweird.f32 %v2000_v44  ;;  %vm652_vm9 = vcmp.gt.f32.partialorder %v1980_v49, 0.0 }
 0x2ee   :  { %v742_v54 = vmul.f32 %v2000_v44, %v741_v56  ;;  %v793_v60 = vmul.f32 0.5, %v792_v17  ;;  %2459 = vst [vmem:[#allocation7_spill] sm:$0xff] %v2073_v1  ;;  %vm2147_vm14 = vmor %vm746_vm8, %vm747_vm6 }
 0x2f0   :  { %v743_v12 = vmul.f32 0.5, %v742_v54 }
 0x2f1   :  { %v2005_v4 = vpop.eup %1131 }
 0x2f2   :  { %v2007_v53 = vpop.xlane.xlu1 %630  ;;  %v801_v13 = vmul.f32 %v2005_v4, %v1992_v21  ;;  %v2024_v52 = vpop.xlane.xlu0 %616  ;;  %vm807_vm11 = vweird.f32 %v2005_v4 }
 0x2f3   :  { %v2013_v6 = vpop.xlane.xlu2 %642  ;;  %1135 = vrsqrt.f32 %v2007_v53  ;;  %v2029_v48 = vpop.eup %1133  ;;  %vm2094_vm4 = vmor %vm806_vm13, %vm807_vm11  ;;  %vm756_vm2 = vweird.f32 %v2007_v53  ;;  %vm653_vm13 = vcmp.gt.f32.partialorder %v2007_v53, 0.0 }
 0x2f4   :  { %v802_v10 = vmul.f32 %v2005_v4, %v801_v13  ;;  %1137 = vrsqrt.f32 %v2013_v6  ;;  %v731_v2 = vmul.f32 %v2029_v48, %v1995_v61  ;;  %vm737_vm12 = vweird.f32 %v2029_v48 }
 0x2f5   :  { %1139 = vrsqrt.f32 %v2024_v52  ;;  %vm816_vm1 = vweird.f32 %v2013_v6  ;;  %vm659_vm11 = vcmp.gt.f32.partialorder %v2013_v6, 0.0  ;;  %vm2200_vm6 = vmor %vm736_vm15, %vm737_vm12  ;;  %vm651_vm12 = vcmp.gt.f32.partialorder %v1995_v61, 0.0 }
 0x2f6   :  { %v803_v58 = vmul.f32 0.5, %v802_v10  ;;  %v794_v10 = vsub.f32 1.5, %v793_v60  ;;  %v732_v50 = vmul.f32 %v2029_v48, %v731_v2  ;;  %v744_v60 = vsub.f32 1.5, %v743_v12 }
 0x2f7   :  { %v2087_v12 = vmul.f32 %v1989_v59, %v2073_v1 }
 0x2f8   :  { %v804_v13 = vsub.f32 1.5, %v803_v58  ;;  %v2065_v58 = vmul.f32 %v1973_v46, %v2045_v11  ;;  %v795_v2 = vmul.f32 %v1998_v57, %v794_v10  ;;  %v745_v14 = vmul.f32 %v2000_v44, %v744_v60 }
 0x2f9   :  { %v2035_v62 = vpop.eup %1135 }
 0x2fa   :  { %v2043_v0 = vpop.xlane.xlu1 %620  ;;  %v2047_v56 = vpop.eup %1137  ;;  %v751_v47 = vmul.f32 %v2035_v62, %v2007_v53  ;;  %v805_v46 = vmul.f32 %v2005_v4, %v804_v13  ;;  %v733_v13 = vmul.f32 0.5, %v732_v50  ;;  %v799_v11 = vsel %vm2107_vm0, %v1998_v57, %v795_v2 }
 0x2fb   :  { %v2051_v17 = vpop.xlane.xlu2 %634  ;;  %v811_v23 = vmul.f32 %v2047_v56, %v2013_v6  ;;  %1141 = vrsqrt.f32 %v2043_v0  ;;  %v2089_v22 = vpop.eup %1139  ;;  %vm817_vm3 = vweird.f32 %v2047_v56  ;;  %v2155_v59 = vsel %vm657_vm7, %v799_v11, 0.0 }
 0x2fc   :  { %v752_v54 = vmul.f32 %v2035_v62, %v751_v47  ;;  %1143 = vrsqrt.f32 %v2051_v17  ;;  %v2076_v47 = vpop.xlane.xlu0 %614  ;;  %vm818_vm10 = vmor %vm816_vm1, %vm817_vm3  ;;  %v898_v6 = vpop.f32.mrf.mxu0  ;;  %v749_v55 = vsel %vm2147_vm14, %v2000_v44, %v745_v14  ;;  %v922_v14 = vmul.f32 %v2015_v16, %v2155_v59 }
 0x2fd   :  { %v812_v9 = vmul.f32 %v2047_v56, %v811_v23  ;;  %1145 = vrsqrt.f32 %v2076_v47  ;;  %v681_v23 = vmul.f32 %v2089_v22, %v2024_v52  ;;  %vm655_vm3 = vcmp.gt.f32.partialorder %v2051_v17, 0.0 }
 0x2fe   :  { %v753_v38 = vmul.f32 0.5, %v752_v54 }
 0x2ff   :  { %v813_v8 = vmul.f32 0.5, %v812_v9 }
 0x300   :  { %v754_v1 = vsub.f32 1.5, %v753_v38  ;;  %v734_v38 = vsub.f32 1.5, %v733_v13 }
 0x301   :  { %v814_v10 = vsub.f32 1.5, %v813_v8  ;;  %v2101_v9 = vpop.eup %1141  ;;  %v809_v8 = vsel %vm2094_vm4, %v2005_v4, %v805_v46  ;;  %vm776_vm4 = vweird.f32 %v2051_v17 }
 0x302   :  { %v2099_v54 = vpop.xlane.xlu1 %618  ;;  %v2119_v18 = vpop.eup %1143  ;;  %v701_v4 = vmul.f32 %v2101_v9, %v2043_v0  ;;  %v2141_v57 = vsel %vm658_vm5, %v809_v8, 0.0  ;;  %vm757_vm5 = vweird.f32 %v2035_v62  ;;  %v735_v44 = vmul.f32 %v2029_v48, %v734_v38 }
 0x303   :  { %1147 = vrsqrt.f32 %v2099_v54  ;;  %v2113_v50 = vpop.xlane.xlu2 %624  ;;  %v771_v60 = vmul.f32 %v2119_v18, %v2051_v17  ;;  %v815_v46 = vmul.f32 %v2047_v56, %v814_v10  ;;  %v2158_v21 = vpop.eup %1145  ;;  %vm2181_vm8 = vmor %vm756_vm2, %vm757_vm5  ;;  %vm777_vm7 = vweird.f32 %v2119_v18 }
 0x304   :  { %1149 = vrsqrt.f32 %v2113_v50  ;;  %v702_v51 = vmul.f32 %v2101_v9, %v701_v4  ;;  %vm778_vm0 = vmor %vm776_vm4, %vm777_vm7  ;;  %vm726_vm2 = vweird.f32 %v2113_v50  ;;  %vm707_vm1 = vweird.f32 %v2101_v9 }
 0x305   :  { %v772_v13 = vmul.f32 %v2119_v18, %v771_v60  ;;  %v819_v10 = vsel %vm818_vm10, %v2047_v56, %v815_v46  ;;  %v755_v60 = vmul.f32 %v2035_v62, %v754_v1  ;;  %v923_v46 = vmul.f32 %v2067_v33, %v2141_v57 }
 0x306   :  { %v2161_v8 = vsel %vm659_vm11, %v819_v10, 0.0  ;;  %v682_v10 = vmul.f32 %v2089_v22, %v681_v23  ;;  %vm650_vm10 = vcmp.gt.f32.partialorder %v2113_v50, 0.0  ;;  %vm706_vm11 = vweird.f32 %v2043_v0 }
 0x307   :  { %v773_v11 = vmul.f32 0.5, %v772_v13  ;;  %v924_v34 = vmul.f32 %v898_v6, %v2161_v8  ;;  %v671_v13 = vmul.f32 %v2158_v21, %v2076_v47  ;;  %v759_v38 = vsel %vm2181_vm8, %v2035_v62, %v755_v60  ;;  %vm2254_vm5 = vmor %vm706_vm11, %vm707_vm1 }
 0x308   :  { %v2210_v62 = vsel %vm652_vm9, %v749_v55, 0.0  ;;  %v739_v60 = vsel %vm2200_vm6, %v2029_v48, %v735_v44  ;;  %vm696_vm8 = vweird.f32 %v2099_v54  ;;  %vm686_vm6 = vweird.f32 %v2024_v52 }
 0x309   :  { %v2167_v56 = vpop.eup %1147  ;;  %v774_v33 = vsub.f32 1.5, %v773_v11  ;;  %v932_v23 = vpack.c.bf16 %v924_v34, %v923_v46  ;;  %v703_v34 = vmul.f32 0.5, %v702_v51  ;;  %v931_v46 = vpack.c.bf16 %v922_v14, %v2087_v12 }
 0x30a   :  { %v1150_v24 = vpop.eup %1149  ;;  %v691_v25 = vmul.f32 %v2167_v56, %v2099_v54  ;;  %v672_v12 = vmul.f32 %v2158_v21, %v671_v13  ;;  %vm697_vm14 = vweird.f32 %v2167_v56 }
 0x30b   :  { %v721_v4 = vmul.f32 %v1150_v24, %v2113_v50  ;;  %v2187_v2 = vpop.xlane.xlu2 %622  ;;  %933 = vmatpush.bf16.msrb.mxu1 %v932_v23  ;;  %v683_v23 = vmul.f32 0.5, %v682_v10  ;;  %v704_v55 = vsub.f32 1.5, %v703_v34  ;;  %vm727_vm15 = vweird.f32 %v1150_v24  ;;  %vm2266_vm4 = vmor %vm696_vm8, %vm697_vm14 }
 0x30c   :  { %v692_v16 = vmul.f32 %v2167_v56, %v691_v25  ;;  %1151 = vrsqrt.f32 %v2187_v2  ;;  %v775_v25 = vmul.f32 %v2119_v18, %v774_v33  ;;  %v2218_v33 = vsel %vm653_vm13, %v759_v38, 0.0  ;;  %vm728_vm9 = vmor %vm726_vm2, %vm727_vm15 }
 0x30d   :  { %v722_v11 = vmul.f32 %v1150_v24, %v721_v4  ;;  %v918_v53 = vmul.f32 %v1971_v45, %v2218_v33  ;;  %v2231_v10 = vsel %vm651_vm12, %v739_v60, 0.0  ;;  %v673_v6 = vmul.f32 0.5, %v672_v12 }
 0x30e   :  { %v693_v51 = vmul.f32 0.5, %v692_v16  ;;  %v779_v4 = vsel %vm778_vm0, %v2119_v18, %v775_v25  ;;  %v917_v18 = vmul.f32 %v1969_v43, %v2210_v62  ;;  %v705_v34 = vmul.f32 %v2101_v9, %v704_v55 }
 0x30f   :  { %v723_v1 = vmul.f32 0.5, %v722_v11  ;;  %v2221_v17 = vsel %vm655_vm3, %v779_v4, 0.0  ;;  %934 = vmatpush.bf16.msrb.mxu1 %v931_v46  ;;  %v916_v11 = vmul.f32 %v1967_v42, %v2231_v10  ;;  %vm687_vm13 = vweird.f32 %v2089_v22 }
 0x310   :  { %v920_v48 = vmul.f32 %v1978_v28, %v2221_v17  ;;  %v694_v44 = vsub.f32 1.5, %v693_v51  ;;  %v684_v28 = vsub.f32 1.5, %v683_v23  ;;  %v929_v60 = vpack.c.bf16 %v918_v53, %v917_v18  ;;  %vm2271_vm3 = vmor %vm686_vm6, %vm687_vm13 }
 0x311   :  { %v724_v49 = vsub.f32 1.5, %v723_v1  ;;  %vm648_vm0 = vcmp.gt.f32.partialorder %v2043_v0, 0.0  ;;  %vm716_vm12 = vweird.f32 %v2187_v2  ;;  %vm677_vm15 = vweird.f32 %v2158_v21 }
 0x312   :  { %v1152_v14 = vpop.eup %1151  ;;  %v930_v13 = vpack.c.bf16 %v920_v48, %v2065_v58  ;;  %v695_v25 = vmul.f32 %v2167_v56, %v694_v44  ;;  %v685_v42 = vmul.f32 %v2089_v22, %v684_v28  ;;  %vm647_vm2 = vcmp.gt.f32.partialorder %v2099_v54, 0.0 }
 0x313   :  { %v711_v61 = vmul.f32 %v1152_v14, %v2187_v2  ;;  %v2235_v16 = vpop.xlane.xlu2 %612  ;;  %v725_v38 = vmul.f32 %v1150_v24, %v724_v49  ;;  %vm717_vm7 = vweird.f32 %v1152_v14  ;;  %vm646_vm14 = vcmp.gt.f32.partialorder %v2024_v52, 0.0 }
 0x314   :  { %1153 = vrsqrt.f32 %v2235_v16  ;;  %935 = vmatpush.bf16.msrb.mxu1 %v930_v13  ;;  %v699_v48 = vsel %vm2266_vm4, %v2167_v56, %v695_v25  ;;  %vm718_vm1 = vmor %vm716_vm12, %vm717_vm7  ;;  %vm666_vm8 = vweird.f32 %v2235_v16  ;;  %vm644_vm6 = vcmp.gt.f32.partialorder %v2235_v16, 0.0 }
 0x315   :  { %v712_v43 = vmul.f32 %v1152_v14, %v711_v61  ;;  %v729_v45 = vsel %vm728_vm9, %v1150_v24, %v725_v38  ;;  %v674_v24 = vsub.f32 1.5, %v673_v6  ;;  %vm649_vm9 = vcmp.gt.f32.partialorder %v2187_v2, 0.0 }
 0x316   :  { %v2244_v58 = vsel %vm650_vm10, %v729_v45, 0.0  ;;  %v689_v61 = vsel %vm2271_vm3, %v2089_v22, %v685_v42  ;;  %vm676_vm10 = vweird.f32 %v2076_v47  ;;  %v823_v13 = vsel %vm647_vm2, %v699_v48, 0.0 }
 0x317   :  { %v713_v46 = vmul.f32 0.5, %v712_v43  ;;  %v915_v51 = vmul.f32 %v1965_v40, %v2244_v58  ;;  %v709_v40 = vsel %vm2254_vm5, %v2101_v9, %v705_v34  ;;  %v675_v18 = vmul.f32 %v2158_v21, %v674_v24  ;;  %vm2293_vm11 = vmor %vm676_vm10, %vm677_vm15 }
 0x318   :  { %936 = vmatpush.bf16.msrb.mxu1 %v929_v60  ;;  %v2284_v0 = vsel %vm648_vm0, %v709_v40, 0.0  ;;  %v912_v45 = vmul.f32 %v1942_v30, %v823_v13  ;;  %vm645_vm5 = vcmp.gt.f32.partialorder %v2076_v47, 0.0  ;;  %v901_v47 = vpack.c.bf16 %v1919_v36, %v1960_v39  ;;  %v2480_v36 = vld [vmem:[#allocation3_spill] sm:$0xff]  ;;  %v2481_v39 = vld [vmem:[#allocation2_spill] sm:$0xff] }
 0x319   :  { %v714_v1 = vsub.f32 1.5, %v713_v46  ;;  %v928_v4 = vpack.c.bf16 %v916_v11, %v915_v51  ;;  %v913_v28 = vmul.f32 %v1954_v35, %v2284_v0  ;;  %v679_v22 = vsel %vm2293_vm11, %v2158_v21, %v675_v18  ;;  %v2484_v51 = vld [vmem:[#allocation4_spill] sm:$0xff] }
 0x31a   :  { %v1154_v23 = vpop.eup %1153  ;;  %v904_v60 = vpack.c.bf16 %v1880_v7, %v1940_v41  ;;  %v563_v7 = vld [vmem:[%s2420_s6] sm:$0xff] }
 0x31b   :  { %v661_v49 = vmul.f32 %v1154_v23, %v2235_v16  ;;  %v715_v9 = vmul.f32 %v1152_v14, %v714_v1  ;;  %vm667_vm13 = vweird.f32 %v1154_v23  ;;  %v903_v16 = vpack.c.bf16 %v1950_v26, %v1922_v37 }
 0x31c   :  { %937 = vmatpush.bf16.msrb.mxu1 %v928_v4  ;;  %vm668_vm7 = vmor %vm666_vm8, %vm667_vm13  ;;  %v2335_v41 = vperm.slane %v563_v7, 0 }
 0x31d   :  { %v662_v53 = vmul.f32 %v1154_v23, %v661_v49  ;;  %v719_v44 = vsel %vm718_vm1, %v1152_v14, %v715_v9  ;;  %v822_v14 = vsel %vm646_vm14, %v689_v61, 0.0 }
 0x31e   :  { %v2291_v56 = vsel %vm649_vm9, %v719_v44, 0.0  ;;  %v911_v35 = vmul.f32 %v1916_v3, %v822_v14  ;;  %v902_v3 = vpack.c.bf16 %v1936_v32, %v1899_v5  ;;  %v2482_v5 = vpack.c.bf16 %v2480_v36, %v2481_v39  ;;  %v2483_v32 = vld [vmem:[#allocation5_spill] sm:$0xff] }
 0x31f   :  { %v663_v38 = vmul.f32 0.5, %v662_v53  ;;  %v914_v2 = vmul.f32 %v1963_v29, %v2291_v56  ;;  %v821_v29 = vsel %vm645_vm5, %v679_v22, 0.0  ;;  %v2485_v37 = vpack.c.bf16 %v2483_v32, %v2484_v51 }
 0x320   :  { %v926_v52 = vpack.c.bf16 %v912_v45, %v911_v35  ;;  %v910_v30 = vmul.f32 %v1890_v31, %v821_v29  ;;  %v2479_v31 = vpack.c.bf16 %v1844_v19, %v1835_v20 }
 0x321   :  { %v664_v6 = vsub.f32 1.5, %v663_v38  ;;  %v927_v43 = vpack.c.bf16 %v914_v2, %v913_v28 }
 0x323   :  { %v665_v34 = vmul.f32 %v1154_v23, %v664_v6  ;;  %938 = vmatpush.bf16.msrb.mxu1 %v927_v43 }
 0x325   :  { %v669_v11 = vsel %vm668_vm7, %v1154_v23, %v665_v34 }
 0x326   :  { %v820_v21 = vsel %vm644_vm6, %v669_v11, 0.0 }
 0x327   :  { %939 = vmatpush.bf16.msrb.mxu1 %v926_v52  ;;  %v909_v25 = vmul.f32 %v1869_v27, %v820_v21  ;;  %v2478_v27 = vpack.c.bf16 %v1825_v63, %v1823_v15 }
 0x329   :  { %v925_v46 = vpack.c.bf16 %v910_v30, %v909_v25  ;;  %v2486_v25 = vld [vmem:[#allocation6_spill] sm:$0xff] }
 0x32b   :  { %940 = vmatpush.bf16.msrb.mxu1 %v925_v46 }
 0x32e   :  { %941 = vmatmul.bf16.vlgmr.msrb.gmra.mxu1 %v901_v47 }
 0x33e   :  { %946 = vmatmul.bf16.gmra.mxu1 %v902_v3 }
 0x34e   :  { %951 = vmatmul.bf16.gmra.mxu1 %v903_v16 }
 0x35e   :  { %956 = vmatmul.bf16.gmra.mxu1 %v904_v60 }
 0x36e   :  { %961 = vmatmul.bf16.gmra.mxu1 %v2478_v27  ;;  %v2487_v27 = vld [vmem:[#allocation7_spill] sm:$0xff] }
 0x37e   :  { %966 = vmatmul.bf16.gmra.mxu1 %v2479_v31 }
 0x38e   :  { %971 = vmatmul.bf16.gmra.mxu1 %v2482_v5 }
 0x39e   :  { %976 = vmatmul.bf16.gmra.mxu1 %v2485_v37 }
 0x3ab   :  { %v942_v15 = vpop.f32.mrf.mxu1 }
 0x3ac   :  { %v982_v63 = vmul.f32 %v942_v15, %v820_v21 }
 0x3ae   :  { %v999_v26 = vadd.f32 %v2335_v41, %v982_v63 }
 0x3b0   :  { %v1015_v20 = vmax.f32 %v999_v26, 0.0 }
 0x3b2   :  { %1031 = vst [vmem:[%s2421_s8] sm:$0xff] %v1015_v20 }
 0x3b3   :  { %v944_v19 = vpop.f32.mrf.mxu1 }
 0x3b4   :  { %v983_v24 = vmul.f32 %v944_v19, %v821_v29 }
 0x3b6   :  { %v1000_v50 = vadd.f32 %v2335_v41, %v983_v24 }
 0x3b8   :  { %v1016_v42 = vmax.f32 %v1000_v50, 0.0 }
 0x3ba   :  { %1032 = vst [vmem:[%s2421_s8 + $0x8] sm:$0xff] %v1016_v42 }
 0x3bb   :  { %v947_v1 = vpop.f32.mrf.mxu1 }
 0x3bc   :  { %v984_v4 = vmul.f32 %v947_v1, %v822_v14 }
 0x3be   :  { %v1001_v40 = vadd.f32 %v2335_v41, %v984_v4 }
 0x3c0   :  { %v1017_v23 = vmax.f32 %v1001_v40, 0.0 }
 0x3c2   :  { %1033 = vst [vmem:[%s2421_s8 + $0x10] sm:$0xff] %v1017_v23 }
 0x3c3   :  { %v949_v12 = vpop.f32.mrf.mxu1 }
 0x3c4   :  { %v985_v55 = vmul.f32 %v949_v12, %v823_v13 }
 0x3c6   :  { %v1002_v49 = vadd.f32 %v2335_v41, %v985_v55 }
 0x3c8   :  { %v1018_v9 = vmax.f32 %v1002_v49, 0.0 }
 0x3ca   :  { %1034 = vst [vmem:[%s2421_s8 + $0x18] sm:$0xff] %v1018_v9 }
 0x3cb   :  { %v952_v48 = vpop.f32.mrf.mxu1 }
 0x3cc   :  { %v986_v18 = vmul.f32 %v952_v48, %v2284_v0 }
 0x3ce   :  { %v1003_v53 = vadd.f32 %v2335_v41, %v986_v18 }
 0x3d0   :  { %v1019_v44 = vmax.f32 %v1003_v53, 0.0 }
 0x3d2   :  { %1035 = vst [vmem:[%s2421_s8 + $0x20] sm:$0xff] %v1019_v44 }
 0x3d3   :  { %v954_v61 = vpop.f32.mrf.mxu1 }
 0x3d4   :  { %v987_v13 = vmul.f32 %v954_v61, %v2291_v56 }
 0x3d6   :  { %v1004_v54 = vadd.f32 %v2335_v41, %v987_v13 }
 0x3d8   :  { %v1020_v38 = vmax.f32 %v1004_v54, 0.0 }
 0x3da   :  { %1036 = vst [vmem:[%s2421_s8 + $0x28] sm:$0xff] %v1020_v38 }
 0x3db   :  { %v957_v28 = vpop.f32.mrf.mxu1 }
 0x3dc   :  { %v988_v0 = vmul.f32 %v957_v28, %v2244_v58 }
 0x3de   :  { %v1005_v2 = vadd.f32 %v2335_v41, %v988_v0 }
 0x3e0   :  { %v1021_v14 = vmax.f32 %v1005_v2, 0.0 }
 0x3e2   :  { %1037 = vst [vmem:[%s2421_s8 + $0x30] sm:$0xff] %v1021_v14 }
 0x3e3   :  { %v959_v22 = vpop.f32.mrf.mxu1 }
 0x3e4   :  { %v989_v56 = vmul.f32 %v959_v22, %v2231_v10 }
 0x3e6   :  { %v1006_v6 = vadd.f32 %v2335_v41, %v989_v56 }
 0x3e8   :  { %v1022_v43 = vmax.f32 %v1006_v6, 0.0 }
 0x3ea   :  { %1038 = vst [vmem:[%s2421_s8 + $0x38] sm:$0xff] %v1022_v43 }
 0x3eb   :  { %v962_v45 = vpop.f32.mrf.mxu1 }
 0x3ec   :  { %v990_v58 = vmul.f32 %v962_v45, %v2210_v62 }
 0x3ee   :  { %v1007_v34 = vadd.f32 %v2335_v41, %v990_v58 }
 0x3f0   :  { %v1023_v35 = vmax.f32 %v1007_v34, 0.0 }
 0x3f2   :  { %1039 = vst [vmem:[%s2421_s8 + $0x40] sm:$0xff] %v1023_v35 }
 0x3f3   :  { %v964_v29 = vpop.f32.mrf.mxu1 }
 0x3f4   :  { %v991_v10 = vmul.f32 %v964_v29, %v2218_v33 }
 0x3f6   :  { %v1008_v52 = vadd.f32 %v2335_v41, %v991_v10 }
 0x3f8   :  { %v1024_v11 = vmax.f32 %v1008_v52, 0.0 }
 0x3fa   :  { %1040 = vst [vmem:[%s2421_s8 + $0x48] sm:$0xff] %v1024_v11 }
 0x3fb   :  { %v967_v21 = vpop.f32.mrf.mxu1 }
 0x3fc   :  { %v992_v62 = vmul.f32 %v967_v21, %v2486_v25 }
 0x3fe   :  { %v1009_v30 = vadd.f32 %v2335_v41, %v992_v62 }
 0x400   :  { %v1025_v46 = vmax.f32 %v1009_v30, 0.0 }
 0x402   :  { %1041 = vst [vmem:[%s2421_s8 + $0x50] sm:$0xff] %v1025_v46 }
 0x403   :  { %v969_v47 = vpop.f32.mrf.mxu1 }
 0x404   :  { %v993_v33 = vmul.f32 %v969_v47, %v2221_v17 }
 0x406   :  { %v1010_v3 = vadd.f32 %v2335_v41, %v993_v33 }
 0x408   :  { %v1026_v16 = vmax.f32 %v1010_v3, 0.0 }
 0x40a   :  { %1042 = vst [vmem:[%s2421_s8 + $0x58] sm:$0xff] %v1026_v16 }
 0x40b   :  { %v972_v60 = vpop.f32.mrf.mxu1 }
 0x40c   :  { %v994_v31 = vmul.f32 %v972_v60, %v2487_v27 }
 0x40e   :  { %v1011_v36 = vadd.f32 %v2335_v41, %v994_v31 }
 0x410   :  { %v1027_v39 = vmax.f32 %v1011_v36, 0.0 }
 0x412   :  { %1043 = vst [vmem:[%s2421_s8 + $0x60] sm:$0xff] %v1027_v39 }
 0x413   :  { %v974_v5 = vpop.f32.mrf.mxu1 }
 0x414   :  { %v995_v17 = vmul.f32 %v974_v5, %v2155_v59 }
 0x416   :  { %v1012_v32 = vadd.f32 %v2335_v41, %v995_v17 }
 0x418   :  { %v1028_v51 = vmax.f32 %v1012_v32, 0.0 }
 0x41a   :  { %1044 = vst [vmem:[%s2421_s8 + $0x68] sm:$0xff] %v1028_v51 }
 0x41b   :  { %v977_v37 = vpop.f32.mrf.mxu1 }
 0x41c   :  { %v996_v7 = vmul.f32 %v977_v37, %v2141_v57 }
 0x41e   :  { %v1013_v15 = vadd.f32 %v2335_v41, %v996_v7 }
 0x420   :  { %v1029_v63 = vmax.f32 %v1013_v15, 0.0 }
 0x422   :  { %1045 = vst [vmem:[%s2421_s8 + $0x70] sm:$0xff] %v1029_v63 }
 0x423   :  { %v979_v26 = vpop.f32.mrf.mxu1 }
 0x424   :  { %v997_v59 = vmul.f32 %v979_v26, %v2161_v8 }
 0x426   :  { %v1014_v20 = vadd.f32 %v2335_v41, %v997_v59 }
 0x428   :  { %v1030_v19 = vmax.f32 %v1014_v20, 0.0 }
 0x42a   :  { %1046 = vst [vmem:[%s2421_s8 + $0x78] sm:$0xff] %v1030_v19 }

// kernel: graph_unet_forward.7
= control target key start
LH: loop header
LB: loop body
LE: loop exit
PB: predicated region body
PF: predicated region fallthrough
CT: control target
= control target key end

     0   :  { %v29_v0 = vlaneseq  ;;  %s2411_s0 = inlined_call_operand.vmem [shape: f32[128,128], index: 0, kind: input, shape index: {}]   ;;  %s2412_s1 = inlined_call_operand.vmem [shape: f32[128,128], index: 1, kind: input, shape index: {}]   ;;  %s2413_s2 = inlined_call_operand.vmem [shape: f32[128,128], index: 2, kind: input, shape index: {}]   ;;  %s2414_s3 = inlined_call_operand.vmem [shape: f32[128,128], index: 3, kind: input, shape index: {}]   ;;  %s2415_s4 = inlined_call_operand.vmem [shape: f32[128,1], index: 4, kind: input, shape index: {}]   ;;  %s2416_s5 = inlined_call_operand.vmem [shape: f32[128,128], index: 5, kind: input, shape index: {}]   ;;  %s2417_s6 = inlined_call_operand.vmem [shape: f32[8,128], index: 6, kind: input, shape index: {}]   ;;  %s2418_s7 = inlined_call_operand.hbm [shape: f32[128,128], index: 7, kind: output, shape index: {0}]   ;;  %s2419_s8 = inlined_call_operand.vmem [shape: f32[128,128], index: 8, kind: output, shape index: {1}]  }
   0x1   :  { %v79_v4 = vld [vmem:[%s2411_s0 + $0x78] sm:$0xff]  ;;  %v78_v6 = vld [vmem:[%s2411_s0 + $0x70] sm:$0xff]  ;;  %v77_v9 = vld [vmem:[%s2411_s0 + $0x68] sm:$0xff] }
   0x2   :  { %v1248_v1 = vshrl.u32 %v29_v0, 7  ;;  %v1250_v2 = vand.u32 127, %v29_v0 }
   0x4   :  { %v1253_v3 = vadd.s32 120, %v1248_v1  ;;  %v1259_v5 = vadd.s32 112, %v1248_v1  ;;  %v1265_v7 = vadd.s32 104, %v1248_v1  ;;  %v1268_v8 = vadd.s32 96, %v1248_v1 }
   0x5   :  { %v1280_v10 = vadd.s32 88, %v1248_v1 }
   0x6   :  { %vm2424_vm0 = vcmp.eq.s32.totalorder %v1253_v3, %v1250_v2  ;;  %vm2425_vm1 = vcmp.eq.s32.totalorder %v1259_v5, %v1250_v2  ;;  %vm61_vm2 = vcmp.eq.s32.totalorder %v1265_v7, %v1250_v2 }
   0x7   :  { %14 = vsyncpa [#allocation3], 0  ;;  %v1285_v11 = vsel %vm2424_vm0, 1.0, %v79_v4  ;;  %v1290_v12 = vsel %vm2425_vm1, 1.0, %v78_v6  ;;  %vm60_vm3 = vcmp.eq.s32.totalorder %v1268_v8, %v1250_v2  ;;  %v76_v13 = vld [vmem:[%s2411_s0 + $0x60] sm:$0xff]  ;;  %v1299_v14 = vadd.s32 80, %v1248_v1 }
   0x8   :  { %1102 = vmatpush.msra.mxu2 %v1285_v11  ;;  %v1304_v15 = vsel %vm61_vm2, 1.0, %v77_v9  ;;  %96 = vmatpush.msra.mxu0 %v1285_v11  ;;  %vm59_vm4 = vcmp.eq.s32.totalorder %v1280_v10, %v1250_v2  ;;  %v75_v16 = vld [vmem:[%s2411_s0 + $0x58] sm:$0xff]  ;;  %v1314_v17 = vadd.s32 72, %v1248_v1  ;;  %v1319_v18 = vsel %vm60_vm3, 1.0, %v76_v13  ;;  %v74_v19 = vld [vmem:[%s2411_s0 + $0x50] sm:$0xff]  ;;  %v73_v22 = vld [vmem:[%s2411_s0 + $0x48] sm:$0xff] }
   0x9   :  { %vm58_vm5 = vcmp.eq.s32.totalorder %v1299_v14, %v1250_v2  ;;  %v1329_v20 = vadd.s32 64, %v1248_v1  ;;  %v1334_v21 = vsel %vm59_vm4, 1.0, %v75_v16  ;;  %v1344_v23 = vadd.s32 56, %v1248_v1  ;;  %v72_v25 = vld [vmem:[%s2411_s0 + $0x40] sm:$0xff]  ;;  %v71_v28 = vld [vmem:[%s2411_s0 + $0x38] sm:$0xff]  ;;  %v70_v31 = vld [vmem:[%s2411_s0 + $0x30] sm:$0xff] }
   0xa   :  { %1103 = vmatpush.msra.mxu2 %v1290_v12  ;;  %97 = vmatpush.msra.mxu0 %v1290_v12  ;;  %vm57_vm6 = vcmp.eq.s32.totalorder %v1314_v17, %v1250_v2  ;;  %v1349_v24 = vsel %vm58_vm5, 1.0, %v74_v19  ;;  %v1359_v26 = vadd.s32 48, %v1248_v1  ;;  %v1372_v29 = vadd.s32 40, %v1248_v1  ;;  %v69_v34 = vld [vmem:[%s2411_s0 + $0x28] sm:$0xff]  ;;  %v68_v37 = vld [vmem:[%s2411_s0 + $0x20] sm:$0xff]  ;;  %v67_v40 = vld [vmem:[%s2411_s0 + $0x18] sm:$0xff] }
   0xb   :  { %vm56_vm7 = vcmp.eq.s32.totalorder %v1329_v20, %v1250_v2  ;;  %v89_v27 = vsel %vm57_vm6, 1.0, %v73_v22  ;;  %vm55_vm8 = vcmp.eq.s32.totalorder %v1344_v23, %v1250_v2  ;;  %v1384_v32 = vadd.s32 32, %v1248_v1  ;;  %v66_v43 = vld [vmem:[%s2411_s0 + $0x10] sm:$0xff]  ;;  %v65_v45 = vld [vmem:[%s2411_s0 + $0x8] sm:$0xff]  ;;  %v64_v47 = vld [vmem:[%s2411_s0] sm:$0xff]  ;;  %s1054_s27 = sshll.u32 %s2418_s7, 4  ;;  %s1055_s27 = int_to_ptr.hbm [resolvable:$true] %s1054_s27 }
   0xc   :  { %1104 = vmatpush.msra.mxu2 %v1304_v15  ;;  %98 = vmatpush.msra.mxu0 %v1304_v15  ;;  %v88_v30 = vsel %vm56_vm7, 1.0, %v72_v25  ;;  %vm2426_vm9 = vcmp.eq.s32.totalorder %v1359_v26, %v1250_v2  ;;  %v87_v33 = vsel %vm55_vm8, 1.0, %v71_v28  ;;  %vm2427_vm10 = vcmp.eq.s32.totalorder %v1372_v29, %v1250_v2  ;;  %v1508_v6 = vld [vmem:[%s2413_s2] sm:$0xff]  ;;  %v360_v16 = vld [vmem:[%s2412_s1 + $0x68] sm:$0xff]  ;;  %v357_v22 = vld [vmem:[%s2412_s1 + $0x50] sm:$0xff]  ;;  %s1200_s28 = smov [#allocation2]  }
   0xd   :  { %v1395_v35 = vadd.s32 24, %v1248_v1  ;;  %v86_v36 = vsel %vm2426_vm9, 1.0, %v70_v31  ;;  %vm2428_vm11 = vcmp.eq.s32.totalorder %v1384_v32, %v1250_v2  ;;  %v1406_v38 = vadd.s32 16, %v1248_v1  ;;  %v1513_v9 = vld [vmem:[%s2413_s2 + $0x40] sm:$0xff]  ;;  %v1534_v19 = vld [vmem:[%s2413_s2 + $0x8] sm:$0xff]  ;;  %v1558_v31 = vld [vmem:[%s2413_s2 + $0x10] sm:$0xff] }
   0xe   :  { %1105 = vmatpush.msra.mxu2 %v1319_v18  ;;  %99 = vmatpush.msra.mxu0 %v1319_v18  ;;  %v85_v39 = vsel %vm2427_vm10, 1.0, %v69_v34  ;;  %v1417_v41 = vadd.s32 8, %v1248_v1  ;;  %v84_v42 = vsel %vm2428_vm11, 1.0, %v68_v37  ;;  %vm2420_vm15 = vcmp.eq.s32.totalorder %v1248_v1, %v1250_v2  ;;  %v356_v28 = vld [vmem:[%s2412_s1 + $0x48] sm:$0xff]  ;;  %v353_v34 = vld [vmem:[%s2412_s1 + $0x30] sm:$0xff]  ;;  %s1052_s29 = sshll.u32 %s1200_s28, 4  ;;  %s1053_s29 = int_to_ptr.vmem [resolvable:$true] %s1052_s29 }
   0xf   :  { %vm2423_vm12 = vcmp.eq.s32.totalorder %v1395_v35, %v1250_v2  ;;  %vm2422_vm13 = vcmp.eq.s32.totalorder %v1406_v38, %v1250_v2  ;;  %v80_v49 = vsel %vm2420_vm15, 1.0, %v64_v47  ;;  %vm1070_vm15 = vmneg %vm2424_vm0  ;;  %s1201_s30 = smov 128  }
  0x10   :  { %1106 = vmatpush.msra.mxu2 %v1334_v21  ;;  %100 = vmatpush.msra.mxu0 %v1334_v21  ;;  %v83_v44 = vsel %vm2423_vm12, 1.0, %v67_v40  ;;  %vm2421_vm14 = vcmp.eq.s32.totalorder %v1417_v41, %v1250_v2  ;;  %v82_v46 = vsel %vm2422_vm13, 1.0, %v66_v43  ;;  %vm1074_vm13 = vmneg %vm61_vm2  ;;  %v352_v40 = vld [vmem:[%s2412_s1 + $0x28] sm:$0xff]  ;;  %v180_v43 = vld [vmem:[%s2413_s2 + $0x18] sm:$0xff] }
  0x11   :  { %v81_v48 = vsel %vm2421_vm14, 1.0, %v65_v45  ;;  %vm1072_vm14 = vmneg %vm2425_vm1  ;;  %v349_v45 = vld [vmem:[%s2412_s1 + $0x10] sm:$0xff] }
  0x12   :  { %1107 = vmatpush.msra.mxu2 %v1349_v24  ;;  %101 = vmatpush.msra.mxu0 %v1349_v24  ;;  %vm1076_vm12 = vmneg %vm60_vm3 }
  0x13   :  { %vm1078_vm0 = vmneg %vm59_vm4 }
  0x14   :  { %1108 = vmatpush.msra.mxu2 %v89_v27  ;;  %102 = vmatpush.msra.mxu0 %v89_v27 }
  0x16   :  { %1109 = vmatpush.msra.mxu2 %v88_v30  ;;  %103 = vmatpush.msra.mxu0 %v88_v30 }
  0x18   :  { %1110 = vmatpush.msra.mxu2 %v87_v33  ;;  %104 = vmatpush.msra.mxu0 %v87_v33 }
  0x1a   :  { %1111 = vmatpush.msra.mxu2 %v86_v36  ;;  %105 = vmatpush.msra.mxu0 %v86_v36 }
  0x1c   :  { %1112 = vmatpush.msra.mxu2 %v85_v39  ;;  %106 = vmatpush.msra.mxu0 %v85_v39 }
  0x1e   :  { %1113 = vmatpush.msra.mxu2 %v84_v42  ;;  %107 = vmatpush.msra.mxu0 %v84_v42 }
  0x20   :  { %1114 = vmatpush.msra.mxu2 %v83_v44  ;;  %108 = vmatpush.msra.mxu0 %v83_v44 }
  0x22   :  { %1115 = vmatpush.msra.mxu2 %v82_v46  ;;  %109 = vmatpush.msra.mxu0 %v82_v46 }
  0x24   :  { %1116 = vmatpush.msra.mxu2 %v81_v48  ;;  %110 = vmatpush.msra.mxu0 %v81_v48 }
  0x26   :  { %1117 = vmatpush.msra.mxu2 %v80_v49  ;;  %111 = vmatpush.msra.mxu0 %v80_v49 }
  0x27   :  { %136 = vmatmul.f32.vlgmr.msra.gmra.mxu2 %v88_v30  ;;  %112 = vmatmul.f32.vlgmr.msra.gmra.mxu0 %v80_v49  ;;  %v348_v49 = vld [vmem:[%s2412_s1 + $0x8] sm:$0xff] }
  0x2f   :  { %139 = vmatmul.f32.gmra.mxu2 %v89_v27  ;;  %115 = vmatmul.f32.gmra.mxu0 %v81_v48  ;;  %v355_v27 = vld [vmem:[%s2412_s1 + $0x40] sm:$0xff] }
  0x30   :  { %v367_v30 = vpack.c.bf16 %v356_v28, %v355_v27  ;;  %v347_v48 = vld [vmem:[%s2412_s1] sm:$0xff]  ;;  %v426_v27 = vld [vmem:[%s2415_s4 + $0x30] sm:$0xff] }
  0x31   :  { %v262_v28 = vld [vmem:[%s2414_s3 + $0x20] sm:$0xff] }
  0x37   :  { %142 = vmatmul.f32.gmra.mxu2 %v1349_v24  ;;  %118 = vmatmul.f32.gmra.mxu0 %v82_v46  ;;  %v358_v24 = vld [vmem:[%s2412_s1 + $0x58] sm:$0xff] }
  0x38   :  { %v368_v25 = vpack.c.bf16 %v358_v24, %v357_v22  ;;  %v350_v46 = vld [vmem:[%s2412_s1 + $0x18] sm:$0xff]  ;;  %v340_v22 = vpack.c.bf16 %v180_v43, %v1558_v31  ;;  %v264_v24 = vld [vmem:[%s2414_s3 + $0x30] sm:$0xff] }
  0x39   :  { %v364_v47 = vpack.c.bf16 %v350_v46, %v349_v45  ;;  %v435_v46 = vld [vmem:[%s2415_s4 + $0x78] sm:$0xff] }
  0x3f   :  { %145 = vmatmul.f32.gmra.mxu2 %v1334_v21  ;;  %121 = vmatmul.f32.gmra.mxu0 %v83_v44  ;;  %v1539_v21 = vld [vmem:[%s2413_s2 + $0x48] sm:$0xff]  ;;  %v1585_v44 = vld [vmem:[%s2413_s2 + $0x58] sm:$0xff] }
  0x47   :  { %148 = vmatmul.f32.gmra.mxu2 %v1319_v18  ;;  %124 = vmatmul.f32.gmra.mxu0 %v84_v42 }
  0x4f   :  { %151 = vmatmul.f32.gmra.mxu2 %v1304_v15  ;;  %127 = vmatmul.f32.gmra.mxu0 %v85_v39  ;;  %v359_v15 = vld [vmem:[%s2412_s1 + $0x60] sm:$0xff] }
  0x50   :  { %v369_v18 = vpack.c.bf16 %v360_v16, %v359_v15  ;;  %v351_v39 = vld [vmem:[%s2412_s1 + $0x20] sm:$0xff]  ;;  %v423_v15 = vld [vmem:[%s2415_s4 + $0x18] sm:$0xff]  ;;  %v267_v16 = vld [vmem:[%s2414_s3 + $0x48] sm:$0xff] }
  0x51   :  { %v365_v42 = vpack.c.bf16 %v352_v40, %v351_v39  ;;  %v429_v39 = vld [vmem:[%s2415_s4 + $0x48] sm:$0xff]  ;;  %v432_v40 = vld [vmem:[%s2415_s4 + $0x60] sm:$0xff] }
  0x57   :  { %154 = vmatmul.f32.gmra.mxu2 %v1290_v12  ;;  %130 = vmatmul.f32.gmra.mxu0 %v86_v36  ;;  %v362_v12 = vld [vmem:[%s2412_s1 + $0x78] sm:$0xff] }
  0x58   :  { %v354_v36 = vld [vmem:[%s2412_s1 + $0x38] sm:$0xff] }
  0x59   :  { %v366_v37 = vpack.c.bf16 %v354_v36, %v353_v34  ;;  %v259_v34 = vld [vmem:[%s2414_s3 + $0x8] sm:$0xff] }
  0x5f   :  { %157 = vmatmul.f32.gmra.mxu2 %v1285_v11  ;;  %133 = vmatmul.f32.gmra.mxu0 %v87_v33  ;;  %v361_v11 = vld [vmem:[%s2412_s1 + $0x70] sm:$0xff] }
  0x60   :  { %v370_v13 = vpack.c.bf16 %v362_v12, %v361_v11  ;;  %v1563_v33 = vld [vmem:[%s2413_s2 + $0x50] sm:$0xff]  ;;  %v271_v11 = vld [vmem:[%s2414_s3 + $0x68] sm:$0xff]  ;;  %v270_v12 = vld [vmem:[%s2414_s3 + $0x60] sm:$0xff] }
  0xa4   :  { %v1455_v51 = vpop.f32.mrf.mxu0 }
  0xaa   :  { %v137_v50 = vpop.f32.mrf.mxu2 }
  0xac   :  { %v116_v53 = vpop.f32.mrf.mxu0 }
  0xb2   :  { %v140_v52 = vpop.f32.mrf.mxu2 }
  0xb4   :  { %v119_v55 = vpop.f32.mrf.mxu0 }
  0xba   :  { %v143_v54 = vpop.f32.mrf.mxu2 }
  0xbc   :  { %v122_v57 = vpop.f32.mrf.mxu0 }
  0xc2   :  { %v146_v56 = vpop.f32.mrf.mxu2 }
  0xc4   :  { %v125_v60 = vpop.f32.mrf.mxu0 }
  0xca   :  { %v149_v58 = vpop.f32.mrf.mxu2 }
  0xcc   :  { %v128_v62 = vpop.f32.mrf.mxu0 }
  0xd2   :  { %v152_v59 = vpop.f32.mrf.mxu2 }
  0xd4   :  { %v131_v0 = vpop.f32.mrf.mxu0 }
  0xda   :  { %v155_v61 = vpop.f32.mrf.mxu2 }
  0xdc   :  { %v134_v4 = vpop.f32.mrf.mxu0 }
  0xe2   :  { %v158_v63 = vpop.f32.mrf.mxu2 }
  0xe3   :  { %1071 = vmatpush.msk.msra.mxu1 %vm1070_vm15, %v158_v63  ;;  %1118 = vmatpush.msk.msra.mxu3 %vm1070_vm15, %v158_v63  ;;  %vm1080_vm15 = vmneg %vm58_vm5  ;;  %v421_v63 = vld [vmem:[%s2415_s4 + $0x8] sm:$0xff] }
  0xe5   :  { %1073 = vmatpush.msk.msra.mxu1 %vm1072_vm14, %v155_v61  ;;  %1119 = vmatpush.msk.msra.mxu3 %vm1072_vm14, %v155_v61  ;;  %vm1082_vm14 = vmneg %vm57_vm6  ;;  %v184_v61 = vld [vmem:[%s2413_s2 + $0x38] sm:$0xff] }
  0xe7   :  { %1075 = vmatpush.msk.msra.mxu1 %vm1074_vm13, %v152_v59  ;;  %1120 = vmatpush.msk.msra.mxu3 %vm1074_vm13, %v152_v59  ;;  %vm1084_vm13 = vmneg %vm56_vm7  ;;  %v273_v59 = vld [vmem:[%s2414_s3 + $0x78] sm:$0xff] }
  0xe8   :  { %274 = vmatpush.msrb.mxu2 %v273_v59 }
  0xe9   :  { %1077 = vmatpush.msk.msra.mxu1 %vm1076_vm12, %v149_v58  ;;  %1121 = vmatpush.msk.msra.mxu3 %vm1076_vm12, %v149_v58  ;;  %vm1086_vm12 = vmneg %vm55_vm8  ;;  %v420_v58 = vld [vmem:[%s2415_s4] sm:$0xff] }
  0xeb   :  { %1079 = vmatpush.msk.msra.mxu1 %vm1078_vm0, %v146_v56  ;;  %1122 = vmatpush.msk.msra.mxu3 %vm1078_vm0, %v146_v56  ;;  %vm1088_vm0 = vmneg %vm2426_vm9  ;;  %v1624_v56 = vld [vmem:[%s2413_s2 + $0x30] sm:$0xff] }
  0xec   :  { %v342_v45 = vpack.c.bf16 %v184_v61, %v1624_v56 }
  0xed   :  { %1081 = vmatpush.msk.msra.mxu1 %vm1080_vm15, %v143_v54  ;;  %1123 = vmatpush.msk.msra.mxu3 %vm1080_vm15, %v143_v54  ;;  %vm1090_vm15 = vmneg %vm2427_vm10  ;;  %v182_v54 = vld [vmem:[%s2413_s2 + $0x28] sm:$0xff] }
  0xef   :  { %1083 = vmatpush.msk.msra.mxu1 %vm1082_vm14, %v140_v52  ;;  %1124 = vmatpush.msk.msra.mxu3 %vm1082_vm14, %v140_v52  ;;  %vm1092_vm14 = vmneg %vm2428_vm11  ;;  %v1608_v52 = vld [vmem:[%s2413_s2 + $0x60] sm:$0xff] }
  0xf1   :  { %1085 = vmatpush.msk.msra.mxu1 %vm1084_vm13, %v137_v50  ;;  %1125 = vmatpush.msk.msra.mxu3 %vm1084_vm13, %v137_v50  ;;  %vm2435_vm13 = vcmp.eq.s32.totalorder %v1395_v35, %v1250_v2  ;;  %v363_v50 = vpack.c.bf16 %v348_v49, %v347_v48  ;;  %v430_v48 = vld [vmem:[%s2415_s4 + $0x50] sm:$0xff]  ;;  %v343_v49 = vpack.c.bf16 %v1539_v21, %v1513_v9 }
  0xf2   :  { %vm1094_vm1 = vmneg %vm2435_vm13 }
  0xf3   :  { %1087 = vmatpush.msk.msra.mxu1 %vm1086_vm12, %v134_v4  ;;  %1126 = vmatpush.msk.msra.mxu3 %vm1086_vm12, %v134_v4  ;;  %vm2436_vm12 = vcmp.eq.s32.totalorder %v1406_v38, %v1250_v2  ;;  %v422_v4 = vld [vmem:[%s2415_s4 + $0x10] sm:$0xff] }
  0xf4   :  { %vm1096_vm9 = vmneg %vm2436_vm12 }
  0xf5   :  { %1089 = vmatpush.msk.msra.mxu1 %vm1088_vm0, %v131_v0  ;;  %1127 = vmatpush.msk.msra.mxu3 %vm1088_vm0, %v131_v0  ;;  %vm2437_vm0 = vcmp.eq.s32.totalorder %v1417_v41, %v1250_v2  ;;  %v339_v0 = vpack.c.bf16 %v1534_v19, %v1508_v6 }
  0xf6   :  { %vm1098_vm10 = vmneg %vm2437_vm0 }
  0xf7   :  { %1091 = vmatpush.msk.msra.mxu1 %vm1090_vm15, %v128_v62  ;;  %1128 = vmatpush.msk.msra.mxu3 %vm1090_vm15, %v128_v62  ;;  %vm2438_vm15 = vcmp.eq.s32.totalorder %v1248_v1, %v1250_v2  ;;  %v1648_v62 = vld [vmem:[%s2413_s2 + $0x78] sm:$0xff] }
  0xf8   :  { %vm1100_vm11 = vmneg %vm2438_vm15 }
  0xf9   :  { %1093 = vmatpush.msk.msra.mxu1 %vm1092_vm14, %v125_v60  ;;  %1129 = vmatpush.msk.msra.mxu3 %vm1092_vm14, %v125_v60  ;;  %v272_v60 = vld [vmem:[%s2414_s3 + $0x70] sm:$0xff] }
  0xfa   :  { %275 = vmatpush.msrb.mxu2 %v272_v60 }
  0xfb   :  { %1095 = vmatpush.msk.msra.mxu1 %vm1094_vm1, %v122_v57  ;;  %1130 = vmatpush.msk.msra.mxu3 %vm1094_vm1, %v122_v57  ;;  %v1629_v57 = vld [vmem:[%s2413_s2 + $0x70] sm:$0xff] }
  0xfc   :  { %276 = vmatpush.msrb.mxu2 %v271_v11  ;;  %v558_v11 = vld [vmem:[%s2416_s5 + $0x50] sm:$0xff] }
  0xfd   :  { %1097 = vmatpush.msk.msra.mxu1 %vm1096_vm9, %v119_v55  ;;  %1131 = vmatpush.msk.msra.mxu3 %vm1096_vm9, %v119_v55  ;;  %v1618_v55 = vld [vmem:[%s2413_s2 + $0x68] sm:$0xff] }
  0xfe   :  { %277 = vmatpush.msrb.mxu2 %v270_v12  ;;  %v559_v12 = vld [vmem:[%s2416_s5 + $0x58] sm:$0xff] }
  0xff   :  { %1099 = vmatpush.msk.msra.mxu1 %vm1098_vm10, %v116_v53  ;;  %1132 = vmatpush.msk.msra.mxu3 %vm1098_vm10, %v116_v53  ;;  %v1199_v53 = vmov 0  }
 0x100   :  { %1138 = vset.pattern.permute.xlu0 %v1199_v53  ;;  %1139 = vset.pattern.permute.xlu1 %v1199_v53 }
 0x101   :  { %1101 = vmatpush.msk.msra.mxu1 %vm1100_vm11, %v1455_v51  ;;  %1133 = vmatpush.msk.msra.mxu3 %vm1100_vm11, %v1455_v51  ;;  %v1603_v51 = vld [vmem:[%s2413_s2 + $0x20] sm:$0xff] }
 0x102   :  { %209 = vmatmul.f32.vlgmr.msra.gmra.mxu1 %v1508_v6  ;;  %233 = vmatmul.f32.vlgmr.msra.gmra.mxu3 %v1513_v9  ;;  %v268_v6 = vld [vmem:[%s2414_s3 + $0x50] sm:$0xff]  ;;  %v341_v36 = vpack.c.bf16 %v182_v54, %v1603_v51 }
 0x103   :  { %371 = vmatpush.bf16.msrb.mxu3 %v370_v13  ;;  %1140 = vset.pattern.permute.xlu2 %v1199_v53  ;;  %v269_v13 = vld [vmem:[%s2414_s3 + $0x58] sm:$0xff]  ;;  %v562_v9 = vld [vmem:[%s2416_s5 + $0x70] sm:$0xff] }
 0x104   :  { %438 = vperm.xlu0 %1138, %v420_v58   ;;  %448 = vperm.xlu1 %1139, %v422_v4   ;;  %v344_v58 = vpack.c.bf16 %v1585_v44, %v1563_v33 }
 0x105   :  { %278 = vmatpush.msrb.mxu2 %v269_v13  ;;  %v850_v13 = vpack.c.bf16 %v559_v12, %v558_v11 }
 0x107   :  { %372 = vmatpush.bf16.msrb.mxu3 %v369_v18  ;;  %279 = vmatpush.msrb.mxu2 %v268_v6  ;;  %v266_v18 = vld [vmem:[%s2414_s3 + $0x40] sm:$0xff] }
 0x108   :  { %v556_v6 = vld [vmem:[%s2416_s5 + $0x40] sm:$0xff] }
 0x109   :  { %280 = vmatpush.msrb.mxu2 %v267_v16 }
 0x10a   :  { %212 = vmatmul.f32.gmra.mxu1 %v1534_v19  ;;  %236 = vmatmul.f32.gmra.mxu3 %v1539_v21  ;;  %v265_v19 = vld [vmem:[%s2414_s3 + $0x38] sm:$0xff] }
 0x10b   :  { %373 = vmatpush.bf16.msrb.mxu3 %v368_v25  ;;  %281 = vmatpush.msrb.mxu2 %v266_v18  ;;  %v263_v25 = vld [vmem:[%s2414_s3 + $0x28] sm:$0xff]  ;;  %v563_v21 = vld [vmem:[%s2416_s5 + $0x78] sm:$0xff] }
 0x10c   :  { %443 = vperm.xlu0 %1138, %v421_v63   ;;  %453 = vperm.xlu1 %1139, %v423_v15   ;;  %v852_v60 = vpack.c.bf16 %v563_v21, %v562_v9  ;;  %v557_v15 = vld [vmem:[%s2416_s5 + $0x48] sm:$0xff] }
 0x10d   :  { %282 = vmatpush.msrb.mxu2 %v265_v19  ;;  %v849_v18 = vpack.c.bf16 %v557_v15, %v556_v6  ;;  %v345_v19 = vpack.c.bf16 %v1618_v55, %v1608_v52 }
 0x10e   :  { %853 = vmatpush.bf16.msrb.mxu0 %v852_v60 }
 0x10f   :  { %374 = vmatpush.bf16.msrb.mxu3 %v367_v30  ;;  %283 = vmatpush.msrb.mxu2 %v264_v24  ;;  %v261_v30 = vld [vmem:[%s2414_s3 + $0x18] sm:$0xff] }
 0x110   :  { %v431_v24 = vld [vmem:[%s2415_s4 + $0x58] sm:$0xff] }
 0x111   :  { %284 = vmatpush.msrb.mxu2 %v263_v25  ;;  %v554_v25 = vld [vmem:[%s2416_s5 + $0x30] sm:$0xff] }
 0x112   :  { %215 = vmatmul.f32.gmra.mxu1 %v1558_v31  ;;  %239 = vmatmul.f32.gmra.mxu3 %v1563_v33  ;;  %v260_v31 = vld [vmem:[%s2414_s3 + $0x10] sm:$0xff]  ;;  %v560_v33 = vld [vmem:[%s2416_s5 + $0x60] sm:$0xff] }
 0x113   :  { %375 = vmatpush.bf16.msrb.mxu3 %v366_v37  ;;  %285 = vmatpush.msrb.mxu2 %v262_v28  ;;  %v258_v37 = vld [vmem:[%s2414_s3] sm:$0xff]  ;;  %s1202_s3 = smov 8  }
 0x114   :  { %468 = vperm.xlu0 %1138, %v426_v27   ;;  %v555_v27 = vld [vmem:[%s2416_s5 + $0x38] sm:$0xff] }
 0x115   :  { %286 = vmatpush.msrb.mxu2 %v261_v30  ;;  %v848_v28 = vpack.c.bf16 %v555_v27, %v554_v25 }
 0x117   :  { %376 = vmatpush.bf16.msrb.mxu3 %v365_v42  ;;  %287 = vmatpush.msrb.mxu2 %v260_v31  ;;  %v424_v42 = vld [vmem:[%s2415_s4 + $0x20] sm:$0xff] }
 0x118   :  { %458 = vperm.xlu2 %1140, %v424_v42   ;;  %v548_v42 = vld [vmem:[%s2416_s5] sm:$0xff] }
 0x119   :  { %288 = vmatpush.msrb.mxu2 %v259_v34 }
 0x11a   :  { %218 = vmatmul.f32.gmra.mxu1 %v180_v43  ;;  %242 = vmatmul.f32.gmra.mxu3 %v1585_v44  ;;  %v427_v43 = vld [vmem:[%s2415_s4 + $0x38] sm:$0xff]  ;;  %v561_v44 = vld [vmem:[%s2416_s5 + $0x68] sm:$0xff] }
 0x11b   :  { %377 = vmatpush.bf16.msrb.mxu3 %v364_v47  ;;  %289 = vmatpush.msrb.mxu2 %v258_v37  ;;  %v425_v47 = vld [vmem:[%s2415_s4 + $0x28] sm:$0xff]  ;;  %v550_v37 = vld [vmem:[%s2416_s5 + $0x10] sm:$0xff] }
 0x11c   :  { %483 = vperm.xlu0 %1138, %v429_v39   ;;  %473 = vperm.xlu1 %1139, %v427_v43   ;;  %v551_v39 = vld [vmem:[%s2416_s5 + $0x18] sm:$0xff]  ;;  %v549_v43 = vld [vmem:[%s2416_s5 + $0x8] sm:$0xff] }
 0x11f   :  { %378 = vmatpush.bf16.msrb.mxu3 %v363_v50 }
 0x120   :  { %463 = vperm.xlu2 %1140, %v425_v47   ;;  %v346_v47 = vpack.c.bf16 %v1648_v62, %v1629_v57 }
 0x122   :  { %221 = vmatmul.f32.gmra.mxu1 %v1603_v51  ;;  %245 = vmatmul.f32.gmra.mxu3 %v1608_v52  ;;  %v433_v51 = vld [vmem:[%s2415_s4 + $0x68] sm:$0xff]  ;;  %v552_v52 = vld [vmem:[%s2416_s5 + $0x20] sm:$0xff] }
 0x124   :  { %498 = vperm.xlu0 %1138, %v432_v40   ;;  %488 = vperm.xlu1 %1139, %v430_v48   ;;  %v846_v40 = vpack.c.bf16 %v551_v39, %v550_v37 }
 0x12a   :  { %224 = vmatmul.f32.gmra.mxu1 %v182_v54  ;;  %248 = vmatmul.f32.gmra.mxu3 %v1618_v55  ;;  %v553_v55 = vld [vmem:[%s2416_s5 + $0x28] sm:$0xff] }
 0x12b   :  { %v847_v31 = vpack.c.bf16 %v553_v55, %v552_v52 }
 0x12c   :  { %513 = vperm.xlu0 %1138, %v435_v46   ;;  %503 = vperm.xlu1 %1139, %v433_v51   ;;  %v845_v46 = vpack.c.bf16 %v549_v43, %v548_v42 }
 0x132   :  { %227 = vmatmul.f32.gmra.mxu1 %v1624_v56  ;;  %251 = vmatmul.f32.gmra.mxu3 %v1629_v57 }
 0x13a   :  { %230 = vmatmul.f32.gmra.mxu1 %v184_v61  ;;  %254 = vmatmul.f32.gmra.mxu3 %v1648_v62  ;;  %v428_v61 = vld [vmem:[%s2415_s4 + $0x40] sm:$0xff] }
 0x13b   :  { %478 = vperm.xlu2 %1140, %v428_v61  }
 0x142   :  { %379 = vmatmul.bf16.vlgmr.msrb.gmra.mxu3 %v339_v0  ;;  %v851_v0 = vpack.c.bf16 %v561_v44, %v560_v33 }
 0x143   :  { %493 = vperm.xlu2 %1140, %v431_v24  }
 0x144   :  { %854 = vmatpush.bf16.msrb.mxu0 %v851_v0 }
 0x148   :  { %855 = vmatpush.bf16.msrb.mxu0 %v850_v13 }
 0x14c   :  { %856 = vmatpush.bf16.msrb.mxu0 %v849_v18 }
 0x150   :  { %857 = vmatpush.bf16.msrb.mxu0 %v848_v28 }
 0x152   :  { %384 = vmatmul.bf16.gmra.mxu3 %v340_v22 }
 0x154   :  { %858 = vmatpush.bf16.msrb.mxu0 %v847_v31 }
 0x158   :  { %859 = vmatpush.bf16.msrb.mxu0 %v846_v40 }
 0x15c   :  { %860 = vmatpush.bf16.msrb.mxu0 %v845_v46 }
 0x162   :  { %389 = vmatmul.bf16.gmra.mxu3 %v341_v36  ;;  %v434_v36 = vld [vmem:[%s2415_s4 + $0x70] sm:$0xff] }
 0x163   :  { %508 = vperm.xlu2 %1140, %v434_v36  }
 0x172   :  { %394 = vmatmul.bf16.gmra.mxu3 %v342_v45  ;;  %v459_v11 = vpop.permute.xlu2 %458 }
 0x176   :  { %v449_v57 = vpop.permute.xlu1 %448 }
 0x17e   :  { %v454_v33 = vpop.permute.xlu1 %453 }
 0x17f   :  { %v210_v50 = vpop.f32.mrf.mxu1 }
 0x180   :  { %290 = vmatmul.f32.vlgmr.msrb.gmra.mxu2 %v210_v50 }
 0x182   :  { %399 = vmatmul.bf16.gmra.mxu3 %v343_v49 }
 0x185   :  { %v1736_v53 = vpop.f32.mrf.mxu3 }
 0x187   :  { %v213_v54 = vpop.f32.mrf.mxu1 }
 0x188   :  { %293 = vmatmul.f32.gmra.mxu2 %v213_v54  ;;  %v439_v54 = vpop.permute.xlu0 %438 }
 0x18d   :  { %v1738_v56 = vpop.f32.mrf.mxu3 }
 0x18f   :  { %v216_v59 = vpop.f32.mrf.mxu1 }
 0x190   :  { %296 = vmatmul.f32.gmra.mxu2 %v216_v59  ;;  %v444_v59 = vpop.permute.xlu0 %443 }
 0x192   :  { %404 = vmatmul.bf16.gmra.mxu3 %v344_v58 }
 0x195   :  { %v240_v63 = vpop.f32.mrf.mxu3 }
 0x197   :  { %v219_v4 = vpop.f32.mrf.mxu1 }
 0x198   :  { %299 = vmatmul.f32.gmra.mxu2 %v219_v4 }
 0x19d   :  { %v243_v16 = vpop.f32.mrf.mxu3 }
 0x19f   :  { %v222_v22 = vpop.f32.mrf.mxu1 }
 0x1a0   :  { %302 = vmatmul.f32.gmra.mxu2 %v222_v22 }
 0x1a2   :  { %409 = vmatmul.bf16.gmra.mxu3 %v345_v19  ;;  %v474_v19 = vpop.permute.xlu1 %473 }
 0x1a5   :  { %v246_v30 = vpop.f32.mrf.mxu3 }
 0x1a7   :  { %v225_v34 = vpop.f32.mrf.mxu1 }
 0x1a8   :  { %305 = vmatmul.f32.gmra.mxu2 %v225_v34 }
 0x1aa   :  { %v489_v46 = vpop.permute.xlu1 %488 }
 0x1ad   :  { %v249_v45 = vpop.f32.mrf.mxu3 }
 0x1af   :  { %v228_v48 = vpop.f32.mrf.mxu1 }
 0x1b0   :  { %308 = vmatmul.f32.gmra.mxu2 %v228_v48 }
 0x1b2   :  { %414 = vmatmul.bf16.gmra.mxu3 %v346_v47 }
 0x1b5   :  { %v252_v49 = vpop.f32.mrf.mxu3 }
 0x1b7   :  { %v231_v50 = vpop.f32.mrf.mxu1 }
 0x1b8   :  { %311 = vmatmul.f32.gmra.mxu2 %v231_v50 }
 0x1bd   :  { %v255_v51 = vpop.f32.mrf.mxu3 }
 0x1c0   :  { %314 = vmatmul.f32.gmra.mxu2 %v1736_v53 }
 0x1c5   :  { %v380_v58 = vpop.f32.mrf.mxu3 }
 0x1c6   :  { %v516_v9 = vmul.f32 %v439_v54, %v380_v58 }
 0x1c8   :  { %317 = vmatmul.f32.gmra.mxu2 %v1738_v56  ;;  %v464_v56 = vpop.permute.xlu2 %463 }
 0x1cd   :  { %v382_v21 = vpop.f32.mrf.mxu3 }
 0x1ce   :  { %v517_v60 = vmul.f32 %v444_v59, %v382_v21 }
 0x1d0   :  { %v837_v61 = vpack.c.bf16 %v517_v60, %v516_v9  ;;  %320 = vmatmul.f32.gmra.mxu2 %v240_v63  ;;  %v479_v55 = vpop.permute.xlu2 %478  ;;  %v504_v9 = vpop.permute.xlu1 %503 }
 0x1d2   :  { %861 = vmatmul.bf16.vlgmr.msrb.gmra.mxu0 %v837_v61 }
 0x1d5   :  { %v385_v62 = vpop.f32.mrf.mxu3 }
 0x1d6   :  { %v518_v44 = vmul.f32 %v449_v57, %v385_v62 }
 0x1d8   :  { %323 = vmatmul.f32.gmra.mxu2 %v243_v16  ;;  %v469_v16 = vpop.permute.xlu0 %468  ;;  %v494_v43 = vpop.permute.xlu2 %493 }
 0x1dd   :  { %v387_v0 = vpop.f32.mrf.mxu3 }
 0x1de   :  { %v519_v4 = vmul.f32 %v454_v33, %v387_v0 }
 0x1e0   :  { %326 = vmatmul.f32.gmra.mxu2 %v246_v30  ;;  %v838_v53 = vpack.c.bf16 %v519_v4, %v518_v44  ;;  %v484_v34 = vpop.permute.xlu0 %483  ;;  %v509_v4 = vpop.permute.xlu2 %508 }
 0x1e2   :  { %866 = vmatmul.bf16.gmra.mxu0 %v838_v53 }
 0x1e5   :  { %v390_v12 = vpop.f32.mrf.mxu3 }
 0x1e6   :  { %v520_v13 = vmul.f32 %v459_v11, %v390_v12 }
 0x1e8   :  { %329 = vmatmul.f32.gmra.mxu2 %v249_v45  ;;  %v499_v59 = vpop.permute.xlu0 %498 }
 0x1ed   :  { %v392_v6 = vpop.f32.mrf.mxu3 }
 0x1ee   :  { %v521_v15 = vmul.f32 %v464_v56, %v392_v6 }
 0x1f0   :  { %332 = vmatmul.f32.gmra.mxu2 %v252_v49  ;;  %v839_v63 = vpack.c.bf16 %v521_v15, %v520_v13  ;;  %v514_v0 = vpop.permute.xlu0 %513 }
 0x1f2   :  { %871 = vmatmul.bf16.gmra.mxu0 %v839_v63 }
 0x1f5   :  { %v395_v18 = vpop.f32.mrf.mxu3 }
 0x1f6   :  { %v522_v22 = vmul.f32 %v469_v16, %v395_v18 }
 0x1f8   :  { %335 = vmatmul.f32.gmra.mxu2 %v255_v51 }
 0x1fd   :  { %v397_v24 = vpop.f32.mrf.mxu3 }
 0x1fe   :  { %v523_v25 = vmul.f32 %v474_v19, %v397_v24 }
 0x200   :  { %v840_v27 = vpack.c.bf16 %v523_v25, %v522_v22 }
 0x202   :  { %876 = vmatmul.bf16.gmra.mxu0 %v840_v27 }
 0x203   :  { %v1805_v28 = vpop.f32.mrf.mxu2 }
 0x204   :  { %532 = vst [vmem:[#allocation2] sm:$0xff] %v1805_v28 }
 0x205   :  { %v400_v52 = vpop.f32.mrf.mxu3 }
 0x206   :  { %v524_v31 = vmul.f32 %v479_v55, %v400_v52 }
 0x20b   :  { %v1808_v30 = vpop.f32.mrf.mxu2 }
 0x20c   :  { %533 = vst [vmem:[#allocation2 + $0x8] sm:$0xff] %v1808_v30 }
 0x20d   :  { %v402_v36 = vpop.f32.mrf.mxu3 }
 0x20e   :  { %v525_v37 = vmul.f32 %v484_v34, %v402_v36 }
 0x210   :  { %v841_v39 = vpack.c.bf16 %v525_v37, %v524_v31 }
 0x212   :  { %881 = vmatmul.bf16.gmra.mxu0 %v841_v39 }
 0x213   :  { %v1811_v40 = vpop.f32.mrf.mxu2 }
 0x214   :  { %534 = vst [vmem:[#allocation2 + $0x10] sm:$0xff] %v1811_v40 }
 0x215   :  { %v405_v42 = vpop.f32.mrf.mxu3 }
 0x216   :  { %v526_v48 = vmul.f32 %v489_v46, %v405_v42 }
 0x21b   :  { %v1814_v45 = vpop.f32.mrf.mxu2 }
 0x21c   :  { %535 = vst [vmem:[#allocation2 + $0x18] sm:$0xff] %v1814_v45 }
 0x21d   :  { %v407_v47 = vpop.f32.mrf.mxu3 }
 0x21e   :  { %v527_v49 = vmul.f32 %v494_v43, %v407_v47 }
 0x220   :  { %v842_v50 = vpack.c.bf16 %v527_v49, %v526_v48 }
 0x222   :  { %886 = vmatmul.bf16.gmra.mxu0 %v842_v50 }
 0x223   :  { %v1817_v51 = vpop.f32.mrf.mxu2 }
 0x224   :  { %536 = vst [vmem:[#allocation2 + $0x20] sm:$0xff] %v1817_v51 }
 0x225   :  { %v410_v54 = vpop.f32.mrf.mxu3 }
 0x226   :  { %v528_v60 = vmul.f32 %v499_v59, %v410_v54 }
 0x22b   :  { %v1820_v58 = vpop.f32.mrf.mxu2 }
 0x22c   :  { %537 = vst [vmem:[#allocation2 + $0x28] sm:$0xff] %v1820_v58 }
 0x22d   :  { %v412_v21 = vpop.f32.mrf.mxu3 }
 0x22e   :  { %v529_v61 = vmul.f32 %v504_v9, %v412_v21 }
 0x230   :  { %v843_v57 = vpack.c.bf16 %v529_v61, %v528_v60 }
 0x232   :  { %891 = vmatmul.bf16.gmra.mxu0 %v843_v57 }
 0x233   :  { %v1823_v62 = vpop.f32.mrf.mxu2 }
 0x234   :  { %538 = vst [vmem:[#allocation2 + $0x30] sm:$0xff] %v1823_v62 }
 0x235   :  { %v415_v33 = vpop.f32.mrf.mxu3 }
 0x236   :  { %v530_v11 = vmul.f32 %v509_v4, %v415_v33 }
 0x23b   :  { %v312_v44 = vpop.f32.mrf.mxu2 }
 0x23c   :  { %539 = vst [vmem:[#allocation2 + $0x38] sm:$0xff] %v312_v44 }
 0x23d   :  { %v417_v53 = vpop.f32.mrf.mxu3 }
 0x23e   :  { %v531_v12 = vmul.f32 %v514_v0, %v417_v53 }
 0x240   :  { %v844_v56 = vpack.c.bf16 %v531_v12, %v530_v11 }
 0x242   :  { %896 = vmatmul.bf16.gmra.mxu0 %v844_v56 }
 0x243   :  { %v315_v13 = vpop.f32.mrf.mxu2 }
 0x244   :  { %540 = vst [vmem:[#allocation2 + $0x40] sm:$0xff] %v315_v13  ;;  %vm573_vm1 = vcmp.eq.f32.partialorder %v315_v13, 0.0 }
 0x245   :  { %vm589_vm9 = vmand %vm56_vm7, %vm573_vm1 }
 0x246   :  { %v1832_v15 = vsel %vm589_vm9, 2.0, %v315_v13 }
 0x24b   :  { %v318_v6 = vpop.f32.mrf.mxu2 }
 0x24c   :  { %541 = vst [vmem:[#allocation2 + $0x48] sm:$0xff] %v318_v6  ;;  %vm574_vm10 = vcmp.eq.f32.partialorder %v318_v6, 0.0 }
 0x24d   :  { %vm590_vm11 = vmand %vm57_vm6, %vm574_vm10  ;;  %vm567_vm10 = vcmp.eq.f32.partialorder %v1811_v40, 0.0 }
 0x24e   :  { %v1834_v63 = vsel %vm590_vm11, 2.0, %v318_v6 }
 0x24f   :  { %v1866_v27 = vpop.f32.mrf.mxu0 }
 0x253   :  { %v321_v16 = vpop.f32.mrf.mxu2 }
 0x254   :  { %542 = vst [vmem:[#allocation2 + $0x50] sm:$0xff] %v321_v16  ;;  %vm575_vm14 = vcmp.eq.f32.partialorder %v321_v16, 0.0 }
 0x255   :  { %vm591_vm7 = vmand %vm58_vm5, %vm575_vm14 }
 0x256   :  { %v1841_v20 = vsel %vm591_vm7, 2.0, %v321_v16  ;;  %vm2444_vm7 = vcmp.eq.s32.totalorder %v1253_v3, %v1250_v2 }
 0x257   :  { %633 = vadd.xlane.f32.xlu1 %v1841_v20  ;;  %v1884_v23 = vpop.f32.mrf.mxu0 }
 0x25b   :  { %v324_v17 = vpop.f32.mrf.mxu2 }
 0x25c   :  { %543 = vst [vmem:[#allocation2 + $0x58] sm:$0xff] %v324_v17  ;;  %vm576_vm6 = vcmp.eq.f32.partialorder %v324_v17, 0.0 }
 0x25d   :  { %vm592_vm13 = vmand %vm59_vm4, %vm576_vm6 }
 0x25e   :  { %v1847_v19 = vsel %vm592_vm13, 2.0, %v324_v17  ;;  %vm566_vm13 = vcmp.eq.f32.partialorder %v1808_v30, 0.0 }
 0x25f   :  { %v1907_v3 = vpop.f32.mrf.mxu0 }
 0x263   :  { %v327_v24 = vpop.f32.mrf.mxu2 }
 0x264   :  { %544 = vst [vmem:[#allocation2 + $0x60] sm:$0xff] %v327_v24  ;;  %vm577_vm12 = vcmp.eq.f32.partialorder %v327_v24, 0.0 }
 0x265   :  { %vm593_vm5 = vmand %vm60_vm3, %vm577_vm12  ;;  %vm572_vm3 = vcmp.eq.f32.partialorder %v312_v44, 0.0  ;;  %vm569_vm12 = vcmp.eq.f32.partialorder %v1817_v51, 0.0 }
 0x266   :  { %v1854_v14 = vsel %vm593_vm5, 2.0, %v327_v24  ;;  %vm588_vm15 = vmand %vm55_vm8, %vm572_vm3  ;;  %vm2443_vm8 = vcmp.eq.s32.totalorder %v1406_v38, %v1250_v2  ;;  %vm2446_vm5 = vcmp.eq.s32.totalorder %v1417_v41, %v1250_v2 }
 0x267   :  { %2439 = vst [vmem:[#allocation5_spill] sm:$0xff] %v1854_v14  ;;  %637 = vadd.xlane.f32.xlu0 %v1854_v14  ;;  %v1874_v7 = vsel %vm588_vm15, 2.0, %v312_v44  ;;  %vm583_vm11 = vmand %vm2443_vm8, %vm567_vm10  ;;  %vm568_vm15 = vcmp.eq.f32.partialorder %v1814_v45, 0.0  ;;  %vm2449_vm10 = vcmp.eq.s32.totalorder %v1359_v26, %v1250_v2 }
 0x26b   :  { %v330_v25 = vpop.f32.mrf.mxu2 }
 0x26c   :  { %545 = vst [vmem:[#allocation2 + $0x68] sm:$0xff] %v330_v25  ;;  %vm578_vm0 = vcmp.eq.f32.partialorder %v330_v25, 0.0 }
 0x26d   :  { %vm594_vm4 = vmand %vm61_vm2, %vm578_vm0  ;;  %vm2441_vm2 = vcmp.eq.s32.totalorder %v1259_v5, %v1250_v2  ;;  %v1890_v5 = vsel %vm583_vm11, 2.0, %v1811_v40  ;;  %vm570_vm11 = vcmp.eq.f32.partialorder %v1820_v58, 0.0 }
 0x26e   :  { %v1860_v10 = vsel %vm594_vm4, 2.0, %v330_v25  ;;  %vm582_vm0 = vmand %vm2446_vm5, %vm566_vm13  ;;  %vm2447_vm4 = vcmp.eq.s32.totalorder %v1384_v32, %v1250_v2  ;;  %vm2451_vm13 = vcmp.eq.s32.totalorder %v1248_v1, %v1250_v2 }
 0x26f   :  { %2440 = vst [vmem:[#allocation6_spill] sm:$0xff] %v1860_v10  ;;  %629 = vadd.xlane.f32.xlu0 %v1832_v15  ;;  %639 = vadd.xlane.f32.xlu2 %v1860_v10  ;;  %vm585_vm3 = vmand %vm2447_vm4, %vm569_vm12  ;;  %v1910_v36 = vsel %vm582_vm0, 2.0, %v1808_v30  ;;  %v1933_v30 = vpop.f32.mrf.mxu0 }
 0x270   :  { %v1913_v37 = vsel %vm585_vm3, 2.0, %v1817_v51 }
 0x273   :  { %v333_v52 = vpop.f32.mrf.mxu2 }
 0x274   :  { %546 = vst [vmem:[#allocation2 + $0x70] sm:$0xff] %v333_v52  ;;  %vm579_vm1 = vcmp.eq.f32.partialorder %v333_v52, 0.0 }
 0x275   :  { %vm595_vm9 = vmand %vm2441_vm2, %vm579_vm1  ;;  %vm571_vm1 = vcmp.eq.f32.partialorder %v1823_v62, 0.0  ;;  %vm2448_vm2 = vcmp.eq.s32.totalorder %v1395_v35, %v1250_v2 }
 0x276   :  { %v1876_v55 = vsel %vm595_vm9, 2.0, %v333_v52  ;;  %vm584_vm9 = vmand %vm2448_vm2, %vm568_vm15 }
 0x277   :  { %2442 = vst [vmem:[#allocation7_spill] sm:$0xff] %v1876_v55  ;;  %627 = vadd.xlane.f32.xlu0 %v1874_v7  ;;  %641 = vadd.xlane.f32.xlu1 %v1876_v55  ;;  %vm587_vm8 = vmand %vm2449_vm10, %vm571_vm1  ;;  %v1927_v32 = vsel %vm584_vm9, 2.0, %v1814_v45  ;;  %v1945_v35 = vpop.f32.mrf.mxu0 }
 0x278   :  { %v1931_v41 = vsel %vm587_vm8, 2.0, %v1823_v62 }
 0x27b   :  { %v336_v31 = vpop.f32.mrf.mxu2 }
 0x27c   :  { %547 = vst [vmem:[#allocation2 + $0x78] sm:$0xff] %v336_v31  ;;  %vm580_vm14 = vcmp.eq.f32.partialorder %v336_v31, 0.0 }
 0x27d   :  { %vm596_vm6 = vmand %vm2444_vm7, %vm580_vm14  ;;  %vm2450_vm14 = vcmp.eq.s32.totalorder %v1372_v29, %v1250_v2  ;;  %1060 = dma.vmem_to_hbm [thread:$0]  %s1053_s29, 2048, %s1055_s27, [#allocation3], %s1201_s30, %s1201_s30, %s1202_s3  }
 0x27e   :  { %v1892_v34 = vsel %vm596_vm6, 2.0, %v336_v31  ;;  %vm586_vm7 = vmand %vm2450_vm14, %vm570_vm11  ;;  %vm565_vm6 = vcmp.eq.f32.partialorder %v1805_v28, 0.0 }
 0x27f   :  { %2445 = vst [vmem:[#allocation8_spill] sm:$0xff] %v1892_v34  ;;  %617 = vadd.xlane.f32.xlu0 %v1890_v5  ;;  %631 = vadd.xlane.f32.xlu1 %v1834_v63  ;;  %v1941_v26 = vsel %vm586_vm7, 2.0, %v1820_v58  ;;  %vm581_vm12 = vmand %vm2451_vm13, %vm565_vm6  ;;  %v1954_v29 = vpop.f32.mrf.mxu0 }
 0x280   :  { %643 = vadd.xlane.f32.xlu2 %v1892_v34  ;;  %v1951_v39 = vsel %vm581_vm12, 2.0, %v1805_v28 }
 0x287   :  { %615 = vadd.xlane.f32.xlu0 %v1910_v36  ;;  %621 = vadd.xlane.f32.xlu1 %v1913_v37  ;;  %v1956_v40 = vpop.f32.mrf.mxu0 }
 0x288   :  { %635 = vadd.xlane.f32.xlu2 %v1847_v19 }
 0x28f   :  { %619 = vadd.xlane.f32.xlu1 %v1927_v32  ;;  %v1958_v42 = vpop.f32.mrf.mxu0 }
 0x290   :  { %625 = vadd.xlane.f32.xlu2 %v1931_v41 }
 0x297   :  { %v1960_v43 = vpop.f32.mrf.mxu0 }
 0x298   :  { %623 = vadd.xlane.f32.xlu2 %v1941_v26 }
 0x29f   :  { %v1962_v45 = vpop.f32.mrf.mxu0 }
 0x2a0   :  { %613 = vadd.xlane.f32.xlu2 %v1951_v39 }
 0x2a7   :  { %v1964_v46 = vpop.f32.mrf.mxu0 }
 0x2af   :  { %v1969_v28 = vpop.f32.mrf.mxu0 }
 0x2b7   :  { %v1980_v59 = vpop.f32.mrf.mxu0 }
 0x2bf   :  { %v2006_v16 = vpop.f32.mrf.mxu0 }
 0x2ca   :  { %v634_v47 = vpop.xlane.xlu1 %633 }
 0x2cb   :  { %1141 = vrsqrt.f32 %v634_v47  ;;  %vm767_vm0 = vweird.f32 %v634_v47  ;;  %vm655_vm1 = vcmp.gt.f32.partialorder %v634_v47, 0.0 }
 0x2d1   :  { %v1142_v2 = vpop.eup %1141 }
 0x2d2   :  { %v762_v48 = vmul.f32 %v1142_v2, %v634_v47  ;;  %vm768_vm5 = vweird.f32 %v1142_v2 }
 0x2d3   :  { %vm2010_vm4 = vmor %vm767_vm0, %vm768_vm5 }
 0x2d4   :  { %v763_v54 = vmul.f32 %v1142_v2, %v762_v48 }
 0x2d6   :  { %v764_v9 = vmul.f32 0.5, %v763_v54 }
 0x2d8   :  { %v765_v62 = vsub.f32 1.5, %v764_v9 }
 0x2da   :  { %v1966_v1 = vpop.xlane.xlu0 %637  ;;  %v766_v11 = vmul.f32 %v1142_v2, %v765_v62 }
 0x2db   :  { %1143 = vrsqrt.f32 %v1966_v1  ;;  %vm787_vm15 = vweird.f32 %v1966_v1  ;;  %vm657_vm9 = vcmp.gt.f32.partialorder %v1966_v1, 0.0 }
 0x2dc   :  { %v770_v31 = vsel %vm2010_vm4, %v1142_v2, %v766_v11 }
 0x2dd   :  { %v2036_v11 = vsel %vm655_vm1, %v770_v31, 0.0 }
 0x2de   :  { %2456 = vst [vmem:[#allocation9_spill] sm:$0xff] %v2036_v11 }
 0x2e1   :  { %v1973_v50 = vpop.eup %1143 }
 0x2e2   :  { %v1971_v49 = vpop.xlane.xlu0 %629  ;;  %v1975_v51 = vpop.xlane.xlu2 %639  ;;  %v782_v58 = vmul.f32 %v1973_v50, %v1966_v1  ;;  %vm788_vm3 = vweird.f32 %v1973_v50 }
 0x2e3   :  { %1145 = vrsqrt.f32 %v1975_v51  ;;  %vm2028_vm2 = vmor %vm787_vm15, %vm788_vm3  ;;  %vm797_vm10 = vweird.f32 %v1975_v51  ;;  %vm747_vm8 = vweird.f32 %v1971_v49  ;;  %vm658_vm14 = vcmp.gt.f32.partialorder %v1975_v51, 0.0 }
 0x2e4   :  { %1147 = vrsqrt.f32 %v1971_v49  ;;  %v783_v60 = vmul.f32 %v1973_v50, %v782_v58 }
 0x2e6   :  { %v784_v33 = vmul.f32 0.5, %v783_v60 }
 0x2e8   :  { %v785_v12 = vsub.f32 1.5, %v784_v33  ;;  %v2058_v33 = vpop.f32.mrf.mxu0 }
 0x2e9   :  { %v1989_v57 = vpop.eup %1145 }
 0x2ea   :  { %v1983_v21 = vpop.xlane.xlu1 %641  ;;  %v1986_v61 = vpop.xlane.xlu0 %627  ;;  %v792_v0 = vmul.f32 %v1989_v57, %v1975_v51  ;;  %v786_v9 = vmul.f32 %v1973_v50, %v785_v12  ;;  %vm798_vm7 = vweird.f32 %v1989_v57 }
 0x2eb   :  { %1149 = vrsqrt.f32 %v1983_v21  ;;  %v1991_v44 = vpop.eup %1147  ;;  %vm807_vm13 = vweird.f32 %v1983_v21  ;;  %vm659_vm12 = vcmp.gt.f32.partialorder %v1983_v21, 0.0  ;;  %vm2098_vm4 = vmor %vm797_vm10, %vm798_vm7  ;;  %vm737_vm15 = vweird.f32 %v1986_v61 }
 0x2ec   :  { %1151 = vrsqrt.f32 %v1986_v61  ;;  %v742_v56 = vmul.f32 %v1991_v44, %v1971_v49  ;;  %v793_v17 = vmul.f32 %v1989_v57, %v792_v0  ;;  %v790_v24 = vsel %vm2028_vm2, %v1973_v50, %v786_v9 }
 0x2ed   :  { %v2064_v1 = vsel %vm657_vm9, %v790_v24, 0.0  ;;  %vm748_vm6 = vweird.f32 %v1991_v44  ;;  %vm653_vm9 = vcmp.gt.f32.partialorder %v1971_v49, 0.0 }
 0x2ee   :  { %v743_v54 = vmul.f32 %v1991_v44, %v742_v56  ;;  %v794_v60 = vmul.f32 0.5, %v793_v17  ;;  %2457 = vst [vmem:[#allocation10_spill] sm:$0xff] %v2064_v1  ;;  %vm2138_vm7 = vmor %vm747_vm8, %vm748_vm6 }
 0x2f0   :  { %v744_v12 = vmul.f32 0.5, %v743_v54 }
 0x2f1   :  { %v1996_v4 = vpop.eup %1149 }
 0x2f2   :  { %v1998_v53 = vpop.xlane.xlu1 %631  ;;  %v802_v13 = vmul.f32 %v1996_v4, %v1983_v21  ;;  %v2015_v52 = vpop.xlane.xlu0 %617  ;;  %vm808_vm11 = vweird.f32 %v1996_v4 }
 0x2f3   :  { %v2004_v6 = vpop.xlane.xlu2 %643  ;;  %1153 = vrsqrt.f32 %v1998_v53  ;;  %v2020_v48 = vpop.eup %1151  ;;  %vm2085_vm0 = vmor %vm807_vm13, %vm808_vm11  ;;  %vm757_vm1 = vweird.f32 %v1998_v53  ;;  %vm654_vm13 = vcmp.gt.f32.partialorder %v1998_v53, 0.0 }
 0x2f4   :  { %v803_v25 = vmul.f32 %v1996_v4, %v802_v13  ;;  %1155 = vrsqrt.f32 %v2004_v6  ;;  %v732_v2 = vmul.f32 %v2020_v48, %v1986_v61  ;;  %vm738_vm5 = vweird.f32 %v2020_v48 }
 0x2f5   :  { %1157 = vrsqrt.f32 %v2015_v52  ;;  %vm817_vm2 = vweird.f32 %v2004_v6  ;;  %vm660_vm11 = vcmp.gt.f32.partialorder %v2004_v6, 0.0  ;;  %vm2191_vm6 = vmor %vm737_vm15, %vm738_vm5  ;;  %vm652_vm5 = vcmp.gt.f32.partialorder %v1986_v61, 0.0 }
 0x2f6   :  { %v804_v58 = vmul.f32 0.5, %v803_v25  ;;  %v795_v25 = vsub.f32 1.5, %v794_v60  ;;  %v733_v50 = vmul.f32 %v2020_v48, %v732_v2  ;;  %v745_v60 = vsub.f32 1.5, %v744_v12 }
 0x2f7   :  { %v2078_v12 = vmul.f32 %v1980_v59, %v2064_v1 }
 0x2f8   :  { %v805_v13 = vsub.f32 1.5, %v804_v58  ;;  %v2056_v58 = vmul.f32 %v1964_v46, %v2036_v11  ;;  %v796_v2 = vmul.f32 %v1989_v57, %v795_v25  ;;  %v746_v22 = vmul.f32 %v1991_v44, %v745_v60 }
 0x2f9   :  { %v2026_v62 = vpop.eup %1153 }
 0x2fa   :  { %v2034_v0 = vpop.xlane.xlu1 %621  ;;  %v2038_v56 = vpop.eup %1155  ;;  %v752_v47 = vmul.f32 %v2026_v62, %v1998_v53  ;;  %v806_v46 = vmul.f32 %v1996_v4, %v805_v13  ;;  %v734_v13 = vmul.f32 0.5, %v733_v50  ;;  %v800_v11 = vsel %vm2098_vm4, %v1989_v57, %v796_v2 }
 0x2fb   :  { %v2042_v17 = vpop.xlane.xlu2 %635  ;;  %v812_v31 = vmul.f32 %v2038_v56, %v2004_v6  ;;  %1159 = vrsqrt.f32 %v2034_v0  ;;  %v2080_v24 = vpop.eup %1157  ;;  %vm818_vm3 = vweird.f32 %v2038_v56  ;;  %v2146_v59 = vsel %vm658_vm14, %v800_v11, 0.0 }
 0x2fc   :  { %v753_v54 = vmul.f32 %v2026_v62, %v752_v47  ;;  %1161 = vrsqrt.f32 %v2042_v17  ;;  %v2067_v47 = vpop.xlane.xlu0 %615  ;;  %vm819_vm10 = vmor %vm817_vm2, %vm818_vm3  ;;  %v899_v6 = vpop.f32.mrf.mxu0  ;;  %v750_v55 = vsel %vm2138_vm7, %v1991_v44, %v746_v22  ;;  %v923_v22 = vmul.f32 %v2006_v16, %v2146_v59 }
 0x2fd   :  { %v813_v9 = vmul.f32 %v2038_v56, %v812_v31  ;;  %1163 = vrsqrt.f32 %v2067_v47  ;;  %v682_v31 = vmul.f32 %v2080_v24, %v2015_v52  ;;  %vm656_vm3 = vcmp.gt.f32.partialorder %v2042_v17, 0.0 }
 0x2fe   :  { %v754_v38 = vmul.f32 0.5, %v753_v54 }
 0x2ff   :  { %v814_v8 = vmul.f32 0.5, %v813_v9 }
 0x300   :  { %v755_v1 = vsub.f32 1.5, %v754_v38  ;;  %v735_v38 = vsub.f32 1.5, %v734_v13 }
 0x301   :  { %v815_v25 = vsub.f32 1.5, %v814_v8  ;;  %v2092_v9 = vpop.eup %1159  ;;  %v810_v8 = vsel %vm2085_vm0, %v1996_v4, %v806_v46  ;;  %vm777_vm0 = vweird.f32 %v2042_v17 }
 0x302   :  { %v2090_v54 = vpop.xlane.xlu1 %619  ;;  %v2110_v18 = vpop.eup %1161  ;;  %v702_v4 = vmul.f32 %v2092_v9, %v2034_v0  ;;  %v2132_v57 = vsel %vm659_vm12, %v810_v8, 0.0  ;;  %vm758_vm12 = vweird.f32 %v2026_v62  ;;  %v736_v44 = vmul.f32 %v2020_v48, %v735_v38 }
 0x303   :  { %1165 = vrsqrt.f32 %v2090_v54  ;;  %v2104_v50 = vpop.xlane.xlu2 %625  ;;  %v772_v60 = vmul.f32 %v2110_v18, %v2042_v17  ;;  %v816_v46 = vmul.f32 %v2038_v56, %v815_v25  ;;  %v2149_v21 = vpop.eup %1163  ;;  %vm2172_vm8 = vmor %vm757_vm1, %vm758_vm12  ;;  %vm778_vm14 = vweird.f32 %v2110_v18 }
 0x304   :  { %1167 = vrsqrt.f32 %v2104_v50  ;;  %v703_v51 = vmul.f32 %v2092_v9, %v702_v4  ;;  %vm779_vm4 = vmor %vm777_vm0, %vm778_vm14  ;;  %vm727_vm1 = vweird.f32 %v2104_v50  ;;  %vm708_vm2 = vweird.f32 %v2092_v9 }
 0x305   :  { %v773_v13 = vmul.f32 %v2110_v18, %v772_v60  ;;  %v820_v25 = vsel %vm819_vm10, %v2038_v56, %v816_v46  ;;  %v756_v60 = vmul.f32 %v2026_v62, %v755_v1  ;;  %v924_v46 = vmul.f32 %v2058_v33, %v2132_v57 }
 0x306   :  { %v2152_v8 = vsel %vm660_vm11, %v820_v25, 0.0  ;;  %v683_v25 = vmul.f32 %v2080_v24, %v682_v31  ;;  %vm651_vm10 = vcmp.gt.f32.partialorder %v2104_v50, 0.0  ;;  %vm707_vm11 = vweird.f32 %v2034_v0 }
 0x307   :  { %v774_v11 = vmul.f32 0.5, %v773_v13  ;;  %v925_v34 = vmul.f32 %v899_v6, %v2152_v8  ;;  %v672_v13 = vmul.f32 %v2149_v21, %v2067_v47  ;;  %v760_v38 = vsel %vm2172_vm8, %v2026_v62, %v756_v60  ;;  %vm2245_vm12 = vmor %vm707_vm11, %vm708_vm2 }
 0x308   :  { %v2201_v62 = vsel %vm653_vm9, %v750_v55, 0.0  ;;  %v740_v60 = vsel %vm2191_vm6, %v2020_v48, %v736_v44  ;;  %vm697_vm8 = vweird.f32 %v2090_v54  ;;  %vm687_vm6 = vweird.f32 %v2015_v52 }
 0x309   :  { %v2158_v56 = vpop.eup %1165  ;;  %v775_v33 = vsub.f32 1.5, %v774_v11  ;;  %v933_v31 = vpack.c.bf16 %v925_v34, %v924_v46  ;;  %v704_v34 = vmul.f32 0.5, %v703_v51  ;;  %v932_v46 = vpack.c.bf16 %v923_v22, %v2078_v12 }
 0x30a   :  { %v1168_v14 = vpop.eup %1167  ;;  %v692_v10 = vmul.f32 %v2158_v56, %v2090_v54  ;;  %v673_v12 = vmul.f32 %v2149_v21, %v672_v13  ;;  %vm698_vm7 = vweird.f32 %v2158_v56 }
 0x30b   :  { %v722_v4 = vmul.f32 %v1168_v14, %v2104_v50  ;;  %v2178_v2 = vpop.xlane.xlu2 %623  ;;  %934 = vmatpush.bf16.msrb.mxu1 %v933_v31  ;;  %v684_v31 = vmul.f32 0.5, %v683_v25  ;;  %v705_v55 = vsub.f32 1.5, %v704_v34  ;;  %vm728_vm15 = vweird.f32 %v1168_v14  ;;  %vm2257_vm0 = vmor %vm697_vm8, %vm698_vm7 }
 0x30c   :  { %v693_v16 = vmul.f32 %v2158_v56, %v692_v10  ;;  %1169 = vrsqrt.f32 %v2178_v2  ;;  %v776_v10 = vmul.f32 %v2110_v18, %v775_v33  ;;  %v2209_v33 = vsel %vm654_vm13, %v760_v38, 0.0  ;;  %vm729_vm9 = vmor %vm727_vm1, %vm728_vm15 }
 0x30d   :  { %v723_v11 = vmul.f32 %v1168_v14, %v722_v4  ;;  %v919_v53 = vmul.f32 %v1962_v45, %v2209_v33  ;;  %v2222_v25 = vsel %vm652_vm5, %v740_v60, 0.0  ;;  %v674_v6 = vmul.f32 0.5, %v673_v12 }
 0x30e   :  { %v694_v51 = vmul.f32 0.5, %v693_v16  ;;  %v780_v4 = vsel %vm779_vm4, %v2110_v18, %v776_v10  ;;  %v918_v18 = vmul.f32 %v1960_v43, %v2201_v62  ;;  %v706_v34 = vmul.f32 %v2092_v9, %v705_v55 }
 0x30f   :  { %v724_v1 = vmul.f32 0.5, %v723_v11  ;;  %v2212_v17 = vsel %vm656_vm3, %v780_v4, 0.0  ;;  %935 = vmatpush.bf16.msrb.mxu1 %v932_v46  ;;  %v917_v11 = vmul.f32 %v1958_v42, %v2222_v25  ;;  %vm688_vm13 = vweird.f32 %v2080_v24 }
 0x310   :  { %v921_v48 = vmul.f32 %v1969_v28, %v2212_v17  ;;  %v695_v44 = vsub.f32 1.5, %v694_v51  ;;  %v685_v28 = vsub.f32 1.5, %v684_v31  ;;  %v930_v60 = vpack.c.bf16 %v919_v53, %v918_v18  ;;  %vm2262_vm3 = vmor %vm687_vm6, %vm688_vm13 }
 0x311   :  { %v725_v49 = vsub.f32 1.5, %v724_v1  ;;  %vm649_vm4 = vcmp.gt.f32.partialorder %v2034_v0, 0.0  ;;  %vm717_vm5 = vweird.f32 %v2178_v2  ;;  %vm678_vm15 = vweird.f32 %v2149_v21 }
 0x312   :  { %v1170_v22 = vpop.eup %1169  ;;  %v931_v13 = vpack.c.bf16 %v921_v48, %v2056_v58  ;;  %v696_v10 = vmul.f32 %v2158_v56, %v695_v44  ;;  %v686_v42 = vmul.f32 %v2080_v24, %v685_v28  ;;  %vm648_vm1 = vcmp.gt.f32.partialorder %v2090_v54, 0.0 }
 0x313   :  { %v712_v61 = vmul.f32 %v1170_v22, %v2178_v2  ;;  %v2226_v16 = vpop.xlane.xlu2 %613  ;;  %v726_v38 = vmul.f32 %v1168_v14, %v725_v49  ;;  %vm718_vm14 = vweird.f32 %v1170_v22  ;;  %vm647_vm7 = vcmp.gt.f32.partialorder %v2015_v52, 0.0 }
 0x314   :  { %1171 = vrsqrt.f32 %v2226_v16  ;;  %936 = vmatpush.bf16.msrb.mxu1 %v931_v13  ;;  %v700_v48 = vsel %vm2257_vm0, %v2158_v56, %v696_v10  ;;  %vm719_vm2 = vmor %vm717_vm5, %vm718_vm14  ;;  %vm667_vm8 = vweird.f32 %v2226_v16  ;;  %vm645_vm6 = vcmp.gt.f32.partialorder %v2226_v16, 0.0 }
 0x315   :  { %v713_v43 = vmul.f32 %v1170_v22, %v712_v61  ;;  %v730_v45 = vsel %vm729_vm9, %v1168_v14, %v726_v38  ;;  %v675_v14 = vsub.f32 1.5, %v674_v6  ;;  %vm650_vm9 = vcmp.gt.f32.partialorder %v2178_v2, 0.0 }
 0x316   :  { %v2235_v58 = vsel %vm651_vm10, %v730_v45, 0.0  ;;  %v690_v61 = vsel %vm2262_vm3, %v2080_v24, %v686_v42  ;;  %vm677_vm10 = vweird.f32 %v2067_v47  ;;  %v2284_v13 = vsel %vm648_vm1, %v700_v48, 0.0 }
 0x317   :  { %v714_v46 = vmul.f32 0.5, %v713_v43  ;;  %v916_v51 = vmul.f32 %v1956_v40, %v2235_v58  ;;  %v710_v40 = vsel %vm2245_vm12, %v2092_v9, %v706_v34  ;;  %v676_v18 = vmul.f32 %v2149_v21, %v675_v14  ;;  %vm2286_vm11 = vmor %vm677_vm10, %vm678_vm15 }
 0x318   :  { %937 = vmatpush.bf16.msrb.mxu1 %v930_v60  ;;  %v2275_v0 = vsel %vm649_vm4, %v710_v40, 0.0  ;;  %v823_v24 = vsel %vm647_vm7, %v690_v61, 0.0  ;;  %v913_v45 = vmul.f32 %v1933_v30, %v2284_v13  ;;  %vm646_vm12 = vcmp.gt.f32.partialorder %v2067_v47, 0.0 }
 0x319   :  { %v715_v1 = vsub.f32 1.5, %v714_v46  ;;  %v929_v4 = vpack.c.bf16 %v917_v11, %v916_v51  ;;  %v914_v28 = vmul.f32 %v1945_v35, %v2275_v0  ;;  %v912_v35 = vmul.f32 %v1907_v3, %v823_v24  ;;  %v2482_v51 = vld [vmem:[#allocation7_spill] sm:$0xff] }
 0x31a   :  { %v1172_v31 = vpop.eup %1171  ;;  %v902_v47 = vpack.c.bf16 %v1910_v36, %v1951_v39  ;;  %v903_v3 = vpack.c.bf16 %v1927_v32, %v1890_v5  ;;  %v905_v60 = vpack.c.bf16 %v1874_v7, %v1931_v41  ;;  %v2478_v36 = vld [vmem:[#allocation6_spill] sm:$0xff]  ;;  %v2479_v39 = vld [vmem:[#allocation5_spill] sm:$0xff]  ;;  %v2481_v32 = vld [vmem:[#allocation8_spill] sm:$0xff] }
 0x31b   :  { %v662_v49 = vmul.f32 %v1172_v31, %v2226_v16  ;;  %v716_v9 = vmul.f32 %v1170_v22, %v715_v1  ;;  %vm668_vm13 = vweird.f32 %v1172_v31  ;;  %v927_v52 = vpack.c.bf16 %v913_v45, %v912_v35  ;;  %v564_v7 = vld [vmem:[%s2417_s6] sm:$0xff] }
 0x31c   :  { %938 = vmatpush.bf16.msrb.mxu1 %v929_v4  ;;  %vm669_vm14 = vmor %vm667_vm8, %vm668_vm13  ;;  %v904_v16 = vpack.c.bf16 %v1941_v26, %v1913_v37  ;;  %v2480_v5 = vpack.c.bf16 %v2478_v36, %v2479_v39  ;;  %v2483_v37 = vpack.c.bf16 %v2481_v32, %v2482_v51  ;;  %v2329_v41 = vperm.slane %v564_v7, 0 }
 0x31d   :  { %v663_v53 = vmul.f32 %v1172_v31, %v662_v49  ;;  %v720_v44 = vsel %vm719_vm2, %v1170_v22, %v716_v9  ;;  %v680_v22 = vsel %vm2286_vm11, %v2149_v21, %v676_v18 }
 0x31e   :  { %v2282_v56 = vsel %vm650_vm9, %v720_v44, 0.0 }
 0x31f   :  { %v664_v38 = vmul.f32 0.5, %v663_v53  ;;  %v915_v2 = vmul.f32 %v1954_v29, %v2282_v56  ;;  %v822_v29 = vsel %vm646_vm12, %v680_v22, 0.0 }
 0x320   :  { %v911_v30 = vmul.f32 %v1884_v23, %v822_v29  ;;  %v2477_v23 = vpack.c.bf16 %v1847_v19, %v1841_v20 }
 0x321   :  { %v665_v6 = vsub.f32 1.5, %v664_v38  ;;  %v928_v43 = vpack.c.bf16 %v915_v2, %v914_v28 }
 0x323   :  { %v666_v34 = vmul.f32 %v1172_v31, %v665_v6  ;;  %939 = vmatpush.bf16.msrb.mxu1 %v928_v43 }
 0x325   :  { %v670_v21 = vsel %vm669_vm14, %v1172_v31, %v666_v34 }
 0x326   :  { %v821_v11 = vsel %vm645_vm6, %v670_v21, 0.0 }
 0x327   :  { %940 = vmatpush.bf16.msrb.mxu1 %v927_v52  ;;  %v910_v10 = vmul.f32 %v1866_v27, %v821_v11  ;;  %v2476_v27 = vpack.c.bf16 %v1834_v63, %v1832_v15 }
 0x329   :  { %v926_v46 = vpack.c.bf16 %v911_v30, %v910_v10  ;;  %v2484_v10 = vld [vmem:[#allocation9_spill] sm:$0xff] }
 0x32b   :  { %941 = vmatpush.bf16.msrb.mxu1 %v926_v46 }
 0x32e   :  { %942 = vmatmul.bf16.vlgmr.msrb.gmra.mxu1 %v902_v47 }
 0x33e   :  { %947 = vmatmul.bf16.gmra.mxu1 %v903_v3 }
 0x34e   :  { %952 = vmatmul.bf16.gmra.mxu1 %v904_v16 }
 0x35e   :  { %957 = vmatmul.bf16.gmra.mxu1 %v905_v60 }
 0x36e   :  { %962 = vmatmul.bf16.gmra.mxu1 %v2476_v27  ;;  %v2485_v27 = vld [vmem:[#allocation10_spill] sm:$0xff] }
 0x37e   :  { %967 = vmatmul.bf16.gmra.mxu1 %v2477_v23 }
 0x38e   :  { %972 = vmatmul.bf16.gmra.mxu1 %v2480_v5 }
 0x39e   :  { %977 = vmatmul.bf16.gmra.mxu1 %v2483_v37 }
 0x3ab   :  { %v943_v15 = vpop.f32.mrf.mxu1 }
 0x3ac   :  { %v983_v63 = vmul.f32 %v943_v15, %v821_v11 }
 0x3ae   :  { %v1000_v20 = vadd.f32 %v2329_v41, %v983_v63 }
 0x3b0   :  { %v1016_v19 = vmax.f32 %v1000_v20, 0.0 }
 0x3b2   :  { %1032 = vst [vmem:[%s2419_s8] sm:$0xff] %v1016_v19 }
 0x3b3   :  { %v945_v26 = vpop.f32.mrf.mxu1 }
 0x3b4   :  { %v984_v14 = vmul.f32 %v945_v26, %v822_v29 }
 0x3b6   :  { %v1001_v50 = vadd.f32 %v2329_v41, %v984_v14 }
 0x3b8   :  { %v1017_v42 = vmax.f32 %v1001_v50, 0.0 }
 0x3ba   :  { %1033 = vst [vmem:[%s2419_s8 + $0x8] sm:$0xff] %v1017_v42 }
 0x3bb   :  { %v948_v1 = vpop.f32.mrf.mxu1 }
 0x3bc   :  { %v985_v4 = vmul.f32 %v948_v1, %v823_v24 }
 0x3be   :  { %v1002_v40 = vadd.f32 %v2329_v41, %v985_v4 }
 0x3c0   :  { %v1018_v31 = vmax.f32 %v1002_v40, 0.0 }
 0x3c2   :  { %1034 = vst [vmem:[%s2419_s8 + $0x10] sm:$0xff] %v1018_v31 }
 0x3c3   :  { %v950_v12 = vpop.f32.mrf.mxu1 }
 0x3c4   :  { %v986_v55 = vmul.f32 %v950_v12, %v2284_v13 }
 0x3c6   :  { %v1003_v49 = vadd.f32 %v2329_v41, %v986_v55 }
 0x3c8   :  { %v1019_v9 = vmax.f32 %v1003_v49, 0.0 }
 0x3ca   :  { %1035 = vst [vmem:[%s2419_s8 + $0x18] sm:$0xff] %v1019_v9 }
 0x3cb   :  { %v953_v48 = vpop.f32.mrf.mxu1 }
 0x3cc   :  { %v987_v18 = vmul.f32 %v953_v48, %v2275_v0 }
 0x3ce   :  { %v1004_v53 = vadd.f32 %v2329_v41, %v987_v18 }
 0x3d0   :  { %v1020_v44 = vmax.f32 %v1004_v53, 0.0 }
 0x3d2   :  { %1036 = vst [vmem:[%s2419_s8 + $0x20] sm:$0xff] %v1020_v44 }
 0x3d3   :  { %v955_v61 = vpop.f32.mrf.mxu1 }
 0x3d4   :  { %v988_v13 = vmul.f32 %v955_v61, %v2282_v56 }
 0x3d6   :  { %v1005_v54 = vadd.f32 %v2329_v41, %v988_v13 }
 0x3d8   :  { %v1021_v38 = vmax.f32 %v1005_v54, 0.0 }
 0x3da   :  { %1037 = vst [vmem:[%s2419_s8 + $0x28] sm:$0xff] %v1021_v38 }
 0x3db   :  { %v958_v28 = vpop.f32.mrf.mxu1 }
 0x3dc   :  { %v989_v0 = vmul.f32 %v958_v28, %v2235_v58 }
 0x3de   :  { %v1006_v2 = vadd.f32 %v2329_v41, %v989_v0 }
 0x3e0   :  { %v1022_v24 = vmax.f32 %v1006_v2, 0.0 }
 0x3e2   :  { %1038 = vst [vmem:[%s2419_s8 + $0x30] sm:$0xff] %v1022_v24 }
 0x3e3   :  { %v960_v22 = vpop.f32.mrf.mxu1 }
 0x3e4   :  { %v990_v56 = vmul.f32 %v960_v22, %v2222_v25 }
 0x3e6   :  { %v1007_v6 = vadd.f32 %v2329_v41, %v990_v56 }
 0x3e8   :  { %v1023_v43 = vmax.f32 %v1007_v6, 0.0 }
 0x3ea   :  { %1039 = vst [vmem:[%s2419_s8 + $0x38] sm:$0xff] %v1023_v43 }
 0x3eb   :  { %v963_v45 = vpop.f32.mrf.mxu1 }
 0x3ec   :  { %v991_v58 = vmul.f32 %v963_v45, %v2201_v62 }
 0x3ee   :  { %v1008_v34 = vadd.f32 %v2329_v41, %v991_v58 }
 0x3f0   :  { %v1024_v35 = vmax.f32 %v1008_v34, 0.0 }
 0x3f2   :  { %1040 = vst [vmem:[%s2419_s8 + $0x40] sm:$0xff] %v1024_v35 }
 0x3f3   :  { %v965_v29 = vpop.f32.mrf.mxu1 }
 0x3f4   :  { %v992_v25 = vmul.f32 %v965_v29, %v2209_v33 }
 0x3f6   :  { %v1009_v52 = vadd.f32 %v2329_v41, %v992_v25 }
 0x3f8   :  { %v1025_v21 = vmax.f32 %v1009_v52, 0.0 }
 0x3fa   :  { %1041 = vst [vmem:[%s2419_s8 + $0x48] sm:$0xff] %v1025_v21 }
 0x3fb   :  { %v968_v11 = vpop.f32.mrf.mxu1 }
 0x3fc   :  { %v993_v62 = vmul.f32 %v968_v11, %v2484_v10 }
 0x3fe   :  { %v1010_v30 = vadd.f32 %v2329_v41, %v993_v62 }
 0x400   :  { %v1026_v46 = vmax.f32 %v1010_v30, 0.0 }
 0x402   :  { %1042 = vst [vmem:[%s2419_s8 + $0x50] sm:$0xff] %v1026_v46 }
 0x403   :  { %v970_v47 = vpop.f32.mrf.mxu1 }
 0x404   :  { %v994_v33 = vmul.f32 %v970_v47, %v2212_v17 }
 0x406   :  { %v1011_v3 = vadd.f32 %v2329_v41, %v994_v33 }
 0x408   :  { %v1027_v16 = vmax.f32 %v1011_v3, 0.0 }
 0x40a   :  { %1043 = vst [vmem:[%s2419_s8 + $0x58] sm:$0xff] %v1027_v16 }
 0x40b   :  { %v973_v60 = vpop.f32.mrf.mxu1 }
 0x40c   :  { %v995_v23 = vmul.f32 %v973_v60, %v2485_v27 }
 0x40e   :  { %v1012_v36 = vadd.f32 %v2329_v41, %v995_v23 }
 0x410   :  { %v1028_v39 = vmax.f32 %v1012_v36, 0.0 }
 0x412   :  { %1044 = vst [vmem:[%s2419_s8 + $0x60] sm:$0xff] %v1028_v39 }
 0x413   :  { %v975_v5 = vpop.f32.mrf.mxu1 }
 0x414   :  { %v996_v17 = vmul.f32 %v975_v5, %v2146_v59 }
 0x416   :  { %v1013_v32 = vadd.f32 %v2329_v41, %v996_v17 }
 0x418   :  { %v1029_v51 = vmax.f32 %v1013_v32, 0.0 }
 0x41a   :  { %1045 = vst [vmem:[%s2419_s8 + $0x68] sm:$0xff] %v1029_v51 }
 0x41b   :  { %v978_v37 = vpop.f32.mrf.mxu1 }
 0x41c   :  { %v997_v7 = vmul.f32 %v978_v37, %v2132_v57 }
 0x41e   :  { %v1014_v15 = vadd.f32 %v2329_v41, %v997_v7 }
 0x420   :  { %v1030_v63 = vmax.f32 %v1014_v15, 0.0 }
 0x422   :  { %1046 = vst [vmem:[%s2419_s8 + $0x70] sm:$0xff] %v1030_v63 }
 0x423   :  { %v980_v20 = vpop.f32.mrf.mxu1 }
 0x424   :  { %v998_v59 = vmul.f32 %v980_v20, %v2152_v8 }
 0x426   :  { %v1015_v19 = vadd.f32 %v2329_v41, %v998_v59 }
 0x428   :  { %v1031_v26 = vmax.f32 %v1015_v19, 0.0 }
 0x42a   :  { %1047 = vst [vmem:[%s2419_s8 + $0x78] sm:$0xff] %v1031_v26 }
 0x42b   :  { %1197 = dma.done.wait [#allocation3], 2048  }
 0x42c   :  { %1198 = vsyncadd [#allocation3], 4294965248 }
 0x42d   :  { %1069 = vsyncpa [#allocation3], 1 }

// kernel: graph_unet_forward.8
= control target key start
LH: loop header
LB: loop body
LE: loop exit
PB: predicated region body
PF: predicated region fallthrough
CT: control target
= control target key end

     0   :  { %v185_v43 = vlaneseq  ;;  %s1591_s3 = inlined_call_operand.vmem [shape: f32[128,128], index: 3, kind: input, shape index: {}]   ;;  %s1592_s2 = inlined_call_operand.vmem [shape: f32[128,128], index: 2, kind: input, shape index: {}]   ;;  %s1593_s0 = inlined_call_operand.vmem [shape: f32[128,128], index: 0, kind: input, shape index: {}]   ;;  %s1594_s4 = inlined_call_operand.vmem [shape: f32[128,128], index: 4, kind: input, shape index: {}]   ;;  %s1595_s1 = inlined_call_operand.vmem [shape: f32[128,128], index: 1, kind: input, shape index: {}]   ;;  %s1596_s5 = inlined_call_operand.vmem [shape: f32[8,128], index: 5, kind: input, shape index: {}]   ;;  %s1597_s6 = inlined_call_operand.vmem [shape: f32[128,128], index: 6, kind: output, shape index: {}]  }
   0x1   :  { %v61_v0 = vld [vmem:[%s1591_s3 + $0x70] sm:$0xff]  ;;  %v62_v1 = vld [vmem:[%s1591_s3 + $0x78] sm:$0xff]  ;;  %v59_v2 = vld [vmem:[%s1591_s3 + $0x60] sm:$0xff] }
   0x2   :  { %v70_v3 = vpack.c.bf16 %v62_v1, %v61_v0  ;;  %v60_v4 = vld [vmem:[%s1591_s3 + $0x68] sm:$0xff]  ;;  %v57_v6 = vld [vmem:[%s1591_s3 + $0x50] sm:$0xff]  ;;  %v58_v7 = vld [vmem:[%s1591_s3 + $0x58] sm:$0xff]  ;;  %v891_v46 = vshrl.u32 %v185_v43, 7  ;;  %v893_v47 = vand.u32 127, %v185_v43 }
   0x3   :  { %v69_v5 = vpack.c.bf16 %v60_v4, %v59_v2  ;;  %v68_v8 = vpack.c.bf16 %v58_v7, %v57_v6  ;;  %v55_v9 = vld [vmem:[%s1591_s3 + $0x40] sm:$0xff]  ;;  %v56_v10 = vld [vmem:[%s1591_s3 + $0x48] sm:$0xff]  ;;  %v53_v12 = vld [vmem:[%s1591_s3 + $0x30] sm:$0xff] }
   0x4   :  { %71 = vmatpush.bf16.msra.mxu0 %v70_v3  ;;  %707 = vmatpush.bf16.msra.mxu3 %v70_v3  ;;  %v67_v11 = vpack.c.bf16 %v56_v10, %v55_v9  ;;  %v54_v13 = vld [vmem:[%s1591_s3 + $0x38] sm:$0xff]  ;;  %v51_v15 = vld [vmem:[%s1591_s3 + $0x20] sm:$0xff]  ;;  %v52_v16 = vld [vmem:[%s1591_s3 + $0x28] sm:$0xff]  ;;  %v200_v52 = vadd.s32 112, %v891_v46  ;;  %v196_v53 = vadd.s32 80, %v891_v46  ;;  %v201_v54 = vadd.s32 120, %v891_v46 }
   0x5   :  { %v66_v14 = vpack.c.bf16 %v54_v13, %v53_v12  ;;  %v65_v17 = vpack.c.bf16 %v52_v16, %v51_v15  ;;  %v49_v18 = vld [vmem:[%s1591_s3 + $0x10] sm:$0xff]  ;;  %v50_v19 = vld [vmem:[%s1591_s3 + $0x18] sm:$0xff]  ;;  %v47_v21 = vld [vmem:[%s1591_s3] sm:$0xff]  ;;  %v197_v57 = vadd.s32 88, %v891_v46  ;;  %v198_v62 = vadd.s32 96, %v891_v46 }
   0x6   :  { %v64_v20 = vpack.c.bf16 %v50_v19, %v49_v18  ;;  %v48_v22 = vld [vmem:[%s1591_s3 + $0x8] sm:$0xff]  ;;  %v23_v23 = vld [vmem:[%s1592_s2] sm:$0xff]  ;;  %v25_v30 = vld [vmem:[%s1592_s2 + $0x10] sm:$0xff]  ;;  %vm218_vm2 = vcmp.eq.s32.totalorder %v200_v52, %v893_v47  ;;  %vm214_vm3 = vcmp.eq.s32.totalorder %v196_v53, %v893_v47  ;;  %vm219_vm6 = vcmp.eq.s32.totalorder %v201_v54, %v893_v47 }
   0x7   :  { %v63_v24 = vpack.c.bf16 %v48_v22, %v47_v21  ;;  %v24_v25 = vld [vmem:[%s1592_s2 + $0x8] sm:$0xff]  ;;  %v35_v26 = vld [vmem:[%s1592_s2 + $0x60] sm:$0xff]  ;;  %v26_v31 = vld [vmem:[%s1592_s2 + $0x18] sm:$0xff]  ;;  %vm215_vm8 = vcmp.eq.s32.totalorder %v197_v57, %v893_v47  ;;  %vm216_vm10 = vcmp.eq.s32.totalorder %v198_v62, %v893_v47  ;;  %v192_v10 = vadd.s32 48, %v891_v46 }
   0x8   :  { %72 = vmatpush.bf16.msra.mxu0 %v69_v5  ;;  %708 = vmatpush.bf16.msra.mxu3 %v69_v5  ;;  %v36_v27 = vld [vmem:[%s1592_s2 + $0x68] sm:$0xff]  ;;  %v39_v28 = vpack.c.bf16 %v24_v25, %v23_v23  ;;  %v37_v32 = vld [vmem:[%s1592_s2 + $0x70] sm:$0xff]  ;;  %v38_v33 = vld [vmem:[%s1592_s2 + $0x78] sm:$0xff]  ;;  %v40_v34 = vpack.c.bf16 %v26_v31, %v25_v30  ;;  %v193_v18 = vadd.s32 56, %v891_v46  ;;  %v199_v31 = vadd.s32 104, %v891_v46 }
   0x9   :  { %v45_v29 = vpack.c.bf16 %v36_v27, %v35_v26  ;;  %v46_v35 = vpack.c.bf16 %v38_v33, %v37_v32  ;;  %v27_v36 = vld [vmem:[%s1592_s2 + $0x20] sm:$0xff]  ;;  %v28_v37 = vld [vmem:[%s1592_s2 + $0x28] sm:$0xff]  ;;  %v29_v39 = vld [vmem:[%s1592_s2 + $0x30] sm:$0xff]  ;;  %v188_v32 = vadd.s32 16, %v891_v46 }
   0xa   :  { %v41_v38 = vpack.c.bf16 %v28_v37, %v27_v36  ;;  %v30_v40 = vld [vmem:[%s1592_s2 + $0x38] sm:$0xff]  ;;  %v166_v42 = vld [vmem:[%s1593_s0 + $0x70] sm:$0xff]  ;;  %v180_v50 = vld [vmem:[%s1594_s4 + $0x60] sm:$0xff] }
   0xb   :  { %v42_v41 = vpack.c.bf16 %v30_v40, %v29_v39  ;;  %v182_v44 = vld [vmem:[%s1594_s4 + $0x70] sm:$0xff]  ;;  %v183_v45 = vld [vmem:[%s1594_s4 + $0x78] sm:$0xff]  ;;  %v181_v51 = vld [vmem:[%s1594_s4 + $0x68] sm:$0xff]  ;;  %vm234_vm0 = vcmp.eq.f32.partialorder %v166_v42, 0.0 }
   0xc   :  { %73 = vmatpush.bf16.msra.mxu0 %v68_v8  ;;  %709 = vmatpush.bf16.msra.mxu3 %v68_v8  ;;  %v162_v48 = vld [vmem:[%s1593_s0 + $0x50] sm:$0xff]  ;;  %v507_v49 = vpack.c.bf16 %v183_v45, %v182_v44  ;;  %v506_v55 = vpack.c.bf16 %v181_v51, %v180_v50  ;;  %v167_v56 = vld [vmem:[%s1593_s0 + $0x78] sm:$0xff]  ;;  %vm250_vm4 = vmand %vm218_vm2, %vm234_vm0  ;;  %v194_v8 = vadd.s32 64, %v891_v46 }
   0xd   :  { %vm230_vm1 = vcmp.eq.f32.partialorder %v162_v48, 0.0  ;;  %v178_v58 = vld [vmem:[%s1594_s4 + $0x50] sm:$0xff]  ;;  %v179_v59 = vld [vmem:[%s1594_s4 + $0x58] sm:$0xff]  ;;  %v164_v61 = vld [vmem:[%s1593_s0 + $0x60] sm:$0xff]  ;;  %v930_v0 = vsel %vm250_vm4, 2.0, %v166_v42  ;;  %vm235_vm7 = vcmp.eq.f32.partialorder %v167_v56, 0.0 }
   0xe   :  { %508 = vmatpush.bf16.msra.mxu1 %v507_v49  ;;  %v163_v60 = vld [vmem:[%s1593_s0 + $0x58] sm:$0xff]  ;;  %v31_v63 = vld [vmem:[%s1592_s2 + $0x40] sm:$0xff]  ;;  %vm246_vm5 = vmand %vm214_vm3, %vm230_vm1  ;;  %v505_v1 = vpack.c.bf16 %v179_v59, %v178_v58  ;;  %296 = vadd.xlane.f32.xlu0 %v930_v0  ;;  %vm232_vm11 = vcmp.eq.f32.partialorder %v164_v61, 0.0  ;;  %vm212_vm15 = vcmp.eq.s32.totalorder %v194_v8, %v893_v47  ;;  %vm210_vm1 = vcmp.eq.s32.totalorder %v192_v10, %v893_v47 }
   0xf   :  { %v32_v2 = vld [vmem:[%s1592_s2 + $0x48] sm:$0xff]  ;;  %v937_v3 = vsel %vm246_vm5, 2.0, %v162_v48  ;;  %vm231_vm9 = vcmp.eq.f32.partialorder %v163_v60, 0.0  ;;  %v176_v4 = vld [vmem:[%s1594_s4 + $0x40] sm:$0xff]  ;;  %vm251_vm12 = vmand %vm219_vm6, %vm235_vm7  ;;  %vm211_vm5 = vcmp.eq.s32.totalorder %v193_v18, %v893_v47  ;;  %v195_v48 = vadd.s32 72, %v891_v46 }
  0x10   :  { %74 = vmatpush.bf16.msra.mxu0 %v67_v11  ;;  %710 = vmatpush.bf16.msra.mxu3 %v67_v11  ;;  %v177_v5 = vld [vmem:[%s1594_s4 + $0x48] sm:$0xff]  ;;  %v43_v6 = vpack.c.bf16 %v32_v2, %v31_v63  ;;  %vm247_vm13 = vmand %vm215_vm8, %vm231_vm9  ;;  %v160_v7 = vld [vmem:[%s1593_s0 + $0x40] sm:$0xff]  ;;  %v961_v13 = vsel %vm251_vm12, 2.0, %v167_v56  ;;  %v189_v58 = vadd.s32 24, %v891_v46 }
  0x11   :  { %288 = vadd.xlane.f32.xlu2 %v937_v3  ;;  %v504_v9 = vpack.c.bf16 %v177_v5, %v176_v4  ;;  %vm248_vm14 = vmand %vm216_vm10, %vm232_vm11  ;;  %v174_v11 = vld [vmem:[%s1594_s4 + $0x30] sm:$0xff]  ;;  %v175_v12 = vld [vmem:[%s1594_s4 + $0x38] sm:$0xff]  ;;  %v968_v16 = vsel %vm247_vm13, 2.0, %v163_v60  ;;  %vm228_vm0 = vcmp.eq.f32.partialorder %v160_v7, 0.0  ;;  %vm217_vm11 = vcmp.eq.s32.totalorder %v199_v31, %v893_v47 }
  0x12   :  { %509 = vmatpush.bf16.msra.mxu1 %v506_v55  ;;  %v966_v15 = vsel %vm248_vm14, 2.0, %v164_v61  ;;  %vm244_vm3 = vmand %vm212_vm15, %vm228_vm0  ;;  %v159_v19 = vld [vmem:[%s1593_s0 + $0x38] sm:$0xff]  ;;  %v157_v22 = vld [vmem:[%s1593_s0 + $0x28] sm:$0xff]  ;;  %vm206_vm13 = vcmp.eq.s32.totalorder %v188_v32, %v893_v47  ;;  %vm204_vm0 = vcmp.eq.s32.totalorder %v891_v46, %v893_v47 }
  0x13   :  { %292 = vadd.xlane.f32.xlu1 %v966_v15  ;;  %v980_v21 = vsel %vm244_vm3, 2.0, %v160_v7  ;;  %vm227_vm6 = vcmp.eq.f32.partialorder %v159_v19, 0.0  ;;  %v34_v25 = vld [vmem:[%s1592_s2 + $0x58] sm:$0xff]  ;;  %vm225_vm8 = vcmp.eq.f32.partialorder %v157_v22, 0.0  ;;  %v173_v30 = vld [vmem:[%s1594_s4 + $0x28] sm:$0xff]  ;;  %v152_v36 = vld [vmem:[%s1593_s0] sm:$0xff] }
  0x14   :  { %75 = vmatpush.bf16.msra.mxu0 %v66_v14  ;;  %711 = vmatpush.bf16.msra.mxu3 %v66_v14  ;;  %v158_v14 = vld [vmem:[%s1593_s0 + $0x30] sm:$0xff]  ;;  %vm243_vm9 = vmand %vm211_vm5, %vm227_vm6  ;;  %v168_v44 = vld [vmem:[%s1594_s4] sm:$0xff] }
  0x15   :  { %vm226_vm2 = vcmp.eq.f32.partialorder %v158_v14, 0.0  ;;  %v997_v27 = vsel %vm243_vm9, 2.0, %v159_v19  ;;  %v170_v37 = vld [vmem:[%s1594_s4 + $0x10] sm:$0xff]  ;;  %v169_v45 = vld [vmem:[%s1594_s4 + $0x8] sm:$0xff]  ;;  %v156_v56 = vld [vmem:[%s1593_s0 + $0x20] sm:$0xff] }
  0x16   :  { %510 = vmatpush.bf16.msra.mxu1 %v505_v1  ;;  %298 = vadd.xlane.f32.xlu0 %v961_v13  ;;  %vm242_vm4 = vmand %vm210_vm1, %vm226_vm2  ;;  %vm220_vm1 = vcmp.eq.f32.partialorder %v152_v36, 0.0  ;;  %v500_v50 = vpack.c.bf16 %v169_v45, %v168_v44  ;;  %v161_v51 = vld [vmem:[%s1593_s0 + $0x48] sm:$0xff]  ;;  %v155_v59 = vld [vmem:[%s1593_s0 + $0x18] sm:$0xff] }
  0x17   :  { %v985_v23 = vsel %vm242_vm4, 2.0, %v158_v14  ;;  %vm236_vm3 = vmand %vm204_vm0, %vm220_vm1  ;;  %v153_v52 = vld [vmem:[%s1593_s0 + $0x8] sm:$0xff]  ;;  %vm213_vm4 = vcmp.eq.s32.totalorder %v195_v48, %v893_v47  ;;  %vm229_vm5 = vcmp.eq.f32.partialorder %v161_v51, 0.0  ;;  %v120_v62 = vld [vmem:[%s1595_s1] sm:$0xff] }
  0x18   :  { %76 = vmatpush.bf16.msra.mxu0 %v65_v17  ;;  %712 = vmatpush.bf16.msra.mxu3 %v65_v17  ;;  %v503_v17 = vpack.c.bf16 %v175_v12, %v174_v11  ;;  %v1038_v43 = vsel %vm236_vm3, 2.0, %v152_v36  ;;  %v122_v12 = vld [vmem:[%s1595_s1 + $0x10] sm:$0xff]  ;;  %v123_v14 = vld [vmem:[%s1595_s1 + $0x18] sm:$0xff] }
  0x19   :  { %290 = vadd.xlane.f32.xlu2 %v968_v16  ;;  %v126_v44 = vld [vmem:[%s1595_s1 + $0x30] sm:$0xff]  ;;  %v127_v45 = vld [vmem:[%s1595_s1 + $0x38] sm:$0xff] }
  0x1a   :  { %511 = vmatpush.bf16.msra.mxu1 %v504_v9 }
  0x1c   :  { %77 = vmatpush.bf16.msra.mxu0 %v64_v20  ;;  %713 = vmatpush.bf16.msra.mxu3 %v64_v20  ;;  %v191_v20 = vadd.s32 40, %v891_v46 }
  0x1e   :  { %512 = vmatpush.bf16.msra.mxu1 %v503_v17  ;;  %284 = vadd.xlane.f32.xlu0 %v980_v21  ;;  %vm209_vm7 = vcmp.eq.s32.totalorder %v191_v20, %v893_v47 }
  0x1f   :  { %vm241_vm10 = vmand %vm209_vm7, %vm225_vm8  ;;  %vm221_vm7 = vcmp.eq.f32.partialorder %v153_v52, 0.0 }
  0x20   :  { %78 = vmatpush.bf16.msra.mxu0 %v63_v24  ;;  %714 = vmatpush.bf16.msra.mxu3 %v63_v24  ;;  %v33_v24 = vld [vmem:[%s1592_s2 + $0x50] sm:$0xff]  ;;  %vm245_vm8 = vmand %vm213_vm4, %vm229_vm5 }
  0x21   :  { %280 = vadd.xlane.f32.xlu2 %v985_v23  ;;  %v44_v26 = vpack.c.bf16 %v34_v25, %v33_v24  ;;  %v1057_v53 = vsel %vm245_vm8, 2.0, %v161_v51  ;;  %v135_v25 = vld [vmem:[%s1595_s1 + $0x78] sm:$0xff] }
  0x23   :  { %79 = vmatmul.bf16.vlgmr.msra.gmra.mxu0 %v39_v28  ;;  %109 = vmatmul.bf16.vlgmr.msra.gmra.mxu3 %v45_v29  ;;  %v999_v28 = vsel %vm241_vm10, 2.0, %v157_v22  ;;  %v172_v29 = vld [vmem:[%s1594_s4 + $0x20] sm:$0xff]  ;;  %v134_v22 = vld [vmem:[%s1595_s1 + $0x70] sm:$0xff] }
  0x24   :  { %715 = vmatpush.bf16.msrb.mxu3 %v507_v49  ;;  %v502_v33 = vpack.c.bf16 %v173_v30, %v172_v29  ;;  %v187_v49 = vadd.s32 8, %v891_v46 }
  0x26   :  { %282 = vadd.xlane.f32.xlu0 %v997_v27  ;;  %513 = vmatpush.bf16.msra.mxu1 %v502_v33  ;;  %vm205_vm6 = vcmp.eq.s32.totalorder %v187_v49, %v893_v47 }
  0x27   :  { %vm237_vm9 = vmand %vm205_vm6, %vm221_vm7 }
  0x28   :  { %716 = vmatpush.bf16.msrb.mxu3 %v506_v55  ;;  %v1060_v54 = vsel %vm237_vm9, 2.0, %v153_v52  ;;  %v190_v55 = vadd.s32 32, %v891_v46  ;;  %v121_v46 = vld [vmem:[%s1595_s1 + $0x8] sm:$0xff] }
  0x29   :  { %278 = vadd.xlane.f32.xlu2 %v999_v28 }
  0x2a   :  { %vm208_vm10 = vcmp.eq.s32.totalorder %v190_v55, %v893_v47 }
  0x2c   :  { %717 = vmatpush.bf16.msrb.mxu3 %v505_v1 }
  0x30   :  { %718 = vmatpush.bf16.msrb.mxu3 %v504_v9 }
  0x31   :  { %268 = vadd.xlane.f32.xlu2 %v1038_v43 }
  0x33   :  { %84 = vmatmul.bf16.gmra.mxu0 %v40_v34  ;;  %114 = vmatmul.bf16.gmra.mxu3 %v46_v35  ;;  %v165_v34 = vld [vmem:[%s1593_s0 + $0x68] sm:$0xff]  ;;  %v154_v35 = vld [vmem:[%s1593_s0 + $0x10] sm:$0xff] }
  0x34   :  { %719 = vmatpush.bf16.msrb.mxu3 %v503_v17  ;;  %vm233_vm12 = vcmp.eq.f32.partialorder %v165_v34, 0.0  ;;  %vm222_vm14 = vcmp.eq.f32.partialorder %v154_v35, 0.0 }
  0x35   :  { %vm249_vm15 = vmand %vm217_vm11, %vm233_vm12  ;;  %vm224_vm11 = vcmp.eq.f32.partialorder %v156_v56, 0.0 }
  0x36   :  { %v1030_v40 = vsel %vm249_vm15, 2.0, %v165_v34  ;;  %vm238_vm2 = vmand %vm206_vm13, %vm222_vm14  ;;  %vm207_vm13 = vcmp.eq.s32.totalorder %v189_v58, %v893_v47  ;;  %vm223_vm14 = vcmp.eq.f32.partialorder %v155_v59, 0.0  ;;  %v132_v47 = vld [vmem:[%s1595_s1 + $0x60] sm:$0xff]  ;;  %v125_v34 = vld [vmem:[%s1595_s1 + $0x28] sm:$0xff] }
  0x37   :  { %294 = vadd.xlane.f32.xlu1 %v1030_v40  ;;  %v1035_v42 = vsel %vm238_vm2, 2.0, %v154_v35  ;;  %vm240_vm12 = vmand %vm208_vm10, %vm224_vm11 }
  0x38   :  { %720 = vmatpush.bf16.msrb.mxu3 %v502_v33  ;;  %272 = vadd.xlane.f32.xlu0 %v1035_v42  ;;  %v1068_v57 = vsel %vm240_vm12, 2.0, %v156_v56  ;;  %vm239_vm15 = vmand %vm207_vm13, %vm223_vm14  ;;  %v124_v33 = vld [vmem:[%s1595_s1 + $0x20] sm:$0xff] }
  0x39   :  { %v1076_v60 = vsel %vm239_vm15, 2.0, %v155_v59  ;;  %v128_v59 = vld [vmem:[%s1595_s1 + $0x40] sm:$0xff] }
  0x3f   :  { %286 = vadd.xlane.f32.xlu1 %v1057_v53 }
  0x40   :  { %270 = vadd.xlane.f32.xlu0 %v1060_v54 }
  0x43   :  { %89 = vmatmul.bf16.gmra.mxu0 %v41_v38  ;;  %v171_v38 = vld [vmem:[%s1594_s4 + $0x18] sm:$0xff] }
  0x44   :  { %v501_v39 = vpack.c.bf16 %v171_v38, %v170_v37 }
  0x46   :  { %514 = vmatpush.bf16.msra.mxu1 %v501_v39  ;;  %721 = vmatpush.bf16.msrb.mxu3 %v501_v39 }
  0x47   :  { %276 = vadd.xlane.f32.xlu1 %v1068_v57 }
  0x4a   :  { %515 = vmatpush.bf16.msra.mxu1 %v500_v50  ;;  %722 = vmatpush.bf16.msrb.mxu3 %v500_v50 }
  0x4f   :  { %274 = vadd.xlane.f32.xlu1 %v1076_v60 }
  0x53   :  { %94 = vmatmul.bf16.gmra.mxu0 %v42_v41 }
  0x63   :  { %99 = vmatmul.bf16.gmra.mxu0 %v43_v6  ;;  %v133_v6 = vld [vmem:[%s1595_s1 + $0x68] sm:$0xff] }
  0x73   :  { %104 = vmatmul.bf16.gmra.mxu0 %v44_v26 }
  0x81   :  { %v1115_v52 = vpop.xlane.xlu0 %296 }
  0x84   :  { %v1117_v56 = vpop.xlane.xlu2 %288 }
  0x89   :  { %v1119_v58 = vpop.xlane.xlu0 %298 }
  0xa0   :  { %v80_v61 = vpop.f32.mrf.mxu0 }
  0xa1   :  { %v136_v2 = vadd.f32 %v120_v62, %v80_v61  ;;  %v129_v61 = vld [vmem:[%s1595_s1 + $0x48] sm:$0xff] }
  0xa6   :  { %v110_v63 = vpop.f32.mrf.mxu3 }
  0xa7   :  { %v148_v7 = vadd.f32 %v132_v47, %v110_v63 }
  0xa8   :  { %v82_v1 = vpop.f32.mrf.mxu0 }
  0xa9   :  { %v137_v4 = vadd.f32 %v121_v46, %v82_v1 }
  0xab   :  { %v492_v5 = vpack.c.bf16 %v137_v4, %v136_v2  ;;  %v1127_v2 = vpop.xlane.xlu2 %290  ;;  %v1129_v4 = vpop.xlane.xlu0 %284 }
  0xad   :  { %516 = vmatmul.bf16.vlgmr.msra.gmra.mxu1 %v492_v5  ;;  %v1131_v5 = vpop.xlane.xlu1 %292 }
  0xae   :  { %v112_v8 = vpop.f32.mrf.mxu3 }
  0xaf   :  { %v149_v9 = vadd.f32 %v133_v6, %v112_v8  ;;  %v130_v6 = vld [vmem:[%s1595_s1 + $0x50] sm:$0xff] }
  0xb0   :  { %v85_v10 = vpop.f32.mrf.mxu0 }
  0xb1   :  { %v498_v11 = vpack.c.bf16 %v149_v9, %v148_v7  ;;  %v138_v19 = vadd.f32 %v122_v12, %v85_v10  ;;  %v131_v7 = vld [vmem:[%s1595_s1 + $0x58] sm:$0xff] }
  0xb3   :  { %546 = vmatmul.bf16.vlgmr.msrb.gmra.mxu3 %v498_v11  ;;  %v1139_v9 = vpop.xlane.xlu2 %280  ;;  %v1141_v12 = vpop.xlane.xlu0 %282 }
  0xb6   :  { %v115_v17 = vpop.f32.mrf.mxu3 }
  0xb7   :  { %v150_v26 = vadd.f32 %v134_v22, %v115_v17  ;;  %v1143_v17 = vpop.xlane.xlu1 %294 }
  0xb8   :  { %v87_v18 = vpop.f32.mrf.mxu0 }
  0xb9   :  { %v139_v20 = vadd.f32 %v123_v14, %v87_v18 }
  0xbb   :  { %v493_v24 = vpack.c.bf16 %v139_v20, %v138_v19  ;;  %v1145_v18 = vpop.xlane.xlu2 %278  ;;  %v1147_v19 = vpop.xlane.xlu0 %272 }
  0xbc   :  { %vm342_vm8 = vweird.f32 %v1147_v19  ;;  %vm302_vm14 = vcmp.gt.f32.partialorder %v1147_v19, 0.0 }
  0xbd   :  { %521 = vmatmul.bf16.gmra.mxu1 %v493_v24 }
  0xbe   :  { %v117_v29 = vpop.f32.mrf.mxu3 }
  0xbf   :  { %v151_v30 = vadd.f32 %v135_v25, %v117_v29  ;;  %v1149_v20 = vpop.xlane.xlu1 %286 }
  0xc0   :  { %v90_v31 = vpop.f32.mrf.mxu0 }
  0xc1   :  { %v499_v32 = vpack.c.bf16 %v151_v30, %v150_v26  ;;  %v140_v36 = vadd.f32 %v124_v33, %v90_v31 }
  0xc3   :  { %551 = vmatmul.bf16.gmra.mxu3 %v499_v32  ;;  %v269_v22 = vpop.xlane.xlu2 %268  ;;  %v271_v24 = vpop.xlane.xlu0 %270 }
  0xc4   :  { %731 = vrsqrt.f32 %v269_v22  ;;  %vm322_vm0 = vweird.f32 %v269_v22  ;;  %vm332_vm2 = vweird.f32 %v271_v24  ;;  %vm300_vm6 = vcmp.gt.f32.partialorder %v269_v22, 0.0 }
  0xc5   :  { %733 = vrsqrt.f32 %v271_v24  ;;  %vm301_vm7 = vcmp.gt.f32.partialorder %v271_v24, 0.0 }
  0xc6   :  { %735 = vrsqrt.f32 %v1147_v19 }
  0xc7   :  { %v1151_v25 = vpop.xlane.xlu1 %276 }
  0xc8   :  { %v92_v35 = vpop.f32.mrf.mxu0 }
  0xc9   :  { %v141_v37 = vadd.f32 %v125_v34, %v92_v35 }
  0xca   :  { %v732_v26 = vpop.eup %731 }
  0xcb   :  { %v494_v38 = vpack.c.bf16 %v141_v37, %v140_v36  ;;  %v734_v29 = vpop.eup %733  ;;  %v317_v30 = vmul.f32 %v732_v26, %v269_v22  ;;  %vm323_vm1 = vweird.f32 %v732_v26 }
  0xcc   :  { %v327_v31 = vmul.f32 %v734_v29, %v271_v24  ;;  %v1157_v37 = vpop.eup %735  ;;  %vm333_vm3 = vweird.f32 %v734_v29  ;;  %vm1165_vm4 = vmor %vm322_vm0, %vm323_vm1  ;;  %vm442_vm0 = vweird.f32 %v1131_v5 }
  0xcd   :  { %526 = vmatmul.bf16.gmra.mxu1 %v494_v38  ;;  %v318_v32 = vmul.f32 %v732_v26, %v317_v30  ;;  %vm334_vm5 = vmor %vm332_vm2, %vm333_vm3  ;;  %vm343_vm9 = vweird.f32 %v1157_v37  ;;  %vm462_vm2 = vweird.f32 %v1115_v52 }
  0xce   :  { %v328_v33 = vmul.f32 %v734_v29, %v327_v31  ;;  %vm1210_vm12 = vmor %vm342_vm8, %vm343_vm9 }
  0xcf   :  { %v1153_v34 = vpop.xlane.xlu1 %274  ;;  %v319_v35 = vmul.f32 0.5, %v318_v32 }
  0xd0   :  { %v95_v39 = vpop.f32.mrf.mxu0  ;;  %737 = vrsqrt.f32 %v1153_v34  ;;  %v329_v36 = vmul.f32 0.5, %v328_v33  ;;  %vm352_vm10 = vweird.f32 %v1153_v34  ;;  %vm303_vm15 = vcmp.gt.f32.partialorder %v1153_v34, 0.0 }
  0xd1   :  { %v142_v49 = vadd.f32 %v126_v44, %v95_v39  ;;  %v320_v38 = vsub.f32 1.5, %v319_v35  ;;  %739 = vrsqrt.f32 %v1115_v52 }
  0xd2   :  { %v330_v39 = vsub.f32 1.5, %v329_v36  ;;  %741 = vrsqrt.f32 %v1119_v58 }
  0xd3   :  { %743 = vrsqrt.f32 %v1131_v5 }
  0xd4   :  { %745 = vrsqrt.f32 %v1143_v17 }
  0xd5   :  { %747 = vrsqrt.f32 %v1117_v56 }
  0xd6   :  { %v1159_v44 = vpop.eup %737  ;;  %749 = vrsqrt.f32 %v1127_v2 }
  0xd7   :  { %vm353_vm11 = vweird.f32 %v1159_v44  ;;  %751 = vrsqrt.f32 %v1149_v20 }
  0xd8   :  { %v97_v48 = vpop.f32.mrf.mxu0  ;;  %vm1215_vm13 = vmor %vm352_vm10, %vm353_vm11  ;;  %753 = vrsqrt.f32 %v1129_v4 }
  0xd9   :  { %v143_v50 = vadd.f32 %v127_v45, %v97_v48  ;;  %v337_v45 = vmul.f32 %v1157_v37, %v1147_v19  ;;  %755 = vrsqrt.f32 %v1141_v12 }
  0xda   :  { %757 = vrsqrt.f32 %v1139_v9 }
  0xdb   :  { %v495_v51 = vpack.c.bf16 %v143_v50, %v142_v49  ;;  %v321_v49 = vmul.f32 %v732_v26, %v320_v38  ;;  %v347_v50 = vmul.f32 %v1159_v44, %v1153_v34  ;;  %759 = vrsqrt.f32 %v1145_v18 }
  0xdc   :  { %761 = vrsqrt.f32 %v1151_v25 }
  0xdd   :  { %531 = vmatmul.bf16.gmra.mxu1 %v495_v51  ;;  %v331_v51 = vmul.f32 %v734_v29, %v330_v39 }
  0xe0   :  { %v100_v55 = vpop.f32.mrf.mxu0 }
  0xe1   :  { %v144_v46 = vadd.f32 %v128_v59, %v100_v55  ;;  %v338_v59 = vmul.f32 %v1157_v37, %v337_v45 }
  0xe8   :  { %v102_v62 = vpop.f32.mrf.mxu0 }
  0xe9   :  { %v145_v63 = vadd.f32 %v129_v61, %v102_v62  ;;  %v325_v61 = vsel %vm1165_vm4, %v732_v26, %v321_v49  ;;  %v348_v62 = vmul.f32 %v1159_v44, %v347_v50  ;;  %vm452_vm4 = vweird.f32 %v1143_v17 }
  0xeb   :  { %v496_v1 = vpack.c.bf16 %v145_v63, %v144_v46  ;;  %v335_v46 = vsel %vm334_vm5, %v734_v29, %v331_v51  ;;  %v1177_v63 = vpop.eup %739 }
  0xec   :  { %vm463_vm3 = vweird.f32 %v1177_v63 }
  0xed   :  { %536 = vmatmul.bf16.gmra.mxu1 %v496_v1  ;;  %v1179_v1 = vpop.eup %741  ;;  %vm1247_vm9 = vmor %vm462_vm2, %vm463_vm3  ;;  %vm432_vm2 = vweird.f32 %v1127_v2 }
  0xee   :  { %v467_v30 = vmul.f32 %v1179_v1, %v1119_v58  ;;  %vm473_vm8 = vweird.f32 %v1179_v1 }
  0xf0   :  { %v105_v47 = vpop.f32.mrf.mxu0  ;;  %v468_v45 = vmul.f32 %v1179_v1, %v467_v30 }
  0xf1   :  { %v146_v10 = vadd.f32 %v130_v6, %v105_v47  ;;  %v1181_v47 = vpop.eup %743  ;;  %v1183_v6 = vsel %vm300_vm6, %v325_v61, 0.0 }
  0xf2   :  { %v437_v24 = vmul.f32 %v1181_v47, %v1131_v5  ;;  %vm443_vm1 = vweird.f32 %v1181_v47 }
  0xf3   :  { %vm1239_vm6 = vmor %vm442_vm0, %vm443_vm1  ;;  %vm422_vm0 = vweird.f32 %v1117_v56 }
  0xf4   :  { %v438_v39 = vmul.f32 %v1181_v47, %v437_v24 }
  0xf8   :  { %v107_v8 = vpop.f32.mrf.mxu0 }
  0xf9   :  { %v147_v11 = vadd.f32 %v131_v7, %v107_v8  ;;  %v1185_v7 = vsel %vm301_vm7, %v335_v46, 0.0  ;;  %v1187_v8 = vpop.eup %745  ;;  %v469_v46 = vmul.f32 0.5, %v468_v45  ;;  %vm472_vm7 = vweird.f32 %v1119_v58 }
  0xfa   :  { %v447_v31 = vmul.f32 %v1187_v8, %v1143_v17  ;;  %vm453_vm5 = vweird.f32 %v1187_v8  ;;  %vm474_vm11 = vmor %vm472_vm7, %vm473_vm8  ;;  %vm402_vm7 = vweird.f32 %v1129_v4 }
  0xfb   :  { %v497_v14 = vpack.c.bf16 %v147_v11, %v146_v10  ;;  %v339_v10 = vmul.f32 0.5, %v338_v59  ;;  %v349_v11 = vmul.f32 0.5, %v348_v62  ;;  %v439_v62 = vmul.f32 0.5, %v438_v39  ;;  %vm1252_vm10 = vmor %vm452_vm4, %vm453_vm5 }
  0xfc   :  { %v448_v48 = vmul.f32 %v1187_v8, %v447_v31  ;;  %v470_v30 = vsub.f32 1.5, %v469_v46  ;;  %vm412_vm4 = vweird.f32 %v1149_v20 }
  0xfd   :  { %541 = vmatmul.bf16.gmra.mxu1 %v497_v14  ;;  %v457_v14 = vmul.f32 %v1177_v63, %v1115_v52  ;;  %v340_v32 = vsub.f32 1.5, %v339_v10  ;;  %v350_v33 = vsub.f32 1.5, %v349_v11 }
  0xfe   :  { %v449_v10 = vmul.f32 0.5, %v448_v48 }
  0xff   :  { %v458_v36 = vmul.f32 %v1177_v63, %v457_v14  ;;  %v341_v49 = vmul.f32 %v1157_v37, %v340_v32  ;;  %v351_v51 = vmul.f32 %v1159_v44, %v350_v33 }
 0x100   :  { %v450_v31 = vsub.f32 1.5, %v449_v10 }
 0x101   :  { %v345_v11 = vsel %vm1210_vm12, %v1157_v37, %v341_v49  ;;  %v355_v14 = vsel %vm1215_vm13, %v1159_v44, %v351_v51  ;;  %v471_v49 = vmul.f32 %v1179_v1, %v470_v30  ;;  %vm314_vm12 = vcmp.gt.f32.partialorder %v1115_v52, 0.0 }
 0x102   :  { %v1231_v19 = vsel %vm303_vm15, %v355_v14, 0.0  ;;  %v451_v45 = vmul.f32 %v1187_v8, %v450_v31  ;;  %vm312_vm13 = vcmp.gt.f32.partialorder %v1131_v5, 0.0  ;;  %vm315_vm15 = vcmp.gt.f32.partialorder %v1119_v58, 0.0 }
 0x103   :  { %1609 = vst [vmem:[#allocation3_spill] sm:$0xff] %v1231_v19  ;;  %v475_v52 = vsel %vm474_vm11, %v1179_v1, %v471_v49  ;;  %vm382_vm11 = vweird.f32 %v1139_v9 }
 0x104   :  { %v1281_v10 = vsel %vm315_vm15, %v475_v52, 0.0 }
 0x105   :  { %1617 = vst [vmem:[#allocation5_spill] sm:$0xff] %v1281_v10 }
 0x12a   :  { %v517_v55 = vpop.f32.mrf.mxu1 }
 0x12b   :  { %v565_v26 = vmul.f32 %v517_v55, %v1183_v6  ;;  %v459_v55 = vmul.f32 0.5, %v458_v36 }
 0x132   :  { %v519_v22 = vpop.f32.mrf.mxu1 }
 0x133   :  { %v566_v29 = vmul.f32 %v519_v22, %v1185_v7  ;;  %v460_v22 = vsub.f32 1.5, %v459_v55 }
 0x135   :  { %v1199_v35 = vpack.c.bf16 %v566_v29, %v565_v26  ;;  %v440_v26 = vsub.f32 1.5, %v439_v62  ;;  %v1227_v29 = vsel %vm302_vm14, %v345_v11, 0.0  ;;  %v461_v37 = vmul.f32 %v1177_v63, %v460_v22 }
 0x136   :  { %v547_v38 = vpop.f32.mrf.mxu3  ;;  %1608 = vst [vmem:[#allocation2_spill] sm:$0xff] %v1227_v29  ;;  %vm313_vm14 = vcmp.gt.f32.partialorder %v1143_v17, 0.0 }
 0x137   :  { %v441_v36 = vmul.f32 %v1181_v47, %v440_v26  ;;  %v465_v55 = vsel %vm1247_vm9, %v1177_v63, %v461_v37 }
 0x138   :  { %v1275_v46 = vsel %vm314_vm12, %v465_v55, 0.0  ;;  %vm392_vm12 = vweird.f32 %v1141_v12 }
 0x139   :  { %v445_v59 = vsel %vm1239_vm6, %v1181_v47, %v441_v36  ;;  %1616 = vst [vmem:[#allocation4_spill] sm:$0xff] %v1275_v46 }
 0x13a   :  { %v522_v61 = vpop.f32.mrf.mxu1  ;;  %v1277_v63 = vsel %vm312_vm13, %v445_v59, 0.0 }
 0x13b   :  { %v567_v44 = vmul.f32 %v522_v61, %v1227_v29  ;;  %v455_v61 = vsel %vm1252_vm10, %v1187_v8, %v451_v45  ;;  %v577_v11 = vmul.f32 %v547_v38, %v1277_v63 }
 0x13c   :  { %v1279_v5 = vsel %vm313_vm14, %v455_v61, 0.0 }
 0x13e   :  { %v549_v24 = vpop.f32.mrf.mxu3 }
 0x13f   :  { %v578_v8 = vmul.f32 %v549_v24, %v1279_v5  ;;  %v1298_v24 = vpop.eup %747 }
 0x140   :  { %v1301_v30 = vpop.eup %749  ;;  %v417_v37 = vmul.f32 %v1298_v24, %v1117_v56  ;;  %vm423_vm1 = vweird.f32 %v1298_v24 }
 0x141   :  { %v587_v22 = vpack.c.bf16 %v578_v8, %v577_v11  ;;  %v1304_v31 = vpop.eup %751  ;;  %vm433_vm3 = vweird.f32 %v1301_v30  ;;  %vm1352_vm6 = vmor %vm422_vm0, %vm423_vm1  ;;  %vm310_vm0 = vcmp.gt.f32.partialorder %v1117_v56, 0.0  ;;  %vm309_vm1 = vcmp.gt.f32.partialorder %v1149_v20, 0.0 }
 0x142   :  { %v524_v34 = vpop.f32.mrf.mxu1  ;;  %v407_v36 = vmul.f32 %v1304_v31, %v1149_v20  ;;  %v418_v49 = vmul.f32 %v1298_v24, %v417_v37  ;;  %vm413_vm5 = vweird.f32 %v1304_v31  ;;  %vm1360_vm9 = vmor %vm432_vm2, %vm433_vm3  ;;  %vm311_vm2 = vcmp.gt.f32.partialorder %v1127_v2, 0.0 }
 0x143   :  { %v568_v33 = vmul.f32 %v524_v34, %v1231_v19  ;;  %v1306_v34 = vpop.eup %753  ;;  %vm1364_vm10 = vmor %vm412_vm4, %vm413_vm5  ;;  %vm362_vm3 = vweird.f32 %v1151_v25  ;;  %vm372_vm5 = vweird.f32 %v1145_v18 }
 0x144   :  { %v397_v48 = vmul.f32 %v1306_v34, %v1129_v4  ;;  %v408_v61 = vmul.f32 %v1304_v31, %v407_v36  ;;  %v419_v11 = vmul.f32 0.5, %v418_v49  ;;  %vm403_vm8 = vweird.f32 %v1306_v34 }
 0x145   :  { %v1257_v50 = vpack.c.bf16 %v568_v33, %v567_v44  ;;  %v427_v44 = vmul.f32 %v1301_v30, %v1127_v2  ;;  %v1314_v33 = vpop.eup %755  ;;  %vm1376_vm15 = vmor %vm402_vm7, %vm403_vm8  ;;  %vm308_vm8 = vcmp.gt.f32.partialorder %v1129_v4, 0.0 }
 0x146   :  { %v552_v51 = vpop.f32.mrf.mxu3  ;;  %v1319_v39 = vpop.eup %757  ;;  %v387_v55 = vmul.f32 %v1314_v33, %v1141_v12  ;;  %v409_v37 = vmul.f32 0.5, %v408_v61  ;;  %vm393_vm13 = vweird.f32 %v1314_v33 }
 0x147   :  { %v579_v17 = vmul.f32 %v552_v51, %v1275_v46  ;;  %v1321_v45 = vpop.eup %759  ;;  %v428_v51 = vmul.f32 %v1301_v30, %v427_v44  ;;  %v377_v59 = vmul.f32 %v1319_v39, %v1139_v9  ;;  %vm383_vm14 = vweird.f32 %v1319_v39 }
 0x148   :  { %v367_v52 = vmul.f32 %v1321_v45, %v1145_v18  ;;  %vm373_vm7 = vweird.f32 %v1321_v45 }
 0x149   :  { %v429_v8 = vmul.f32 0.5, %v428_v51 }
 0x14a   :  { %v1273_v62 = vpop.f32.mrf.mxu1  ;;  %v368_v44 = vmul.f32 %v1321_v45, %v367_v52 }
 0x14b   :  { %v430_v19 = vsub.f32 1.5, %v429_v8 }
 0x14c   :  { %v369_v49 = vmul.f32 0.5, %v368_v44 }
 0x14e   :  { %v554_v47 = vpop.f32.mrf.mxu3 }
 0x14f   :  { %v580_v58 = vmul.f32 %v554_v47, %v1281_v10  ;;  %v398_v47 = vmul.f32 %v1306_v34, %v397_v48  ;;  %v420_v10 = vsub.f32 1.5, %v419_v11  ;;  %v410_v48 = vsub.f32 1.5, %v409_v37 }
 0x151   :  { %v588_v1 = vpack.c.bf16 %v580_v58, %v579_v17  ;;  %v1334_v17 = vpop.eup %761  ;;  %v388_v58 = vmul.f32 %v1314_v33, %v387_v55  ;;  %v399_v41 = vmul.f32 0.5, %v398_v47  ;;  %v421_v61 = vmul.f32 %v1298_v24, %v420_v10 }
 0x152   :  { %v1287_v14 = vpop.f32.mrf.mxu1  ;;  %v357_v36 = vmul.f32 %v1334_v17, %v1151_v25  ;;  %v411_v11 = vmul.f32 %v1304_v31, %v410_v48  ;;  %vm363_vm4 = vweird.f32 %v1334_v17 }
 0x153   :  { %589 = vmatpush.bf16.msra.mxu2 %v588_v1  ;;  %723 = vmatpush.bf16.msra.mxu3 %v588_v1  ;;  %v389_v46 = vmul.f32 0.5, %v388_v58  ;;  %v400_v55 = vsub.f32 1.5, %v399_v41  ;;  %v431_v41 = vmul.f32 %v1301_v30, %v430_v19  ;;  %v370_v58 = vsub.f32 1.5, %v369_v49 }
 0x154   :  { %v358_v51 = vmul.f32 %v1334_v17, %v357_v36  ;;  %v425_v44 = vsel %vm1352_vm6, %v1298_v24, %v421_v61  ;;  %v415_v36 = vsel %vm1364_vm10, %v1304_v31, %v411_v11  ;;  %vm1399_vm6 = vmor %vm392_vm12, %vm393_vm13  ;;  %vm307_vm10 = vcmp.gt.f32.partialorder %v1141_v12, 0.0  ;;  %v1636_v24 = vld [vmem:[#allocation4_spill] sm:$0xff] }
 0x155   :  { %v401_v37 = vmul.f32 %v1306_v34, %v400_v55  ;;  %v435_v48 = vsel %vm1360_vm9, %v1301_v30, %v431_v41  ;;  %v371_v31 = vmul.f32 %v1321_v45, %v370_v58  ;;  %vm1414_vm9 = vmor %vm382_vm11, %vm383_vm14  ;;  %v1420_v55 = vsel %vm309_vm1, %v415_v36, 0.0 }
 0x156   :  { %v359_v10 = vmul.f32 0.5, %v358_v51  ;;  %v1424_v4 = vsel %vm310_vm0, %v425_v44, 0.0  ;;  %vm1439_vm11 = vmor %vm372_vm5, %vm373_vm7  ;;  %vm306_vm12 = vcmp.gt.f32.partialorder %v1139_v9, 0.0  ;;  %vm305_vm14 = vcmp.gt.f32.partialorder %v1145_v18, 0.0 }
 0x157   :  { %590 = vmatpush.bf16.msra.mxu2 %v587_v22  ;;  %724 = vmatpush.bf16.msra.mxu3 %v587_v22  ;;  %v378_v22 = vmul.f32 %v1319_v39, %v377_v59  ;;  %v390_v59 = vsub.f32 1.5, %v389_v46  ;;  %v405_v30 = vsel %vm1376_vm15, %v1306_v34, %v401_v37  ;;  %vm1455_vm13 = vmor %vm362_vm3, %vm363_vm4  ;;  %v375_v9 = vsel %vm1439_vm11, %v1321_v45, %v371_v31 }
 0x158   :  { %v360_v49 = vsub.f32 1.5, %v359_v10  ;;  %v1443_v41 = vsel %vm308_vm8, %v405_v30, 0.0  ;;  %vm304_vm15 = vcmp.gt.f32.partialorder %v1151_v25, 0.0 }
 0x159   :  { %v379_v29 = vmul.f32 0.5, %v378_v22  ;;  %v391_v19 = vmul.f32 %v1314_v33, %v390_v59  ;;  %v1426_v59 = vsel %vm311_vm2, %v435_v48, 0.0  ;;  %v1475_v22 = vsel %vm305_vm14, %v375_v9, 0.0 }
 0x15a   :  { %v1289_v26 = vpop.f32.mrf.mxu1  ;;  %v361_v20 = vmul.f32 %v1334_v17, %v360_v49  ;;  %v570_v25 = vmul.f32 %v1287_v14, %v1475_v22  ;;  %v558_v14 = vpack.c.bf16 %v1076_v60, %v1035_v42  ;;  %v1635_v49 = vld [vmem:[#allocation2_spill] sm:$0xff] }
 0x15b   :  { %v380_v46 = vsub.f32 1.5, %v379_v29  ;;  %v395_v61 = vsel %vm1399_vm6, %v1314_v33, %v391_v19  ;;  %v564_v19 = vpack.c.bf16 %v961_v13, %v930_v0  ;;  %v184_v0 = vld [vmem:[%s1596_s5] sm:$0xff] }
 0x15c   :  { %v365_v58 = vsel %vm1455_vm13, %v1334_v17, %v361_v20  ;;  %v1509_v13 = vperm.slane %v184_v0, 0  ;;  %v1638_v20 = vld [vmem:[#allocation5_spill] sm:$0xff] }
 0x15d   :  { %v381_v2 = vmul.f32 %v1319_v39, %v380_v46  ;;  %v1459_v46 = vsel %vm307_vm10, %v395_v61, 0.0 }
 0x15f   :  { %v385_v12 = vsel %vm1414_vm9, %v1319_v39, %v381_v2 }
 0x162   :  { %v1294_v38 = vpop.f32.mrf.mxu1 }
 0x163   :  { %v572_v18 = vmul.f32 %v1294_v38, %v1459_v46 }
 0x16a   :  { %v1312_v32 = vpop.f32.mrf.mxu1 }
 0x16b   :  { %v573_v39 = vmul.f32 %v1312_v32, %v1443_v41  ;;  %v1479_v32 = vsel %vm304_vm15, %v365_v58, 0.0 }
 0x16c   :  { %v569_v17 = vmul.f32 %v1273_v62, %v1479_v32  ;;  %v1634_v62 = vpack.c.bf16 %v1030_v40, %v966_v15  ;;  %v561_v15 = vpack.c.bf16 %v1057_v53, %v980_v21  ;;  %v562_v40 = vpack.c.bf16 %v968_v16, %v937_v3 }
 0x16e   :  { %v583_v38 = vpack.c.bf16 %v570_v25, %v569_v17 }
 0x172   :  { %v1338_v1 = vpop.f32.mrf.mxu1 }
 0x173   :  { %v574_v33 = vmul.f32 %v1338_v1, %v1420_v55  ;;  %v1467_v1 = vsel %vm306_vm12, %v385_v12, 0.0 }
 0x174   :  { %v571_v45 = vmul.f32 %v1289_v26, %v1467_v1  ;;  %v557_v26 = vpack.c.bf16 %v1060_v54, %v1038_v43  ;;  %v559_v43 = vpack.c.bf16 %v999_v28, %v1068_v57  ;;  %v560_v54 = vpack.c.bf16 %v997_v27, %v985_v23 }
 0x175   :  { %v585_v10 = vpack.c.bf16 %v574_v33, %v573_v39 }
 0x176   :  { %v584_v37 = vpack.c.bf16 %v572_v18, %v571_v45 }
 0x17a   :  { %v542_v47 = vpop.f32.mrf.mxu1 }
 0x17b   :  { %v575_v52 = vmul.f32 %v542_v47, %v1424_v4 }
 0x182   :  { %v544_v34 = vpop.f32.mrf.mxu1 }
 0x183   :  { %v576_v11 = vmul.f32 %v544_v34, %v1426_v59 }
 0x185   :  { %v586_v47 = vpack.c.bf16 %v576_v11, %v575_v52  ;;  %v1637_v52 = vld [vmem:[#allocation3_spill] sm:$0xff] }
 0x187   :  { %591 = vmatpush.bf16.msra.mxu2 %v586_v47  ;;  %725 = vmatpush.bf16.msra.mxu3 %v586_v47 }
 0x18b   :  { %592 = vmatpush.bf16.msra.mxu2 %v585_v10  ;;  %726 = vmatpush.bf16.msra.mxu3 %v585_v10 }
 0x18f   :  { %593 = vmatpush.bf16.msra.mxu2 %v584_v37  ;;  %727 = vmatpush.bf16.msra.mxu3 %v584_v37 }
 0x193   :  { %594 = vmatpush.bf16.msra.mxu2 %v583_v38  ;;  %728 = vmatpush.bf16.msra.mxu3 %v583_v38 }
 0x197   :  { %595 = vmatpush.bf16.msra.mxu2 %v1257_v50  ;;  %729 = vmatpush.bf16.msra.mxu3 %v1257_v50 }
 0x19b   :  { %596 = vmatpush.bf16.msra.mxu2 %v1199_v35  ;;  %730 = vmatpush.bf16.msra.mxu3 %v1199_v35 }
 0x19e   :  { %597 = vmatmul.bf16.vlgmr.msra.gmra.mxu2 %v557_v26  ;;  %627 = vmatmul.bf16.vlgmr.msra.gmra.mxu3 %v1634_v62 }
 0x1ae   :  { %602 = vmatmul.bf16.gmra.mxu2 %v558_v14  ;;  %632 = vmatmul.bf16.gmra.mxu3 %v564_v19 }
 0x1be   :  { %607 = vmatmul.bf16.gmra.mxu2 %v559_v43 }
 0x1ce   :  { %612 = vmatmul.bf16.gmra.mxu2 %v560_v54 }
 0x1de   :  { %617 = vmatmul.bf16.gmra.mxu2 %v561_v15 }
 0x1ee   :  { %622 = vmatmul.bf16.gmra.mxu2 %v562_v40 }
 0x221   :  { %v598_v28 = vpop.f32.mrf.mxu2  ;;  %v628_v42 = vpop.f32.mrf.mxu3 }
 0x222   :  { %v638_v57 = vmul.f32 %v598_v28, %v1183_v6  ;;  %v650_v23 = vmul.f32 %v628_v42, %v1277_v63 }
 0x224   :  { %v655_v27 = vadd.f32 %v1509_v13, %v638_v57  ;;  %v667_v21 = vadd.f32 %v1509_v13, %v650_v23 }
 0x226   :  { %v671_v53 = vmax.f32 %v655_v27, 0.0  ;;  %v683_v60 = vmax.f32 %v667_v21, 0.0 }
 0x228   :  { %687 = vst [vmem:[%s1597_s6] sm:$0xff] %v671_v53 }
 0x229   :  { %699 = vst [vmem:[%s1597_s6 + $0x60] sm:$0xff] %v683_v60  ;;  %v600_v3 = vpop.f32.mrf.mxu2  ;;  %v630_v16 = vpop.f32.mrf.mxu3 }
 0x22a   :  { %v639_v6 = vmul.f32 %v600_v3, %v1185_v7  ;;  %v651_v35 = vmul.f32 %v630_v16, %v1279_v5 }
 0x22c   :  { %v656_v50 = vadd.f32 %v1509_v13, %v639_v6  ;;  %v668_v63 = vadd.f32 %v1509_v13, %v651_v35 }
 0x22e   :  { %v672_v29 = vmax.f32 %v656_v50, 0.0  ;;  %v684_v44 = vmax.f32 %v668_v63, 0.0 }
 0x230   :  { %688 = vst [vmem:[%s1597_s6 + $0x8] sm:$0xff] %v672_v29 }
 0x231   :  { %700 = vst [vmem:[%s1597_s6 + $0x68] sm:$0xff] %v684_v44  ;;  %v603_v36 = vpop.f32.mrf.mxu2  ;;  %v633_v48 = vpop.f32.mrf.mxu3 }
 0x232   :  { %v640_v7 = vmul.f32 %v603_v36, %v1635_v49  ;;  %v652_v5 = vmul.f32 %v633_v48, %v1636_v24 }
 0x234   :  { %v657_v2 = vadd.f32 %v1509_v13, %v640_v7  ;;  %v669_v30 = vadd.f32 %v1509_v13, %v652_v5 }
 0x236   :  { %v673_v31 = vmax.f32 %v657_v2, 0.0  ;;  %v685_v51 = vmax.f32 %v669_v30, 0.0 }
 0x238   :  { %689 = vst [vmem:[%s1597_s6 + $0x10] sm:$0xff] %v673_v31 }
 0x239   :  { %701 = vst [vmem:[%s1597_s6 + $0x70] sm:$0xff] %v685_v51  ;;  %v605_v34 = vpop.f32.mrf.mxu2  ;;  %v635_v61 = vpop.f32.mrf.mxu3 }
 0x23a   :  { %v641_v11 = vmul.f32 %v605_v34, %v1637_v52  ;;  %v653_v56 = vmul.f32 %v635_v61, %v1638_v20 }
 0x23c   :  { %v658_v12 = vadd.f32 %v1509_v13, %v641_v11  ;;  %v670_v33 = vadd.f32 %v1509_v13, %v653_v56 }
 0x23e   :  { %v674_v47 = vmax.f32 %v658_v12, 0.0  ;;  %v686_v8 = vmax.f32 %v670_v33, 0.0 }
 0x240   :  { %690 = vst [vmem:[%s1597_s6 + $0x18] sm:$0xff] %v674_v47 }
 0x241   :  { %702 = vst [vmem:[%s1597_s6 + $0x78] sm:$0xff] %v686_v8  ;;  %v608_v9 = vpop.f32.mrf.mxu2 }
 0x242   :  { %v642_v39 = vmul.f32 %v608_v9, %v1479_v32 }
 0x244   :  { %v659_v58 = vadd.f32 %v1509_v13, %v642_v39 }
 0x246   :  { %v675_v18 = vmax.f32 %v659_v58, 0.0 }
 0x248   :  { %691 = vst [vmem:[%s1597_s6 + $0x20] sm:$0xff] %v675_v18 }
 0x249   :  { %v610_v10 = vpop.f32.mrf.mxu2 }
 0x24a   :  { %v643_v45 = vmul.f32 %v610_v10, %v1475_v22 }
 0x24c   :  { %v660_v25 = vadd.f32 %v1509_v13, %v643_v45 }
 0x24e   :  { %v676_v37 = vmax.f32 %v660_v25, 0.0 }
 0x250   :  { %692 = vst [vmem:[%s1597_s6 + $0x28] sm:$0xff] %v676_v37 }
 0x251   :  { %v613_v17 = vpop.f32.mrf.mxu2 }
 0x252   :  { %v644_v32 = vmul.f32 %v613_v17, %v1467_v1 }
 0x254   :  { %v661_v38 = vadd.f32 %v1509_v13, %v644_v32 }
 0x256   :  { %v677_v26 = vmax.f32 %v661_v38, 0.0 }
 0x258   :  { %693 = vst [vmem:[%s1597_s6 + $0x30] sm:$0xff] %v677_v26 }
 0x259   :  { %v615_v62 = vpop.f32.mrf.mxu2 }
 0x25a   :  { %v645_v22 = vmul.f32 %v615_v62, %v1459_v46 }
 0x25c   :  { %v662_v14 = vadd.f32 %v1509_v13, %v645_v22 }
 0x25e   :  { %v678_v19 = vmax.f32 %v662_v14, 0.0 }
 0x260   :  { %694 = vst [vmem:[%s1597_s6 + $0x38] sm:$0xff] %v678_v19 }
 0x261   :  { %v618_v43 = vpop.f32.mrf.mxu2 }
 0x262   :  { %v646_v1 = vmul.f32 %v618_v43, %v1443_v41 }
 0x264   :  { %v663_v54 = vadd.f32 %v1509_v13, %v646_v1 }
 0x266   :  { %v679_v15 = vmax.f32 %v663_v54, 0.0 }
 0x268   :  { %695 = vst [vmem:[%s1597_s6 + $0x40] sm:$0xff] %v679_v15 }
 0x269   :  { %v620_v40 = vpop.f32.mrf.mxu2 }
 0x26a   :  { %v647_v46 = vmul.f32 %v620_v40, %v1420_v55 }
 0x26c   :  { %v664_v0 = vadd.f32 %v1509_v13, %v647_v46 }
 0x26e   :  { %v680_v28 = vmax.f32 %v664_v0, 0.0 }
 0x270   :  { %696 = vst [vmem:[%s1597_s6 + $0x48] sm:$0xff] %v680_v28 }
 0x271   :  { %v623_v42 = vpop.f32.mrf.mxu2 }
 0x272   :  { %v648_v41 = vmul.f32 %v623_v42, %v1424_v4 }
 0x274   :  { %v665_v57 = vadd.f32 %v1509_v13, %v648_v41 }
 0x276   :  { %v681_v23 = vmax.f32 %v665_v57, 0.0 }
 0x278   :  { %697 = vst [vmem:[%s1597_s6 + $0x50] sm:$0xff] %v681_v23 }
 0x279   :  { %v625_v27 = vpop.f32.mrf.mxu2 }
 0x27a   :  { %v649_v55 = vmul.f32 %v625_v27, %v1426_v59 }
 0x27c   :  { %v666_v21 = vadd.f32 %v1509_v13, %v649_v55 }
 0x27e   :  { %v682_v53 = vmax.f32 %v666_v21, 0.0 }
 0x280   :  { %698 = vst [vmem:[%s1597_s6 + $0x58] sm:$0xff] %v682_v53 }

// kernel: graph_unet_forward.9
= control target key start
LH: loop header
LB: loop body
LE: loop exit
PB: predicated region body
PF: predicated region fallthrough
CT: control target
= control target key end

     0   :  { %v185_v43 = vlaneseq  ;;  %s1575_s3 = inlined_call_operand.vmem [shape: f32[128,128], index: 3, kind: input, shape index: {}]   ;;  %s1576_s2 = inlined_call_operand.vmem [shape: f32[128,128], index: 2, kind: input, shape index: {}]   ;;  %s1577_s0 = inlined_call_operand.vmem [shape: f32[128,128], index: 0, kind: input, shape index: {}]   ;;  %s1578_s4 = inlined_call_operand.vmem [shape: f32[128,128], index: 4, kind: input, shape index: {}]   ;;  %s1579_s1 = inlined_call_operand.vmem [shape: f32[128,128], index: 1, kind: input, shape index: {}]   ;;  %s1580_s5 = inlined_call_operand.vmem [shape: f32[8,128], index: 5, kind: input, shape index: {}]   ;;  %s1581_s6 = inlined_call_operand.vmem [shape: f32[128,128], index: 6, kind: output, shape index: {}]  }
   0x1   :  { %v61_v0 = vld [vmem:[%s1575_s3 + $0x70] sm:$0xff]  ;;  %v62_v1 = vld [vmem:[%s1575_s3 + $0x78] sm:$0xff]  ;;  %v59_v2 = vld [vmem:[%s1575_s3 + $0x60] sm:$0xff] }
   0x2   :  { %v70_v3 = vpack.c.bf16 %v62_v1, %v61_v0  ;;  %v60_v4 = vld [vmem:[%s1575_s3 + $0x68] sm:$0xff]  ;;  %v57_v6 = vld [vmem:[%s1575_s3 + $0x50] sm:$0xff]  ;;  %v58_v7 = vld [vmem:[%s1575_s3 + $0x58] sm:$0xff]  ;;  %v875_v46 = vshrl.u32 %v185_v43, 7  ;;  %v877_v47 = vand.u32 127, %v185_v43 }
   0x3   :  { %v69_v5 = vpack.c.bf16 %v60_v4, %v59_v2  ;;  %v68_v8 = vpack.c.bf16 %v58_v7, %v57_v6  ;;  %v55_v9 = vld [vmem:[%s1575_s3 + $0x40] sm:$0xff]  ;;  %v56_v10 = vld [vmem:[%s1575_s3 + $0x48] sm:$0xff]  ;;  %v53_v12 = vld [vmem:[%s1575_s3 + $0x30] sm:$0xff] }
   0x4   :  { %71 = vmatpush.bf16.msra.mxu0 %v70_v3  ;;  %691 = vmatpush.bf16.msra.mxu3 %v70_v3  ;;  %v67_v11 = vpack.c.bf16 %v56_v10, %v55_v9  ;;  %v54_v13 = vld [vmem:[%s1575_s3 + $0x38] sm:$0xff]  ;;  %v51_v15 = vld [vmem:[%s1575_s3 + $0x20] sm:$0xff]  ;;  %v52_v16 = vld [vmem:[%s1575_s3 + $0x28] sm:$0xff]  ;;  %v200_v52 = vadd.s32 112, %v875_v46  ;;  %v196_v53 = vadd.s32 80, %v875_v46  ;;  %v201_v54 = vadd.s32 120, %v875_v46 }
   0x5   :  { %v66_v14 = vpack.c.bf16 %v54_v13, %v53_v12  ;;  %v65_v17 = vpack.c.bf16 %v52_v16, %v51_v15  ;;  %v49_v18 = vld [vmem:[%s1575_s3 + $0x10] sm:$0xff]  ;;  %v50_v19 = vld [vmem:[%s1575_s3 + $0x18] sm:$0xff]  ;;  %v47_v21 = vld [vmem:[%s1575_s3] sm:$0xff]  ;;  %v197_v57 = vadd.s32 88, %v875_v46  ;;  %v198_v62 = vadd.s32 96, %v875_v46 }
   0x6   :  { %v64_v20 = vpack.c.bf16 %v50_v19, %v49_v18  ;;  %v48_v22 = vld [vmem:[%s1575_s3 + $0x8] sm:$0xff]  ;;  %v23_v23 = vld [vmem:[%s1576_s2] sm:$0xff]  ;;  %v25_v30 = vld [vmem:[%s1576_s2 + $0x10] sm:$0xff]  ;;  %vm218_vm2 = vcmp.eq.s32.totalorder %v200_v52, %v877_v47  ;;  %vm214_vm3 = vcmp.eq.s32.totalorder %v196_v53, %v877_v47  ;;  %vm219_vm6 = vcmp.eq.s32.totalorder %v201_v54, %v877_v47 }
   0x7   :  { %v63_v24 = vpack.c.bf16 %v48_v22, %v47_v21  ;;  %v24_v25 = vld [vmem:[%s1576_s2 + $0x8] sm:$0xff]  ;;  %v35_v26 = vld [vmem:[%s1576_s2 + $0x60] sm:$0xff]  ;;  %v26_v31 = vld [vmem:[%s1576_s2 + $0x18] sm:$0xff]  ;;  %vm215_vm8 = vcmp.eq.s32.totalorder %v197_v57, %v877_v47  ;;  %vm216_vm10 = vcmp.eq.s32.totalorder %v198_v62, %v877_v47  ;;  %v192_v10 = vadd.s32 48, %v875_v46 }
   0x8   :  { %72 = vmatpush.bf16.msra.mxu0 %v69_v5  ;;  %692 = vmatpush.bf16.msra.mxu3 %v69_v5  ;;  %v36_v27 = vld [vmem:[%s1576_s2 + $0x68] sm:$0xff]  ;;  %v39_v28 = vpack.c.bf16 %v24_v25, %v23_v23  ;;  %v37_v32 = vld [vmem:[%s1576_s2 + $0x70] sm:$0xff]  ;;  %v38_v33 = vld [vmem:[%s1576_s2 + $0x78] sm:$0xff]  ;;  %v40_v34 = vpack.c.bf16 %v26_v31, %v25_v30  ;;  %v193_v18 = vadd.s32 56, %v875_v46  ;;  %v199_v31 = vadd.s32 104, %v875_v46 }
   0x9   :  { %v45_v29 = vpack.c.bf16 %v36_v27, %v35_v26  ;;  %v46_v35 = vpack.c.bf16 %v38_v33, %v37_v32  ;;  %v27_v36 = vld [vmem:[%s1576_s2 + $0x20] sm:$0xff]  ;;  %v28_v37 = vld [vmem:[%s1576_s2 + $0x28] sm:$0xff]  ;;  %v29_v39 = vld [vmem:[%s1576_s2 + $0x30] sm:$0xff]  ;;  %v188_v32 = vadd.s32 16, %v875_v46 }
   0xa   :  { %v41_v38 = vpack.c.bf16 %v28_v37, %v27_v36  ;;  %v30_v40 = vld [vmem:[%s1576_s2 + $0x38] sm:$0xff]  ;;  %v166_v42 = vld [vmem:[%s1577_s0 + $0x70] sm:$0xff]  ;;  %v180_v50 = vld [vmem:[%s1578_s4 + $0x60] sm:$0xff] }
   0xb   :  { %v42_v41 = vpack.c.bf16 %v30_v40, %v29_v39  ;;  %v182_v44 = vld [vmem:[%s1578_s4 + $0x70] sm:$0xff]  ;;  %v183_v45 = vld [vmem:[%s1578_s4 + $0x78] sm:$0xff]  ;;  %v181_v51 = vld [vmem:[%s1578_s4 + $0x68] sm:$0xff]  ;;  %vm234_vm0 = vcmp.eq.f32.partialorder %v166_v42, 0.0 }
   0xc   :  { %73 = vmatpush.bf16.msra.mxu0 %v68_v8  ;;  %693 = vmatpush.bf16.msra.mxu3 %v68_v8  ;;  %v162_v48 = vld [vmem:[%s1577_s0 + $0x50] sm:$0xff]  ;;  %v507_v49 = vpack.c.bf16 %v183_v45, %v182_v44  ;;  %v506_v55 = vpack.c.bf16 %v181_v51, %v180_v50  ;;  %v167_v56 = vld [vmem:[%s1577_s0 + $0x78] sm:$0xff]  ;;  %vm250_vm4 = vmand %vm218_vm2, %vm234_vm0  ;;  %v194_v8 = vadd.s32 64, %v875_v46 }
   0xd   :  { %vm230_vm1 = vcmp.eq.f32.partialorder %v162_v48, 0.0  ;;  %v178_v58 = vld [vmem:[%s1578_s4 + $0x50] sm:$0xff]  ;;  %v179_v59 = vld [vmem:[%s1578_s4 + $0x58] sm:$0xff]  ;;  %v164_v61 = vld [vmem:[%s1577_s0 + $0x60] sm:$0xff]  ;;  %v914_v0 = vsel %vm250_vm4, 2.0, %v166_v42  ;;  %vm235_vm7 = vcmp.eq.f32.partialorder %v167_v56, 0.0 }
   0xe   :  { %508 = vmatpush.bf16.msra.mxu1 %v507_v49  ;;  %v163_v60 = vld [vmem:[%s1577_s0 + $0x58] sm:$0xff]  ;;  %v31_v63 = vld [vmem:[%s1576_s2 + $0x40] sm:$0xff]  ;;  %vm246_vm5 = vmand %vm214_vm3, %vm230_vm1  ;;  %v505_v1 = vpack.c.bf16 %v179_v59, %v178_v58  ;;  %296 = vadd.xlane.f32.xlu0 %v914_v0  ;;  %vm232_vm11 = vcmp.eq.f32.partialorder %v164_v61, 0.0  ;;  %vm212_vm15 = vcmp.eq.s32.totalorder %v194_v8, %v877_v47  ;;  %vm210_vm1 = vcmp.eq.s32.totalorder %v192_v10, %v877_v47 }
   0xf   :  { %v32_v2 = vld [vmem:[%s1576_s2 + $0x48] sm:$0xff]  ;;  %v921_v3 = vsel %vm246_vm5, 2.0, %v162_v48  ;;  %vm231_vm9 = vcmp.eq.f32.partialorder %v163_v60, 0.0  ;;  %v176_v4 = vld [vmem:[%s1578_s4 + $0x40] sm:$0xff]  ;;  %vm251_vm12 = vmand %vm219_vm6, %vm235_vm7  ;;  %vm211_vm5 = vcmp.eq.s32.totalorder %v193_v18, %v877_v47  ;;  %v195_v48 = vadd.s32 72, %v875_v46 }
  0x10   :  { %74 = vmatpush.bf16.msra.mxu0 %v67_v11  ;;  %694 = vmatpush.bf16.msra.mxu3 %v67_v11  ;;  %v177_v5 = vld [vmem:[%s1578_s4 + $0x48] sm:$0xff]  ;;  %v43_v6 = vpack.c.bf16 %v32_v2, %v31_v63  ;;  %vm247_vm13 = vmand %vm215_vm8, %vm231_vm9  ;;  %v160_v7 = vld [vmem:[%s1577_s0 + $0x40] sm:$0xff]  ;;  %v945_v13 = vsel %vm251_vm12, 2.0, %v167_v56  ;;  %v189_v58 = vadd.s32 24, %v875_v46 }
  0x11   :  { %288 = vadd.xlane.f32.xlu2 %v921_v3  ;;  %v504_v9 = vpack.c.bf16 %v177_v5, %v176_v4  ;;  %vm248_vm14 = vmand %vm216_vm10, %vm232_vm11  ;;  %v174_v11 = vld [vmem:[%s1578_s4 + $0x30] sm:$0xff]  ;;  %v175_v12 = vld [vmem:[%s1578_s4 + $0x38] sm:$0xff]  ;;  %v952_v16 = vsel %vm247_vm13, 2.0, %v163_v60  ;;  %vm228_vm0 = vcmp.eq.f32.partialorder %v160_v7, 0.0  ;;  %vm217_vm11 = vcmp.eq.s32.totalorder %v199_v31, %v877_v47 }
  0x12   :  { %509 = vmatpush.bf16.msra.mxu1 %v506_v55  ;;  %v950_v15 = vsel %vm248_vm14, 2.0, %v164_v61  ;;  %vm244_vm3 = vmand %vm212_vm15, %vm228_vm0  ;;  %v159_v19 = vld [vmem:[%s1577_s0 + $0x38] sm:$0xff]  ;;  %v157_v22 = vld [vmem:[%s1577_s0 + $0x28] sm:$0xff]  ;;  %vm206_vm13 = vcmp.eq.s32.totalorder %v188_v32, %v877_v47  ;;  %vm204_vm0 = vcmp.eq.s32.totalorder %v875_v46, %v877_v47 }
  0x13   :  { %292 = vadd.xlane.f32.xlu1 %v950_v15  ;;  %v964_v21 = vsel %vm244_vm3, 2.0, %v160_v7  ;;  %vm227_vm6 = vcmp.eq.f32.partialorder %v159_v19, 0.0  ;;  %v34_v25 = vld [vmem:[%s1576_s2 + $0x58] sm:$0xff]  ;;  %vm225_vm8 = vcmp.eq.f32.partialorder %v157_v22, 0.0  ;;  %v173_v30 = vld [vmem:[%s1578_s4 + $0x28] sm:$0xff]  ;;  %v152_v36 = vld [vmem:[%s1577_s0] sm:$0xff] }
  0x14   :  { %75 = vmatpush.bf16.msra.mxu0 %v66_v14  ;;  %695 = vmatpush.bf16.msra.mxu3 %v66_v14  ;;  %v158_v14 = vld [vmem:[%s1577_s0 + $0x30] sm:$0xff]  ;;  %vm243_vm9 = vmand %vm211_vm5, %vm227_vm6  ;;  %v168_v44 = vld [vmem:[%s1578_s4] sm:$0xff] }
  0x15   :  { %vm226_vm2 = vcmp.eq.f32.partialorder %v158_v14, 0.0  ;;  %v981_v27 = vsel %vm243_vm9, 2.0, %v159_v19  ;;  %v170_v37 = vld [vmem:[%s1578_s4 + $0x10] sm:$0xff]  ;;  %v169_v45 = vld [vmem:[%s1578_s4 + $0x8] sm:$0xff]  ;;  %v156_v56 = vld [vmem:[%s1577_s0 + $0x20] sm:$0xff] }
  0x16   :  { %510 = vmatpush.bf16.msra.mxu1 %v505_v1  ;;  %298 = vadd.xlane.f32.xlu0 %v945_v13  ;;  %vm242_vm4 = vmand %vm210_vm1, %vm226_vm2  ;;  %vm220_vm1 = vcmp.eq.f32.partialorder %v152_v36, 0.0  ;;  %v500_v50 = vpack.c.bf16 %v169_v45, %v168_v44  ;;  %v161_v51 = vld [vmem:[%s1577_s0 + $0x48] sm:$0xff]  ;;  %v155_v59 = vld [vmem:[%s1577_s0 + $0x18] sm:$0xff] }
  0x17   :  { %v969_v23 = vsel %vm242_vm4, 2.0, %v158_v14  ;;  %vm236_vm3 = vmand %vm204_vm0, %vm220_vm1  ;;  %v153_v52 = vld [vmem:[%s1577_s0 + $0x8] sm:$0xff]  ;;  %vm213_vm4 = vcmp.eq.s32.totalorder %v195_v48, %v877_v47  ;;  %vm229_vm5 = vcmp.eq.f32.partialorder %v161_v51, 0.0  ;;  %v120_v62 = vld [vmem:[%s1579_s1] sm:$0xff] }
  0x18   :  { %76 = vmatpush.bf16.msra.mxu0 %v65_v17  ;;  %696 = vmatpush.bf16.msra.mxu3 %v65_v17  ;;  %v503_v17 = vpack.c.bf16 %v175_v12, %v174_v11  ;;  %v1022_v43 = vsel %vm236_vm3, 2.0, %v152_v36  ;;  %v122_v12 = vld [vmem:[%s1579_s1 + $0x10] sm:$0xff]  ;;  %v123_v14 = vld [vmem:[%s1579_s1 + $0x18] sm:$0xff] }
  0x19   :  { %290 = vadd.xlane.f32.xlu2 %v952_v16  ;;  %v126_v44 = vld [vmem:[%s1579_s1 + $0x30] sm:$0xff]  ;;  %v127_v45 = vld [vmem:[%s1579_s1 + $0x38] sm:$0xff] }
  0x1a   :  { %511 = vmatpush.bf16.msra.mxu1 %v504_v9 }
  0x1c   :  { %77 = vmatpush.bf16.msra.mxu0 %v64_v20  ;;  %697 = vmatpush.bf16.msra.mxu3 %v64_v20  ;;  %v191_v20 = vadd.s32 40, %v875_v46 }
  0x1e   :  { %512 = vmatpush.bf16.msra.mxu1 %v503_v17  ;;  %284 = vadd.xlane.f32.xlu0 %v964_v21  ;;  %vm209_vm7 = vcmp.eq.s32.totalorder %v191_v20, %v877_v47 }
  0x1f   :  { %vm241_vm10 = vmand %vm209_vm7, %vm225_vm8  ;;  %vm221_vm7 = vcmp.eq.f32.partialorder %v153_v52, 0.0 }
  0x20   :  { %78 = vmatpush.bf16.msra.mxu0 %v63_v24  ;;  %698 = vmatpush.bf16.msra.mxu3 %v63_v24  ;;  %v33_v24 = vld [vmem:[%s1576_s2 + $0x50] sm:$0xff]  ;;  %vm245_vm8 = vmand %vm213_vm4, %vm229_vm5 }
  0x21   :  { %280 = vadd.xlane.f32.xlu2 %v969_v23  ;;  %v44_v26 = vpack.c.bf16 %v34_v25, %v33_v24  ;;  %v1041_v53 = vsel %vm245_vm8, 2.0, %v161_v51  ;;  %v135_v25 = vld [vmem:[%s1579_s1 + $0x78] sm:$0xff] }
  0x23   :  { %79 = vmatmul.bf16.vlgmr.msra.gmra.mxu0 %v39_v28  ;;  %109 = vmatmul.bf16.vlgmr.msra.gmra.mxu3 %v45_v29  ;;  %v983_v28 = vsel %vm241_vm10, 2.0, %v157_v22  ;;  %v172_v29 = vld [vmem:[%s1578_s4 + $0x20] sm:$0xff]  ;;  %v134_v22 = vld [vmem:[%s1579_s1 + $0x70] sm:$0xff] }
  0x24   :  { %699 = vmatpush.bf16.msrb.mxu3 %v507_v49  ;;  %v502_v33 = vpack.c.bf16 %v173_v30, %v172_v29  ;;  %v187_v49 = vadd.s32 8, %v875_v46 }
  0x26   :  { %282 = vadd.xlane.f32.xlu0 %v981_v27  ;;  %513 = vmatpush.bf16.msra.mxu1 %v502_v33  ;;  %vm205_vm6 = vcmp.eq.s32.totalorder %v187_v49, %v877_v47 }
  0x27   :  { %vm237_vm9 = vmand %vm205_vm6, %vm221_vm7 }
  0x28   :  { %700 = vmatpush.bf16.msrb.mxu3 %v506_v55  ;;  %v1044_v54 = vsel %vm237_vm9, 2.0, %v153_v52  ;;  %v190_v55 = vadd.s32 32, %v875_v46  ;;  %v121_v46 = vld [vmem:[%s1579_s1 + $0x8] sm:$0xff] }
  0x29   :  { %278 = vadd.xlane.f32.xlu2 %v983_v28 }
  0x2a   :  { %vm208_vm10 = vcmp.eq.s32.totalorder %v190_v55, %v877_v47 }
  0x2c   :  { %701 = vmatpush.bf16.msrb.mxu3 %v505_v1 }
  0x30   :  { %702 = vmatpush.bf16.msrb.mxu3 %v504_v9 }
  0x31   :  { %268 = vadd.xlane.f32.xlu2 %v1022_v43 }
  0x33   :  { %84 = vmatmul.bf16.gmra.mxu0 %v40_v34  ;;  %114 = vmatmul.bf16.gmra.mxu3 %v46_v35  ;;  %v165_v34 = vld [vmem:[%s1577_s0 + $0x68] sm:$0xff]  ;;  %v154_v35 = vld [vmem:[%s1577_s0 + $0x10] sm:$0xff] }
  0x34   :  { %703 = vmatpush.bf16.msrb.mxu3 %v503_v17  ;;  %vm233_vm12 = vcmp.eq.f32.partialorder %v165_v34, 0.0  ;;  %vm222_vm14 = vcmp.eq.f32.partialorder %v154_v35, 0.0 }
  0x35   :  { %vm249_vm15 = vmand %vm217_vm11, %vm233_vm12  ;;  %vm224_vm11 = vcmp.eq.f32.partialorder %v156_v56, 0.0 }
  0x36   :  { %v1014_v40 = vsel %vm249_vm15, 2.0, %v165_v34  ;;  %vm238_vm2 = vmand %vm206_vm13, %vm222_vm14  ;;  %vm207_vm13 = vcmp.eq.s32.totalorder %v189_v58, %v877_v47  ;;  %vm223_vm14 = vcmp.eq.f32.partialorder %v155_v59, 0.0  ;;  %v132_v47 = vld [vmem:[%s1579_s1 + $0x60] sm:$0xff]  ;;  %v125_v34 = vld [vmem:[%s1579_s1 + $0x28] sm:$0xff] }
  0x37   :  { %294 = vadd.xlane.f32.xlu1 %v1014_v40  ;;  %v1019_v42 = vsel %vm238_vm2, 2.0, %v154_v35  ;;  %vm240_vm12 = vmand %vm208_vm10, %vm224_vm11 }
  0x38   :  { %704 = vmatpush.bf16.msrb.mxu3 %v502_v33  ;;  %272 = vadd.xlane.f32.xlu0 %v1019_v42  ;;  %v1052_v57 = vsel %vm240_vm12, 2.0, %v156_v56  ;;  %vm239_vm15 = vmand %vm207_vm13, %vm223_vm14  ;;  %v124_v33 = vld [vmem:[%s1579_s1 + $0x20] sm:$0xff] }
  0x39   :  { %v1060_v60 = vsel %vm239_vm15, 2.0, %v155_v59  ;;  %v128_v59 = vld [vmem:[%s1579_s1 + $0x40] sm:$0xff] }
  0x3f   :  { %286 = vadd.xlane.f32.xlu1 %v1041_v53 }
  0x40   :  { %270 = vadd.xlane.f32.xlu0 %v1044_v54 }
  0x43   :  { %89 = vmatmul.bf16.gmra.mxu0 %v41_v38  ;;  %v171_v38 = vld [vmem:[%s1578_s4 + $0x18] sm:$0xff] }
  0x44   :  { %v501_v39 = vpack.c.bf16 %v171_v38, %v170_v37 }
  0x46   :  { %514 = vmatpush.bf16.msra.mxu1 %v501_v39  ;;  %705 = vmatpush.bf16.msrb.mxu3 %v501_v39 }
  0x47   :  { %276 = vadd.xlane.f32.xlu1 %v1052_v57 }
  0x4a   :  { %515 = vmatpush.bf16.msra.mxu1 %v500_v50  ;;  %706 = vmatpush.bf16.msrb.mxu3 %v500_v50 }
  0x4f   :  { %274 = vadd.xlane.f32.xlu1 %v1060_v60 }
  0x53   :  { %94 = vmatmul.bf16.gmra.mxu0 %v42_v41 }
  0x63   :  { %99 = vmatmul.bf16.gmra.mxu0 %v43_v6  ;;  %v133_v6 = vld [vmem:[%s1579_s1 + $0x68] sm:$0xff] }
  0x73   :  { %104 = vmatmul.bf16.gmra.mxu0 %v44_v26 }
  0x81   :  { %v1099_v52 = vpop.xlane.xlu0 %296 }
  0x84   :  { %v1101_v56 = vpop.xlane.xlu2 %288 }
  0x89   :  { %v1103_v58 = vpop.xlane.xlu0 %298 }
  0xa0   :  { %v80_v61 = vpop.f32.mrf.mxu0 }
  0xa1   :  { %v136_v2 = vadd.f32 %v120_v62, %v80_v61  ;;  %v129_v61 = vld [vmem:[%s1579_s1 + $0x48] sm:$0xff] }
  0xa6   :  { %v110_v63 = vpop.f32.mrf.mxu3 }
  0xa7   :  { %v148_v7 = vadd.f32 %v132_v47, %v110_v63 }
  0xa8   :  { %v82_v1 = vpop.f32.mrf.mxu0 }
  0xa9   :  { %v137_v4 = vadd.f32 %v121_v46, %v82_v1 }
  0xab   :  { %v492_v5 = vpack.c.bf16 %v137_v4, %v136_v2  ;;  %v1111_v2 = vpop.xlane.xlu2 %290  ;;  %v1113_v4 = vpop.xlane.xlu0 %284 }
  0xad   :  { %516 = vmatmul.bf16.vlgmr.msra.gmra.mxu1 %v492_v5  ;;  %v1115_v5 = vpop.xlane.xlu1 %292 }
  0xae   :  { %v112_v8 = vpop.f32.mrf.mxu3 }
  0xaf   :  { %v149_v9 = vadd.f32 %v133_v6, %v112_v8  ;;  %v130_v6 = vld [vmem:[%s1579_s1 + $0x50] sm:$0xff] }
  0xb0   :  { %v85_v10 = vpop.f32.mrf.mxu0 }
  0xb1   :  { %v498_v11 = vpack.c.bf16 %v149_v9, %v148_v7  ;;  %v138_v19 = vadd.f32 %v122_v12, %v85_v10  ;;  %v131_v7 = vld [vmem:[%s1579_s1 + $0x58] sm:$0xff] }
  0xb3   :  { %546 = vmatmul.bf16.vlgmr.msrb.gmra.mxu3 %v498_v11  ;;  %v1123_v9 = vpop.xlane.xlu2 %280  ;;  %v1125_v12 = vpop.xlane.xlu0 %282 }
  0xb6   :  { %v115_v17 = vpop.f32.mrf.mxu3 }
  0xb7   :  { %v150_v26 = vadd.f32 %v134_v22, %v115_v17  ;;  %v1127_v17 = vpop.xlane.xlu1 %294 }
  0xb8   :  { %v87_v18 = vpop.f32.mrf.mxu0 }
  0xb9   :  { %v139_v20 = vadd.f32 %v123_v14, %v87_v18 }
  0xbb   :  { %v493_v24 = vpack.c.bf16 %v139_v20, %v138_v19  ;;  %v1129_v18 = vpop.xlane.xlu2 %278  ;;  %v1131_v19 = vpop.xlane.xlu0 %272 }
  0xbc   :  { %vm342_vm8 = vweird.f32 %v1131_v19  ;;  %vm302_vm14 = vcmp.gt.f32.partialorder %v1131_v19, 0.0 }
  0xbd   :  { %521 = vmatmul.bf16.gmra.mxu1 %v493_v24 }
  0xbe   :  { %v117_v29 = vpop.f32.mrf.mxu3 }
  0xbf   :  { %v151_v30 = vadd.f32 %v135_v25, %v117_v29  ;;  %v1133_v20 = vpop.xlane.xlu1 %286 }
  0xc0   :  { %v90_v31 = vpop.f32.mrf.mxu0 }
  0xc1   :  { %v499_v32 = vpack.c.bf16 %v151_v30, %v150_v26  ;;  %v140_v36 = vadd.f32 %v124_v33, %v90_v31 }
  0xc3   :  { %551 = vmatmul.bf16.gmra.mxu3 %v499_v32  ;;  %v269_v22 = vpop.xlane.xlu2 %268  ;;  %v271_v24 = vpop.xlane.xlu0 %270 }
  0xc4   :  { %715 = vrsqrt.f32 %v269_v22  ;;  %vm322_vm0 = vweird.f32 %v269_v22  ;;  %vm332_vm2 = vweird.f32 %v271_v24  ;;  %vm300_vm6 = vcmp.gt.f32.partialorder %v269_v22, 0.0 }
  0xc5   :  { %717 = vrsqrt.f32 %v271_v24  ;;  %vm301_vm7 = vcmp.gt.f32.partialorder %v271_v24, 0.0 }
  0xc6   :  { %719 = vrsqrt.f32 %v1131_v19 }
  0xc7   :  { %v1135_v25 = vpop.xlane.xlu1 %276 }
  0xc8   :  { %v92_v35 = vpop.f32.mrf.mxu0 }
  0xc9   :  { %v141_v37 = vadd.f32 %v125_v34, %v92_v35 }
  0xca   :  { %v716_v26 = vpop.eup %715 }
  0xcb   :  { %v494_v38 = vpack.c.bf16 %v141_v37, %v140_v36  ;;  %v718_v29 = vpop.eup %717  ;;  %v317_v30 = vmul.f32 %v716_v26, %v269_v22  ;;  %vm323_vm1 = vweird.f32 %v716_v26 }
  0xcc   :  { %v327_v31 = vmul.f32 %v718_v29, %v271_v24  ;;  %v1141_v37 = vpop.eup %719  ;;  %vm333_vm3 = vweird.f32 %v718_v29  ;;  %vm1149_vm4 = vmor %vm322_vm0, %vm323_vm1  ;;  %vm442_vm0 = vweird.f32 %v1115_v5 }
  0xcd   :  { %526 = vmatmul.bf16.gmra.mxu1 %v494_v38  ;;  %v318_v32 = vmul.f32 %v716_v26, %v317_v30  ;;  %vm334_vm5 = vmor %vm332_vm2, %vm333_vm3  ;;  %vm343_vm9 = vweird.f32 %v1141_v37  ;;  %vm462_vm2 = vweird.f32 %v1099_v52 }
  0xce   :  { %v328_v33 = vmul.f32 %v718_v29, %v327_v31  ;;  %vm1194_vm12 = vmor %vm342_vm8, %vm343_vm9 }
  0xcf   :  { %v1137_v34 = vpop.xlane.xlu1 %274  ;;  %v319_v35 = vmul.f32 0.5, %v318_v32 }
  0xd0   :  { %v95_v39 = vpop.f32.mrf.mxu0  ;;  %721 = vrsqrt.f32 %v1137_v34  ;;  %v329_v36 = vmul.f32 0.5, %v328_v33  ;;  %vm352_vm10 = vweird.f32 %v1137_v34  ;;  %vm303_vm15 = vcmp.gt.f32.partialorder %v1137_v34, 0.0 }
  0xd1   :  { %v142_v49 = vadd.f32 %v126_v44, %v95_v39  ;;  %v320_v38 = vsub.f32 1.5, %v319_v35  ;;  %723 = vrsqrt.f32 %v1099_v52 }
  0xd2   :  { %v330_v39 = vsub.f32 1.5, %v329_v36  ;;  %725 = vrsqrt.f32 %v1103_v58 }
  0xd3   :  { %727 = vrsqrt.f32 %v1115_v5 }
  0xd4   :  { %729 = vrsqrt.f32 %v1127_v17 }
  0xd5   :  { %731 = vrsqrt.f32 %v1101_v56 }
  0xd6   :  { %v1143_v44 = vpop.eup %721  ;;  %733 = vrsqrt.f32 %v1111_v2 }
  0xd7   :  { %vm353_vm11 = vweird.f32 %v1143_v44  ;;  %735 = vrsqrt.f32 %v1133_v20 }
  0xd8   :  { %v97_v48 = vpop.f32.mrf.mxu0  ;;  %vm1199_vm13 = vmor %vm352_vm10, %vm353_vm11  ;;  %737 = vrsqrt.f32 %v1113_v4 }
  0xd9   :  { %v143_v50 = vadd.f32 %v127_v45, %v97_v48  ;;  %v337_v45 = vmul.f32 %v1141_v37, %v1131_v19  ;;  %739 = vrsqrt.f32 %v1125_v12 }
  0xda   :  { %741 = vrsqrt.f32 %v1123_v9 }
  0xdb   :  { %v495_v51 = vpack.c.bf16 %v143_v50, %v142_v49  ;;  %v321_v49 = vmul.f32 %v716_v26, %v320_v38  ;;  %v347_v50 = vmul.f32 %v1143_v44, %v1137_v34  ;;  %743 = vrsqrt.f32 %v1129_v18 }
  0xdc   :  { %745 = vrsqrt.f32 %v1135_v25 }
  0xdd   :  { %531 = vmatmul.bf16.gmra.mxu1 %v495_v51  ;;  %v331_v51 = vmul.f32 %v718_v29, %v330_v39 }
  0xe0   :  { %v100_v55 = vpop.f32.mrf.mxu0 }
  0xe1   :  { %v144_v46 = vadd.f32 %v128_v59, %v100_v55  ;;  %v338_v59 = vmul.f32 %v1141_v37, %v337_v45 }
  0xe8   :  { %v102_v62 = vpop.f32.mrf.mxu0 }
  0xe9   :  { %v145_v63 = vadd.f32 %v129_v61, %v102_v62  ;;  %v325_v61 = vsel %vm1149_vm4, %v716_v26, %v321_v49  ;;  %v348_v62 = vmul.f32 %v1143_v44, %v347_v50  ;;  %vm452_vm4 = vweird.f32 %v1127_v17 }
  0xeb   :  { %v496_v1 = vpack.c.bf16 %v145_v63, %v144_v46  ;;  %v335_v46 = vsel %vm334_vm5, %v718_v29, %v331_v51  ;;  %v1161_v63 = vpop.eup %723 }
  0xec   :  { %vm463_vm3 = vweird.f32 %v1161_v63 }
  0xed   :  { %536 = vmatmul.bf16.gmra.mxu1 %v496_v1  ;;  %v1163_v1 = vpop.eup %725  ;;  %vm1231_vm9 = vmor %vm462_vm2, %vm463_vm3  ;;  %vm432_vm2 = vweird.f32 %v1111_v2 }
  0xee   :  { %v467_v30 = vmul.f32 %v1163_v1, %v1103_v58  ;;  %vm473_vm8 = vweird.f32 %v1163_v1 }
  0xf0   :  { %v105_v47 = vpop.f32.mrf.mxu0  ;;  %v468_v45 = vmul.f32 %v1163_v1, %v467_v30 }
  0xf1   :  { %v146_v10 = vadd.f32 %v130_v6, %v105_v47  ;;  %v1165_v47 = vpop.eup %727  ;;  %v1167_v6 = vsel %vm300_vm6, %v325_v61, 0.0 }
  0xf2   :  { %v437_v24 = vmul.f32 %v1165_v47, %v1115_v5  ;;  %vm443_vm1 = vweird.f32 %v1165_v47 }
  0xf3   :  { %vm1223_vm6 = vmor %vm442_vm0, %vm443_vm1  ;;  %vm422_vm0 = vweird.f32 %v1101_v56 }
  0xf4   :  { %v438_v39 = vmul.f32 %v1165_v47, %v437_v24 }
  0xf8   :  { %v107_v8 = vpop.f32.mrf.mxu0 }
  0xf9   :  { %v147_v11 = vadd.f32 %v131_v7, %v107_v8  ;;  %v1169_v7 = vsel %vm301_vm7, %v335_v46, 0.0  ;;  %v1171_v8 = vpop.eup %729  ;;  %v469_v46 = vmul.f32 0.5, %v468_v45  ;;  %vm472_vm7 = vweird.f32 %v1103_v58 }
  0xfa   :  { %v447_v31 = vmul.f32 %v1171_v8, %v1127_v17  ;;  %vm453_vm5 = vweird.f32 %v1171_v8  ;;  %vm474_vm11 = vmor %vm472_vm7, %vm473_vm8  ;;  %vm402_vm7 = vweird.f32 %v1113_v4 }
  0xfb   :  { %v497_v14 = vpack.c.bf16 %v147_v11, %v146_v10  ;;  %v339_v10 = vmul.f32 0.5, %v338_v59  ;;  %v349_v11 = vmul.f32 0.5, %v348_v62  ;;  %v439_v62 = vmul.f32 0.5, %v438_v39  ;;  %vm1236_vm10 = vmor %vm452_vm4, %vm453_vm5 }
  0xfc   :  { %v448_v48 = vmul.f32 %v1171_v8, %v447_v31  ;;  %v470_v30 = vsub.f32 1.5, %v469_v46  ;;  %vm412_vm4 = vweird.f32 %v1133_v20 }
  0xfd   :  { %541 = vmatmul.bf16.gmra.mxu1 %v497_v14  ;;  %v457_v14 = vmul.f32 %v1161_v63, %v1099_v52  ;;  %v340_v32 = vsub.f32 1.5, %v339_v10  ;;  %v350_v33 = vsub.f32 1.5, %v349_v11 }
  0xfe   :  { %v449_v10 = vmul.f32 0.5, %v448_v48 }
  0xff   :  { %v458_v36 = vmul.f32 %v1161_v63, %v457_v14  ;;  %v341_v49 = vmul.f32 %v1141_v37, %v340_v32  ;;  %v351_v51 = vmul.f32 %v1143_v44, %v350_v33 }
 0x100   :  { %v450_v31 = vsub.f32 1.5, %v449_v10 }
 0x101   :  { %v345_v11 = vsel %vm1194_vm12, %v1141_v37, %v341_v49  ;;  %v355_v14 = vsel %vm1199_vm13, %v1143_v44, %v351_v51  ;;  %v471_v49 = vmul.f32 %v1163_v1, %v470_v30  ;;  %vm314_vm12 = vcmp.gt.f32.partialorder %v1099_v52, 0.0 }
 0x102   :  { %v1215_v19 = vsel %vm303_vm15, %v355_v14, 0.0  ;;  %v451_v45 = vmul.f32 %v1171_v8, %v450_v31  ;;  %vm312_vm13 = vcmp.gt.f32.partialorder %v1115_v5, 0.0  ;;  %vm315_vm15 = vcmp.gt.f32.partialorder %v1103_v58, 0.0 }
 0x103   :  { %1593 = vst [vmem:[#allocation3_spill] sm:$0xff] %v1215_v19  ;;  %v475_v52 = vsel %vm474_vm11, %v1163_v1, %v471_v49  ;;  %vm382_vm11 = vweird.f32 %v1123_v9 }
 0x104   :  { %v1265_v10 = vsel %vm315_vm15, %v475_v52, 0.0 }
 0x105   :  { %1601 = vst [vmem:[#allocation5_spill] sm:$0xff] %v1265_v10 }
 0x12a   :  { %v517_v55 = vpop.f32.mrf.mxu1 }
 0x12b   :  { %v565_v26 = vmul.f32 %v517_v55, %v1167_v6  ;;  %v459_v55 = vmul.f32 0.5, %v458_v36 }
 0x132   :  { %v519_v22 = vpop.f32.mrf.mxu1 }
 0x133   :  { %v566_v29 = vmul.f32 %v519_v22, %v1169_v7  ;;  %v460_v22 = vsub.f32 1.5, %v459_v55 }
 0x135   :  { %v1183_v35 = vpack.c.bf16 %v566_v29, %v565_v26  ;;  %v440_v26 = vsub.f32 1.5, %v439_v62  ;;  %v1211_v29 = vsel %vm302_vm14, %v345_v11, 0.0  ;;  %v461_v37 = vmul.f32 %v1161_v63, %v460_v22 }
 0x136   :  { %v547_v38 = vpop.f32.mrf.mxu3  ;;  %1592 = vst [vmem:[#allocation2_spill] sm:$0xff] %v1211_v29  ;;  %vm313_vm14 = vcmp.gt.f32.partialorder %v1127_v17, 0.0 }
 0x137   :  { %v441_v36 = vmul.f32 %v1165_v47, %v440_v26  ;;  %v465_v55 = vsel %vm1231_vm9, %v1161_v63, %v461_v37 }
 0x138   :  { %v1259_v46 = vsel %vm314_vm12, %v465_v55, 0.0  ;;  %vm392_vm12 = vweird.f32 %v1125_v12 }
 0x139   :  { %v445_v59 = vsel %vm1223_vm6, %v1165_v47, %v441_v36  ;;  %1600 = vst [vmem:[#allocation4_spill] sm:$0xff] %v1259_v46 }
 0x13a   :  { %v522_v61 = vpop.f32.mrf.mxu1  ;;  %v1261_v63 = vsel %vm312_vm13, %v445_v59, 0.0 }
 0x13b   :  { %v567_v44 = vmul.f32 %v522_v61, %v1211_v29  ;;  %v455_v61 = vsel %vm1236_vm10, %v1171_v8, %v451_v45  ;;  %v577_v11 = vmul.f32 %v547_v38, %v1261_v63 }
 0x13c   :  { %v1263_v5 = vsel %vm313_vm14, %v455_v61, 0.0 }
 0x13e   :  { %v549_v24 = vpop.f32.mrf.mxu3 }
 0x13f   :  { %v578_v8 = vmul.f32 %v549_v24, %v1263_v5  ;;  %v1282_v24 = vpop.eup %731 }
 0x140   :  { %v1285_v30 = vpop.eup %733  ;;  %v417_v37 = vmul.f32 %v1282_v24, %v1101_v56  ;;  %vm423_vm1 = vweird.f32 %v1282_v24 }
 0x141   :  { %v587_v22 = vpack.c.bf16 %v578_v8, %v577_v11  ;;  %v1288_v31 = vpop.eup %735  ;;  %vm433_vm3 = vweird.f32 %v1285_v30  ;;  %vm1336_vm6 = vmor %vm422_vm0, %vm423_vm1  ;;  %vm310_vm0 = vcmp.gt.f32.partialorder %v1101_v56, 0.0  ;;  %vm309_vm1 = vcmp.gt.f32.partialorder %v1133_v20, 0.0 }
 0x142   :  { %v524_v34 = vpop.f32.mrf.mxu1  ;;  %v407_v36 = vmul.f32 %v1288_v31, %v1133_v20  ;;  %v418_v49 = vmul.f32 %v1282_v24, %v417_v37  ;;  %vm413_vm5 = vweird.f32 %v1288_v31  ;;  %vm1344_vm9 = vmor %vm432_vm2, %vm433_vm3  ;;  %vm311_vm2 = vcmp.gt.f32.partialorder %v1111_v2, 0.0 }
 0x143   :  { %v568_v33 = vmul.f32 %v524_v34, %v1215_v19  ;;  %v1290_v34 = vpop.eup %737  ;;  %vm1348_vm10 = vmor %vm412_vm4, %vm413_vm5  ;;  %vm362_vm3 = vweird.f32 %v1135_v25  ;;  %vm372_vm5 = vweird.f32 %v1129_v18 }
 0x144   :  { %v397_v48 = vmul.f32 %v1290_v34, %v1113_v4  ;;  %v408_v61 = vmul.f32 %v1288_v31, %v407_v36  ;;  %v419_v11 = vmul.f32 0.5, %v418_v49  ;;  %vm403_vm8 = vweird.f32 %v1290_v34 }
 0x145   :  { %v1241_v50 = vpack.c.bf16 %v568_v33, %v567_v44  ;;  %v427_v44 = vmul.f32 %v1285_v30, %v1111_v2  ;;  %v1298_v33 = vpop.eup %739  ;;  %vm1360_vm15 = vmor %vm402_vm7, %vm403_vm8  ;;  %vm308_vm8 = vcmp.gt.f32.partialorder %v1113_v4, 0.0 }
 0x146   :  { %v552_v51 = vpop.f32.mrf.mxu3  ;;  %v1303_v39 = vpop.eup %741  ;;  %v387_v55 = vmul.f32 %v1298_v33, %v1125_v12  ;;  %v409_v37 = vmul.f32 0.5, %v408_v61  ;;  %vm393_vm13 = vweird.f32 %v1298_v33 }
 0x147   :  { %v579_v17 = vmul.f32 %v552_v51, %v1259_v46  ;;  %v1305_v45 = vpop.eup %743  ;;  %v428_v51 = vmul.f32 %v1285_v30, %v427_v44  ;;  %v377_v59 = vmul.f32 %v1303_v39, %v1123_v9  ;;  %vm383_vm14 = vweird.f32 %v1303_v39 }
 0x148   :  { %v367_v52 = vmul.f32 %v1305_v45, %v1129_v18  ;;  %vm373_vm7 = vweird.f32 %v1305_v45 }
 0x149   :  { %v429_v8 = vmul.f32 0.5, %v428_v51 }
 0x14a   :  { %v1257_v62 = vpop.f32.mrf.mxu1  ;;  %v368_v44 = vmul.f32 %v1305_v45, %v367_v52 }
 0x14b   :  { %v430_v19 = vsub.f32 1.5, %v429_v8 }
 0x14c   :  { %v369_v49 = vmul.f32 0.5, %v368_v44 }
 0x14e   :  { %v554_v47 = vpop.f32.mrf.mxu3 }
 0x14f   :  { %v580_v58 = vmul.f32 %v554_v47, %v1265_v10  ;;  %v398_v47 = vmul.f32 %v1290_v34, %v397_v48  ;;  %v420_v10 = vsub.f32 1.5, %v419_v11  ;;  %v410_v48 = vsub.f32 1.5, %v409_v37 }
 0x151   :  { %v588_v1 = vpack.c.bf16 %v580_v58, %v579_v17  ;;  %v1318_v17 = vpop.eup %745  ;;  %v388_v58 = vmul.f32 %v1298_v33, %v387_v55  ;;  %v399_v41 = vmul.f32 0.5, %v398_v47  ;;  %v421_v61 = vmul.f32 %v1282_v24, %v420_v10 }
 0x152   :  { %v1271_v14 = vpop.f32.mrf.mxu1  ;;  %v357_v36 = vmul.f32 %v1318_v17, %v1135_v25  ;;  %v411_v11 = vmul.f32 %v1288_v31, %v410_v48  ;;  %vm363_vm4 = vweird.f32 %v1318_v17 }
 0x153   :  { %589 = vmatpush.bf16.msra.mxu2 %v588_v1  ;;  %707 = vmatpush.bf16.msra.mxu3 %v588_v1  ;;  %v389_v46 = vmul.f32 0.5, %v388_v58  ;;  %v400_v55 = vsub.f32 1.5, %v399_v41  ;;  %v431_v41 = vmul.f32 %v1285_v30, %v430_v19  ;;  %v370_v58 = vsub.f32 1.5, %v369_v49 }
 0x154   :  { %v358_v51 = vmul.f32 %v1318_v17, %v357_v36  ;;  %v425_v44 = vsel %vm1336_vm6, %v1282_v24, %v421_v61  ;;  %v415_v36 = vsel %vm1348_vm10, %v1288_v31, %v411_v11  ;;  %vm1383_vm6 = vmor %vm392_vm12, %vm393_vm13  ;;  %vm307_vm10 = vcmp.gt.f32.partialorder %v1125_v12, 0.0 }
 0x155   :  { %v401_v37 = vmul.f32 %v1290_v34, %v400_v55  ;;  %v435_v48 = vsel %vm1344_vm9, %v1285_v30, %v431_v41  ;;  %v371_v31 = vmul.f32 %v1305_v45, %v370_v58  ;;  %vm1398_vm9 = vmor %vm382_vm11, %vm383_vm14  ;;  %v1404_v55 = vsel %vm309_vm1, %v415_v36, 0.0  ;;  %v1620_v36 = vld [vmem:[#allocation4_spill] sm:$0xff] }
 0x156   :  { %v359_v10 = vmul.f32 0.5, %v358_v51  ;;  %v1408_v4 = vsel %vm310_vm0, %v425_v44, 0.0  ;;  %vm1423_vm11 = vmor %vm372_vm5, %vm373_vm7  ;;  %vm306_vm12 = vcmp.gt.f32.partialorder %v1123_v9, 0.0  ;;  %vm305_vm14 = vcmp.gt.f32.partialorder %v1129_v18, 0.0 }
 0x157   :  { %590 = vmatpush.bf16.msra.mxu2 %v587_v22  ;;  %708 = vmatpush.bf16.msra.mxu3 %v587_v22  ;;  %v378_v22 = vmul.f32 %v1303_v39, %v377_v59  ;;  %v390_v59 = vsub.f32 1.5, %v389_v46  ;;  %v405_v30 = vsel %vm1360_vm15, %v1290_v34, %v401_v37  ;;  %vm1439_vm13 = vmor %vm362_vm3, %vm363_vm4  ;;  %v375_v9 = vsel %vm1423_vm11, %v1305_v45, %v371_v31  ;;  %v1622_v31 = vld [vmem:[#allocation5_spill] sm:$0xff] }
 0x158   :  { %v360_v49 = vsub.f32 1.5, %v359_v10  ;;  %v1427_v41 = vsel %vm308_vm8, %v405_v30, 0.0  ;;  %vm304_vm15 = vcmp.gt.f32.partialorder %v1135_v25, 0.0 }
 0x159   :  { %v379_v29 = vmul.f32 0.5, %v378_v22  ;;  %v391_v19 = vmul.f32 %v1298_v33, %v390_v59  ;;  %v1410_v59 = vsel %vm311_vm2, %v435_v48, 0.0  ;;  %v1459_v22 = vsel %vm305_vm14, %v375_v9, 0.0 }
 0x15a   :  { %v1273_v26 = vpop.f32.mrf.mxu1  ;;  %v361_v20 = vmul.f32 %v1318_v17, %v360_v49  ;;  %v570_v25 = vmul.f32 %v1271_v14, %v1459_v22  ;;  %v558_v14 = vpack.c.bf16 %v1060_v60, %v1019_v42 }
 0x15b   :  { %v380_v46 = vsub.f32 1.5, %v379_v29  ;;  %v395_v61 = vsel %vm1383_vm6, %v1298_v33, %v391_v19  ;;  %v564_v19 = vpack.c.bf16 %v945_v13, %v914_v0  ;;  %v184_v0 = vld [vmem:[%s1580_s5] sm:$0xff] }
 0x15c   :  { %v365_v58 = vsel %vm1439_vm13, %v1318_v17, %v361_v20  ;;  %v1493_v13 = vperm.slane %v184_v0, 0  ;;  %v1619_v29 = vld [vmem:[#allocation2_spill] sm:$0xff] }
 0x15d   :  { %v381_v2 = vmul.f32 %v1303_v39, %v380_v46  ;;  %v1443_v46 = vsel %vm307_vm10, %v395_v61, 0.0 }
 0x15f   :  { %v385_v12 = vsel %vm1398_vm9, %v1303_v39, %v381_v2  ;;  %v1621_v2 = vld [vmem:[#allocation3_spill] sm:$0xff] }
 0x162   :  { %v1278_v38 = vpop.f32.mrf.mxu1 }
 0x163   :  { %v572_v18 = vmul.f32 %v1278_v38, %v1443_v46 }
 0x16a   :  { %v1296_v32 = vpop.f32.mrf.mxu1 }
 0x16b   :  { %v573_v39 = vmul.f32 %v1296_v32, %v1427_v41  ;;  %v1463_v32 = vsel %vm304_vm15, %v365_v58, 0.0 }
 0x16c   :  { %v569_v17 = vmul.f32 %v1257_v62, %v1463_v32  ;;  %v1618_v62 = vpack.c.bf16 %v1014_v40, %v950_v15  ;;  %v561_v15 = vpack.c.bf16 %v1041_v53, %v964_v21  ;;  %v562_v40 = vpack.c.bf16 %v952_v16, %v921_v3 }
 0x16e   :  { %v583_v38 = vpack.c.bf16 %v570_v25, %v569_v17 }
 0x172   :  { %v1322_v1 = vpop.f32.mrf.mxu1 }
 0x173   :  { %v574_v33 = vmul.f32 %v1322_v1, %v1404_v55  ;;  %v1451_v1 = vsel %vm306_vm12, %v385_v12, 0.0 }
 0x174   :  { %v571_v45 = vmul.f32 %v1273_v26, %v1451_v1  ;;  %v557_v26 = vpack.c.bf16 %v1044_v54, %v1022_v43  ;;  %v559_v43 = vpack.c.bf16 %v983_v28, %v1052_v57  ;;  %v560_v54 = vpack.c.bf16 %v981_v27, %v969_v23 }
 0x175   :  { %v585_v10 = vpack.c.bf16 %v574_v33, %v573_v39 }
 0x176   :  { %v584_v37 = vpack.c.bf16 %v572_v18, %v571_v45 }
 0x17a   :  { %v542_v47 = vpop.f32.mrf.mxu1 }
 0x17b   :  { %v575_v52 = vmul.f32 %v542_v47, %v1408_v4 }
 0x182   :  { %v544_v34 = vpop.f32.mrf.mxu1 }
 0x183   :  { %v576_v11 = vmul.f32 %v544_v34, %v1410_v59 }
 0x185   :  { %v586_v47 = vpack.c.bf16 %v576_v11, %v575_v52 }
 0x187   :  { %591 = vmatpush.bf16.msra.mxu2 %v586_v47  ;;  %709 = vmatpush.bf16.msra.mxu3 %v586_v47 }
 0x18b   :  { %592 = vmatpush.bf16.msra.mxu2 %v585_v10  ;;  %710 = vmatpush.bf16.msra.mxu3 %v585_v10 }
 0x18f   :  { %593 = vmatpush.bf16.msra.mxu2 %v584_v37  ;;  %711 = vmatpush.bf16.msra.mxu3 %v584_v37 }
 0x193   :  { %594 = vmatpush.bf16.msra.mxu2 %v583_v38  ;;  %712 = vmatpush.bf16.msra.mxu3 %v583_v38 }
 0x197   :  { %595 = vmatpush.bf16.msra.mxu2 %v1241_v50  ;;  %713 = vmatpush.bf16.msra.mxu3 %v1241_v50 }
 0x19b   :  { %596 = vmatpush.bf16.msra.mxu2 %v1183_v35  ;;  %714 = vmatpush.bf16.msra.mxu3 %v1183_v35 }
 0x19e   :  { %597 = vmatmul.bf16.vlgmr.msra.gmra.mxu2 %v557_v26  ;;  %627 = vmatmul.bf16.vlgmr.msra.gmra.mxu3 %v1618_v62 }
 0x1ae   :  { %602 = vmatmul.bf16.gmra.mxu2 %v558_v14  ;;  %632 = vmatmul.bf16.gmra.mxu3 %v564_v19 }
 0x1be   :  { %607 = vmatmul.bf16.gmra.mxu2 %v559_v43 }
 0x1ce   :  { %612 = vmatmul.bf16.gmra.mxu2 %v560_v54 }
 0x1de   :  { %617 = vmatmul.bf16.gmra.mxu2 %v561_v15 }
 0x1ee   :  { %622 = vmatmul.bf16.gmra.mxu2 %v562_v40 }
 0x221   :  { %v598_v28 = vpop.f32.mrf.mxu2  ;;  %v628_v42 = vpop.f32.mrf.mxu3 }
 0x222   :  { %v638_v57 = vmul.f32 %v598_v28, %v1167_v6  ;;  %v650_v23 = vmul.f32 %v628_v42, %v1261_v63 }
 0x224   :  { %v655_v27 = vadd.f32 %v1493_v13, %v638_v57  ;;  %v667_v21 = vadd.f32 %v1493_v13, %v650_v23 }
 0x226   :  { %671 = vst [vmem:[%s1581_s6] sm:$0xff] %v655_v27 }
 0x227   :  { %683 = vst [vmem:[%s1581_s6 + $0x60] sm:$0xff] %v667_v21 }
 0x229   :  { %v600_v3 = vpop.f32.mrf.mxu2  ;;  %v630_v16 = vpop.f32.mrf.mxu3 }
 0x22a   :  { %v639_v53 = vmul.f32 %v600_v3, %v1169_v7  ;;  %v651_v60 = vmul.f32 %v630_v16, %v1263_v5 }
 0x22c   :  { %v656_v6 = vadd.f32 %v1493_v13, %v639_v53  ;;  %v668_v35 = vadd.f32 %v1493_v13, %v651_v60 }
 0x22e   :  { %672 = vst [vmem:[%s1581_s6 + $0x8] sm:$0xff] %v656_v6 }
 0x22f   :  { %684 = vst [vmem:[%s1581_s6 + $0x68] sm:$0xff] %v668_v35 }
 0x231   :  { %v603_v50 = vpop.f32.mrf.mxu2  ;;  %v633_v63 = vpop.f32.mrf.mxu3 }
 0x232   :  { %v640_v44 = vmul.f32 %v603_v50, %v1619_v29  ;;  %v652_v7 = vmul.f32 %v633_v63, %v1620_v36 }
 0x234   :  { %v657_v5 = vadd.f32 %v1493_v13, %v640_v44  ;;  %v669_v48 = vadd.f32 %v1493_v13, %v652_v7 }
 0x236   :  { %673 = vst [vmem:[%s1581_s6 + $0x10] sm:$0xff] %v657_v5 }
 0x237   :  { %685 = vst [vmem:[%s1581_s6 + $0x70] sm:$0xff] %v669_v48 }
 0x239   :  { %v605_v49 = vpop.f32.mrf.mxu2  ;;  %v635_v24 = vpop.f32.mrf.mxu3 }
 0x23a   :  { %v641_v30 = vmul.f32 %v605_v49, %v1621_v2  ;;  %v653_v51 = vmul.f32 %v635_v24, %v1622_v31 }
 0x23c   :  { %v658_v34 = vadd.f32 %v1493_v13, %v641_v30  ;;  %v670_v61 = vadd.f32 %v1493_v13, %v653_v51 }
 0x23e   :  { %674 = vst [vmem:[%s1581_s6 + $0x18] sm:$0xff] %v658_v34 }
 0x23f   :  { %686 = vst [vmem:[%s1581_s6 + $0x78] sm:$0xff] %v670_v61 }
 0x241   :  { %v608_v52 = vpop.f32.mrf.mxu2 }
 0x242   :  { %v642_v11 = vmul.f32 %v608_v52, %v1463_v32 }
 0x244   :  { %v659_v20 = vadd.f32 %v1493_v13, %v642_v11 }
 0x246   :  { %675 = vst [vmem:[%s1581_s6 + $0x20] sm:$0xff] %v659_v20 }
 0x249   :  { %v610_v56 = vpop.f32.mrf.mxu2 }
 0x24a   :  { %v643_v12 = vmul.f32 %v610_v56, %v1459_v22 }
 0x24c   :  { %v660_v33 = vadd.f32 %v1493_v13, %v643_v12 }
 0x24e   :  { %676 = vst [vmem:[%s1581_s6 + $0x28] sm:$0xff] %v660_v33 }
 0x251   :  { %v613_v47 = vpop.f32.mrf.mxu2 }
 0x252   :  { %v644_v8 = vmul.f32 %v613_v47, %v1451_v1 }
 0x254   :  { %v661_v9 = vadd.f32 %v1493_v13, %v644_v8 }
 0x256   :  { %677 = vst [vmem:[%s1581_s6 + $0x30] sm:$0xff] %v661_v9 }
 0x259   :  { %v615_v39 = vpop.f32.mrf.mxu2 }
 0x25a   :  { %v645_v58 = vmul.f32 %v615_v39, %v1443_v46 }
 0x25c   :  { %v662_v18 = vadd.f32 %v1493_v13, %v645_v58 }
 0x25e   :  { %678 = vst [vmem:[%s1581_s6 + $0x38] sm:$0xff] %v662_v18 }
 0x261   :  { %v618_v10 = vpop.f32.mrf.mxu2 }
 0x262   :  { %v646_v22 = vmul.f32 %v618_v10, %v1427_v41 }
 0x264   :  { %v663_v1 = vadd.f32 %v1493_v13, %v646_v22 }
 0x266   :  { %679 = vst [vmem:[%s1581_s6 + $0x40] sm:$0xff] %v663_v1 }
 0x269   :  { %v620_v45 = vpop.f32.mrf.mxu2 }
 0x26a   :  { %v647_v32 = vmul.f32 %v620_v45, %v1404_v55 }
 0x26c   :  { %v664_v46 = vadd.f32 %v1493_v13, %v647_v32 }
 0x26e   :  { %680 = vst [vmem:[%s1581_s6 + $0x48] sm:$0xff] %v664_v46 }
 0x271   :  { %v623_v25 = vpop.f32.mrf.mxu2 }
 0x272   :  { %v648_v37 = vmul.f32 %v623_v25, %v1408_v4 }
 0x274   :  { %v665_v41 = vadd.f32 %v1493_v13, %v648_v37 }
 0x276   :  { %681 = vst [vmem:[%s1581_s6 + $0x50] sm:$0xff] %v665_v41 }
 0x279   :  { %v625_v17 = vpop.f32.mrf.mxu2 }
 0x27a   :  { %v649_v38 = vmul.f32 %v625_v17, %v1410_v59 }
 0x27c   :  { %v666_v55 = vadd.f32 %v1493_v13, %v649_v38 }
 0x27e   :  { %682 = vst [vmem:[%s1581_s6 + $0x58] sm:$0xff] %v666_v55 }

</bundles_post_ra>
